<compile_context>
chip_gen: v6e
topology: v6e:2x2x1
jax: 0.10.0
libtpu: 0.0.40
codegen_flags: <defaults>
</compile_context>

<pallas_src>
import functools
from collections import namedtuple

import jax
import jax.numpy as jnp
from jax.experimental import pallas as pl
from jax.experimental.pallas import tpu as pltpu


LayerCfg = namedtuple("LayerCfg", ["stride", "pad", "act"])  # hashable/static


def _round_up(x, m):
    return (x + m - 1) // m * m


# ----------------------------------------------------------------------------
# Pallas kernel: single-shot fused matmul + shift + activation.
#   out = act(A @ B + shift), A:(tm,K) bf16, B:(K,N) bf16, shift:(1,N) f32.
# K and N are full-dim blocks, so there is no reduction grid axis.
# ----------------------------------------------------------------------------
def _matmul_shift_act_kernel(a_ref, b_ref, shift_ref, o_ref, *, act):
    y = jnp.dot(a_ref[...], b_ref[...], preferred_element_type=jnp.float32)
    y = y + shift_ref[...]
    if act == "relu":
        y = jnp.maximum(y, 0.0)
    elif act == "tanh":
        y = jnp.tanh(y)
    o_ref[...] = y.astype(o_ref.dtype)


def matmul_shift_act(a, b, shift, act, *, tm_max=512):
    """act(a @ b + shift) with only the M axis tiled."""
    M, K = a.shape
    K2, N = b.shape
    assert K == K2

    # Pick tm: big tiles for big M, but keep >=2 M-blocks when possible so
    # both TensorCores (v7x megacore) have work; tiny layers get one block.
    Mp8 = _round_up(M, 8)
    if Mp8 < 16:
        tm = Mp8
    elif Mp8 <= 2 * tm_max:
        tm = _round_up(Mp8 // 2, 8)
    else:
        tm = tm_max
    Mp = _round_up(M, tm)

    a_p = a if Mp == M else jnp.pad(a, ((0, Mp - M), (0, 0)))
    shift2d = shift.astype(jnp.float32).reshape(1, N)

    out = pl.pallas_call(
        functools.partial(_matmul_shift_act_kernel, act=act),
        out_shape=jax.ShapeDtypeStruct((Mp, N), jnp.float32),
        grid_spec=pltpu.PrefetchScalarGridSpec(
            num_scalar_prefetch=0,
            grid=(Mp // tm,),
            in_specs=[
                pl.BlockSpec((tm, K), lambda i: (i, 0)),   # A tile
                pl.BlockSpec((K, N), lambda i: (0, 0)),    # full weight
                pl.BlockSpec((1, N), lambda i: (0, 0)),    # BN shift
            ],
            out_specs=pl.BlockSpec((tm, N), lambda i: (i, 0)),
        ),
        compiler_params=pltpu.CompilerParams(
            dimension_semantics=("parallel",)),
    )(a_p, b, shift2d)

    return out if Mp == M else out[:M]


# ----------------------------------------------------------------------------
# Conv + folded-BN + activation layer (NHWC in/out).
# ----------------------------------------------------------------------------
def conv_bn_act(x_nhwc, w_oihw, scale, shift, *, stride, pad, act):
    c_out, c_in, kh, kw = w_oihw.shape
    n = x_nhwc.shape[0]

    # Extract patches in bf16; feature order is (c_in, kh, kw).
    x_bf16 = x_nhwc.astype(jnp.bfloat16)
    patches = jax.lax.conv_general_dilated_patches(
        x_bf16, (kh, kw), (stride, stride),
        ((pad, pad), (pad, pad)),
        dimension_numbers=("NHWC", "HWIO", "NHWC"))
    _, ho, wo, kdim = patches.shape
    assert kdim == c_in * kh * kw
    patches = patches.reshape(n * ho * wo, kdim)

    # Fold BN scale into weight columns; (O, I*kh*kw)^T matches patch order.
    wmat = (w_oihw.reshape(c_out, c_in * kh * kw)
            * scale[:, None]).T.astype(jnp.bfloat16)

    out = matmul_shift_act(patches, wmat, shift, act)
    return out.reshape(n, ho, wo, c_out)


# ----------------------------------------------------------------------------
# Encoder parameters (arrays) + static layer configs (kept out of jit tracing).
# ----------------------------------------------------------------------------
def make_encoder_params(key, in_ch=3, num_z_ch=8, conv_dim=8):
    cfgs = []
    cfgs.append(dict(cin=in_ch, cout=conv_dim, k=7, stride=1, pad=3, act="relu"))
    curr = conv_dim
    for _ in range(3):                                   # up1..up3
        cfgs.append(dict(cin=curr, cout=curr * 2, k=4, stride=2, pad=1,
                         act="relu"))
        curr *= 2
    for _ in range(3):                                   # down
        cfgs.append(dict(cin=curr, cout=curr, k=4, stride=2, pad=1, act="relu"))
    cfgs.append(dict(cin=curr, cout=num_z_ch, k=4, stride=2, pad=1, act="tanh"))

    weights = []
    configs = []
    for i, cfg in enumerate(cfgs):
        kw_, kb_, kg_ = jax.random.split(jax.random.fold_in(key, i), 3)
        cin, cout, k = cfg["cin"], cfg["cout"], cfg["k"]
        w = jax.random.normal(kw_, (cout, cin, k, k), jnp.float32) * 0.05
        gamma = 1.0 + 0.1 * jax.random.normal(kg_, (cout,), jnp.float32)
        beta = 0.1 * jax.random.normal(kb_, (cout,), jnp.float32)
        running_mean = jnp.zeros((cout,), jnp.float32)
        running_var = jnp.ones((cout,), jnp.float32)
        eps = 1e-5
        scale = gamma / jnp.sqrt(running_var + eps)      # eval-mode BN fold
        shift = beta - running_mean * scale
        weights.append(dict(w=w, scale=scale, shift=shift))
        configs.append(LayerCfg(stride=cfg["stride"], pad=cfg["pad"],
                                act=cfg["act"]))
    return weights, tuple(configs)


@functools.partial(jax.jit, static_argnums=(2,))
def encoder_forward(x_nchw, weights, configs):
    """Matches Encoder.forward(x, getFeat=False): returns (N, num_z_ch*Ho*Wo)."""
    x = jnp.transpose(x_nchw, (0, 2, 3, 1))              # NCHW -> NHWC
    for w, cfg in zip(weights, configs):
        x = conv_bn_act(x, w["w"], w["scale"], w["shift"],
                        stride=cfg.stride, pad=cfg.pad, act=cfg.act)
    x_out = jnp.transpose(x, (0, 3, 1, 2))               # NHWC -> NCHW
    return x_out.reshape(x_out.shape[0], -1)


# Independent pure-JAX reference (real conv, NCHW) with the same bf16 inputs.
def _ref_forward(x_nchw, weights, configs):
    x = x_nchw
    for w, cfg in zip(weights, configs):
        wf = (w["w"] * w["scale"][:, None, None, None]).astype(jnp.bfloat16)
        y = jax.lax.conv_general_dilated(
            x.astype(jnp.bfloat16), wf,
            window_strides=(cfg.stride, cfg.stride),
            padding=((cfg.pad, cfg.pad), (cfg.pad, cfg.pad)),
            dimension_numbers=("NCHW", "OIHW", "NCHW"),
            preferred_element_type=jnp.float32)
        y = y + w["shift"][None, :, None, None]
        x = jnp.maximum(y, 0.0) if cfg.act == "relu" else jnp.tanh(y)
    return x.reshape(x.shape[0], -1)


if __name__ == "__main__":
    key = jax.random.PRNGKey(0)
    k_x, k_p = jax.random.split(key)

    # 7 stride-2 convs => spatial 128 -> 1 at the output.
    batch, in_ch, spatial = 2, 3, 128
    num_z_ch, conv_dim = 8, 8

    x = jax.random.normal(k_x, (batch, in_ch, spatial, spatial), jnp.float32)
    weights, configs = make_encoder_params(k_p, in_ch=in_ch,
                                           num_z_ch=num_z_ch,
                                           conv_dim=conv_dim)

    out = jax.block_until_ready(encoder_forward(x, weights, configs))
    assert out.shape == (batch, num_z_ch), out.shape

    ref = jax.block_until_ready(_ref_forward(x, weights, configs))
    assert jnp.allclose(out, ref, rtol=2e-2, atol=2e-2), (
        float(jnp.max(jnp.abs(out - ref))))

    print("KERNEL_OK")
</pallas_src>

<mosaic_0001>
module attributes {stable_mosaic.version = 11 : i64} {
  func.func @_matmul_shift_act_kernel(%arg0: i32, %arg1: memref<512x147xbf16, #tpu.memory_space<vmem>>, %arg2: memref<147x8xbf16, #tpu.memory_space<vmem>>, %arg3: memref<1x8xf32, #tpu.memory_space<vmem>>, %arg4: memref<512x8xf32, #tpu.memory_space<vmem>>) attributes {dimension_semantics = [#tpu.dimension_semantics<parallel>], iteration_bounds = array<i64: 64>, scalar_prefetch = 0 : i64, scratch_operands = 0 : i64, tpu.core_type = #tpu.core_type<tc>, window_params = [{transform_indices = @transform_0, window_bounds = array<i64: 512, 147>}, {pipeline_mode = #tpu.pipeline_mode<synchronous>, transform_indices = @transform_1, window_bounds = array<i64: 147, 8>}, {pipeline_mode = #tpu.pipeline_mode<synchronous>, transform_indices = @transform_2, window_bounds = array<i64: 1, 8>}, {transform_indices = @transform_3, window_bounds = array<i64: 512, 8>}]} {
    %c0 = arith.constant 0 : index
    %c0_0 = arith.constant 0 : index
    %0 = vector.load %arg1[%c0, %c0_0] : memref<512x147xbf16, #tpu.memory_space<vmem>>, vector<512x147xbf16>
    %c0_1 = arith.constant 0 : index
    %c0_2 = arith.constant 0 : index
    %1 = vector.load %arg2[%c0_1, %c0_2] : memref<147x8xbf16, #tpu.memory_space<vmem>>, vector<147x8xbf16>
    %cst = arith.constant dense<0.000000e+00> : vector<512x8xf32>
    %2 = tpu.matmul %0, %1, %cst {dimension_numbers = #tpu.dot_dimension_numbers<[1], [0], [0], [1], [0, 0, 1, 1], [], []>} : vector<512x147xbf16>, vector<147x8xbf16>, vector<512x8xf32> -> vector<512x8xf32>
    %c0_3 = arith.constant 0 : index
    %c0_4 = arith.constant 0 : index
    %3 = vector.load %arg3[%c0_3, %c0_4] : memref<1x8xf32, #tpu.memory_space<vmem>>, vector<1x8xf32>
    %4 = vector.broadcast %3 : vector<1x8xf32> to vector<512x8xf32>
    %5 = arith.addf %2, %4 : vector<512x8xf32>
    %cst_5 = arith.constant 0.000000e+00 : f32
    %6 = vector.broadcast %cst_5 : f32 to vector<512x8xf32>
    %7 = arith.maximumf %5, %6 : vector<512x8xf32>
    %c0_6 = arith.constant 0 : index
    %c0_7 = arith.constant 0 : index
    %8 = vector.load %arg4[%c0_6, %c0_7] : memref<512x8xf32, #tpu.memory_space<vmem>>, vector<512x8xf32>
    tpu.vector_store %arg4[%c0_6, %c0_7], %7 {strides = array<i32>} : memref<512x8xf32, #tpu.memory_space<vmem>>, vector<512x8xf32>,
    return
  }
  func.func @transform_0(%arg0: i32) -> (i32, i32) {
    %c0_i32 = arith.constant 0 : i32
    %c0_i32_0 = arith.constant 0 : i32
    return %arg0, %c0_i32 : i32, i32
  }
  func.func @transform_1(%arg0: i32) -> (i32, i32) {
    %c0_i32 = arith.constant 0 : i32
    %c0_i32_0 = arith.constant 0 : i32
    %c0_i32_1 = arith.constant 0 : i32
    return %c0_i32, %c0_i32_0 : i32, i32
  }
  func.func @transform_2(%arg0: i32) -> (i32, i32) {
    %c0_i32 = arith.constant 0 : i32
    %c0_i32_0 = arith.constant 0 : i32
    %c0_i32_1 = arith.constant 0 : i32
    return %c0_i32, %c0_i32_0 : i32, i32
  }
  func.func @transform_3(%arg0: i32) -> (i32, i32) {
    %c0_i32 = arith.constant 0 : i32
    %c0_i32_0 = arith.constant 0 : i32
    return %arg0, %c0_i32 : i32, i32
  }
}

module attributes {stable_mosaic.version = 11 : i64} {
  func.func @_matmul_shift_act_kernel(%arg0: i32, %arg1: memref<512x128xbf16, #tpu.memory_space<vmem>>, %arg2: memref<128x16xbf16, #tpu.memory_space<vmem>>, %arg3: memref<1x16xf32, #tpu.memory_space<vmem>>, %arg4: memref<512x16xf32, #tpu.memory_space<vmem>>) attributes {dimension_semantics = [#tpu.dimension_semantics<parallel>], iteration_bounds = array<i64: 16>, scalar_prefetch = 0 : i64, scratch_operands = 0 : i64, tpu.core_type = #tpu.core_type<tc>, window_params = [{transform_indices = @transform_0, window_bounds = array<i64: 512, 128>}, {pipeline_mode = #tpu.pipeline_mode<synchronous>, transform_indices = @transform_1, window_bounds = array<i64: 128, 16>}, {pipeline_mode = #tpu.pipeline_mode<synchronous>, transform_indices = @transform_2, window_bounds = array<i64: 1, 16>}, {transform_indices = @transform_3, window_bounds = array<i64: 512, 16>}]} {
    %c0 = arith.constant 0 : index
    %c0_0 = arith.constant 0 : index
    %0 = vector.load %arg1[%c0, %c0_0] : memref<512x128xbf16, #tpu.memory_space<vmem>>, vector<512x128xbf16>
    %c0_1 = arith.constant 0 : index
    %c0_2 = arith.constant 0 : index
    %1 = vector.load %arg2[%c0_1, %c0_2] : memref<128x16xbf16, #tpu.memory_space<vmem>>, vector<128x16xbf16>
    %cst = arith.constant dense<0.000000e+00> : vector<512x16xf32>
    %2 = tpu.matmul %0, %1, %cst {dimension_numbers = #tpu.dot_dimension_numbers<[1], [0], [0], [1], [0, 0, 1, 1], [], []>} : vector<512x128xbf16>, vector<128x16xbf16>, vector<512x16xf32> -> vector<512x16xf32>
    %c0_3 = arith.constant 0 : index
    %c0_4 = arith.constant 0 : index
    %3 = vector.load %arg3[%c0_3, %c0_4] : memref<1x16xf32, #tpu.memory_space<vmem>>, vector<1x16xf32>
    %4 = vector.broadcast %3 : vector<1x16xf32> to vector<512x16xf32>
    %5 = arith.addf %2, %4 : vector<512x16xf32>
    %cst_5 = arith.constant 0.000000e+00 : f32
    %6 = vector.broadcast %cst_5 : f32 to vector<512x16xf32>
    %7 = arith.maximumf %5, %6 : vector<512x16xf32>
    %c0_6 = arith.constant 0 : index
    %c0_7 = arith.constant 0 : index
    %8 = vector.load %arg4[%c0_6, %c0_7] : memref<512x16xf32, #tpu.memory_space<vmem>>, vector<512x16xf32>
    tpu.vector_store %arg4[%c0_6, %c0_7], %7 {strides = array<i32>} : memref<512x16xf32, #tpu.memory_space<vmem>>, vector<512x16xf32>,
    return
  }
  func.func @transform_0(%arg0: i32) -> (i32, i32) {
    %c0_i32 = arith.constant 0 : i32
    %c0_i32_0 = arith.constant 0 : i32
    return %arg0, %c0_i32 : i32, i32
  }
  func.func @transform_1(%arg0: i32) -> (i32, i32) {
    %c0_i32 = arith.constant 0 : i32
    %c0_i32_0 = arith.constant 0 : i32
    %c0_i32_1 = arith.constant 0 : i32
    return %c0_i32, %c0_i32_0 : i32, i32
  }
  func.func @transform_2(%arg0: i32) -> (i32, i32) {
    %c0_i32 = arith.constant 0 : i32
    %c0_i32_0 = arith.constant 0 : i32
    %c0_i32_1 = arith.constant 0 : i32
    return %c0_i32, %c0_i32_0 : i32, i32
  }
  func.func @transform_3(%arg0: i32) -> (i32, i32) {
    %c0_i32 = arith.constant 0 : i32
    %c0_i32_0 = arith.constant 0 : i32
    return %arg0, %c0_i32 : i32, i32
  }
}

module attributes {stable_mosaic.version = 11 : i64} {
  func.func @_matmul_shift_act_kernel(%arg0: i32, %arg1: memref<512x256xbf16, #tpu.memory_space<vmem>>, %arg2: memref<256x32xbf16, #tpu.memory_space<vmem>>, %arg3: memref<1x32xf32, #tpu.memory_space<vmem>>, %arg4: memref<512x32xf32, #tpu.memory_space<vmem>>) attributes {dimension_semantics = [#tpu.dimension_semantics<parallel>], iteration_bounds = array<i64: 4>, scalar_prefetch = 0 : i64, scratch_operands = 0 : i64, tpu.core_type = #tpu.core_type<tc>, window_params = [{transform_indices = @transform_0, window_bounds = array<i64: 512, 256>}, {pipeline_mode = #tpu.pipeline_mode<synchronous>, transform_indices = @transform_1, window_bounds = array<i64: 256, 32>}, {pipeline_mode = #tpu.pipeline_mode<synchronous>, transform_indices = @transform_2, window_bounds = array<i64: 1, 32>}, {transform_indices = @transform_3, window_bounds = array<i64: 512, 32>}]} {
    %c0 = arith.constant 0 : index
    %c0_0 = arith.constant 0 : index
    %0 = vector.load %arg1[%c0, %c0_0] : memref<512x256xbf16, #tpu.memory_space<vmem>>, vector<512x256xbf16>
    %c0_1 = arith.constant 0 : index
    %c0_2 = arith.constant 0 : index
    %1 = vector.load %arg2[%c0_1, %c0_2] : memref<256x32xbf16, #tpu.memory_space<vmem>>, vector<256x32xbf16>
    %cst = arith.constant dense<0.000000e+00> : vector<512x32xf32>
    %2 = tpu.matmul %0, %1, %cst {dimension_numbers = #tpu.dot_dimension_numbers<[1], [0], [0], [1], [0, 0, 1, 1], [], []>} : vector<512x256xbf16>, vector<256x32xbf16>, vector<512x32xf32> -> vector<512x32xf32>
    %c0_3 = arith.constant 0 : index
    %c0_4 = arith.constant 0 : index
    %3 = vector.load %arg3[%c0_3, %c0_4] : memref<1x32xf32, #tpu.memory_space<vmem>>, vector<1x32xf32>
    %4 = vector.broadcast %3 : vector<1x32xf32> to vector<512x32xf32>
    %5 = arith.addf %2, %4 : vector<512x32xf32>
    %cst_5 = arith.constant 0.000000e+00 : f32
    %6 = vector.broadcast %cst_5 : f32 to vector<512x32xf32>
    %7 = arith.maximumf %5, %6 : vector<512x32xf32>
    %c0_6 = arith.constant 0 : index
    %c0_7 = arith.constant 0 : index
    %8 = vector.load %arg4[%c0_6, %c0_7] : memref<512x32xf32, #tpu.memory_space<vmem>>, vector<512x32xf32>
    tpu.vector_store %arg4[%c0_6, %c0_7], %7 {strides = array<i32>} : memref<512x32xf32, #tpu.memory_space<vmem>>, vector<512x32xf32>,
    return
  }
  func.func @transform_0(%arg0: i32) -> (i32, i32) {
    %c0_i32 = arith.constant 0 : i32
    %c0_i32_0 = arith.constant 0 : i32
    return %arg0, %c0_i32 : i32, i32
  }
  func.func @transform_1(%arg0: i32) -> (i32, i32) {
    %c0_i32 = arith.constant 0 : i32
    %c0_i32_0 = arith.constant 0 : i32
    %c0_i32_1 = arith.constant 0 : i32
    return %c0_i32, %c0_i32_0 : i32, i32
  }
  func.func @transform_2(%arg0: i32) -> (i32, i32) {
    %c0_i32 = arith.constant 0 : i32
    %c0_i32_0 = arith.constant 0 : i32
    %c0_i32_1 = arith.constant 0 : i32
    return %c0_i32, %c0_i32_0 : i32, i32
  }
  func.func @transform_3(%arg0: i32) -> (i32, i32) {
    %c0_i32 = arith.constant 0 : i32
    %c0_i32_0 = arith.constant 0 : i32
    return %arg0, %c0_i32 : i32, i32
  }
}

module attributes {stable_mosaic.version = 11 : i64} {
  func.func @_matmul_shift_act_kernel(%arg0: i32, %arg1: memref<256x512xbf16, #tpu.memory_space<vmem>>, %arg2: memref<512x64xbf16, #tpu.memory_space<vmem>>, %arg3: memref<1x64xf32, #tpu.memory_space<vmem>>, %arg4: memref<256x64xf32, #tpu.memory_space<vmem>>) attributes {dimension_semantics = [#tpu.dimension_semantics<parallel>], iteration_bounds = array<i64: 2>, scalar_prefetch = 0 : i64, scratch_operands = 0 : i64, tpu.core_type = #tpu.core_type<tc>, window_params = [{transform_indices = @transform_0, window_bounds = array<i64: 256, 512>}, {pipeline_mode = #tpu.pipeline_mode<synchronous>, transform_indices = @transform_1, window_bounds = array<i64: 512, 64>}, {pipeline_mode = #tpu.pipeline_mode<synchronous>, transform_indices = @transform_2, window_bounds = array<i64: 1, 64>}, {transform_indices = @transform_3, window_bounds = array<i64: 256, 64>}]} {
    %c0 = arith.constant 0 : index
    %c0_0 = arith.constant 0 : index
    %0 = vector.load %arg1[%c0, %c0_0] : memref<256x512xbf16, #tpu.memory_space<vmem>>, vector<256x512xbf16>
    %c0_1 = arith.constant 0 : index
    %c0_2 = arith.constant 0 : index
    %1 = vector.load %arg2[%c0_1, %c0_2] : memref<512x64xbf16, #tpu.memory_space<vmem>>, vector<512x64xbf16>
    %cst = arith.constant dense<0.000000e+00> : vector<256x64xf32>
    %2 = tpu.matmul %0, %1, %cst {dimension_numbers = #tpu.dot_dimension_numbers<[1], [0], [0], [1], [0, 0, 1, 1], [], []>} : vector<256x512xbf16>, vector<512x64xbf16>, vector<256x64xf32> -> vector<256x64xf32>
    %c0_3 = arith.constant 0 : index
    %c0_4 = arith.constant 0 : index
    %3 = vector.load %arg3[%c0_3, %c0_4] : memref<1x64xf32, #tpu.memory_space<vmem>>, vector<1x64xf32>
    %4 = vector.broadcast %3 : vector<1x64xf32> to vector<256x64xf32>
    %5 = arith.addf %2, %4 : vector<256x64xf32>
    %cst_5 = arith.constant 0.000000e+00 : f32
    %6 = vector.broadcast %cst_5 : f32 to vector<256x64xf32>
    %7 = arith.maximumf %5, %6 : vector<256x64xf32>
    %c0_6 = arith.constant 0 : index
    %c0_7 = arith.constant 0 : index
    %8 = vector.load %arg4[%c0_6, %c0_7] : memref<256x64xf32, #tpu.memory_space<vmem>>, vector<256x64xf32>
    tpu.vector_store %arg4[%c0_6, %c0_7], %7 {strides = array<i32>} : memref<256x64xf32, #tpu.memory_space<vmem>>, vector<256x64xf32>,
    return
  }
  func.func @transform_0(%arg0: i32) -> (i32, i32) {
    %c0_i32 = arith.constant 0 : i32
    %c0_i32_0 = arith.constant 0 : i32
    return %arg0, %c0_i32 : i32, i32
  }
  func.func @transform_1(%arg0: i32) -> (i32, i32) {
    %c0_i32 = arith.constant 0 : i32
    %c0_i32_0 = arith.constant 0 : i32
    %c0_i32_1 = arith.constant 0 : i32
    return %c0_i32, %c0_i32_0 : i32, i32
  }
  func.func @transform_2(%arg0: i32) -> (i32, i32) {
    %c0_i32 = arith.constant 0 : i32
    %c0_i32_0 = arith.constant 0 : i32
    %c0_i32_1 = arith.constant 0 : i32
    return %c0_i32, %c0_i32_0 : i32, i32
  }
  func.func @transform_3(%arg0: i32) -> (i32, i32) {
    %c0_i32 = arith.constant 0 : i32
    %c0_i32_0 = arith.constant 0 : i32
    return %arg0, %c0_i32 : i32, i32
  }
}

module attributes {stable_mosaic.version = 11 : i64} {
  func.func @_matmul_shift_act_kernel(%arg0: i32, %arg1: memref<64x1024xbf16, #tpu.memory_space<vmem>>, %arg2: memref<1024x64xbf16, #tpu.memory_space<vmem>>, %arg3: memref<1x64xf32, #tpu.memory_space<vmem>>, %arg4: memref<64x64xf32, #tpu.memory_space<vmem>>) attributes {dimension_semantics = [#tpu.dimension_semantics<parallel>], iteration_bounds = array<i64: 2>, scalar_prefetch = 0 : i64, scratch_operands = 0 : i64, tpu.core_type = #tpu.core_type<tc>, window_params = [{transform_indices = @transform_0, window_bounds = array<i64: 64, 1024>}, {pipeline_mode = #tpu.pipeline_mode<synchronous>, transform_indices = @transform_1, window_bounds = array<i64: 1024, 64>}, {pipeline_mode = #tpu.pipeline_mode<synchronous>, transform_indices = @transform_2, window_bounds = array<i64: 1, 64>}, {transform_indices = @transform_3, window_bounds = array<i64: 64, 64>}]} {
    %c0 = arith.constant 0 : index
    %c0_0 = arith.constant 0 : index
    %0 = vector.load %arg1[%c0, %c0_0] : memref<64x1024xbf16, #tpu.memory_space<vmem>>, vector<64x1024xbf16>
    %c0_1 = arith.constant 0 : index
    %c0_2 = arith.constant 0 : index
    %1 = vector.load %arg2[%c0_1, %c0_2] : memref<1024x64xbf16, #tpu.memory_space<vmem>>, vector<1024x64xbf16>
    %cst = arith.constant dense<0.000000e+00> : vector<64x64xf32>
    %2 = tpu.matmul %0, %1, %cst {dimension_numbers = #tpu.dot_dimension_numbers<[1], [0], [0], [1], [0, 0, 1, 1], [], []>} : vector<64x1024xbf16>, vector<1024x64xbf16>, vector<64x64xf32> -> vector<64x64xf32>
    %c0_3 = arith.constant 0 : index
    %c0_4 = arith.constant 0 : index
    %3 = vector.load %arg3[%c0_3, %c0_4] : memref<1x64xf32, #tpu.memory_space<vmem>>, vector<1x64xf32>
    %4 = vector.broadcast %3 : vector<1x64xf32> to vector<64x64xf32>
    %5 = arith.addf %2, %4 : vector<64x64xf32>
    %cst_5 = arith.constant 0.000000e+00 : f32
    %6 = vector.broadcast %cst_5 : f32 to vector<64x64xf32>
    %7 = arith.maximumf %5, %6 : vector<64x64xf32>
    %c0_6 = arith.constant 0 : index
    %c0_7 = arith.constant 0 : index
    %8 = vector.load %arg4[%c0_6, %c0_7] : memref<64x64xf32, #tpu.memory_space<vmem>>, vector<64x64xf32>
    tpu.vector_store %arg4[%c0_6, %c0_7], %7 {strides = array<i32>} : memref<64x64xf32, #tpu.memory_space<vmem>>, vector<64x64xf32>,
    return
  }
  func.func @transform_0(%arg0: i32) -> (i32, i32) {
    %c0_i32 = arith.constant 0 : i32
    %c0_i32_0 = arith.constant 0 : i32
    return %arg0, %c0_i32 : i32, i32
  }
  func.func @transform_1(%arg0: i32) -> (i32, i32) {
    %c0_i32 = arith.constant 0 : i32
    %c0_i32_0 = arith.constant 0 : i32
    %c0_i32_1 = arith.constant 0 : i32
    return %c0_i32, %c0_i32_0 : i32, i32
  }
  func.func @transform_2(%arg0: i32) -> (i32, i32) {
    %c0_i32 = arith.constant 0 : i32
    %c0_i32_0 = arith.constant 0 : i32
    %c0_i32_1 = arith.constant 0 : i32
    return %c0_i32, %c0_i32_0 : i32, i32
  }
  func.func @transform_3(%arg0: i32) -> (i32, i32) {
    %c0_i32 = arith.constant 0 : i32
    %c0_i32_0 = arith.constant 0 : i32
    return %arg0, %c0_i32 : i32, i32
  }
}

module attributes {stable_mosaic.version = 11 : i64} {
  func.func @_matmul_shift_act_kernel(%arg0: i32, %arg1: memref<16x1024xbf16, #tpu.memory_space<vmem>>, %arg2: memref<1024x64xbf16, #tpu.memory_space<vmem>>, %arg3: memref<1x64xf32, #tpu.memory_space<vmem>>, %arg4: memref<16x64xf32, #tpu.memory_space<vmem>>) attributes {dimension_semantics = [#tpu.dimension_semantics<parallel>], iteration_bounds = array<i64: 2>, scalar_prefetch = 0 : i64, scratch_operands = 0 : i64, tpu.core_type = #tpu.core_type<tc>, window_params = [{transform_indices = @transform_0, window_bounds = array<i64: 16, 1024>}, {pipeline_mode = #tpu.pipeline_mode<synchronous>, transform_indices = @transform_1, window_bounds = array<i64: 1024, 64>}, {pipeline_mode = #tpu.pipeline_mode<synchronous>, transform_indices = @transform_2, window_bounds = array<i64: 1, 64>}, {transform_indices = @transform_3, window_bounds = array<i64: 16, 64>}]} {
    %c0 = arith.constant 0 : index
    %c0_0 = arith.constant 0 : index
    %0 = vector.load %arg1[%c0, %c0_0] : memref<16x1024xbf16, #tpu.memory_space<vmem>>, vector<16x1024xbf16>
    %c0_1 = arith.constant 0 : index
    %c0_2 = arith.constant 0 : index
    %1 = vector.load %arg2[%c0_1, %c0_2] : memref<1024x64xbf16, #tpu.memory_space<vmem>>, vector<1024x64xbf16>
    %cst = arith.constant dense<0.000000e+00> : vector<16x64xf32>
    %2 = tpu.matmul %0, %1, %cst {dimension_numbers = #tpu.dot_dimension_numbers<[1], [0], [0], [1], [0, 0, 1, 1], [], []>} : vector<16x1024xbf16>, vector<1024x64xbf16>, vector<16x64xf32> -> vector<16x64xf32>
    %c0_3 = arith.constant 0 : index
    %c0_4 = arith.constant 0 : index
    %3 = vector.load %arg3[%c0_3, %c0_4] : memref<1x64xf32, #tpu.memory_space<vmem>>, vector<1x64xf32>
    %4 = vector.broadcast %3 : vector<1x64xf32> to vector<16x64xf32>
    %5 = arith.addf %2, %4 : vector<16x64xf32>
    %cst_5 = arith.constant 0.000000e+00 : f32
    %6 = vector.broadcast %cst_5 : f32 to vector<16x64xf32>
    %7 = arith.maximumf %5, %6 : vector<16x64xf32>
    %c0_6 = arith.constant 0 : index
    %c0_7 = arith.constant 0 : index
    %8 = vector.load %arg4[%c0_6, %c0_7] : memref<16x64xf32, #tpu.memory_space<vmem>>, vector<16x64xf32>
    tpu.vector_store %arg4[%c0_6, %c0_7], %7 {strides = array<i32>} : memref<16x64xf32, #tpu.memory_space<vmem>>, vector<16x64xf32>,
    return
  }
  func.func @transform_0(%arg0: i32) -> (i32, i32) {
    %c0_i32 = arith.constant 0 : i32
    %c0_i32_0 = arith.constant 0 : i32
    return %arg0, %c0_i32 : i32, i32
  }
  func.func @transform_1(%arg0: i32) -> (i32, i32) {
    %c0_i32 = arith.constant 0 : i32
    %c0_i32_0 = arith.constant 0 : i32
    %c0_i32_1 = arith.constant 0 : i32
    return %c0_i32, %c0_i32_0 : i32, i32
  }
  func.func @transform_2(%arg0: i32) -> (i32, i32) {
    %c0_i32 = arith.constant 0 : i32
    %c0_i32_0 = arith.constant 0 : i32
    %c0_i32_1 = arith.constant 0 : i32
    return %c0_i32, %c0_i32_0 : i32, i32
  }
  func.func @transform_3(%arg0: i32) -> (i32, i32) {
    %c0_i32 = arith.constant 0 : i32
    %c0_i32_0 = arith.constant 0 : i32
    return %arg0, %c0_i32 : i32, i32
  }
}

module attributes {stable_mosaic.version = 11 : i64} {
  func.func @_matmul_shift_act_kernel(%arg0: i32, %arg1: memref<8x1024xbf16, #tpu.memory_space<vmem>>, %arg2: memref<1024x64xbf16, #tpu.memory_space<vmem>>, %arg3: memref<1x64xf32, #tpu.memory_space<vmem>>, %arg4: memref<8x64xf32, #tpu.memory_space<vmem>>) attributes {dimension_semantics = [#tpu.dimension_semantics<parallel>], iteration_bounds = array<i64: 1>, scalar_prefetch = 0 : i64, scratch_operands = 0 : i64, tpu.core_type = #tpu.core_type<tc>, window_params = [{transform_indices = @transform_0, window_bounds = array<i64: 8, 1024>}, {pipeline_mode = #tpu.pipeline_mode<synchronous>, transform_indices = @transform_1, window_bounds = array<i64: 1024, 64>}, {pipeline_mode = #tpu.pipeline_mode<synchronous>, transform_indices = @transform_2, window_bounds = array<i64: 1, 64>}, {transform_indices = @transform_3, window_bounds = array<i64: 8, 64>}]} {
    %c0 = arith.constant 0 : index
    %c0_0 = arith.constant 0 : index
    %0 = vector.load %arg1[%c0, %c0_0] : memref<8x1024xbf16, #tpu.memory_space<vmem>>, vector<8x1024xbf16>
    %c0_1 = arith.constant 0 : index
    %c0_2 = arith.constant 0 : index
    %1 = vector.load %arg2[%c0_1, %c0_2] : memref<1024x64xbf16, #tpu.memory_space<vmem>>, vector<1024x64xbf16>
    %cst = arith.constant dense<0.000000e+00> : vector<8x64xf32>
    %2 = tpu.matmul %0, %1, %cst {dimension_numbers = #tpu.dot_dimension_numbers<[1], [0], [0], [1], [0, 0, 1, 1], [], []>} : vector<8x1024xbf16>, vector<1024x64xbf16>, vector<8x64xf32> -> vector<8x64xf32>
    %c0_3 = arith.constant 0 : index
    %c0_4 = arith.constant 0 : index
    %3 = vector.load %arg3[%c0_3, %c0_4] : memref<1x64xf32, #tpu.memory_space<vmem>>, vector<1x64xf32>
    %4 = vector.broadcast %3 : vector<1x64xf32> to vector<8x64xf32>
    %5 = arith.addf %2, %4 : vector<8x64xf32>
    %cst_5 = arith.constant 0.000000e+00 : f32
    %6 = vector.broadcast %cst_5 : f32 to vector<8x64xf32>
    %7 = arith.maximumf %5, %6 : vector<8x64xf32>
    %c0_6 = arith.constant 0 : index
    %c0_7 = arith.constant 0 : index
    %8 = vector.load %arg4[%c0_6, %c0_7] : memref<8x64xf32, #tpu.memory_space<vmem>>, vector<8x64xf32>
    tpu.vector_store %arg4[%c0_6, %c0_7], %7 {strides = array<i32>} : memref<8x64xf32, #tpu.memory_space<vmem>>, vector<8x64xf32>,
    return
  }
  func.func @transform_0(%arg0: i32) -> (i32, i32) {
    %c0_i32 = arith.constant 0 : i32
    %c0_i32_0 = arith.constant 0 : i32
    return %arg0, %c0_i32 : i32, i32
  }
  func.func @transform_1(%arg0: i32) -> (i32, i32) {
    %c0_i32 = arith.constant 0 : i32
    %c0_i32_0 = arith.constant 0 : i32
    %c0_i32_1 = arith.constant 0 : i32
    return %c0_i32, %c0_i32_0 : i32, i32
  }
  func.func @transform_2(%arg0: i32) -> (i32, i32) {
    %c0_i32 = arith.constant 0 : i32
    %c0_i32_0 = arith.constant 0 : i32
    %c0_i32_1 = arith.constant 0 : i32
    return %c0_i32, %c0_i32_0 : i32, i32
  }
  func.func @transform_3(%arg0: i32) -> (i32, i32) {
    %c0_i32 = arith.constant 0 : i32
    %c0_i32_0 = arith.constant 0 : i32
    return %arg0, %c0_i32 : i32, i32
  }
}

module attributes {stable_mosaic.version = 11 : i64} {
  func.func @_matmul_shift_act_kernel(%arg0: i32, %arg1: memref<8x1024xbf16, #tpu.memory_space<vmem>>, %arg2: memref<1024x8xbf16, #tpu.memory_space<vmem>>, %arg3: memref<1x8xf32, #tpu.memory_space<vmem>>, %arg4: memref<8x8xf32, #tpu.memory_space<vmem>>) attributes {dimension_semantics = [#tpu.dimension_semantics<parallel>], iteration_bounds = array<i64: 1>, scalar_prefetch = 0 : i64, scratch_operands = 0 : i64, tpu.core_type = #tpu.core_type<tc>, window_params = [{transform_indices = @transform_0, window_bounds = array<i64: 8, 1024>}, {pipeline_mode = #tpu.pipeline_mode<synchronous>, transform_indices = @transform_1, window_bounds = array<i64: 1024, 8>}, {pipeline_mode = #tpu.pipeline_mode<synchronous>, transform_indices = @transform_2, window_bounds = array<i64: 1, 8>}, {transform_indices = @transform_3, window_bounds = array<i64: 8, 8>}]} {
    %c0 = arith.constant 0 : index
    %c0_0 = arith.constant 0 : index
    %0 = vector.load %arg1[%c0, %c0_0] : memref<8x1024xbf16, #tpu.memory_space<vmem>>, vector<8x1024xbf16>
    %c0_1 = arith.constant 0 : index
    %c0_2 = arith.constant 0 : index
    %1 = vector.load %arg2[%c0_1, %c0_2] : memref<1024x8xbf16, #tpu.memory_space<vmem>>, vector<1024x8xbf16>
    %cst = arith.constant dense<0.000000e+00> : vector<8x8xf32>
    %2 = tpu.matmul %0, %1, %cst {dimension_numbers = #tpu.dot_dimension_numbers<[1], [0], [0], [1], [0, 0, 1, 1], [], []>} : vector<8x1024xbf16>, vector<1024x8xbf16>, vector<8x8xf32> -> vector<8x8xf32>
    %c0_3 = arith.constant 0 : index
    %c0_4 = arith.constant 0 : index
    %3 = vector.load %arg3[%c0_3, %c0_4] : memref<1x8xf32, #tpu.memory_space<vmem>>, vector<1x8xf32>
    %4 = vector.broadcast %3 : vector<1x8xf32> to vector<8x8xf32>
    %5 = arith.addf %2, %4 : vector<8x8xf32>
    %6 = math.tanh %5 : vector<8x8xf32>
    %c0_5 = arith.constant 0 : index
    %c0_6 = arith.constant 0 : index
    %7 = vector.load %arg4[%c0_5, %c0_6] : memref<8x8xf32, #tpu.memory_space<vmem>>, vector<8x8xf32>
    tpu.vector_store %arg4[%c0_5, %c0_6], %6 {strides = array<i32>} : memref<8x8xf32, #tpu.memory_space<vmem>>, vector<8x8xf32>,
    return
  }
  func.func @transform_0(%arg0: i32) -> (i32, i32) {
    %c0_i32 = arith.constant 0 : i32
    %c0_i32_0 = arith.constant 0 : i32
    return %arg0, %c0_i32 : i32, i32
  }
  func.func @transform_1(%arg0: i32) -> (i32, i32) {
    %c0_i32 = arith.constant 0 : i32
    %c0_i32_0 = arith.constant 0 : i32
    %c0_i32_1 = arith.constant 0 : i32
    return %c0_i32, %c0_i32_0 : i32, i32
  }
  func.func @transform_2(%arg0: i32) -> (i32, i32) {
    %c0_i32 = arith.constant 0 : i32
    %c0_i32_0 = arith.constant 0 : i32
    %c0_i32_1 = arith.constant 0 : i32
    return %c0_i32, %c0_i32_0 : i32, i32
  }
  func.func @transform_3(%arg0: i32) -> (i32, i32) {
    %c0_i32 = arith.constant 0 : i32
    %c0_i32_0 = arith.constant 0 : i32
    return %arg0, %c0_i32 : i32, i32
  }
}

</mosaic_0001>

<bundles_post_ra>
// kernel: encoder_forward.8
= control target key start
LH: loop header
LB: loop body
LE: loop exit
PB: predicated region body
PF: predicated region fallthrough
CT: control target
= control target key end

     0   :  { %s1477_s12 = smov 0   ;;  %s1828_s0 = inlined_call_operand.vmem [shape: bf16[32768,147], index: 0, kind: input, shape index: {}]   ;;  %s1829_s1 = inlined_call_operand.vmem [shape: bf16[147,8], index: 1, kind: input, shape index: {}]   ;;  %s1830_s2 = inlined_call_operand.vmem [shape: f32[1,8], index: 2, kind: input, shape index: {}]   ;;  %s1831_s3 = inlined_call_operand.vmem [shape: f32[32768,8], index: 3, kind: output, shape index: {}]  }
   0x1 LB: > { %s1191_s13 = sadd.s32 4294967295, %s1453_s12   ;;  %p1195_p0 = scmp.ge.s32.totalorder %s1453_s12, 1  ;;  %s1453_s12 = sphi %s1477_s12, %s13_s12  }
   0x2   : > { %p139_p1 = scmp.lt.s32.totalorder %s1453_s12, 65 }
   0x4   : > { %p140_p2 = pnand %p1195_p0, %p139_p1 }
   0x5   : > { %s1196_s20 = sshll.u32 (!%p140_p2), %s1191_s13, 6 }
   0x6   : > { %143 = sbr.rel (%p140_p2) target bundleno = 374 (0x176), region = 32  ;;  %p165_p3 = scmp.lt.s32.totalorder (!%p140_p2), %s1196_s20, 4095 }
   0xb   : > { %v1341_v0 = vld [vmem:[%s1829_s1 + $0x38] sm:$0xff]   ;;  %v1455_v1 = vmov 0   ;;  %v1342_v2 = vld [vmem:[%s1829_s1 + $0x30] sm:$0xff]   ;;  %v1343_v3 = vld [vmem:[%s1829_s1 + $0x28] sm:$0xff]   ;;  %s1833_s20 = smov (!%p165_p3, %s1196_s20), 4095  ;;  %vm613_vm0 = vcmask 154624  }
   0xc   : > { %717 = vmatprep.subr.bf16.mxu0 %v1455_v1  ;;  %1311 = vmatprep.subr.bf16.mxu1 %v1455_v1  ;;  %v1344_v4 = vld [vmem:[%s1829_s1 + $0x20] sm:$0xff]   ;;  %s1310_s23 = sshll.u32 %s1833_s20, 3  ;;  %v1345_v5 = vld [vmem:[%s1829_s1 + $0x18] sm:$0xff]   ;;  %v1346_v8 = vld [vmem:[%s1829_s1 + $0x10] sm:$0xff]   ;;  %vm710_vm1 = vcmask 1040384   ;;  %vm711_vm2 = vcmask 1041408  }
   0xd   : > { %718 = vmatpush1.bf16.msra.mxu0 %v1341_v0  ;;  %1321 = vmatpush1.bf16.msra.mxu1 %v1341_v0  ;;  %s1505_s26 = scalar_lea.vmem %s1828_s0, %s1310_s23  ;;  %v1347_v9 = vld [vmem:[%s1829_s1 + $0x8] sm:$0xff]   ;;  %v1456_v10 = vmov 65535   ;;  %v1348_v12 = vld [vmem:[%s1829_s1] sm:$0xff]   ;;  %s1633_s17 = scalar_lea.vmem %s1831_s3, %s1310_s23  ;;  %vm1070_vm3 = vcmask 64512  }
   0xe   : > { %719 = vmatprep.subr.bf16.mxu0 %v1455_v1  ;;  %1312 = vmatprep.subr.bf16.mxu1 %v1455_v1  ;;  %v1353_v6 = vld [vmem:[%s1505_s26 + $0x4] ss:$8 sps:$4 sm:$0xff]   ;;  %v712_v11 = vsel %vm710_vm1, 4294967295, %v1456_v10  ;;  %v1349_v13 = vld [vmem:[%s1829_s1 + $0x48] ss:$0 sps:$4 sm:$0x33]  }
   0xf   : > { %v1356_v7 = vld [vmem:[%s1505_s26 + $0x104] ss:$8 sps:$4 sm:$0xff]   ;;  %1276 = vmatprep.mubr.msk.bf16.mxu0 %vm613_vm0, %v1353_v6  ;;  %v713_v14 = vsel %vm711_vm2, %v712_v11, 0  ;;  %v1351_v17 = vld [vmem:[%s1505_s26] ss:$8 sps:$4 sm:$0xff]  }
  0x10   : > { %1292 = vmatprep.mubr.msk.bf16.mxu1 %vm613_vm0, %v1356_v7  ;;  %v715_v15 = vand.u32 %v1349_v13, %v713_v14  ;;  %v1350_v16 = vld [vmem:[%s1829_s1 + $0x40] sm:$0xff]   ;;  %v1357_v19 = vld [vmem:[%s1505_s26 + $0x14] ss:$8 sps:$4 sm:$0xff]   ;;  %v1361_v21 = vld [vmem:[%s1505_s26 + $0x10] ss:$8 sps:$4 sm:$0xff]  }
  0x11   : > { %720 = vmatpush1.bf16.msra.mxu0 %v1342_v2  ;;  %1322 = vmatpush1.bf16.msra.mxu1 %v1342_v2  ;;  %v1354_v18 = vld [vmem:[%s1505_s26 + $0x100] ss:$8 sps:$4 sm:$0xff]   ;;  %v1359_v20 = vld [vmem:[%s1505_s26 + $0x114] ss:$8 sps:$4 sm:$0xff]   ;;  %v1362_v22 = vld [vmem:[%s1505_s26 + $0x110] ss:$8 sps:$4 sm:$0xff]  }
  0x12   : > { %721 = vmatprep.subr.bf16.mxu0 %v1455_v1  ;;  %1313 = vmatprep.subr.bf16.mxu1 %v1455_v1  ;;  %v1363_v23 = vld [vmem:[%s1505_s26 + $0x24] ss:$8 sps:$4 sm:$0xff]   ;;  %v1367_v25 = vld [vmem:[%s1505_s26 + $0x20] ss:$8 sps:$4 sm:$0xff]   ;;  %v1369_v27 = vld [vmem:[%s1505_s26 + $0x34] ss:$8 sps:$4 sm:$0xff]  }
  0x13   : > { %v1365_v24 = vld [vmem:[%s1505_s26 + $0x124] ss:$8 sps:$4 sm:$0xff]   ;;  %v1368_v26 = vld [vmem:[%s1505_s26 + $0x120] ss:$8 sps:$4 sm:$0xff]   ;;  %v1371_v28 = vld [vmem:[%s1505_s26 + $0x134] ss:$8 sps:$4 sm:$0xff]  }
  0x14   : > { %v1373_v29 = vld [vmem:[%s1505_s26 + $0x30] ss:$8 sps:$4 sm:$0xff]   ;;  %v1375_v31 = vld [vmem:[%s1505_s26 + $0x44] ss:$8 sps:$4 sm:$0xff]   ;;  %v1379_v33 = vld [vmem:[%s1505_s26 + $0x40] ss:$8 sps:$4 sm:$0xff]  }
  0x15   : > { %722 = vmatpush1.bf16.msra.mxu0 %v1343_v3  ;;  %1323 = vmatpush1.bf16.msra.mxu1 %v1343_v3  ;;  %v1374_v30 = vld [vmem:[%s1505_s26 + $0x130] ss:$8 sps:$4 sm:$0xff]   ;;  %v1377_v32 = vld [vmem:[%s1505_s26 + $0x144] ss:$8 sps:$4 sm:$0xff]   ;;  %v1380_v34 = vld [vmem:[%s1505_s26 + $0x140] ss:$8 sps:$4 sm:$0xff]  }
  0x16   : > { %723 = vmatprep.subr.bf16.mxu0 %v1455_v1  ;;  %1314 = vmatprep.subr.bf16.mxu1 %v1455_v1  ;;  %v1381_v35 = vld [vmem:[%s1505_s26 + $0x54] ss:$8 sps:$4 sm:$0xff]   ;;  %v1385_v37 = vld [vmem:[%s1505_s26 + $0x50] ss:$8 sps:$4 sm:$0xff]   ;;  %v1387_v39 = vld [vmem:[%s1505_s26 + $0x64] ss:$8 sps:$4 sm:$0xff]  }
  0x17   : > { %v1383_v36 = vld [vmem:[%s1505_s26 + $0x154] ss:$8 sps:$4 sm:$0xff]   ;;  %v1386_v38 = vld [vmem:[%s1505_s26 + $0x150] ss:$8 sps:$4 sm:$0xff]   ;;  %v1389_v40 = vld [vmem:[%s1505_s26 + $0x164] ss:$8 sps:$4 sm:$0xff]  }
  0x18   : > { %v1391_v41 = vld [vmem:[%s1505_s26 + $0x60] ss:$8 sps:$4 sm:$0xff]   ;;  %v1393_v43 = vld [vmem:[%s1505_s26 + $0x74] ss:$8 sps:$4 sm:$0xff]   ;;  %v1397_v45 = vld [vmem:[%s1505_s26 + $0x70] ss:$8 sps:$4 sm:$0xff]  }
  0x19   : > { %724 = vmatpush1.bf16.msra.mxu0 %v1344_v4  ;;  %1324 = vmatpush1.bf16.msra.mxu1 %v1344_v4  ;;  %v1392_v42 = vld [vmem:[%s1505_s26 + $0x160] ss:$8 sps:$4 sm:$0xff]   ;;  %v1395_v44 = vld [vmem:[%s1505_s26 + $0x174] ss:$8 sps:$4 sm:$0xff]   ;;  %v1398_v46 = vld [vmem:[%s1505_s26 + $0x170] ss:$8 sps:$4 sm:$0xff]  }
  0x1a   : > { %725 = vmatprep.subr.bf16.mxu0 %v1455_v1  ;;  %1315 = vmatprep.subr.bf16.mxu1 %v1455_v1  ;;  %v1399_v47 = vld [vmem:[%s1505_s26 + $0x84] ss:$8 sps:$4 sm:$0xff]   ;;  %v1403_v49 = vld [vmem:[%s1505_s26 + $0x80] ss:$8 sps:$4 sm:$0xff]   ;;  %v1405_v51 = vld [vmem:[%s1505_s26 + $0x94] ss:$8 sps:$4 sm:$0xff]  }
  0x1b   : > { %v1401_v48 = vld [vmem:[%s1505_s26 + $0x184] ss:$8 sps:$4 sm:$0xff]   ;;  %v1404_v50 = vld [vmem:[%s1505_s26 + $0x180] ss:$8 sps:$4 sm:$0xff]   ;;  %v1407_v52 = vld [vmem:[%s1505_s26 + $0x194] ss:$8 sps:$4 sm:$0xff]  }
  0x1c   : > { %v1409_v53 = vld [vmem:[%s1505_s26 + $0x90] ss:$8 sps:$4 sm:$0xff]   ;;  %v1411_v55 = vld [vmem:[%s1505_s26 + $0xa4] ss:$8 sps:$4 sm:$0xff]   ;;  %v1415_v57 = vld [vmem:[%s1505_s26 + $0xa0] ss:$8 sps:$4 sm:$0xff]  }
  0x1d   : > { %726 = vmatpush1.bf16.msra.mxu0 %v1345_v5  ;;  %1325 = vmatpush1.bf16.msra.mxu1 %v1345_v5  ;;  %v1410_v54 = vld [vmem:[%s1505_s26 + $0x190] ss:$8 sps:$4 sm:$0xff]   ;;  %v1413_v56 = vld [vmem:[%s1505_s26 + $0x1a4] ss:$8 sps:$4 sm:$0xff]   ;;  %v1416_v58 = vld [vmem:[%s1505_s26 + $0x1a0] ss:$8 sps:$4 sm:$0xff]  }
  0x1e   : > { %727 = vmatprep.subr.bf16.mxu0 %v1455_v1  ;;  %1316 = vmatprep.subr.bf16.mxu1 %v1455_v1  ;;  %v1417_v59 = vld [vmem:[%s1505_s26 + $0xb4] ss:$8 sps:$4 sm:$0xff]   ;;  %v1421_v61 = vld [vmem:[%s1505_s26 + $0xb0] ss:$8 sps:$4 sm:$0xff]   ;;  %v1423_v63 = vld [vmem:[%s1505_s26 + $0xc4] ss:$8 sps:$4 sm:$0xff]  }
  0x1f   : > { %v1419_v60 = vld [vmem:[%s1505_s26 + $0x1b4] ss:$8 sps:$4 sm:$0xff]   ;;  %v1422_v62 = vld [vmem:[%s1505_s26 + $0x1b0] ss:$8 sps:$4 sm:$0xff]   ;;  %v1425_v0 = vld [vmem:[%s1505_s26 + $0x1c4] ss:$8 sps:$4 sm:$0xff]  }
  0x20   : > { %v1428_v2 = vld [vmem:[%s1505_s26 + $0x1c0] ss:$8 sps:$4 sm:$0xff]   ;;  %v1429_v3 = vld [vmem:[%s1505_s26 + $0xd4] ss:$8 sps:$4 sm:$0xff]   ;;  %v1433_v5 = vld [vmem:[%s1505_s26 + $0xd0] ss:$8 sps:$4 sm:$0xff]  }
  0x21   : > { %728 = vmatpush1.bf16.msra.mxu0 %v1346_v8  ;;  %1326 = vmatpush1.bf16.msra.mxu1 %v1346_v8  ;;  %v1431_v4 = vld [vmem:[%s1505_s26 + $0x1d4] ss:$8 sps:$4 sm:$0xff]   ;;  %v1434_v6 = vld [vmem:[%s1505_s26 + $0x1d0] ss:$8 sps:$4 sm:$0xff]   ;;  %v1435_v7 = vld [vmem:[%s1505_s26 + $0xe4] ss:$8 sps:$4 sm:$0xff]  }
  0x22   : > { %729 = vmatprep.subr.bf16.mxu0 %v1455_v1  ;;  %1317 = vmatprep.subr.bf16.mxu1 %v1455_v1  ;;  %v1437_v8 = vld [vmem:[%s1505_s26 + $0x1e4] ss:$8 sps:$4 sm:$0xff]   ;;  %v1440_v10 = vld [vmem:[%s1505_s26 + $0x1e0] ss:$8 sps:$4 sm:$0xff]   ;;  %v1441_v11 = vld [vmem:[%s1505_s26 + $0xf4] ss:$8 sps:$4 sm:$0xff]  }
  0x23   : > { %v1445_v13 = vld [vmem:[%s1505_s26 + $0xf0] ss:$8 sps:$4 sm:$0xff]  }
  0x24   : > { %v1446_v14 = vld [vmem:[%s1505_s26 + $0x1f0] ss:$8 sps:$4 sm:$0xff]  }
  0x25   : > { %730 = vmatpush1.bf16.msra.mxu0 %v1347_v9  ;;  %1327 = vmatpush1.bf16.msra.mxu1 %v1347_v9  ;;  %v1439_v9 = vld [vmem:[%s1505_s26 + $0xe0] ss:$8 sps:$4 sm:$0xff]  }
  0x26   : > { %731 = vmatprep.subr.bf16.mxu0 %v1455_v1  ;;  %1318 = vmatprep.subr.bf16.mxu1 %v1455_v1 }
  0x29   : > { %732 = vmatpush1.bf16.msra.mxu0 %v1348_v12  ;;  %1328 = vmatpush1.bf16.msra.mxu1 %v1348_v12  ;;  %v1443_v12 = vld [vmem:[%s1505_s26 + $0x1f4] ss:$8 sps:$4 sm:$0xff]  }
  0x2a   : > { %745 = vmatprep.subr.bf16.mxu0 %v1455_v1  ;;  %1319 = vmatprep.subr.bf16.mxu1 %v1455_v1 }
  0x2d   : > { %746 = vmatpush2.bf16.msra.mxu0 %v715_v15  ;;  %1329 = vmatpush2.bf16.msra.mxu1 %v715_v15  ;;  %v1624_v15 = vld [vmem:[%s1830_s2] ss:$0 sm:$0xff] }
  0x2e   : > { %747 = vmatprep.subr.bf16.mxu0 %v1455_v1  ;;  %1320 = vmatprep.subr.bf16.mxu1 %v1455_v1  ;;  %v1427_v1 = vld [vmem:[%s1505_s26 + $0xc0] ss:$8 sps:$4 sm:$0xff]  }
  0x31   : > { %748 = vmatpush2.bf16.msra.mxu0 %v1350_v16  ;;  %1330 = vmatpush2.bf16.msra.mxu1 %v1350_v16 }
  0x34   : > { %750 = vmatmul.mubr.bf16.vlgmr.msra.gmra.mxu0 %v1351_v17  ;;  %878 = vmatmul.mubr.bf16.vlgmr.msra.gmra.mxu1 %v1354_v18 }
  0x35   : > { %1277 = vmatprep.mubr.msk.bf16.mxu0 %vm613_vm0, %v1357_v19  ;;  %1293 = vmatprep.mubr.msk.bf16.mxu1 %vm613_vm0, %v1359_v20 }
  0x3c   : > { %758 = vmatmul.mubr.bf16.gmra.mxu0 %v1361_v21  ;;  %886 = vmatmul.mubr.bf16.gmra.mxu1 %v1362_v22 }
  0x3d   : > { %1278 = vmatprep.mubr.msk.bf16.mxu0 %vm613_vm0, %v1363_v23  ;;  %1294 = vmatprep.mubr.msk.bf16.mxu1 %vm613_vm0, %v1365_v24 }
  0x44   : > { %766 = vmatmul.mubr.bf16.gmra.mxu0 %v1367_v25  ;;  %894 = vmatmul.mubr.bf16.gmra.mxu1 %v1368_v26 }
  0x45   : > { %1279 = vmatprep.mubr.msk.bf16.mxu0 %vm613_vm0, %v1369_v27  ;;  %1295 = vmatprep.mubr.msk.bf16.mxu1 %vm613_vm0, %v1371_v28 }
  0x4c   : > { %774 = vmatmul.mubr.bf16.gmra.mxu0 %v1373_v29  ;;  %902 = vmatmul.mubr.bf16.gmra.mxu1 %v1374_v30 }
  0x4d   : > { %1280 = vmatprep.mubr.msk.bf16.mxu0 %vm613_vm0, %v1375_v31  ;;  %1296 = vmatprep.mubr.msk.bf16.mxu1 %vm613_vm0, %v1377_v32 }
  0x54   : > { %782 = vmatmul.mubr.bf16.gmra.mxu0 %v1379_v33  ;;  %910 = vmatmul.mubr.bf16.gmra.mxu1 %v1380_v34 }
  0x55   : > { %1281 = vmatprep.mubr.msk.bf16.mxu0 %vm613_vm0, %v1381_v35  ;;  %1297 = vmatprep.mubr.msk.bf16.mxu1 %vm613_vm0, %v1383_v36 }
  0x5c   : > { %790 = vmatmul.mubr.bf16.gmra.mxu0 %v1385_v37  ;;  %918 = vmatmul.mubr.bf16.gmra.mxu1 %v1386_v38 }
  0x5d   : > { %1282 = vmatprep.mubr.msk.bf16.mxu0 %vm613_vm0, %v1387_v39  ;;  %1298 = vmatprep.mubr.msk.bf16.mxu1 %vm613_vm0, %v1389_v40 }
  0x64   : > { %798 = vmatmul.mubr.bf16.gmra.mxu0 %v1391_v41  ;;  %926 = vmatmul.mubr.bf16.gmra.mxu1 %v1392_v42 }
  0x65   : > { %1283 = vmatprep.mubr.msk.bf16.mxu0 %vm613_vm0, %v1393_v43  ;;  %1299 = vmatprep.mubr.msk.bf16.mxu1 %vm613_vm0, %v1395_v44 }
  0x6c   : > { %806 = vmatmul.mubr.bf16.gmra.mxu0 %v1397_v45  ;;  %934 = vmatmul.mubr.bf16.gmra.mxu1 %v1398_v46 }
  0x6d   : > { %1284 = vmatprep.mubr.msk.bf16.mxu0 %vm613_vm0, %v1399_v47  ;;  %1300 = vmatprep.mubr.msk.bf16.mxu1 %vm613_vm0, %v1401_v48 }
  0x74   : > { %814 = vmatmul.mubr.bf16.gmra.mxu0 %v1403_v49  ;;  %942 = vmatmul.mubr.bf16.gmra.mxu1 %v1404_v50 }
  0x75   : > { %1285 = vmatprep.mubr.msk.bf16.mxu0 %vm613_vm0, %v1405_v51  ;;  %1301 = vmatprep.mubr.msk.bf16.mxu1 %vm613_vm0, %v1407_v52 }
  0x7c   : > { %822 = vmatmul.mubr.bf16.gmra.mxu0 %v1409_v53  ;;  %950 = vmatmul.mubr.bf16.gmra.mxu1 %v1410_v54 }
  0x7d   : > { %1286 = vmatprep.mubr.msk.bf16.mxu0 %vm613_vm0, %v1411_v55  ;;  %1302 = vmatprep.mubr.msk.bf16.mxu1 %vm613_vm0, %v1413_v56 }
  0x84   : > { %830 = vmatmul.mubr.bf16.gmra.mxu0 %v1415_v57  ;;  %958 = vmatmul.mubr.bf16.gmra.mxu1 %v1416_v58 }
  0x85   : > { %1287 = vmatprep.mubr.msk.bf16.mxu0 %vm613_vm0, %v1417_v59  ;;  %1303 = vmatprep.mubr.msk.bf16.mxu1 %vm613_vm0, %v1419_v60 }
  0x8c   : > { %838 = vmatmul.mubr.bf16.gmra.mxu0 %v1421_v61  ;;  %966 = vmatmul.mubr.bf16.gmra.mxu1 %v1422_v62 }
  0x8d   : > { %1288 = vmatprep.mubr.msk.bf16.mxu0 %vm613_vm0, %v1423_v63  ;;  %1304 = vmatprep.mubr.msk.bf16.mxu1 %vm613_vm0, %v1425_v0 }
  0x94   : > { %846 = vmatmul.mubr.bf16.gmra.mxu0 %v1427_v1  ;;  %974 = vmatmul.mubr.bf16.gmra.mxu1 %v1428_v2 }
  0x95   : > { %1289 = vmatprep.mubr.msk.bf16.mxu0 %vm613_vm0, %v1429_v3  ;;  %1305 = vmatprep.mubr.msk.bf16.mxu1 %vm613_vm0, %v1431_v4 }
  0x9c   : > { %854 = vmatmul.mubr.bf16.gmra.mxu0 %v1433_v5  ;;  %982 = vmatmul.mubr.bf16.gmra.mxu1 %v1434_v6 }
  0x9d   : > { %1290 = vmatprep.mubr.msk.bf16.mxu0 %vm613_vm0, %v1435_v7  ;;  %1306 = vmatprep.mubr.msk.bf16.mxu1 %vm613_vm0, %v1437_v8 }
  0xa4   : > { %862 = vmatmul.mubr.bf16.gmra.mxu0 %v1439_v9  ;;  %990 = vmatmul.mubr.bf16.gmra.mxu1 %v1440_v10 }
  0xa5   : > { %1291 = vmatprep.mubr.msk.bf16.mxu0 %vm613_vm0, %v1441_v11  ;;  %1307 = vmatprep.mubr.msk.bf16.mxu1 %vm613_vm0, %v1443_v12 }
  0xac   : > { %870 = vmatmul.mubr.bf16.gmra.mxu0 %v1445_v13  ;;  %998 = vmatmul.mubr.bf16.gmra.mxu1 %v1446_v14 }
  0xf4   : > { %v751_v16 = vpop.f32.mrf.mxu0  ;;  %v879_v17 = vpop.f32.mrf.mxu1 }
  0xf5   : > { %v752_v18 = vadd.f32 %v1624_v15, %v751_v16  ;;  %v880_v19 = vadd.f32 %v1624_v15, %v879_v17 }
  0xf6   : > { %v753_v20 = vpop.f32.mrf.mxu0  ;;  %v881_v21 = vpop.f32.mrf.mxu1 }
  0xf7   : > { %v1006_v22 = vmax.f32 %v752_v18, 0.0  ;;  %v1038_v23 = vmax.f32 %v880_v19, 0.0 }
  0xf8   : > { %v754_v24 = vpop.f32.mrf.mxu0  ;;  %v882_v25 = vpop.f32.mrf.mxu1 }
  0xf9   : > { %1071 = vst.msk [vmem:[%s1633_s17] sm:$0xff] %vm1070_vm3, %v1006_v22  ;;  %1103 = vst.msk [vmem:[%s1633_s17 + $0x100] sm:$0xff] %vm1070_vm3, %v1038_v23  ;;  %v755_v26 = vadd.f32 %v1624_v15, %v754_v24  ;;  %v883_v27 = vadd.f32 %v1624_v15, %v882_v25 }
  0xfa   : > { %v756_v28 = vpop.f32.mrf.mxu0  ;;  %v884_v29 = vpop.f32.mrf.mxu1 }
  0xfb   : > { %v1007_v30 = vmax.f32 %v755_v26, 0.0  ;;  %v1039_v31 = vmax.f32 %v883_v27, 0.0 }
  0xfc   : > { %v759_v32 = vpop.f32.mrf.mxu0  ;;  %v887_v33 = vpop.f32.mrf.mxu1 }
  0xfd   : > { %1072 = vst.msk [vmem:[%s1633_s17 + $0x8] sm:$0xff] %vm1070_vm3, %v1007_v30  ;;  %1104 = vst.msk [vmem:[%s1633_s17 + $0x108] sm:$0xff] %vm1070_vm3, %v1039_v31  ;;  %v760_v34 = vadd.f32 %v1624_v15, %v759_v32  ;;  %v888_v35 = vadd.f32 %v1624_v15, %v887_v33 }
  0xfe   : > { %v761_v36 = vpop.f32.mrf.mxu0  ;;  %v889_v37 = vpop.f32.mrf.mxu1 }
  0xff   : > { %v1008_v38 = vmax.f32 %v760_v34, 0.0  ;;  %v1040_v39 = vmax.f32 %v888_v35, 0.0 }
 0x100   : > { %v762_v40 = vpop.f32.mrf.mxu0  ;;  %v890_v41 = vpop.f32.mrf.mxu1 }
 0x101   : > { %1073 = vst.msk [vmem:[%s1633_s17 + $0x10] sm:$0xff] %vm1070_vm3, %v1008_v38  ;;  %1105 = vst.msk [vmem:[%s1633_s17 + $0x110] sm:$0xff] %vm1070_vm3, %v1040_v39  ;;  %v763_v42 = vadd.f32 %v1624_v15, %v762_v40  ;;  %v891_v43 = vadd.f32 %v1624_v15, %v890_v41 }
 0x102   : > { %v764_v44 = vpop.f32.mrf.mxu0  ;;  %v892_v45 = vpop.f32.mrf.mxu1 }
 0x103   : > { %v1009_v46 = vmax.f32 %v763_v42, 0.0  ;;  %v1041_v47 = vmax.f32 %v891_v43, 0.0 }
 0x104   : > { %v767_v48 = vpop.f32.mrf.mxu0  ;;  %v895_v49 = vpop.f32.mrf.mxu1 }
 0x105   : > { %1074 = vst.msk [vmem:[%s1633_s17 + $0x18] sm:$0xff] %vm1070_vm3, %v1009_v46  ;;  %1106 = vst.msk [vmem:[%s1633_s17 + $0x118] sm:$0xff] %vm1070_vm3, %v1041_v47  ;;  %v768_v50 = vadd.f32 %v1624_v15, %v767_v48  ;;  %v896_v51 = vadd.f32 %v1624_v15, %v895_v49 }
 0x106   : > { %v769_v52 = vpop.f32.mrf.mxu0  ;;  %v897_v53 = vpop.f32.mrf.mxu1 }
 0x107   : > { %v1010_v54 = vmax.f32 %v768_v50, 0.0  ;;  %v1042_v55 = vmax.f32 %v896_v51, 0.0 }
 0x108   : > { %v770_v56 = vpop.f32.mrf.mxu0  ;;  %v898_v57 = vpop.f32.mrf.mxu1 }
 0x109   : > { %1075 = vst.msk [vmem:[%s1633_s17 + $0x20] sm:$0xff] %vm1070_vm3, %v1010_v54  ;;  %1107 = vst.msk [vmem:[%s1633_s17 + $0x120] sm:$0xff] %vm1070_vm3, %v1042_v55  ;;  %v771_v58 = vadd.f32 %v1624_v15, %v770_v56  ;;  %v899_v59 = vadd.f32 %v1624_v15, %v898_v57 }
 0x10a   : > { %v772_v60 = vpop.f32.mrf.mxu0  ;;  %v900_v61 = vpop.f32.mrf.mxu1 }
 0x10b   : > { %v1011_v62 = vmax.f32 %v771_v58, 0.0  ;;  %v1043_v63 = vmax.f32 %v899_v59, 0.0 }
 0x10c   : > { %v775_v0 = vpop.f32.mrf.mxu0  ;;  %v903_v1 = vpop.f32.mrf.mxu1 }
 0x10d   : > { %1076 = vst.msk [vmem:[%s1633_s17 + $0x28] sm:$0xff] %vm1070_vm3, %v1011_v62  ;;  %1108 = vst.msk [vmem:[%s1633_s17 + $0x128] sm:$0xff] %vm1070_vm3, %v1043_v63  ;;  %v776_v2 = vadd.f32 %v1624_v15, %v775_v0  ;;  %v904_v3 = vadd.f32 %v1624_v15, %v903_v1 }
 0x10e   : > { %v777_v4 = vpop.f32.mrf.mxu0  ;;  %v905_v5 = vpop.f32.mrf.mxu1 }
 0x10f   : > { %v1012_v6 = vmax.f32 %v776_v2, 0.0  ;;  %v1044_v7 = vmax.f32 %v904_v3, 0.0 }
 0x110   : > { %v778_v8 = vpop.f32.mrf.mxu0  ;;  %v906_v9 = vpop.f32.mrf.mxu1 }
 0x111   : > { %1077 = vst.msk [vmem:[%s1633_s17 + $0x30] sm:$0xff] %vm1070_vm3, %v1012_v6  ;;  %1109 = vst.msk [vmem:[%s1633_s17 + $0x130] sm:$0xff] %vm1070_vm3, %v1044_v7  ;;  %v779_v10 = vadd.f32 %v1624_v15, %v778_v8  ;;  %v907_v11 = vadd.f32 %v1624_v15, %v906_v9 }
 0x112   : > { %v780_v12 = vpop.f32.mrf.mxu0  ;;  %v908_v13 = vpop.f32.mrf.mxu1 }
 0x113   : > { %v1013_v14 = vmax.f32 %v779_v10, 0.0  ;;  %v1045_v16 = vmax.f32 %v907_v11, 0.0 }
 0x114   : > { %v783_v17 = vpop.f32.mrf.mxu0  ;;  %v911_v18 = vpop.f32.mrf.mxu1 }
 0x115   : > { %1078 = vst.msk [vmem:[%s1633_s17 + $0x38] sm:$0xff] %vm1070_vm3, %v1013_v14  ;;  %1110 = vst.msk [vmem:[%s1633_s17 + $0x138] sm:$0xff] %vm1070_vm3, %v1045_v16  ;;  %v784_v19 = vadd.f32 %v1624_v15, %v783_v17  ;;  %v912_v20 = vadd.f32 %v1624_v15, %v911_v18 }
 0x116   : > { %v785_v21 = vpop.f32.mrf.mxu0  ;;  %v913_v22 = vpop.f32.mrf.mxu1 }
 0x117   : > { %v1014_v23 = vmax.f32 %v784_v19, 0.0  ;;  %v1046_v24 = vmax.f32 %v912_v20, 0.0 }
 0x118   : > { %v786_v25 = vpop.f32.mrf.mxu0  ;;  %v914_v26 = vpop.f32.mrf.mxu1 }
 0x119   : > { %1079 = vst.msk [vmem:[%s1633_s17 + $0x40] sm:$0xff] %vm1070_vm3, %v1014_v23  ;;  %1111 = vst.msk [vmem:[%s1633_s17 + $0x140] sm:$0xff] %vm1070_vm3, %v1046_v24  ;;  %v787_v27 = vadd.f32 %v1624_v15, %v786_v25  ;;  %v915_v28 = vadd.f32 %v1624_v15, %v914_v26 }
 0x11a   : > { %v788_v29 = vpop.f32.mrf.mxu0  ;;  %v916_v30 = vpop.f32.mrf.mxu1 }
 0x11b   : > { %v1015_v31 = vmax.f32 %v787_v27, 0.0  ;;  %v1047_v32 = vmax.f32 %v915_v28, 0.0 }
 0x11c   : > { %v791_v33 = vpop.f32.mrf.mxu0  ;;  %v919_v34 = vpop.f32.mrf.mxu1 }
 0x11d   : > { %1080 = vst.msk [vmem:[%s1633_s17 + $0x48] sm:$0xff] %vm1070_vm3, %v1015_v31  ;;  %1112 = vst.msk [vmem:[%s1633_s17 + $0x148] sm:$0xff] %vm1070_vm3, %v1047_v32  ;;  %v792_v35 = vadd.f32 %v1624_v15, %v791_v33  ;;  %v920_v36 = vadd.f32 %v1624_v15, %v919_v34 }
 0x11e   : > { %v793_v37 = vpop.f32.mrf.mxu0  ;;  %v921_v38 = vpop.f32.mrf.mxu1 }
 0x11f   : > { %v1016_v39 = vmax.f32 %v792_v35, 0.0  ;;  %v1048_v40 = vmax.f32 %v920_v36, 0.0 }
 0x120   : > { %v794_v41 = vpop.f32.mrf.mxu0  ;;  %v922_v42 = vpop.f32.mrf.mxu1 }
 0x121   : > { %1081 = vst.msk [vmem:[%s1633_s17 + $0x50] sm:$0xff] %vm1070_vm3, %v1016_v39  ;;  %1113 = vst.msk [vmem:[%s1633_s17 + $0x150] sm:$0xff] %vm1070_vm3, %v1048_v40  ;;  %v795_v43 = vadd.f32 %v1624_v15, %v794_v41  ;;  %v923_v44 = vadd.f32 %v1624_v15, %v922_v42 }
 0x122   : > { %v796_v45 = vpop.f32.mrf.mxu0  ;;  %v924_v46 = vpop.f32.mrf.mxu1 }
 0x123   : > { %v1017_v47 = vmax.f32 %v795_v43, 0.0  ;;  %v1049_v48 = vmax.f32 %v923_v44, 0.0 }
 0x124   : > { %v799_v49 = vpop.f32.mrf.mxu0  ;;  %v927_v50 = vpop.f32.mrf.mxu1 }
 0x125   : > { %1082 = vst.msk [vmem:[%s1633_s17 + $0x58] sm:$0xff] %vm1070_vm3, %v1017_v47  ;;  %1114 = vst.msk [vmem:[%s1633_s17 + $0x158] sm:$0xff] %vm1070_vm3, %v1049_v48  ;;  %v800_v51 = vadd.f32 %v1624_v15, %v799_v49  ;;  %v928_v52 = vadd.f32 %v1624_v15, %v927_v50 }
 0x126   : > { %v801_v53 = vpop.f32.mrf.mxu0  ;;  %v929_v54 = vpop.f32.mrf.mxu1 }
 0x127   : > { %v1018_v55 = vmax.f32 %v800_v51, 0.0  ;;  %v1050_v56 = vmax.f32 %v928_v52, 0.0 }
 0x128   : > { %v802_v57 = vpop.f32.mrf.mxu0  ;;  %v930_v58 = vpop.f32.mrf.mxu1 }
 0x129   : > { %1083 = vst.msk [vmem:[%s1633_s17 + $0x60] sm:$0xff] %vm1070_vm3, %v1018_v55  ;;  %1115 = vst.msk [vmem:[%s1633_s17 + $0x160] sm:$0xff] %vm1070_vm3, %v1050_v56  ;;  %v803_v59 = vadd.f32 %v1624_v15, %v802_v57  ;;  %v931_v60 = vadd.f32 %v1624_v15, %v930_v58 }
 0x12a   : > { %v804_v61 = vpop.f32.mrf.mxu0  ;;  %v932_v62 = vpop.f32.mrf.mxu1 }
 0x12b   : > { %v1019_v63 = vmax.f32 %v803_v59, 0.0  ;;  %v1051_v0 = vmax.f32 %v931_v60, 0.0 }
 0x12c   : > { %v807_v1 = vpop.f32.mrf.mxu0  ;;  %v935_v2 = vpop.f32.mrf.mxu1 }
 0x12d   : > { %1084 = vst.msk [vmem:[%s1633_s17 + $0x68] sm:$0xff] %vm1070_vm3, %v1019_v63  ;;  %1116 = vst.msk [vmem:[%s1633_s17 + $0x168] sm:$0xff] %vm1070_vm3, %v1051_v0  ;;  %v808_v3 = vadd.f32 %v1624_v15, %v807_v1  ;;  %v936_v4 = vadd.f32 %v1624_v15, %v935_v2 }
 0x12e   : > { %v809_v5 = vpop.f32.mrf.mxu0  ;;  %v937_v6 = vpop.f32.mrf.mxu1 }
 0x12f   : > { %v1020_v7 = vmax.f32 %v808_v3, 0.0  ;;  %v1052_v8 = vmax.f32 %v936_v4, 0.0 }
 0x130   : > { %v810_v9 = vpop.f32.mrf.mxu0  ;;  %v938_v10 = vpop.f32.mrf.mxu1 }
 0x131   : > { %1085 = vst.msk [vmem:[%s1633_s17 + $0x70] sm:$0xff] %vm1070_vm3, %v1020_v7  ;;  %1117 = vst.msk [vmem:[%s1633_s17 + $0x170] sm:$0xff] %vm1070_vm3, %v1052_v8  ;;  %v811_v11 = vadd.f32 %v1624_v15, %v810_v9  ;;  %v939_v12 = vadd.f32 %v1624_v15, %v938_v10 }
 0x132   : > { %v812_v13 = vpop.f32.mrf.mxu0  ;;  %v940_v14 = vpop.f32.mrf.mxu1 }
 0x133   : > { %v1021_v16 = vmax.f32 %v811_v11, 0.0  ;;  %v1053_v17 = vmax.f32 %v939_v12, 0.0 }
 0x134   : > { %v815_v18 = vpop.f32.mrf.mxu0  ;;  %v943_v19 = vpop.f32.mrf.mxu1 }
 0x135   : > { %1086 = vst.msk [vmem:[%s1633_s17 + $0x78] sm:$0xff] %vm1070_vm3, %v1021_v16  ;;  %1118 = vst.msk [vmem:[%s1633_s17 + $0x178] sm:$0xff] %vm1070_vm3, %v1053_v17  ;;  %v816_v20 = vadd.f32 %v1624_v15, %v815_v18  ;;  %v944_v21 = vadd.f32 %v1624_v15, %v943_v19 }
 0x136   : > { %v817_v22 = vpop.f32.mrf.mxu0  ;;  %v945_v23 = vpop.f32.mrf.mxu1 }
 0x137   : > { %v1022_v24 = vmax.f32 %v816_v20, 0.0  ;;  %v1054_v25 = vmax.f32 %v944_v21, 0.0 }
 0x138   : > { %v818_v26 = vpop.f32.mrf.mxu0  ;;  %v946_v27 = vpop.f32.mrf.mxu1 }
 0x139   : > { %1087 = vst.msk [vmem:[%s1633_s17 + $0x80] sm:$0xff] %vm1070_vm3, %v1022_v24  ;;  %1119 = vst.msk [vmem:[%s1633_s17 + $0x180] sm:$0xff] %vm1070_vm3, %v1054_v25  ;;  %v819_v28 = vadd.f32 %v1624_v15, %v818_v26  ;;  %v947_v29 = vadd.f32 %v1624_v15, %v946_v27 }
 0x13a   : > { %v820_v30 = vpop.f32.mrf.mxu0  ;;  %v948_v31 = vpop.f32.mrf.mxu1 }
 0x13b   : > { %v1023_v32 = vmax.f32 %v819_v28, 0.0  ;;  %v1055_v33 = vmax.f32 %v947_v29, 0.0 }
 0x13c   : > { %v823_v34 = vpop.f32.mrf.mxu0  ;;  %v951_v35 = vpop.f32.mrf.mxu1 }
 0x13d   : > { %1088 = vst.msk [vmem:[%s1633_s17 + $0x88] sm:$0xff] %vm1070_vm3, %v1023_v32  ;;  %1120 = vst.msk [vmem:[%s1633_s17 + $0x188] sm:$0xff] %vm1070_vm3, %v1055_v33  ;;  %v824_v36 = vadd.f32 %v1624_v15, %v823_v34  ;;  %v952_v37 = vadd.f32 %v1624_v15, %v951_v35 }
 0x13e   : > { %v825_v38 = vpop.f32.mrf.mxu0  ;;  %v953_v39 = vpop.f32.mrf.mxu1 }
 0x13f   : > { %v1024_v40 = vmax.f32 %v824_v36, 0.0  ;;  %v1056_v41 = vmax.f32 %v952_v37, 0.0 }
 0x140   : > { %v826_v42 = vpop.f32.mrf.mxu0  ;;  %v954_v43 = vpop.f32.mrf.mxu1 }
 0x141   : > { %1089 = vst.msk [vmem:[%s1633_s17 + $0x90] sm:$0xff] %vm1070_vm3, %v1024_v40  ;;  %1121 = vst.msk [vmem:[%s1633_s17 + $0x190] sm:$0xff] %vm1070_vm3, %v1056_v41  ;;  %v827_v44 = vadd.f32 %v1624_v15, %v826_v42  ;;  %v955_v45 = vadd.f32 %v1624_v15, %v954_v43 }
 0x142   : > { %v828_v46 = vpop.f32.mrf.mxu0  ;;  %v956_v47 = vpop.f32.mrf.mxu1 }
 0x143   : > { %v1025_v48 = vmax.f32 %v827_v44, 0.0  ;;  %v1057_v49 = vmax.f32 %v955_v45, 0.0 }
 0x144   : > { %v831_v50 = vpop.f32.mrf.mxu0  ;;  %v959_v51 = vpop.f32.mrf.mxu1 }
 0x145   : > { %1090 = vst.msk [vmem:[%s1633_s17 + $0x98] sm:$0xff] %vm1070_vm3, %v1025_v48  ;;  %1122 = vst.msk [vmem:[%s1633_s17 + $0x198] sm:$0xff] %vm1070_vm3, %v1057_v49  ;;  %v832_v52 = vadd.f32 %v1624_v15, %v831_v50  ;;  %v960_v53 = vadd.f32 %v1624_v15, %v959_v51 }
 0x146   : > { %v833_v54 = vpop.f32.mrf.mxu0  ;;  %v961_v55 = vpop.f32.mrf.mxu1 }
 0x147   : > { %v1026_v56 = vmax.f32 %v832_v52, 0.0  ;;  %v1058_v57 = vmax.f32 %v960_v53, 0.0 }
 0x148   : > { %v834_v58 = vpop.f32.mrf.mxu0  ;;  %v962_v59 = vpop.f32.mrf.mxu1 }
 0x149   : > { %1091 = vst.msk [vmem:[%s1633_s17 + $0xa0] sm:$0xff] %vm1070_vm3, %v1026_v56  ;;  %1123 = vst.msk [vmem:[%s1633_s17 + $0x1a0] sm:$0xff] %vm1070_vm3, %v1058_v57  ;;  %v835_v60 = vadd.f32 %v1624_v15, %v834_v58  ;;  %v963_v61 = vadd.f32 %v1624_v15, %v962_v59 }
 0x14a   : > { %v836_v62 = vpop.f32.mrf.mxu0  ;;  %v964_v63 = vpop.f32.mrf.mxu1 }
 0x14b   : > { %v1027_v0 = vmax.f32 %v835_v60, 0.0  ;;  %v1059_v1 = vmax.f32 %v963_v61, 0.0 }
 0x14c   : > { %v839_v2 = vpop.f32.mrf.mxu0  ;;  %v967_v3 = vpop.f32.mrf.mxu1 }
 0x14d   : > { %1092 = vst.msk [vmem:[%s1633_s17 + $0xa8] sm:$0xff] %vm1070_vm3, %v1027_v0  ;;  %1124 = vst.msk [vmem:[%s1633_s17 + $0x1a8] sm:$0xff] %vm1070_vm3, %v1059_v1  ;;  %v840_v4 = vadd.f32 %v1624_v15, %v839_v2  ;;  %v968_v5 = vadd.f32 %v1624_v15, %v967_v3 }
 0x14e   : > { %v841_v6 = vpop.f32.mrf.mxu0  ;;  %v969_v7 = vpop.f32.mrf.mxu1 }
 0x14f   : > { %v1028_v8 = vmax.f32 %v840_v4, 0.0  ;;  %v1060_v9 = vmax.f32 %v968_v5, 0.0 }
 0x150   : > { %v842_v10 = vpop.f32.mrf.mxu0  ;;  %v970_v11 = vpop.f32.mrf.mxu1 }
 0x151   : > { %1093 = vst.msk [vmem:[%s1633_s17 + $0xb0] sm:$0xff] %vm1070_vm3, %v1028_v8  ;;  %1125 = vst.msk [vmem:[%s1633_s17 + $0x1b0] sm:$0xff] %vm1070_vm3, %v1060_v9  ;;  %v843_v12 = vadd.f32 %v1624_v15, %v842_v10  ;;  %v971_v13 = vadd.f32 %v1624_v15, %v970_v11 }
 0x152   : > { %v844_v14 = vpop.f32.mrf.mxu0  ;;  %v972_v16 = vpop.f32.mrf.mxu1 }
 0x153   : > { %v1029_v17 = vmax.f32 %v843_v12, 0.0  ;;  %v1061_v18 = vmax.f32 %v971_v13, 0.0 }
 0x154   : > { %v847_v19 = vpop.f32.mrf.mxu0  ;;  %v975_v20 = vpop.f32.mrf.mxu1 }
 0x155   : > { %1094 = vst.msk [vmem:[%s1633_s17 + $0xb8] sm:$0xff] %vm1070_vm3, %v1029_v17  ;;  %1126 = vst.msk [vmem:[%s1633_s17 + $0x1b8] sm:$0xff] %vm1070_vm3, %v1061_v18  ;;  %v848_v21 = vadd.f32 %v1624_v15, %v847_v19  ;;  %v976_v22 = vadd.f32 %v1624_v15, %v975_v20 }
 0x156   : > { %v849_v23 = vpop.f32.mrf.mxu0  ;;  %v977_v24 = vpop.f32.mrf.mxu1 }
 0x157   : > { %v1030_v25 = vmax.f32 %v848_v21, 0.0  ;;  %v1062_v26 = vmax.f32 %v976_v22, 0.0 }
 0x158   : > { %v850_v27 = vpop.f32.mrf.mxu0  ;;  %v978_v28 = vpop.f32.mrf.mxu1 }
 0x159   : > { %1095 = vst.msk [vmem:[%s1633_s17 + $0xc0] sm:$0xff] %vm1070_vm3, %v1030_v25  ;;  %1127 = vst.msk [vmem:[%s1633_s17 + $0x1c0] sm:$0xff] %vm1070_vm3, %v1062_v26  ;;  %v851_v29 = vadd.f32 %v1624_v15, %v850_v27  ;;  %v979_v30 = vadd.f32 %v1624_v15, %v978_v28 }
 0x15a   : > { %v852_v31 = vpop.f32.mrf.mxu0  ;;  %v980_v32 = vpop.f32.mrf.mxu1 }
 0x15b   : > { %v1031_v33 = vmax.f32 %v851_v29, 0.0  ;;  %v1063_v34 = vmax.f32 %v979_v30, 0.0 }
 0x15c   : > { %v855_v35 = vpop.f32.mrf.mxu0  ;;  %v983_v36 = vpop.f32.mrf.mxu1 }
 0x15d   : > { %1096 = vst.msk [vmem:[%s1633_s17 + $0xc8] sm:$0xff] %vm1070_vm3, %v1031_v33  ;;  %1128 = vst.msk [vmem:[%s1633_s17 + $0x1c8] sm:$0xff] %vm1070_vm3, %v1063_v34  ;;  %v856_v37 = vadd.f32 %v1624_v15, %v855_v35  ;;  %v984_v38 = vadd.f32 %v1624_v15, %v983_v36 }
 0x15e   : > { %v857_v39 = vpop.f32.mrf.mxu0  ;;  %v985_v40 = vpop.f32.mrf.mxu1 }
 0x15f   : > { %v1032_v41 = vmax.f32 %v856_v37, 0.0  ;;  %v1064_v42 = vmax.f32 %v984_v38, 0.0 }
 0x160   : > { %v858_v43 = vpop.f32.mrf.mxu0  ;;  %v986_v44 = vpop.f32.mrf.mxu1 }
 0x161   : > { %1097 = vst.msk [vmem:[%s1633_s17 + $0xd0] sm:$0xff] %vm1070_vm3, %v1032_v41  ;;  %1129 = vst.msk [vmem:[%s1633_s17 + $0x1d0] sm:$0xff] %vm1070_vm3, %v1064_v42  ;;  %v859_v45 = vadd.f32 %v1624_v15, %v858_v43  ;;  %v987_v46 = vadd.f32 %v1624_v15, %v986_v44 }
 0x162   : > { %v860_v47 = vpop.f32.mrf.mxu0  ;;  %v988_v48 = vpop.f32.mrf.mxu1 }
 0x163   : > { %v1033_v49 = vmax.f32 %v859_v45, 0.0  ;;  %v1065_v50 = vmax.f32 %v987_v46, 0.0 }
 0x164   : > { %v863_v51 = vpop.f32.mrf.mxu0  ;;  %v991_v52 = vpop.f32.mrf.mxu1 }
 0x165   : > { %1098 = vst.msk [vmem:[%s1633_s17 + $0xd8] sm:$0xff] %vm1070_vm3, %v1033_v49  ;;  %1130 = vst.msk [vmem:[%s1633_s17 + $0x1d8] sm:$0xff] %vm1070_vm3, %v1065_v50  ;;  %v864_v53 = vadd.f32 %v1624_v15, %v863_v51  ;;  %v992_v54 = vadd.f32 %v1624_v15, %v991_v52 }
 0x166   : > { %v865_v55 = vpop.f32.mrf.mxu0  ;;  %v993_v56 = vpop.f32.mrf.mxu1 }
 0x167   : > { %v1034_v57 = vmax.f32 %v864_v53, 0.0  ;;  %v1066_v58 = vmax.f32 %v992_v54, 0.0 }
 0x168   : > { %v866_v59 = vpop.f32.mrf.mxu0  ;;  %v994_v60 = vpop.f32.mrf.mxu1 }
 0x169   : > { %1099 = vst.msk [vmem:[%s1633_s17 + $0xe0] sm:$0xff] %vm1070_vm3, %v1034_v57  ;;  %1131 = vst.msk [vmem:[%s1633_s17 + $0x1e0] sm:$0xff] %vm1070_vm3, %v1066_v58  ;;  %v867_v61 = vadd.f32 %v1624_v15, %v866_v59  ;;  %v995_v62 = vadd.f32 %v1624_v15, %v994_v60 }
 0x16a   : > { %v868_v63 = vpop.f32.mrf.mxu0  ;;  %v996_v0 = vpop.f32.mrf.mxu1 }
 0x16b   : > { %v1035_v1 = vmax.f32 %v867_v61, 0.0  ;;  %v1067_v2 = vmax.f32 %v995_v62, 0.0 }
 0x16c   : > { %v871_v3 = vpop.f32.mrf.mxu0  ;;  %v999_v4 = vpop.f32.mrf.mxu1 }
 0x16d   : > { %1100 = vst.msk [vmem:[%s1633_s17 + $0xe8] sm:$0xff] %vm1070_vm3, %v1035_v1  ;;  %1132 = vst.msk [vmem:[%s1633_s17 + $0x1e8] sm:$0xff] %vm1070_vm3, %v1067_v2  ;;  %v872_v5 = vadd.f32 %v1624_v15, %v871_v3  ;;  %v1000_v6 = vadd.f32 %v1624_v15, %v999_v4 }
 0x16e   : > { %v873_v7 = vpop.f32.mrf.mxu0  ;;  %v1001_v8 = vpop.f32.mrf.mxu1 }
 0x16f   : > { %v1036_v9 = vmax.f32 %v872_v5, 0.0  ;;  %v1068_v10 = vmax.f32 %v1000_v6, 0.0 }
 0x170   : > { %v874_v11 = vpop.f32.mrf.mxu0  ;;  %v1002_v12 = vpop.f32.mrf.mxu1 }
 0x171   : > { %1101 = vst.msk [vmem:[%s1633_s17 + $0xf0] sm:$0xff] %vm1070_vm3, %v1036_v9  ;;  %1133 = vst.msk [vmem:[%s1633_s17 + $0x1f0] sm:$0xff] %vm1070_vm3, %v1068_v10  ;;  %v875_v13 = vadd.f32 %v1624_v15, %v874_v11  ;;  %v1003_v14 = vadd.f32 %v1624_v15, %v1002_v12 }
 0x172   : > { %v876_v16 = vpop.f32.mrf.mxu0  ;;  %v1004_v17 = vpop.f32.mrf.mxu1 }
 0x173   : > { %v1037_v18 = vmax.f32 %v875_v13, 0.0  ;;  %v1069_v19 = vmax.f32 %v1003_v14, 0.0 }
 0x175   : > { %1102 = vst.msk [vmem:[%s1633_s17 + $0xf8] sm:$0xff] %vm1070_vm3, %v1037_v18  ;;  %1134 = vst.msk [vmem:[%s1633_s17 + $0x1f8] sm:$0xff] %vm1070_vm3, %v1069_v19 }
 0x176 PF: > { %s13_s12 = sadd.s32 1, %s1453_s12  }
 0x177   : > { %p10_p4 = scmp.ge.s32.totalorder %s13_s12, 66  }
 0x179   :  { %12 = sbr.rel (!%p10_p4) target bundleno = 1 (0x1), region = 62 }

// kernel: encoder_forward.9
= control target key start
LH: loop header
LB: loop body
LE: loop exit
PB: predicated region body
PF: predicated region fallthrough
CT: control target
= control target key end

     0   :  { %s1240_s12 = smov 0   ;;  %s1518_s0 = inlined_call_operand.vmem [shape: bf16[8192,128], index: 0, kind: input, shape index: {}]   ;;  %s1519_s1 = inlined_call_operand.vmem [shape: bf16[128,16], index: 1, kind: input, shape index: {}]   ;;  %s1520_s2 = inlined_call_operand.vmem [shape: f32[1,16], index: 2, kind: input, shape index: {}]   ;;  %s1521_s3 = inlined_call_operand.vmem [shape: f32[8192,16], index: 3, kind: output, shape index: {}]  }
   0x1 LB: > { %s976_s13 = sadd.s32 4294967295, %s1218_s12   ;;  %p980_p0 = scmp.ge.s32.totalorder %s1218_s12, 1  ;;  %s1218_s12 = sphi %s1240_s12, %s13_s12  }
   0x2   : > { %p138_p1 = scmp.lt.s32.totalorder %s1218_s12, 17 }
   0x4   : > { %p139_p2 = pnand %p980_p0, %p138_p1 }
   0x5   : > { %s981_s16 = sshll.u32 (!%p139_p2), %s976_s13, 6 }
   0x6   : > { %142 = sbr.rel (%p139_p2) target bundleno = 304 (0x130), region = 32  ;;  %p163_p3 = scmp.lt.s32.totalorder (!%p139_p2), %s981_s16, 1023 }
   0xb   : > { %v1172_v0 = vld [vmem:[%s1519_s1 + $0x38] sm:$0xff]   ;;  %v1173_v1 = vld [vmem:[%s1519_s1 + $0x30] sm:$0xff]   ;;  %s1523_s16 = smov (!%p163_p3, %s981_s16), 1023  ;;  %v1174_v2 = vld [vmem:[%s1519_s1 + $0x28] sm:$0xff]   ;;  %vm855_vm0 = vcmask 130048  }
   0xc   : > { %1068 = vmatprep.subr.bf16.mxu0 %v1172_v0  ;;  %1148 = vmatprep.subr.bf16.mxu1 %v1172_v0  ;;  %s982_s21 = sshll.u32 %s1523_s16, 2  ;;  %v1175_v3 = vld [vmem:[%s1519_s1 + $0x20] sm:$0xff]   ;;  %v1176_v6 = vld [vmem:[%s1519_s1 + $0x18] sm:$0xff]   ;;  %v1177_v7 = vld [vmem:[%s1519_s1 + $0x10] sm:$0xff]   ;;  %s984_s10 = sshll.u32 %s1523_s16, 3 }
   0xd   : > { %1069 = vmatpush3.bf16.msra.mxu0 %v1172_v0  ;;  %1156 = vmatpush3.bf16.msra.mxu1 %v1172_v0  ;;  %s1263_s24 = scalar_lea.vmem %s1518_s0, %s982_s21  ;;  %v1178_v8 = vld [vmem:[%s1519_s1 + $0x8] sm:$0xff]   ;;  %v1179_v9 = vld [vmem:[%s1519_s1] sm:$0xff]   ;;  %s1323_s14 = scalar_lea.vmem %s1521_s3, %s984_s10 }
   0xe   : > { %1070 = vmatprep.subr.bf16.mxu0 %v1173_v1  ;;  %1149 = vmatprep.subr.bf16.mxu1 %v1173_v1  ;;  %v1180_v4 = vld [vmem:[%s1263_s24] sm:$0xff]   ;;  %v1182_v10 = vld [vmem:[%s1263_s24 + $0x8] sm:$0xff]   ;;  %v1184_v12 = vld [vmem:[%s1263_s24 + $0x10] sm:$0xff]  }
   0xf   : > { %v1181_v5 = vld [vmem:[%s1263_s24 + $0x80] sm:$0xff]   ;;  %1084 = vmatprep.mubr.bf16.mxu0 %v1180_v4  ;;  %v1183_v11 = vld [vmem:[%s1263_s24 + $0x88] sm:$0xff]   ;;  %v1185_v13 = vld [vmem:[%s1263_s24 + $0x90] sm:$0xff]  }
  0x10   : > { %1116 = vmatprep.mubr.bf16.mxu1 %v1181_v5  ;;  %v1186_v14 = vld [vmem:[%s1263_s24 + $0x18] sm:$0xff]   ;;  %v1188_v16 = vld [vmem:[%s1263_s24 + $0x20] sm:$0xff]   ;;  %v1190_v18 = vld [vmem:[%s1263_s24 + $0x28] sm:$0xff]  }
  0x11   : > { %1071 = vmatpush3.bf16.msra.mxu0 %v1173_v1  ;;  %1157 = vmatpush3.bf16.msra.mxu1 %v1173_v1  ;;  %v1187_v15 = vld [vmem:[%s1263_s24 + $0x98] sm:$0xff]   ;;  %v1189_v17 = vld [vmem:[%s1263_s24 + $0xa0] sm:$0xff]   ;;  %v1191_v19 = vld [vmem:[%s1263_s24 + $0xa8] sm:$0xff]  }
  0x12   : > { %1072 = vmatprep.subr.bf16.mxu0 %v1174_v2  ;;  %1150 = vmatprep.subr.bf16.mxu1 %v1174_v2  ;;  %v1192_v20 = vld [vmem:[%s1263_s24 + $0x30] sm:$0xff]   ;;  %v1194_v22 = vld [vmem:[%s1263_s24 + $0x38] sm:$0xff]   ;;  %v1196_v24 = vld [vmem:[%s1263_s24 + $0x40] sm:$0xff]  }
  0x13   : > { %v1193_v21 = vld [vmem:[%s1263_s24 + $0xb0] sm:$0xff]   ;;  %v1195_v23 = vld [vmem:[%s1263_s24 + $0xb8] sm:$0xff]   ;;  %v1197_v25 = vld [vmem:[%s1263_s24 + $0xc0] sm:$0xff]  }
  0x14   : > { %v1198_v26 = vld [vmem:[%s1263_s24 + $0x48] sm:$0xff]   ;;  %v1200_v28 = vld [vmem:[%s1263_s24 + $0x50] sm:$0xff]   ;;  %v1202_v30 = vld [vmem:[%s1263_s24 + $0x58] sm:$0xff]  }
  0x15   : > { %1073 = vmatpush3.bf16.msra.mxu0 %v1174_v2  ;;  %1158 = vmatpush3.bf16.msra.mxu1 %v1174_v2  ;;  %v1199_v27 = vld [vmem:[%s1263_s24 + $0xc8] sm:$0xff]   ;;  %v1201_v29 = vld [vmem:[%s1263_s24 + $0xd0] sm:$0xff]   ;;  %v1203_v31 = vld [vmem:[%s1263_s24 + $0xd8] sm:$0xff]  }
  0x16   : > { %1074 = vmatprep.subr.bf16.mxu0 %v1175_v3  ;;  %1151 = vmatprep.subr.bf16.mxu1 %v1175_v3  ;;  %v1204_v32 = vld [vmem:[%s1263_s24 + $0x60] sm:$0xff]   ;;  %v1206_v34 = vld [vmem:[%s1263_s24 + $0x68] sm:$0xff]   ;;  %v1208_v36 = vld [vmem:[%s1263_s24 + $0x70] sm:$0xff]  }
  0x17   : > { %v1205_v33 = vld [vmem:[%s1263_s24 + $0xe0] sm:$0xff]   ;;  %v1207_v35 = vld [vmem:[%s1263_s24 + $0xe8] sm:$0xff]   ;;  %v1209_v37 = vld [vmem:[%s1263_s24 + $0xf0] sm:$0xff]  }
  0x18   : > { %v1210_v38 = vld [vmem:[%s1263_s24 + $0x78] sm:$0xff]   ;;  %v1315_v40 = vld [vmem:[%s1520_s2] ss:$0 sm:$0xff] }
  0x19   : > { %1075 = vmatpush3.bf16.msra.mxu0 %v1175_v3  ;;  %1159 = vmatpush3.bf16.msra.mxu1 %v1175_v3  ;;  %v1211_v39 = vld [vmem:[%s1263_s24 + $0xf8] sm:$0xff]  }
  0x1a   : > { %1076 = vmatprep.subr.bf16.mxu0 %v1176_v6  ;;  %1152 = vmatprep.subr.bf16.mxu1 %v1176_v6 }
  0x1d   : > { %1077 = vmatpush3.bf16.msra.mxu0 %v1176_v6  ;;  %1160 = vmatpush3.bf16.msra.mxu1 %v1176_v6 }
  0x1e   : > { %1078 = vmatprep.subr.bf16.mxu0 %v1177_v7  ;;  %1153 = vmatprep.subr.bf16.mxu1 %v1177_v7 }
  0x21   : > { %1079 = vmatpush3.bf16.msra.mxu0 %v1177_v7  ;;  %1161 = vmatpush3.bf16.msra.mxu1 %v1177_v7 }
  0x22   : > { %1080 = vmatprep.subr.bf16.mxu0 %v1178_v8  ;;  %1154 = vmatprep.subr.bf16.mxu1 %v1178_v8 }
  0x25   : > { %1081 = vmatpush3.bf16.msra.mxu0 %v1178_v8  ;;  %1162 = vmatpush3.bf16.msra.mxu1 %v1178_v8 }
  0x26   : > { %1082 = vmatprep.subr.bf16.mxu0 %v1179_v9  ;;  %1155 = vmatprep.subr.bf16.mxu1 %v1179_v9 }
  0x29   : > { %1083 = vmatpush3.bf16.msra.mxu0 %v1179_v9  ;;  %1163 = vmatpush3.bf16.msra.mxu1 %v1179_v9 }
  0x2c   : > { %1085 = vmatmul.mubr.bf16.vlgmr.msra.gmra.mxu0 %v1182_v10  ;;  %1117 = vmatmul.mubr.bf16.vlgmr.msra.gmra.mxu1 %v1183_v11 }
  0x2d   : > { %1088 = vmatprep.mubr.bf16.mxu0 %v1184_v12  ;;  %1120 = vmatprep.mubr.bf16.mxu1 %v1185_v13 }
  0x34   : > { %1089 = vmatmul.mubr.bf16.gmra.mxu0 %v1186_v14  ;;  %1121 = vmatmul.mubr.bf16.gmra.mxu1 %v1187_v15 }
  0x35   : > { %1092 = vmatprep.mubr.bf16.mxu0 %v1188_v16  ;;  %1124 = vmatprep.mubr.bf16.mxu1 %v1189_v17 }
  0x3c   : > { %1093 = vmatmul.mubr.bf16.gmra.mxu0 %v1190_v18  ;;  %1125 = vmatmul.mubr.bf16.gmra.mxu1 %v1191_v19 }
  0x3d   : > { %1096 = vmatprep.mubr.bf16.mxu0 %v1192_v20  ;;  %1128 = vmatprep.mubr.bf16.mxu1 %v1193_v21 }
  0x44   : > { %1097 = vmatmul.mubr.bf16.gmra.mxu0 %v1194_v22  ;;  %1129 = vmatmul.mubr.bf16.gmra.mxu1 %v1195_v23 }
  0x45   : > { %1100 = vmatprep.mubr.bf16.mxu0 %v1196_v24  ;;  %1132 = vmatprep.mubr.bf16.mxu1 %v1197_v25 }
  0x4c   : > { %1101 = vmatmul.mubr.bf16.gmra.mxu0 %v1198_v26  ;;  %1133 = vmatmul.mubr.bf16.gmra.mxu1 %v1199_v27 }
  0x4d   : > { %1104 = vmatprep.mubr.bf16.mxu0 %v1200_v28  ;;  %1136 = vmatprep.mubr.bf16.mxu1 %v1201_v29 }
  0x54   : > { %1105 = vmatmul.mubr.bf16.gmra.mxu0 %v1202_v30  ;;  %1137 = vmatmul.mubr.bf16.gmra.mxu1 %v1203_v31 }
  0x55   : > { %1108 = vmatprep.mubr.bf16.mxu0 %v1204_v32  ;;  %1140 = vmatprep.mubr.bf16.mxu1 %v1205_v33 }
  0x5c   : > { %1109 = vmatmul.mubr.bf16.gmra.mxu0 %v1206_v34  ;;  %1141 = vmatmul.mubr.bf16.gmra.mxu1 %v1207_v35 }
  0x5d   : > { %1112 = vmatprep.mubr.bf16.mxu0 %v1208_v36  ;;  %1144 = vmatprep.mubr.bf16.mxu1 %v1209_v37 }
  0x64   : > { %1113 = vmatmul.mubr.bf16.gmra.mxu0 %v1210_v38  ;;  %1145 = vmatmul.mubr.bf16.gmra.mxu1 %v1211_v39 }
  0xec   : > { %v1086_v41 = vpop.f32.mrf.mxu0  ;;  %v1118_v42 = vpop.f32.mrf.mxu1 }
  0xed   : > { %v545_v43 = vadd.f32 %v1086_v41, %v1315_v40  ;;  %v673_v44 = vadd.f32 %v1118_v42, %v1315_v40 }
  0xee   : > { %v536_v45 = vpop.f32.mrf.mxu0  ;;  %v664_v46 = vpop.f32.mrf.mxu1 }
  0xef   : > { %v793_v47 = vmax.f32 %v545_v43, 0.0  ;;  %v825_v48 = vmax.f32 %v673_v44, 0.0  ;;  %v537_v49 = vadd.f32 %v1315_v40, %v536_v45  ;;  %v665_v50 = vadd.f32 %v1315_v40, %v664_v46 }
  0xf0   : > { %v1087_v51 = vpop.f32.mrf.mxu0  ;;  %v1119_v52 = vpop.f32.mrf.mxu1 }
  0xf1   : > { %858 = vst.msk [vmem:[%s1323_s14 + $0x10] sm:$0xff] %vm855_vm0, %v793_v47  ;;  %890 = vst.msk [vmem:[%s1323_s14 + $0x110] sm:$0xff] %vm855_vm0, %v825_v48  ;;  %v791_v53 = vmax.f32 %v537_v49, 0.0  ;;  %v823_v54 = vmax.f32 %v665_v50, 0.0  ;;  %v548_v55 = vadd.f32 %v1087_v51, %v1315_v40  ;;  %v676_v56 = vadd.f32 %v1119_v52, %v1315_v40 }
  0xf2   : > { %v539_v57 = vpop.f32.mrf.mxu0  ;;  %v667_v58 = vpop.f32.mrf.mxu1 }
  0xf3   : > { %856 = vst.msk [vmem:[%s1323_s14] sm:$0xff] %vm855_vm0, %v791_v53  ;;  %888 = vst.msk [vmem:[%s1323_s14 + $0x100] sm:$0xff] %vm855_vm0, %v823_v54  ;;  %v794_v59 = vmax.f32 %v548_v55, 0.0  ;;  %v826_v60 = vmax.f32 %v676_v56, 0.0  ;;  %v540_v61 = vadd.f32 %v1315_v40, %v539_v57  ;;  %v668_v62 = vadd.f32 %v1315_v40, %v667_v58 }
  0xf4   : > { %v1090_v63 = vpop.f32.mrf.mxu0  ;;  %v1122_v0 = vpop.f32.mrf.mxu1 }
  0xf5   : > { %859 = vst.msk [vmem:[%s1323_s14 + $0x18] sm:$0xff] %vm855_vm0, %v794_v59  ;;  %891 = vst.msk [vmem:[%s1323_s14 + $0x118] sm:$0xff] %vm855_vm0, %v826_v60  ;;  %v792_v1 = vmax.f32 %v540_v61, 0.0  ;;  %v824_v2 = vmax.f32 %v668_v62, 0.0  ;;  %v561_v3 = vadd.f32 %v1090_v63, %v1315_v40  ;;  %v689_v4 = vadd.f32 %v1122_v0, %v1315_v40 }
  0xf6   : > { %v552_v5 = vpop.f32.mrf.mxu0  ;;  %v680_v6 = vpop.f32.mrf.mxu1 }
  0xf7   : > { %857 = vst.msk [vmem:[%s1323_s14 + $0x8] sm:$0xff] %vm855_vm0, %v792_v1  ;;  %889 = vst.msk [vmem:[%s1323_s14 + $0x108] sm:$0xff] %vm855_vm0, %v824_v2  ;;  %v797_v7 = vmax.f32 %v561_v3, 0.0  ;;  %v829_v8 = vmax.f32 %v689_v4, 0.0  ;;  %v553_v9 = vadd.f32 %v1315_v40, %v552_v5  ;;  %v681_v10 = vadd.f32 %v1315_v40, %v680_v6 }
  0xf8   : > { %v1091_v11 = vpop.f32.mrf.mxu0  ;;  %v1123_v12 = vpop.f32.mrf.mxu1 }
  0xf9   : > { %862 = vst.msk [vmem:[%s1323_s14 + $0x30] sm:$0xff] %vm855_vm0, %v797_v7  ;;  %894 = vst.msk [vmem:[%s1323_s14 + $0x130] sm:$0xff] %vm855_vm0, %v829_v8  ;;  %v795_v13 = vmax.f32 %v553_v9, 0.0  ;;  %v827_v14 = vmax.f32 %v681_v10, 0.0  ;;  %v564_v15 = vadd.f32 %v1091_v11, %v1315_v40  ;;  %v692_v16 = vadd.f32 %v1123_v12, %v1315_v40 }
  0xfa   : > { %v555_v17 = vpop.f32.mrf.mxu0  ;;  %v683_v18 = vpop.f32.mrf.mxu1 }
  0xfb   : > { %860 = vst.msk [vmem:[%s1323_s14 + $0x20] sm:$0xff] %vm855_vm0, %v795_v13  ;;  %892 = vst.msk [vmem:[%s1323_s14 + $0x120] sm:$0xff] %vm855_vm0, %v827_v14  ;;  %v798_v19 = vmax.f32 %v564_v15, 0.0  ;;  %v830_v20 = vmax.f32 %v692_v16, 0.0  ;;  %v556_v21 = vadd.f32 %v1315_v40, %v555_v17  ;;  %v684_v22 = vadd.f32 %v1315_v40, %v683_v18 }
  0xfc   : > { %v1094_v23 = vpop.f32.mrf.mxu0  ;;  %v1126_v24 = vpop.f32.mrf.mxu1 }
  0xfd   : > { %863 = vst.msk [vmem:[%s1323_s14 + $0x38] sm:$0xff] %vm855_vm0, %v798_v19  ;;  %895 = vst.msk [vmem:[%s1323_s14 + $0x138] sm:$0xff] %vm855_vm0, %v830_v20  ;;  %v796_v25 = vmax.f32 %v556_v21, 0.0  ;;  %v828_v26 = vmax.f32 %v684_v22, 0.0  ;;  %v577_v27 = vadd.f32 %v1094_v23, %v1315_v40  ;;  %v705_v28 = vadd.f32 %v1126_v24, %v1315_v40 }
  0xfe   : > { %v568_v29 = vpop.f32.mrf.mxu0  ;;  %v696_v30 = vpop.f32.mrf.mxu1 }
  0xff   : > { %861 = vst.msk [vmem:[%s1323_s14 + $0x28] sm:$0xff] %vm855_vm0, %v796_v25  ;;  %893 = vst.msk [vmem:[%s1323_s14 + $0x128] sm:$0xff] %vm855_vm0, %v828_v26  ;;  %v801_v31 = vmax.f32 %v577_v27, 0.0  ;;  %v833_v32 = vmax.f32 %v705_v28, 0.0  ;;  %v569_v33 = vadd.f32 %v1315_v40, %v568_v29  ;;  %v697_v34 = vadd.f32 %v1315_v40, %v696_v30 }
 0x100   : > { %v1095_v35 = vpop.f32.mrf.mxu0  ;;  %v1127_v36 = vpop.f32.mrf.mxu1 }
 0x101   : > { %866 = vst.msk [vmem:[%s1323_s14 + $0x50] sm:$0xff] %vm855_vm0, %v801_v31  ;;  %898 = vst.msk [vmem:[%s1323_s14 + $0x150] sm:$0xff] %vm855_vm0, %v833_v32  ;;  %v799_v37 = vmax.f32 %v569_v33, 0.0  ;;  %v831_v38 = vmax.f32 %v697_v34, 0.0  ;;  %v580_v39 = vadd.f32 %v1095_v35, %v1315_v40  ;;  %v708_v41 = vadd.f32 %v1127_v36, %v1315_v40 }
 0x102   : > { %v571_v42 = vpop.f32.mrf.mxu0  ;;  %v699_v43 = vpop.f32.mrf.mxu1 }
 0x103   : > { %864 = vst.msk [vmem:[%s1323_s14 + $0x40] sm:$0xff] %vm855_vm0, %v799_v37  ;;  %896 = vst.msk [vmem:[%s1323_s14 + $0x140] sm:$0xff] %vm855_vm0, %v831_v38  ;;  %v802_v44 = vmax.f32 %v580_v39, 0.0  ;;  %v834_v45 = vmax.f32 %v708_v41, 0.0  ;;  %v572_v46 = vadd.f32 %v1315_v40, %v571_v42  ;;  %v700_v47 = vadd.f32 %v1315_v40, %v699_v43 }
 0x104   : > { %v1098_v48 = vpop.f32.mrf.mxu0  ;;  %v1130_v49 = vpop.f32.mrf.mxu1 }
 0x105   : > { %867 = vst.msk [vmem:[%s1323_s14 + $0x58] sm:$0xff] %vm855_vm0, %v802_v44  ;;  %899 = vst.msk [vmem:[%s1323_s14 + $0x158] sm:$0xff] %vm855_vm0, %v834_v45  ;;  %v800_v50 = vmax.f32 %v572_v46, 0.0  ;;  %v832_v51 = vmax.f32 %v700_v47, 0.0  ;;  %v593_v52 = vadd.f32 %v1098_v48, %v1315_v40  ;;  %v721_v53 = vadd.f32 %v1130_v49, %v1315_v40 }
 0x106   : > { %v584_v54 = vpop.f32.mrf.mxu0  ;;  %v712_v55 = vpop.f32.mrf.mxu1 }
 0x107   : > { %865 = vst.msk [vmem:[%s1323_s14 + $0x48] sm:$0xff] %vm855_vm0, %v800_v50  ;;  %897 = vst.msk [vmem:[%s1323_s14 + $0x148] sm:$0xff] %vm855_vm0, %v832_v51  ;;  %v805_v56 = vmax.f32 %v593_v52, 0.0  ;;  %v837_v57 = vmax.f32 %v721_v53, 0.0  ;;  %v585_v58 = vadd.f32 %v1315_v40, %v584_v54  ;;  %v713_v59 = vadd.f32 %v1315_v40, %v712_v55 }
 0x108   : > { %v1099_v60 = vpop.f32.mrf.mxu0  ;;  %v1131_v61 = vpop.f32.mrf.mxu1 }
 0x109   : > { %870 = vst.msk [vmem:[%s1323_s14 + $0x70] sm:$0xff] %vm855_vm0, %v805_v56  ;;  %902 = vst.msk [vmem:[%s1323_s14 + $0x170] sm:$0xff] %vm855_vm0, %v837_v57  ;;  %v803_v62 = vmax.f32 %v585_v58, 0.0  ;;  %v835_v63 = vmax.f32 %v713_v59, 0.0  ;;  %v596_v0 = vadd.f32 %v1099_v60, %v1315_v40  ;;  %v724_v1 = vadd.f32 %v1131_v61, %v1315_v40 }
 0x10a   : > { %v587_v2 = vpop.f32.mrf.mxu0  ;;  %v715_v3 = vpop.f32.mrf.mxu1 }
 0x10b   : > { %868 = vst.msk [vmem:[%s1323_s14 + $0x60] sm:$0xff] %vm855_vm0, %v803_v62  ;;  %900 = vst.msk [vmem:[%s1323_s14 + $0x160] sm:$0xff] %vm855_vm0, %v835_v63  ;;  %v806_v4 = vmax.f32 %v596_v0, 0.0  ;;  %v838_v5 = vmax.f32 %v724_v1, 0.0  ;;  %v588_v6 = vadd.f32 %v1315_v40, %v587_v2  ;;  %v716_v7 = vadd.f32 %v1315_v40, %v715_v3 }
 0x10c   : > { %v1102_v8 = vpop.f32.mrf.mxu0  ;;  %v1134_v9 = vpop.f32.mrf.mxu1 }
 0x10d   : > { %871 = vst.msk [vmem:[%s1323_s14 + $0x78] sm:$0xff] %vm855_vm0, %v806_v4  ;;  %903 = vst.msk [vmem:[%s1323_s14 + $0x178] sm:$0xff] %vm855_vm0, %v838_v5  ;;  %v804_v10 = vmax.f32 %v588_v6, 0.0  ;;  %v836_v11 = vmax.f32 %v716_v7, 0.0  ;;  %v609_v12 = vadd.f32 %v1102_v8, %v1315_v40  ;;  %v737_v13 = vadd.f32 %v1134_v9, %v1315_v40 }
 0x10e   : > { %v600_v14 = vpop.f32.mrf.mxu0  ;;  %v728_v15 = vpop.f32.mrf.mxu1 }
 0x10f   : > { %869 = vst.msk [vmem:[%s1323_s14 + $0x68] sm:$0xff] %vm855_vm0, %v804_v10  ;;  %901 = vst.msk [vmem:[%s1323_s14 + $0x168] sm:$0xff] %vm855_vm0, %v836_v11  ;;  %v809_v16 = vmax.f32 %v609_v12, 0.0  ;;  %v841_v17 = vmax.f32 %v737_v13, 0.0  ;;  %v601_v18 = vadd.f32 %v1315_v40, %v600_v14  ;;  %v729_v19 = vadd.f32 %v1315_v40, %v728_v15 }
 0x110   : > { %v1103_v20 = vpop.f32.mrf.mxu0  ;;  %v1135_v21 = vpop.f32.mrf.mxu1 }
 0x111   : > { %874 = vst.msk [vmem:[%s1323_s14 + $0x90] sm:$0xff] %vm855_vm0, %v809_v16  ;;  %906 = vst.msk [vmem:[%s1323_s14 + $0x190] sm:$0xff] %vm855_vm0, %v841_v17  ;;  %v807_v22 = vmax.f32 %v601_v18, 0.0  ;;  %v839_v23 = vmax.f32 %v729_v19, 0.0  ;;  %v612_v24 = vadd.f32 %v1103_v20, %v1315_v40  ;;  %v740_v25 = vadd.f32 %v1135_v21, %v1315_v40 }
 0x112   : > { %v603_v26 = vpop.f32.mrf.mxu0  ;;  %v731_v27 = vpop.f32.mrf.mxu1 }
 0x113   : > { %872 = vst.msk [vmem:[%s1323_s14 + $0x80] sm:$0xff] %vm855_vm0, %v807_v22  ;;  %904 = vst.msk [vmem:[%s1323_s14 + $0x180] sm:$0xff] %vm855_vm0, %v839_v23  ;;  %v810_v28 = vmax.f32 %v612_v24, 0.0  ;;  %v842_v29 = vmax.f32 %v740_v25, 0.0  ;;  %v604_v30 = vadd.f32 %v1315_v40, %v603_v26  ;;  %v732_v31 = vadd.f32 %v1315_v40, %v731_v27 }
 0x114   : > { %v1106_v32 = vpop.f32.mrf.mxu0  ;;  %v1138_v33 = vpop.f32.mrf.mxu1 }
 0x115   : > { %875 = vst.msk [vmem:[%s1323_s14 + $0x98] sm:$0xff] %vm855_vm0, %v810_v28  ;;  %907 = vst.msk [vmem:[%s1323_s14 + $0x198] sm:$0xff] %vm855_vm0, %v842_v29  ;;  %v808_v34 = vmax.f32 %v604_v30, 0.0  ;;  %v840_v35 = vmax.f32 %v732_v31, 0.0  ;;  %v625_v36 = vadd.f32 %v1106_v32, %v1315_v40  ;;  %v753_v37 = vadd.f32 %v1138_v33, %v1315_v40 }
 0x116   : > { %v616_v38 = vpop.f32.mrf.mxu0  ;;  %v744_v39 = vpop.f32.mrf.mxu1 }
 0x117   : > { %873 = vst.msk [vmem:[%s1323_s14 + $0x88] sm:$0xff] %vm855_vm0, %v808_v34  ;;  %905 = vst.msk [vmem:[%s1323_s14 + $0x188] sm:$0xff] %vm855_vm0, %v840_v35  ;;  %v813_v41 = vmax.f32 %v625_v36, 0.0  ;;  %v845_v42 = vmax.f32 %v753_v37, 0.0  ;;  %v617_v43 = vadd.f32 %v1315_v40, %v616_v38  ;;  %v745_v44 = vadd.f32 %v1315_v40, %v744_v39 }
 0x118   : > { %v1107_v45 = vpop.f32.mrf.mxu0  ;;  %v1139_v46 = vpop.f32.mrf.mxu1 }
 0x119   : > { %878 = vst.msk [vmem:[%s1323_s14 + $0xb0] sm:$0xff] %vm855_vm0, %v813_v41  ;;  %910 = vst.msk [vmem:[%s1323_s14 + $0x1b0] sm:$0xff] %vm855_vm0, %v845_v42  ;;  %v811_v47 = vmax.f32 %v617_v43, 0.0  ;;  %v843_v48 = vmax.f32 %v745_v44, 0.0  ;;  %v628_v49 = vadd.f32 %v1107_v45, %v1315_v40  ;;  %v756_v50 = vadd.f32 %v1139_v46, %v1315_v40 }
 0x11a   : > { %v619_v51 = vpop.f32.mrf.mxu0  ;;  %v747_v52 = vpop.f32.mrf.mxu1 }
 0x11b   : > { %876 = vst.msk [vmem:[%s1323_s14 + $0xa0] sm:$0xff] %vm855_vm0, %v811_v47  ;;  %908 = vst.msk [vmem:[%s1323_s14 + $0x1a0] sm:$0xff] %vm855_vm0, %v843_v48  ;;  %v814_v53 = vmax.f32 %v628_v49, 0.0  ;;  %v846_v54 = vmax.f32 %v756_v50, 0.0  ;;  %v620_v55 = vadd.f32 %v1315_v40, %v619_v51  ;;  %v748_v56 = vadd.f32 %v1315_v40, %v747_v52 }
 0x11c   : > { %v1110_v57 = vpop.f32.mrf.mxu0  ;;  %v1142_v58 = vpop.f32.mrf.mxu1 }
 0x11d   : > { %879 = vst.msk [vmem:[%s1323_s14 + $0xb8] sm:$0xff] %vm855_vm0, %v814_v53  ;;  %911 = vst.msk [vmem:[%s1323_s14 + $0x1b8] sm:$0xff] %vm855_vm0, %v846_v54  ;;  %v812_v59 = vmax.f32 %v620_v55, 0.0  ;;  %v844_v60 = vmax.f32 %v748_v56, 0.0  ;;  %v641_v61 = vadd.f32 %v1110_v57, %v1315_v40  ;;  %v769_v62 = vadd.f32 %v1142_v58, %v1315_v40 }
 0x11e   : > { %v632_v63 = vpop.f32.mrf.mxu0  ;;  %v760_v0 = vpop.f32.mrf.mxu1 }
 0x11f   : > { %877 = vst.msk [vmem:[%s1323_s14 + $0xa8] sm:$0xff] %vm855_vm0, %v812_v59  ;;  %909 = vst.msk [vmem:[%s1323_s14 + $0x1a8] sm:$0xff] %vm855_vm0, %v844_v60  ;;  %v817_v1 = vmax.f32 %v641_v61, 0.0  ;;  %v849_v2 = vmax.f32 %v769_v62, 0.0  ;;  %v633_v3 = vadd.f32 %v1315_v40, %v632_v63  ;;  %v761_v4 = vadd.f32 %v1315_v40, %v760_v0 }
 0x120   : > { %v1111_v5 = vpop.f32.mrf.mxu0  ;;  %v1143_v6 = vpop.f32.mrf.mxu1 }
 0x121   : > { %882 = vst.msk [vmem:[%s1323_s14 + $0xd0] sm:$0xff] %vm855_vm0, %v817_v1  ;;  %914 = vst.msk [vmem:[%s1323_s14 + $0x1d0] sm:$0xff] %vm855_vm0, %v849_v2  ;;  %v815_v7 = vmax.f32 %v633_v3, 0.0  ;;  %v847_v8 = vmax.f32 %v761_v4, 0.0  ;;  %v644_v9 = vadd.f32 %v1111_v5, %v1315_v40  ;;  %v772_v10 = vadd.f32 %v1143_v6, %v1315_v40 }
 0x122   : > { %v635_v11 = vpop.f32.mrf.mxu0  ;;  %v763_v12 = vpop.f32.mrf.mxu1 }
 0x123   : > { %880 = vst.msk [vmem:[%s1323_s14 + $0xc0] sm:$0xff] %vm855_vm0, %v815_v7  ;;  %912 = vst.msk [vmem:[%s1323_s14 + $0x1c0] sm:$0xff] %vm855_vm0, %v847_v8  ;;  %v818_v13 = vmax.f32 %v644_v9, 0.0  ;;  %v850_v14 = vmax.f32 %v772_v10, 0.0  ;;  %v636_v15 = vadd.f32 %v1315_v40, %v635_v11  ;;  %v764_v16 = vadd.f32 %v1315_v40, %v763_v12 }
 0x124   : > { %v1114_v17 = vpop.f32.mrf.mxu0  ;;  %v1146_v18 = vpop.f32.mrf.mxu1 }
 0x125   : > { %883 = vst.msk [vmem:[%s1323_s14 + $0xd8] sm:$0xff] %vm855_vm0, %v818_v13  ;;  %915 = vst.msk [vmem:[%s1323_s14 + $0x1d8] sm:$0xff] %vm855_vm0, %v850_v14  ;;  %v816_v19 = vmax.f32 %v636_v15, 0.0  ;;  %v848_v20 = vmax.f32 %v764_v16, 0.0  ;;  %v657_v21 = vadd.f32 %v1114_v17, %v1315_v40  ;;  %v785_v22 = vadd.f32 %v1146_v18, %v1315_v40 }
 0x126   : > { %v648_v23 = vpop.f32.mrf.mxu0  ;;  %v776_v24 = vpop.f32.mrf.mxu1 }
 0x127   : > { %881 = vst.msk [vmem:[%s1323_s14 + $0xc8] sm:$0xff] %vm855_vm0, %v816_v19  ;;  %913 = vst.msk [vmem:[%s1323_s14 + $0x1c8] sm:$0xff] %vm855_vm0, %v848_v20  ;;  %v821_v25 = vmax.f32 %v657_v21, 0.0  ;;  %v853_v26 = vmax.f32 %v785_v22, 0.0  ;;  %v649_v27 = vadd.f32 %v1315_v40, %v648_v23  ;;  %v777_v28 = vadd.f32 %v1315_v40, %v776_v24 }
 0x128   : > { %v1115_v29 = vpop.f32.mrf.mxu0  ;;  %v1147_v30 = vpop.f32.mrf.mxu1 }
 0x129   : > { %886 = vst.msk [vmem:[%s1323_s14 + $0xf0] sm:$0xff] %vm855_vm0, %v821_v25  ;;  %918 = vst.msk [vmem:[%s1323_s14 + $0x1f0] sm:$0xff] %vm855_vm0, %v853_v26  ;;  %v819_v31 = vmax.f32 %v649_v27, 0.0  ;;  %v851_v32 = vmax.f32 %v777_v28, 0.0  ;;  %v660_v33 = vadd.f32 %v1115_v29, %v1315_v40  ;;  %v788_v34 = vadd.f32 %v1147_v30, %v1315_v40 }
 0x12a   : > { %v651_v35 = vpop.f32.mrf.mxu0  ;;  %v779_v36 = vpop.f32.mrf.mxu1 }
 0x12b   : > { %884 = vst.msk [vmem:[%s1323_s14 + $0xe0] sm:$0xff] %vm855_vm0, %v819_v31  ;;  %916 = vst.msk [vmem:[%s1323_s14 + $0x1e0] sm:$0xff] %vm855_vm0, %v851_v32  ;;  %v822_v37 = vmax.f32 %v660_v33, 0.0  ;;  %v854_v38 = vmax.f32 %v788_v34, 0.0  ;;  %v652_v39 = vadd.f32 %v1315_v40, %v651_v35  ;;  %v780_v41 = vadd.f32 %v1315_v40, %v779_v36 }
 0x12d   : > { %887 = vst.msk [vmem:[%s1323_s14 + $0xf8] sm:$0xff] %vm855_vm0, %v822_v37  ;;  %919 = vst.msk [vmem:[%s1323_s14 + $0x1f8] sm:$0xff] %vm855_vm0, %v854_v38  ;;  %v820_v42 = vmax.f32 %v652_v39, 0.0  ;;  %v852_v43 = vmax.f32 %v780_v41, 0.0 }
 0x12f   : > { %885 = vst.msk [vmem:[%s1323_s14 + $0xe8] sm:$0xff] %vm855_vm0, %v820_v42  ;;  %917 = vst.msk [vmem:[%s1323_s14 + $0x1e8] sm:$0xff] %vm855_vm0, %v852_v43 }
 0x130 PF: > { %s13_s12 = sadd.s32 1, %s1218_s12  }
 0x131   : > { %p10_p4 = scmp.ge.s32.totalorder %s13_s12, 18  }
 0x133   :  { %12 = sbr.rel (!%p10_p4) target bundleno = 1 (0x1), region = 62 }

// kernel: encoder_forward.10
= control target key start
LH: loop header
LB: loop body
LE: loop exit
PB: predicated region body
PF: predicated region fallthrough
CT: control target
= control target key end

     0   :  { %s1447_s12 = smov 0   ;;  %s1816_s0 = inlined_call_operand.vmem [shape: bf16[2048,256], index: 0, kind: input, shape index: {}]   ;;  %s1817_s1 = inlined_call_operand.vmem [shape: bf16[256,32], index: 1, kind: input, shape index: {}]   ;;  %s1818_s2 = inlined_call_operand.vmem [shape: f32[1,32], index: 2, kind: input, shape index: {}]   ;;  %s1819_s3 = inlined_call_operand.vmem [shape: f32[2048,32], index: 3, kind: output, shape index: {}]  }
   0x1 LB: > { %s1171_s13 = sadd.s32 4294967295, %s1424_s12   ;;  %p1175_p0 = scmp.ge.s32.totalorder %s1424_s12, 1  ;;  %s1424_s12 = sphi %s1447_s12, %s13_s12  }
   0x2   : > { %p139_p1 = scmp.lt.s32.totalorder %s1424_s12, 5 }
   0x4   : > { %p140_p2 = pnand %p1175_p0, %p139_p1 }
   0x5   : > { %s1176_s16 = sshll.u32 (!%p140_p2), %s1171_s13, 6 }
   0x6   : > { %143 = sbr.rel (%p140_p2) target bundleno = 398 (0x18e), region = 32  ;;  %p165_p3 = scmp.lt.s32.totalorder (!%p140_p2), %s1176_s16, 255 }
   0xb   : > { %v1306_v0 = vld [vmem:[%s1817_s1 + $0x38] sm:$0xff]   ;;  %v1426_v1 = vmov 0   ;;  %v1307_v2 = vld [vmem:[%s1817_s1 + $0x30] sm:$0xff]   ;;  %v1308_v3 = vld [vmem:[%s1817_s1 + $0x28] sm:$0xff]   ;;  %s1821_s16 = smov (!%p165_p3, %s1176_s16), 255  ;;  %vm1050_vm0 = vcmask 261120  }
   0xc   : > { %697 = vmatprep.subr.bf16.mxu0 %v1426_v1  ;;  %1265 = vmatprep.subr.bf16.mxu1 %v1426_v1  ;;  %v1309_v4 = vld [vmem:[%s1817_s1 + $0x20] sm:$0xff]   ;;  %s1264_s23 = sshll.u32 %s1821_s16, 3  ;;  %v1310_v5 = vld [vmem:[%s1817_s1 + $0x18] sm:$0xff]   ;;  %v1311_v7 = vld [vmem:[%s1817_s1 + $0x10] sm:$0xff]  }
   0xd   : > { %698 = vmatpush1.bf16.msra.mxu0 %v1306_v0  ;;  %1281 = vmatpush1.bf16.msra.mxu1 %v1306_v0  ;;  %s1486_s28 = scalar_lea.vmem %s1816_s0, %s1264_s23  ;;  %v1312_v9 = vld [vmem:[%s1817_s1 + $0x8] sm:$0xff]   ;;  %v1313_v10 = vld [vmem:[%s1817_s1] sm:$0xff]   ;;  %v1314_v11 = vld [vmem:[%s1817_s1 + $0x78] sm:$0xff]   ;;  %s1621_s5 = scalar_lea.vmem %s1819_s3, %s1264_s23 }
   0xe   : > { %699 = vmatprep.subr.bf16.mxu0 %v1426_v1  ;;  %1266 = vmatprep.subr.bf16.mxu1 %v1426_v1  ;;  %v1324_v6 = vld [vmem:[%s1486_s28 + $0x4] ss:$8 sps:$4 sm:$0xff]   ;;  %v1315_v12 = vld [vmem:[%s1817_s1 + $0x70] sm:$0xff]   ;;  %v1318_v15 = vld [vmem:[%s1817_s1 + $0x58] sm:$0xff]  }
   0xf   : > { %v1327_v8 = vld [vmem:[%s1486_s28 + $0x104] ss:$8 sps:$4 sm:$0xff]   ;;  %729 = vmatprep.mubr.bf16.mxu0 %v1324_v6  ;;  %v1319_v16 = vld [vmem:[%s1817_s1 + $0x50] sm:$0xff]   ;;  %v1322_v19 = vld [vmem:[%s1486_s28] ss:$8 sps:$4 sm:$0xff]  }
  0x10   : > { %857 = vmatprep.mubr.bf16.mxu1 %v1327_v8  ;;  %v1316_v13 = vld [vmem:[%s1817_s1 + $0x68] sm:$0xff]   ;;  %v1317_v14 = vld [vmem:[%s1817_s1 + $0x60] sm:$0xff]   ;;  %v1328_v21 = vld [vmem:[%s1486_s28 + $0x14] ss:$8 sps:$4 sm:$0xff]  }
  0x11   : > { %700 = vmatpush1.bf16.msra.mxu0 %v1307_v2  ;;  %1282 = vmatpush1.bf16.msra.mxu1 %v1307_v2  ;;  %v1320_v17 = vld [vmem:[%s1817_s1 + $0x48] sm:$0xff]   ;;  %v1321_v18 = vld [vmem:[%s1817_s1 + $0x40] sm:$0xff]   ;;  %v1330_v22 = vld [vmem:[%s1486_s28 + $0x114] ss:$8 sps:$4 sm:$0xff]  }
  0x12   : > { %701 = vmatprep.subr.bf16.mxu0 %v1426_v1  ;;  %1267 = vmatprep.subr.bf16.mxu1 %v1426_v1  ;;  %v1325_v20 = vld [vmem:[%s1486_s28 + $0x100] ss:$8 sps:$4 sm:$0xff]   ;;  %v1332_v23 = vld [vmem:[%s1486_s28 + $0x10] ss:$8 sps:$4 sm:$0xff]   ;;  %v1334_v25 = vld [vmem:[%s1486_s28 + $0x24] ss:$8 sps:$4 sm:$0xff]  }
  0x13   : > { %v1333_v24 = vld [vmem:[%s1486_s28 + $0x110] ss:$8 sps:$4 sm:$0xff]   ;;  %v1336_v26 = vld [vmem:[%s1486_s28 + $0x124] ss:$8 sps:$4 sm:$0xff]   ;;  %v1338_v27 = vld [vmem:[%s1486_s28 + $0x20] ss:$8 sps:$4 sm:$0xff]  }
  0x14   : > { %v1339_v28 = vld [vmem:[%s1486_s28 + $0x120] ss:$8 sps:$4 sm:$0xff]   ;;  %v1340_v29 = vld [vmem:[%s1486_s28 + $0x34] ss:$8 sps:$4 sm:$0xff]   ;;  %v1344_v31 = vld [vmem:[%s1486_s28 + $0x30] ss:$8 sps:$4 sm:$0xff]  }
  0x15   : > { %702 = vmatpush1.bf16.msra.mxu0 %v1308_v3  ;;  %1283 = vmatpush1.bf16.msra.mxu1 %v1308_v3  ;;  %v1342_v30 = vld [vmem:[%s1486_s28 + $0x134] ss:$8 sps:$4 sm:$0xff]   ;;  %v1345_v32 = vld [vmem:[%s1486_s28 + $0x130] ss:$8 sps:$4 sm:$0xff]   ;;  %v1346_v33 = vld [vmem:[%s1486_s28 + $0x44] ss:$8 sps:$4 sm:$0xff]  }
  0x16   : > { %703 = vmatprep.subr.bf16.mxu0 %v1426_v1  ;;  %1268 = vmatprep.subr.bf16.mxu1 %v1426_v1  ;;  %v1348_v34 = vld [vmem:[%s1486_s28 + $0x144] ss:$8 sps:$4 sm:$0xff]   ;;  %v1350_v35 = vld [vmem:[%s1486_s28 + $0x40] ss:$8 sps:$4 sm:$0xff]   ;;  %v1352_v37 = vld [vmem:[%s1486_s28 + $0x54] ss:$8 sps:$4 sm:$0xff]  }
  0x17   : > { %v1351_v36 = vld [vmem:[%s1486_s28 + $0x140] ss:$8 sps:$4 sm:$0xff]   ;;  %v1354_v38 = vld [vmem:[%s1486_s28 + $0x154] ss:$8 sps:$4 sm:$0xff]   ;;  %v1356_v39 = vld [vmem:[%s1486_s28 + $0x50] ss:$8 sps:$4 sm:$0xff]  }
  0x18   : > { %v1357_v40 = vld [vmem:[%s1486_s28 + $0x150] ss:$8 sps:$4 sm:$0xff]   ;;  %v1358_v41 = vld [vmem:[%s1486_s28 + $0x64] ss:$8 sps:$4 sm:$0xff]   ;;  %v1362_v43 = vld [vmem:[%s1486_s28 + $0x60] ss:$8 sps:$4 sm:$0xff]  }
  0x19   : > { %704 = vmatpush1.bf16.msra.mxu0 %v1309_v4  ;;  %1284 = vmatpush1.bf16.msra.mxu1 %v1309_v4  ;;  %v1360_v42 = vld [vmem:[%s1486_s28 + $0x164] ss:$8 sps:$4 sm:$0xff]   ;;  %v1363_v44 = vld [vmem:[%s1486_s28 + $0x160] ss:$8 sps:$4 sm:$0xff]   ;;  %v1364_v45 = vld [vmem:[%s1486_s28 + $0x74] ss:$8 sps:$4 sm:$0xff]  }
  0x1a   : > { %705 = vmatprep.subr.bf16.mxu0 %v1426_v1  ;;  %1269 = vmatprep.subr.bf16.mxu1 %v1426_v1  ;;  %v1366_v46 = vld [vmem:[%s1486_s28 + $0x174] ss:$8 sps:$4 sm:$0xff]   ;;  %v1368_v47 = vld [vmem:[%s1486_s28 + $0x70] ss:$8 sps:$4 sm:$0xff]   ;;  %v1370_v49 = vld [vmem:[%s1486_s28 + $0x84] ss:$8 sps:$4 sm:$0xff]  }
  0x1b   : > { %v1369_v48 = vld [vmem:[%s1486_s28 + $0x170] ss:$8 sps:$4 sm:$0xff]   ;;  %v1372_v50 = vld [vmem:[%s1486_s28 + $0x184] ss:$8 sps:$4 sm:$0xff]   ;;  %v1374_v51 = vld [vmem:[%s1486_s28 + $0x80] ss:$8 sps:$4 sm:$0xff]  }
  0x1c   : > { %v1375_v52 = vld [vmem:[%s1486_s28 + $0x180] ss:$8 sps:$4 sm:$0xff]   ;;  %v1376_v53 = vld [vmem:[%s1486_s28 + $0x94] ss:$8 sps:$4 sm:$0xff]   ;;  %v1380_v55 = vld [vmem:[%s1486_s28 + $0x90] ss:$8 sps:$4 sm:$0xff]  }
  0x1d   : > { %706 = vmatpush1.bf16.msra.mxu0 %v1310_v5  ;;  %1285 = vmatpush1.bf16.msra.mxu1 %v1310_v5  ;;  %v1378_v54 = vld [vmem:[%s1486_s28 + $0x194] ss:$8 sps:$4 sm:$0xff]   ;;  %v1381_v56 = vld [vmem:[%s1486_s28 + $0x190] ss:$8 sps:$4 sm:$0xff]   ;;  %v1382_v57 = vld [vmem:[%s1486_s28 + $0xa4] ss:$8 sps:$4 sm:$0xff]  }
  0x1e   : > { %707 = vmatprep.subr.bf16.mxu0 %v1426_v1  ;;  %1270 = vmatprep.subr.bf16.mxu1 %v1426_v1  ;;  %v1384_v58 = vld [vmem:[%s1486_s28 + $0x1a4] ss:$8 sps:$4 sm:$0xff]   ;;  %v1386_v59 = vld [vmem:[%s1486_s28 + $0xa0] ss:$8 sps:$4 sm:$0xff]   ;;  %v1388_v61 = vld [vmem:[%s1486_s28 + $0xb4] ss:$8 sps:$4 sm:$0xff]  }
  0x1f   : > { %v1387_v60 = vld [vmem:[%s1486_s28 + $0x1a0] ss:$8 sps:$4 sm:$0xff]   ;;  %v1390_v62 = vld [vmem:[%s1486_s28 + $0x1b4] ss:$8 sps:$4 sm:$0xff]   ;;  %v1392_v63 = vld [vmem:[%s1486_s28 + $0xb0] ss:$8 sps:$4 sm:$0xff]  }
  0x20   : > { %v1393_v0 = vld [vmem:[%s1486_s28 + $0x1b0] ss:$8 sps:$4 sm:$0xff]   ;;  %v1396_v2 = vld [vmem:[%s1486_s28 + $0x1c4] ss:$8 sps:$4 sm:$0xff]   ;;  %v1398_v3 = vld [vmem:[%s1486_s28 + $0xc0] ss:$8 sps:$4 sm:$0xff]  }
  0x21   : > { %708 = vmatpush1.bf16.msra.mxu0 %v1311_v7  ;;  %1286 = vmatpush1.bf16.msra.mxu1 %v1311_v7  ;;  %v1399_v4 = vld [vmem:[%s1486_s28 + $0x1c0] ss:$8 sps:$4 sm:$0xff]   ;;  %v1400_v5 = vld [vmem:[%s1486_s28 + $0xd4] ss:$8 sps:$4 sm:$0xff]   ;;  %v1404_v7 = vld [vmem:[%s1486_s28 + $0xd0] ss:$8 sps:$4 sm:$0xff]  }
  0x22   : > { %709 = vmatprep.subr.bf16.mxu0 %v1426_v1  ;;  %1271 = vmatprep.subr.bf16.mxu1 %v1426_v1  ;;  %v1402_v6 = vld [vmem:[%s1486_s28 + $0x1d4] ss:$8 sps:$4 sm:$0xff]   ;;  %v1405_v8 = vld [vmem:[%s1486_s28 + $0x1d0] ss:$8 sps:$4 sm:$0xff]  }
  0x25   : > { %710 = vmatpush1.bf16.msra.mxu0 %v1312_v9  ;;  %1287 = vmatpush1.bf16.msra.mxu1 %v1312_v9  ;;  %v1406_v9 = vld [vmem:[%s1486_s28 + $0xe4] ss:$8 sps:$4 sm:$0xff]  }
  0x26   : > { %711 = vmatprep.subr.bf16.mxu0 %v1426_v1  ;;  %1272 = vmatprep.subr.bf16.mxu1 %v1426_v1 }
  0x29   : > { %712 = vmatpush1.bf16.msra.mxu0 %v1313_v10  ;;  %1288 = vmatpush1.bf16.msra.mxu1 %v1313_v10  ;;  %v1408_v10 = vld [vmem:[%s1486_s28 + $0x1e4] ss:$8 sps:$4 sm:$0xff]  }
  0x2a   : > { %713 = vmatprep.subr.bf16.mxu0 %v1426_v1  ;;  %1273 = vmatprep.subr.bf16.mxu1 %v1426_v1 }
  0x2d   : > { %714 = vmatpush2.bf16.msra.mxu0 %v1314_v11  ;;  %1289 = vmatpush2.bf16.msra.mxu1 %v1314_v11  ;;  %v1410_v11 = vld [vmem:[%s1486_s28 + $0xe0] ss:$8 sps:$4 sm:$0xff]  }
  0x2e   : > { %715 = vmatprep.subr.bf16.mxu0 %v1426_v1  ;;  %1274 = vmatprep.subr.bf16.mxu1 %v1426_v1 }
  0x31   : > { %716 = vmatpush2.bf16.msra.mxu0 %v1315_v12  ;;  %1290 = vmatpush2.bf16.msra.mxu1 %v1315_v12  ;;  %v1411_v12 = vld [vmem:[%s1486_s28 + $0x1e0] ss:$8 sps:$4 sm:$0xff]  }
  0x32   : > { %717 = vmatprep.subr.bf16.mxu0 %v1426_v1  ;;  %1275 = vmatprep.subr.bf16.mxu1 %v1426_v1 }
  0x35   : > { %718 = vmatpush2.bf16.msra.mxu0 %v1316_v13  ;;  %1291 = vmatpush2.bf16.msra.mxu1 %v1316_v13  ;;  %v1412_v13 = vld [vmem:[%s1486_s28 + $0xf4] ss:$8 sps:$4 sm:$0xff]  }
  0x36   : > { %719 = vmatprep.subr.bf16.mxu0 %v1426_v1  ;;  %1276 = vmatprep.subr.bf16.mxu1 %v1426_v1 }
  0x39   : > { %720 = vmatpush2.bf16.msra.mxu0 %v1317_v14  ;;  %1292 = vmatpush2.bf16.msra.mxu1 %v1317_v14  ;;  %v1414_v14 = vld [vmem:[%s1486_s28 + $0x1f4] ss:$8 sps:$4 sm:$0xff]  }
  0x3a   : > { %721 = vmatprep.subr.bf16.mxu0 %v1426_v1  ;;  %1277 = vmatprep.subr.bf16.mxu1 %v1426_v1 }
  0x3d   : > { %722 = vmatpush2.bf16.msra.mxu0 %v1318_v15  ;;  %1293 = vmatpush2.bf16.msra.mxu1 %v1318_v15  ;;  %v1416_v15 = vld [vmem:[%s1486_s28 + $0xf0] ss:$8 sps:$4 sm:$0xff]  }
  0x3e   : > { %723 = vmatprep.subr.bf16.mxu0 %v1426_v1  ;;  %1278 = vmatprep.subr.bf16.mxu1 %v1426_v1 }
  0x41   : > { %724 = vmatpush2.bf16.msra.mxu0 %v1319_v16  ;;  %1294 = vmatpush2.bf16.msra.mxu1 %v1319_v16  ;;  %v1417_v16 = vld [vmem:[%s1486_s28 + $0x1f0] ss:$8 sps:$4 sm:$0xff]  }
  0x42   : > { %725 = vmatprep.subr.bf16.mxu0 %v1426_v1  ;;  %1279 = vmatprep.subr.bf16.mxu1 %v1426_v1 }
  0x45   : > { %726 = vmatpush2.bf16.msra.mxu0 %v1320_v17  ;;  %1295 = vmatpush2.bf16.msra.mxu1 %v1320_v17  ;;  %v1612_v17 = vld [vmem:[%s1818_s2] ss:$0 sm:$0xff] }
  0x46   : > { %727 = vmatprep.subr.bf16.mxu0 %v1426_v1  ;;  %1280 = vmatprep.subr.bf16.mxu1 %v1426_v1  ;;  %v1394_v1 = vld [vmem:[%s1486_s28 + $0xc4] ss:$8 sps:$4 sm:$0xff]  }
  0x49   : > { %728 = vmatpush2.bf16.msra.mxu0 %v1321_v18  ;;  %1296 = vmatpush2.bf16.msra.mxu1 %v1321_v18 }
  0x4c   : > { %730 = vmatmul.mubr.bf16.vlgmr.msra.gmra.mxu0 %v1322_v19  ;;  %858 = vmatmul.mubr.bf16.vlgmr.msra.gmra.mxu1 %v1325_v20 }
  0x4d   : > { %737 = vmatprep.mubr.bf16.mxu0 %v1328_v21  ;;  %865 = vmatprep.mubr.bf16.mxu1 %v1330_v22 }
  0x54   : > { %738 = vmatmul.mubr.bf16.gmra.mxu0 %v1332_v23  ;;  %866 = vmatmul.mubr.bf16.gmra.mxu1 %v1333_v24 }
  0x55   : > { %745 = vmatprep.mubr.bf16.mxu0 %v1334_v25  ;;  %873 = vmatprep.mubr.bf16.mxu1 %v1336_v26 }
  0x5c   : > { %746 = vmatmul.mubr.bf16.gmra.mxu0 %v1338_v27  ;;  %874 = vmatmul.mubr.bf16.gmra.mxu1 %v1339_v28 }
  0x5d   : > { %753 = vmatprep.mubr.bf16.mxu0 %v1340_v29  ;;  %881 = vmatprep.mubr.bf16.mxu1 %v1342_v30 }
  0x64   : > { %754 = vmatmul.mubr.bf16.gmra.mxu0 %v1344_v31  ;;  %882 = vmatmul.mubr.bf16.gmra.mxu1 %v1345_v32 }
  0x65   : > { %761 = vmatprep.mubr.bf16.mxu0 %v1346_v33  ;;  %889 = vmatprep.mubr.bf16.mxu1 %v1348_v34 }
  0x6c   : > { %762 = vmatmul.mubr.bf16.gmra.mxu0 %v1350_v35  ;;  %890 = vmatmul.mubr.bf16.gmra.mxu1 %v1351_v36 }
  0x6d   : > { %769 = vmatprep.mubr.bf16.mxu0 %v1352_v37  ;;  %897 = vmatprep.mubr.bf16.mxu1 %v1354_v38 }
  0x74   : > { %770 = vmatmul.mubr.bf16.gmra.mxu0 %v1356_v39  ;;  %898 = vmatmul.mubr.bf16.gmra.mxu1 %v1357_v40 }
  0x75   : > { %777 = vmatprep.mubr.bf16.mxu0 %v1358_v41  ;;  %905 = vmatprep.mubr.bf16.mxu1 %v1360_v42 }
  0x7c   : > { %778 = vmatmul.mubr.bf16.gmra.mxu0 %v1362_v43  ;;  %906 = vmatmul.mubr.bf16.gmra.mxu1 %v1363_v44 }
  0x7d   : > { %785 = vmatprep.mubr.bf16.mxu0 %v1364_v45  ;;  %913 = vmatprep.mubr.bf16.mxu1 %v1366_v46 }
  0x84   : > { %786 = vmatmul.mubr.bf16.gmra.mxu0 %v1368_v47  ;;  %914 = vmatmul.mubr.bf16.gmra.mxu1 %v1369_v48 }
  0x85   : > { %793 = vmatprep.mubr.bf16.mxu0 %v1370_v49  ;;  %921 = vmatprep.mubr.bf16.mxu1 %v1372_v50 }
  0x8c   : > { %794 = vmatmul.mubr.bf16.gmra.mxu0 %v1374_v51  ;;  %922 = vmatmul.mubr.bf16.gmra.mxu1 %v1375_v52 }
  0x8d   : > { %801 = vmatprep.mubr.bf16.mxu0 %v1376_v53  ;;  %929 = vmatprep.mubr.bf16.mxu1 %v1378_v54 }
  0x94   : > { %802 = vmatmul.mubr.bf16.gmra.mxu0 %v1380_v55  ;;  %930 = vmatmul.mubr.bf16.gmra.mxu1 %v1381_v56 }
  0x95   : > { %809 = vmatprep.mubr.bf16.mxu0 %v1382_v57  ;;  %937 = vmatprep.mubr.bf16.mxu1 %v1384_v58 }
  0x9c   : > { %810 = vmatmul.mubr.bf16.gmra.mxu0 %v1386_v59  ;;  %938 = vmatmul.mubr.bf16.gmra.mxu1 %v1387_v60 }
  0x9d   : > { %817 = vmatprep.mubr.bf16.mxu0 %v1388_v61  ;;  %945 = vmatprep.mubr.bf16.mxu1 %v1390_v62 }
  0xa4   : > { %818 = vmatmul.mubr.bf16.gmra.mxu0 %v1392_v63  ;;  %946 = vmatmul.mubr.bf16.gmra.mxu1 %v1393_v0 }
  0xa5   : > { %825 = vmatprep.mubr.bf16.mxu0 %v1394_v1  ;;  %953 = vmatprep.mubr.bf16.mxu1 %v1396_v2 }
  0xac   : > { %826 = vmatmul.mubr.bf16.gmra.mxu0 %v1398_v3  ;;  %954 = vmatmul.mubr.bf16.gmra.mxu1 %v1399_v4 }
  0xad   : > { %833 = vmatprep.mubr.bf16.mxu0 %v1400_v5  ;;  %961 = vmatprep.mubr.bf16.mxu1 %v1402_v6 }
  0xb4   : > { %834 = vmatmul.mubr.bf16.gmra.mxu0 %v1404_v7  ;;  %962 = vmatmul.mubr.bf16.gmra.mxu1 %v1405_v8 }
  0xb5   : > { %841 = vmatprep.mubr.bf16.mxu0 %v1406_v9  ;;  %969 = vmatprep.mubr.bf16.mxu1 %v1408_v10 }
  0xbc   : > { %842 = vmatmul.mubr.bf16.gmra.mxu0 %v1410_v11  ;;  %970 = vmatmul.mubr.bf16.gmra.mxu1 %v1411_v12 }
  0xbd   : > { %849 = vmatprep.mubr.bf16.mxu0 %v1412_v13  ;;  %977 = vmatprep.mubr.bf16.mxu1 %v1414_v14 }
  0xc4   : > { %850 = vmatmul.mubr.bf16.gmra.mxu0 %v1416_v15  ;;  %978 = vmatmul.mubr.bf16.gmra.mxu1 %v1417_v16 }
 0x10c   : > { %v731_v18 = vpop.f32.mrf.mxu0  ;;  %v859_v19 = vpop.f32.mrf.mxu1 }
 0x10d   : > { %v732_v20 = vadd.f32 %v1612_v17, %v731_v18  ;;  %v860_v21 = vadd.f32 %v1612_v17, %v859_v19 }
 0x10e   : > { %v733_v22 = vpop.f32.mrf.mxu0  ;;  %v861_v23 = vpop.f32.mrf.mxu1 }
 0x10f   : > { %v986_v24 = vmax.f32 %v732_v20, 0.0  ;;  %v1018_v25 = vmax.f32 %v860_v21, 0.0 }
 0x110   : > { %v734_v26 = vpop.f32.mrf.mxu0  ;;  %v862_v27 = vpop.f32.mrf.mxu1 }
 0x111   : > { %1051 = vst.msk [vmem:[%s1621_s5] sm:$0xff] %vm1050_vm0, %v986_v24  ;;  %1083 = vst.msk [vmem:[%s1621_s5 + $0x100] sm:$0xff] %vm1050_vm0, %v1018_v25  ;;  %v735_v28 = vadd.f32 %v1612_v17, %v734_v26  ;;  %v863_v29 = vadd.f32 %v1612_v17, %v862_v27 }
 0x112   : > { %v736_v30 = vpop.f32.mrf.mxu0  ;;  %v864_v31 = vpop.f32.mrf.mxu1 }
 0x113   : > { %v987_v32 = vmax.f32 %v735_v28, 0.0  ;;  %v1019_v33 = vmax.f32 %v863_v29, 0.0 }
 0x114   : > { %v739_v34 = vpop.f32.mrf.mxu0  ;;  %v867_v35 = vpop.f32.mrf.mxu1 }
 0x115   : > { %1052 = vst.msk [vmem:[%s1621_s5 + $0x8] sm:$0xff] %vm1050_vm0, %v987_v32  ;;  %1084 = vst.msk [vmem:[%s1621_s5 + $0x108] sm:$0xff] %vm1050_vm0, %v1019_v33  ;;  %v740_v36 = vadd.f32 %v1612_v17, %v739_v34  ;;  %v868_v37 = vadd.f32 %v1612_v17, %v867_v35 }
 0x116   : > { %v741_v38 = vpop.f32.mrf.mxu0  ;;  %v869_v39 = vpop.f32.mrf.mxu1 }
 0x117   : > { %v988_v40 = vmax.f32 %v740_v36, 0.0  ;;  %v1020_v41 = vmax.f32 %v868_v37, 0.0 }
 0x118   : > { %v742_v42 = vpop.f32.mrf.mxu0  ;;  %v870_v43 = vpop.f32.mrf.mxu1 }
 0x119   : > { %1053 = vst.msk [vmem:[%s1621_s5 + $0x10] sm:$0xff] %vm1050_vm0, %v988_v40  ;;  %1085 = vst.msk [vmem:[%s1621_s5 + $0x110] sm:$0xff] %vm1050_vm0, %v1020_v41  ;;  %v743_v44 = vadd.f32 %v1612_v17, %v742_v42  ;;  %v871_v45 = vadd.f32 %v1612_v17, %v870_v43 }
 0x11a   : > { %v744_v46 = vpop.f32.mrf.mxu0  ;;  %v872_v47 = vpop.f32.mrf.mxu1 }
 0x11b   : > { %v989_v48 = vmax.f32 %v743_v44, 0.0  ;;  %v1021_v49 = vmax.f32 %v871_v45, 0.0 }
 0x11c   : > { %v747_v50 = vpop.f32.mrf.mxu0  ;;  %v875_v51 = vpop.f32.mrf.mxu1 }
 0x11d   : > { %1054 = vst.msk [vmem:[%s1621_s5 + $0x18] sm:$0xff] %vm1050_vm0, %v989_v48  ;;  %1086 = vst.msk [vmem:[%s1621_s5 + $0x118] sm:$0xff] %vm1050_vm0, %v1021_v49  ;;  %v748_v52 = vadd.f32 %v1612_v17, %v747_v50  ;;  %v876_v53 = vadd.f32 %v1612_v17, %v875_v51 }
 0x11e   : > { %v749_v54 = vpop.f32.mrf.mxu0  ;;  %v877_v55 = vpop.f32.mrf.mxu1 }
 0x11f   : > { %v990_v56 = vmax.f32 %v748_v52, 0.0  ;;  %v1022_v57 = vmax.f32 %v876_v53, 0.0 }
 0x120   : > { %v750_v58 = vpop.f32.mrf.mxu0  ;;  %v878_v59 = vpop.f32.mrf.mxu1 }
 0x121   : > { %1055 = vst.msk [vmem:[%s1621_s5 + $0x20] sm:$0xff] %vm1050_vm0, %v990_v56  ;;  %1087 = vst.msk [vmem:[%s1621_s5 + $0x120] sm:$0xff] %vm1050_vm0, %v1022_v57  ;;  %v751_v60 = vadd.f32 %v1612_v17, %v750_v58  ;;  %v879_v61 = vadd.f32 %v1612_v17, %v878_v59 }
 0x122   : > { %v752_v62 = vpop.f32.mrf.mxu0  ;;  %v880_v63 = vpop.f32.mrf.mxu1 }
 0x123   : > { %v991_v0 = vmax.f32 %v751_v60, 0.0  ;;  %v1023_v1 = vmax.f32 %v879_v61, 0.0 }
 0x124   : > { %v755_v2 = vpop.f32.mrf.mxu0  ;;  %v883_v3 = vpop.f32.mrf.mxu1 }
 0x125   : > { %1056 = vst.msk [vmem:[%s1621_s5 + $0x28] sm:$0xff] %vm1050_vm0, %v991_v0  ;;  %1088 = vst.msk [vmem:[%s1621_s5 + $0x128] sm:$0xff] %vm1050_vm0, %v1023_v1  ;;  %v756_v4 = vadd.f32 %v1612_v17, %v755_v2  ;;  %v884_v5 = vadd.f32 %v1612_v17, %v883_v3 }
 0x126   : > { %v757_v6 = vpop.f32.mrf.mxu0  ;;  %v885_v7 = vpop.f32.mrf.mxu1 }
 0x127   : > { %v992_v8 = vmax.f32 %v756_v4, 0.0  ;;  %v1024_v9 = vmax.f32 %v884_v5, 0.0 }
 0x128   : > { %v758_v10 = vpop.f32.mrf.mxu0  ;;  %v886_v11 = vpop.f32.mrf.mxu1 }
 0x129   : > { %1057 = vst.msk [vmem:[%s1621_s5 + $0x30] sm:$0xff] %vm1050_vm0, %v992_v8  ;;  %1089 = vst.msk [vmem:[%s1621_s5 + $0x130] sm:$0xff] %vm1050_vm0, %v1024_v9  ;;  %v759_v12 = vadd.f32 %v1612_v17, %v758_v10  ;;  %v887_v13 = vadd.f32 %v1612_v17, %v886_v11 }
 0x12a   : > { %v760_v14 = vpop.f32.mrf.mxu0  ;;  %v888_v15 = vpop.f32.mrf.mxu1 }
 0x12b   : > { %v993_v16 = vmax.f32 %v759_v12, 0.0  ;;  %v1025_v18 = vmax.f32 %v887_v13, 0.0 }
 0x12c   : > { %v763_v19 = vpop.f32.mrf.mxu0  ;;  %v891_v20 = vpop.f32.mrf.mxu1 }
 0x12d   : > { %1058 = vst.msk [vmem:[%s1621_s5 + $0x38] sm:$0xff] %vm1050_vm0, %v993_v16  ;;  %1090 = vst.msk [vmem:[%s1621_s5 + $0x138] sm:$0xff] %vm1050_vm0, %v1025_v18  ;;  %v764_v21 = vadd.f32 %v1612_v17, %v763_v19  ;;  %v892_v22 = vadd.f32 %v1612_v17, %v891_v20 }
 0x12e   : > { %v765_v23 = vpop.f32.mrf.mxu0  ;;  %v893_v24 = vpop.f32.mrf.mxu1 }
 0x12f   : > { %v994_v25 = vmax.f32 %v764_v21, 0.0  ;;  %v1026_v26 = vmax.f32 %v892_v22, 0.0 }
 0x130   : > { %v766_v27 = vpop.f32.mrf.mxu0  ;;  %v894_v28 = vpop.f32.mrf.mxu1 }
 0x131   : > { %1059 = vst.msk [vmem:[%s1621_s5 + $0x40] sm:$0xff] %vm1050_vm0, %v994_v25  ;;  %1091 = vst.msk [vmem:[%s1621_s5 + $0x140] sm:$0xff] %vm1050_vm0, %v1026_v26  ;;  %v767_v29 = vadd.f32 %v1612_v17, %v766_v27  ;;  %v895_v30 = vadd.f32 %v1612_v17, %v894_v28 }
 0x132   : > { %v768_v31 = vpop.f32.mrf.mxu0  ;;  %v896_v32 = vpop.f32.mrf.mxu1 }
 0x133   : > { %v995_v33 = vmax.f32 %v767_v29, 0.0  ;;  %v1027_v34 = vmax.f32 %v895_v30, 0.0 }
 0x134   : > { %v771_v35 = vpop.f32.mrf.mxu0  ;;  %v899_v36 = vpop.f32.mrf.mxu1 }
 0x135   : > { %1060 = vst.msk [vmem:[%s1621_s5 + $0x48] sm:$0xff] %vm1050_vm0, %v995_v33  ;;  %1092 = vst.msk [vmem:[%s1621_s5 + $0x148] sm:$0xff] %vm1050_vm0, %v1027_v34  ;;  %v772_v37 = vadd.f32 %v1612_v17, %v771_v35  ;;  %v900_v38 = vadd.f32 %v1612_v17, %v899_v36 }
 0x136   : > { %v773_v39 = vpop.f32.mrf.mxu0  ;;  %v901_v40 = vpop.f32.mrf.mxu1 }
 0x137   : > { %v996_v41 = vmax.f32 %v772_v37, 0.0  ;;  %v1028_v42 = vmax.f32 %v900_v38, 0.0 }
 0x138   : > { %v774_v43 = vpop.f32.mrf.mxu0  ;;  %v902_v44 = vpop.f32.mrf.mxu1 }
 0x139   : > { %1061 = vst.msk [vmem:[%s1621_s5 + $0x50] sm:$0xff] %vm1050_vm0, %v996_v41  ;;  %1093 = vst.msk [vmem:[%s1621_s5 + $0x150] sm:$0xff] %vm1050_vm0, %v1028_v42  ;;  %v775_v45 = vadd.f32 %v1612_v17, %v774_v43  ;;  %v903_v46 = vadd.f32 %v1612_v17, %v902_v44 }
 0x13a   : > { %v776_v47 = vpop.f32.mrf.mxu0  ;;  %v904_v48 = vpop.f32.mrf.mxu1 }
 0x13b   : > { %v997_v49 = vmax.f32 %v775_v45, 0.0  ;;  %v1029_v50 = vmax.f32 %v903_v46, 0.0 }
 0x13c   : > { %v779_v51 = vpop.f32.mrf.mxu0  ;;  %v907_v52 = vpop.f32.mrf.mxu1 }
 0x13d   : > { %1062 = vst.msk [vmem:[%s1621_s5 + $0x58] sm:$0xff] %vm1050_vm0, %v997_v49  ;;  %1094 = vst.msk [vmem:[%s1621_s5 + $0x158] sm:$0xff] %vm1050_vm0, %v1029_v50  ;;  %v780_v53 = vadd.f32 %v1612_v17, %v779_v51  ;;  %v908_v54 = vadd.f32 %v1612_v17, %v907_v52 }
 0x13e   : > { %v781_v55 = vpop.f32.mrf.mxu0  ;;  %v909_v56 = vpop.f32.mrf.mxu1 }
 0x13f   : > { %v998_v57 = vmax.f32 %v780_v53, 0.0  ;;  %v1030_v58 = vmax.f32 %v908_v54, 0.0 }
 0x140   : > { %v782_v59 = vpop.f32.mrf.mxu0  ;;  %v910_v60 = vpop.f32.mrf.mxu1 }
 0x141   : > { %1063 = vst.msk [vmem:[%s1621_s5 + $0x60] sm:$0xff] %vm1050_vm0, %v998_v57  ;;  %1095 = vst.msk [vmem:[%s1621_s5 + $0x160] sm:$0xff] %vm1050_vm0, %v1030_v58  ;;  %v783_v61 = vadd.f32 %v1612_v17, %v782_v59  ;;  %v911_v62 = vadd.f32 %v1612_v17, %v910_v60 }
 0x142   : > { %v784_v63 = vpop.f32.mrf.mxu0  ;;  %v912_v0 = vpop.f32.mrf.mxu1 }
 0x143   : > { %v999_v1 = vmax.f32 %v783_v61, 0.0  ;;  %v1031_v2 = vmax.f32 %v911_v62, 0.0 }
 0x144   : > { %v787_v3 = vpop.f32.mrf.mxu0  ;;  %v915_v4 = vpop.f32.mrf.mxu1 }
 0x145   : > { %1064 = vst.msk [vmem:[%s1621_s5 + $0x68] sm:$0xff] %vm1050_vm0, %v999_v1  ;;  %1096 = vst.msk [vmem:[%s1621_s5 + $0x168] sm:$0xff] %vm1050_vm0, %v1031_v2  ;;  %v788_v5 = vadd.f32 %v1612_v17, %v787_v3  ;;  %v916_v6 = vadd.f32 %v1612_v17, %v915_v4 }
 0x146   : > { %v789_v7 = vpop.f32.mrf.mxu0  ;;  %v917_v8 = vpop.f32.mrf.mxu1 }
 0x147   : > { %v1000_v9 = vmax.f32 %v788_v5, 0.0  ;;  %v1032_v10 = vmax.f32 %v916_v6, 0.0 }
 0x148   : > { %v790_v11 = vpop.f32.mrf.mxu0  ;;  %v918_v12 = vpop.f32.mrf.mxu1 }
 0x149   : > { %1065 = vst.msk [vmem:[%s1621_s5 + $0x70] sm:$0xff] %vm1050_vm0, %v1000_v9  ;;  %1097 = vst.msk [vmem:[%s1621_s5 + $0x170] sm:$0xff] %vm1050_vm0, %v1032_v10  ;;  %v791_v13 = vadd.f32 %v1612_v17, %v790_v11  ;;  %v919_v14 = vadd.f32 %v1612_v17, %v918_v12 }
 0x14a   : > { %v792_v15 = vpop.f32.mrf.mxu0  ;;  %v920_v16 = vpop.f32.mrf.mxu1 }
 0x14b   : > { %v1001_v18 = vmax.f32 %v791_v13, 0.0  ;;  %v1033_v19 = vmax.f32 %v919_v14, 0.0 }
 0x14c   : > { %v795_v20 = vpop.f32.mrf.mxu0  ;;  %v923_v21 = vpop.f32.mrf.mxu1 }
 0x14d   : > { %1066 = vst.msk [vmem:[%s1621_s5 + $0x78] sm:$0xff] %vm1050_vm0, %v1001_v18  ;;  %1098 = vst.msk [vmem:[%s1621_s5 + $0x178] sm:$0xff] %vm1050_vm0, %v1033_v19  ;;  %v796_v22 = vadd.f32 %v1612_v17, %v795_v20  ;;  %v924_v23 = vadd.f32 %v1612_v17, %v923_v21 }
 0x14e   : > { %v797_v24 = vpop.f32.mrf.mxu0  ;;  %v925_v25 = vpop.f32.mrf.mxu1 }
 0x14f   : > { %v1002_v26 = vmax.f32 %v796_v22, 0.0  ;;  %v1034_v27 = vmax.f32 %v924_v23, 0.0 }
 0x150   : > { %v798_v28 = vpop.f32.mrf.mxu0  ;;  %v926_v29 = vpop.f32.mrf.mxu1 }
 0x151   : > { %1067 = vst.msk [vmem:[%s1621_s5 + $0x80] sm:$0xff] %vm1050_vm0, %v1002_v26  ;;  %1099 = vst.msk [vmem:[%s1621_s5 + $0x180] sm:$0xff] %vm1050_vm0, %v1034_v27  ;;  %v799_v30 = vadd.f32 %v1612_v17, %v798_v28  ;;  %v927_v31 = vadd.f32 %v1612_v17, %v926_v29 }
 0x152   : > { %v800_v32 = vpop.f32.mrf.mxu0  ;;  %v928_v33 = vpop.f32.mrf.mxu1 }
 0x153   : > { %v1003_v34 = vmax.f32 %v799_v30, 0.0  ;;  %v1035_v35 = vmax.f32 %v927_v31, 0.0 }
 0x154   : > { %v803_v36 = vpop.f32.mrf.mxu0  ;;  %v931_v37 = vpop.f32.mrf.mxu1 }
 0x155   : > { %1068 = vst.msk [vmem:[%s1621_s5 + $0x88] sm:$0xff] %vm1050_vm0, %v1003_v34  ;;  %1100 = vst.msk [vmem:[%s1621_s5 + $0x188] sm:$0xff] %vm1050_vm0, %v1035_v35  ;;  %v804_v38 = vadd.f32 %v1612_v17, %v803_v36  ;;  %v932_v39 = vadd.f32 %v1612_v17, %v931_v37 }
 0x156   : > { %v805_v40 = vpop.f32.mrf.mxu0  ;;  %v933_v41 = vpop.f32.mrf.mxu1 }
 0x157   : > { %v1004_v42 = vmax.f32 %v804_v38, 0.0  ;;  %v1036_v43 = vmax.f32 %v932_v39, 0.0 }
 0x158   : > { %v806_v44 = vpop.f32.mrf.mxu0  ;;  %v934_v45 = vpop.f32.mrf.mxu1 }
 0x159   : > { %1069 = vst.msk [vmem:[%s1621_s5 + $0x90] sm:$0xff] %vm1050_vm0, %v1004_v42  ;;  %1101 = vst.msk [vmem:[%s1621_s5 + $0x190] sm:$0xff] %vm1050_vm0, %v1036_v43  ;;  %v807_v46 = vadd.f32 %v1612_v17, %v806_v44  ;;  %v935_v47 = vadd.f32 %v1612_v17, %v934_v45 }
 0x15a   : > { %v808_v48 = vpop.f32.mrf.mxu0  ;;  %v936_v49 = vpop.f32.mrf.mxu1 }
 0x15b   : > { %v1005_v50 = vmax.f32 %v807_v46, 0.0  ;;  %v1037_v51 = vmax.f32 %v935_v47, 0.0 }
 0x15c   : > { %v811_v52 = vpop.f32.mrf.mxu0  ;;  %v939_v53 = vpop.f32.mrf.mxu1 }
 0x15d   : > { %1070 = vst.msk [vmem:[%s1621_s5 + $0x98] sm:$0xff] %vm1050_vm0, %v1005_v50  ;;  %1102 = vst.msk [vmem:[%s1621_s5 + $0x198] sm:$0xff] %vm1050_vm0, %v1037_v51  ;;  %v812_v54 = vadd.f32 %v1612_v17, %v811_v52  ;;  %v940_v55 = vadd.f32 %v1612_v17, %v939_v53 }
 0x15e   : > { %v813_v56 = vpop.f32.mrf.mxu0  ;;  %v941_v57 = vpop.f32.mrf.mxu1 }
 0x15f   : > { %v1006_v58 = vmax.f32 %v812_v54, 0.0  ;;  %v1038_v59 = vmax.f32 %v940_v55, 0.0 }
 0x160   : > { %v814_v60 = vpop.f32.mrf.mxu0  ;;  %v942_v61 = vpop.f32.mrf.mxu1 }
 0x161   : > { %1071 = vst.msk [vmem:[%s1621_s5 + $0xa0] sm:$0xff] %vm1050_vm0, %v1006_v58  ;;  %1103 = vst.msk [vmem:[%s1621_s5 + $0x1a0] sm:$0xff] %vm1050_vm0, %v1038_v59  ;;  %v815_v62 = vadd.f32 %v1612_v17, %v814_v60  ;;  %v943_v63 = vadd.f32 %v1612_v17, %v942_v61 }
 0x162   : > { %v816_v0 = vpop.f32.mrf.mxu0  ;;  %v944_v1 = vpop.f32.mrf.mxu1 }
 0x163   : > { %v1007_v2 = vmax.f32 %v815_v62, 0.0  ;;  %v1039_v3 = vmax.f32 %v943_v63, 0.0 }
 0x164   : > { %v819_v4 = vpop.f32.mrf.mxu0  ;;  %v947_v5 = vpop.f32.mrf.mxu1 }
 0x165   : > { %1072 = vst.msk [vmem:[%s1621_s5 + $0xa8] sm:$0xff] %vm1050_vm0, %v1007_v2  ;;  %1104 = vst.msk [vmem:[%s1621_s5 + $0x1a8] sm:$0xff] %vm1050_vm0, %v1039_v3  ;;  %v820_v6 = vadd.f32 %v1612_v17, %v819_v4  ;;  %v948_v7 = vadd.f32 %v1612_v17, %v947_v5 }
 0x166   : > { %v821_v8 = vpop.f32.mrf.mxu0  ;;  %v949_v9 = vpop.f32.mrf.mxu1 }
 0x167   : > { %v1008_v10 = vmax.f32 %v820_v6, 0.0  ;;  %v1040_v11 = vmax.f32 %v948_v7, 0.0 }
 0x168   : > { %v822_v12 = vpop.f32.mrf.mxu0  ;;  %v950_v13 = vpop.f32.mrf.mxu1 }
 0x169   : > { %1073 = vst.msk [vmem:[%s1621_s5 + $0xb0] sm:$0xff] %vm1050_vm0, %v1008_v10  ;;  %1105 = vst.msk [vmem:[%s1621_s5 + $0x1b0] sm:$0xff] %vm1050_vm0, %v1040_v11  ;;  %v823_v14 = vadd.f32 %v1612_v17, %v822_v12  ;;  %v951_v15 = vadd.f32 %v1612_v17, %v950_v13 }
 0x16a   : > { %v824_v16 = vpop.f32.mrf.mxu0  ;;  %v952_v18 = vpop.f32.mrf.mxu1 }
 0x16b   : > { %v1009_v19 = vmax.f32 %v823_v14, 0.0  ;;  %v1041_v20 = vmax.f32 %v951_v15, 0.0 }
 0x16c   : > { %v827_v21 = vpop.f32.mrf.mxu0  ;;  %v955_v22 = vpop.f32.mrf.mxu1 }
 0x16d   : > { %1074 = vst.msk [vmem:[%s1621_s5 + $0xb8] sm:$0xff] %vm1050_vm0, %v1009_v19  ;;  %1106 = vst.msk [vmem:[%s1621_s5 + $0x1b8] sm:$0xff] %vm1050_vm0, %v1041_v20  ;;  %v828_v23 = vadd.f32 %v1612_v17, %v827_v21  ;;  %v956_v24 = vadd.f32 %v1612_v17, %v955_v22 }
 0x16e   : > { %v829_v25 = vpop.f32.mrf.mxu0  ;;  %v957_v26 = vpop.f32.mrf.mxu1 }
 0x16f   : > { %v1010_v27 = vmax.f32 %v828_v23, 0.0  ;;  %v1042_v28 = vmax.f32 %v956_v24, 0.0 }
 0x170   : > { %v830_v29 = vpop.f32.mrf.mxu0  ;;  %v958_v30 = vpop.f32.mrf.mxu1 }
 0x171   : > { %1075 = vst.msk [vmem:[%s1621_s5 + $0xc0] sm:$0xff] %vm1050_vm0, %v1010_v27  ;;  %1107 = vst.msk [vmem:[%s1621_s5 + $0x1c0] sm:$0xff] %vm1050_vm0, %v1042_v28  ;;  %v831_v31 = vadd.f32 %v1612_v17, %v830_v29  ;;  %v959_v32 = vadd.f32 %v1612_v17, %v958_v30 }
 0x172   : > { %v832_v33 = vpop.f32.mrf.mxu0  ;;  %v960_v34 = vpop.f32.mrf.mxu1 }
 0x173   : > { %v1011_v35 = vmax.f32 %v831_v31, 0.0  ;;  %v1043_v36 = vmax.f32 %v959_v32, 0.0 }
 0x174   : > { %v835_v37 = vpop.f32.mrf.mxu0  ;;  %v963_v38 = vpop.f32.mrf.mxu1 }
 0x175   : > { %1076 = vst.msk [vmem:[%s1621_s5 + $0xc8] sm:$0xff] %vm1050_vm0, %v1011_v35  ;;  %1108 = vst.msk [vmem:[%s1621_s5 + $0x1c8] sm:$0xff] %vm1050_vm0, %v1043_v36  ;;  %v836_v39 = vadd.f32 %v1612_v17, %v835_v37  ;;  %v964_v40 = vadd.f32 %v1612_v17, %v963_v38 }
 0x176   : > { %v837_v41 = vpop.f32.mrf.mxu0  ;;  %v965_v42 = vpop.f32.mrf.mxu1 }
 0x177   : > { %v1012_v43 = vmax.f32 %v836_v39, 0.0  ;;  %v1044_v44 = vmax.f32 %v964_v40, 0.0 }
 0x178   : > { %v838_v45 = vpop.f32.mrf.mxu0  ;;  %v966_v46 = vpop.f32.mrf.mxu1 }
 0x179   : > { %1077 = vst.msk [vmem:[%s1621_s5 + $0xd0] sm:$0xff] %vm1050_vm0, %v1012_v43  ;;  %1109 = vst.msk [vmem:[%s1621_s5 + $0x1d0] sm:$0xff] %vm1050_vm0, %v1044_v44  ;;  %v839_v47 = vadd.f32 %v1612_v17, %v838_v45  ;;  %v967_v48 = vadd.f32 %v1612_v17, %v966_v46 }
 0x17a   : > { %v840_v49 = vpop.f32.mrf.mxu0  ;;  %v968_v50 = vpop.f32.mrf.mxu1 }
 0x17b   : > { %v1013_v51 = vmax.f32 %v839_v47, 0.0  ;;  %v1045_v52 = vmax.f32 %v967_v48, 0.0 }
 0x17c   : > { %v843_v53 = vpop.f32.mrf.mxu0  ;;  %v971_v54 = vpop.f32.mrf.mxu1 }
 0x17d   : > { %1078 = vst.msk [vmem:[%s1621_s5 + $0xd8] sm:$0xff] %vm1050_vm0, %v1013_v51  ;;  %1110 = vst.msk [vmem:[%s1621_s5 + $0x1d8] sm:$0xff] %vm1050_vm0, %v1045_v52  ;;  %v844_v55 = vadd.f32 %v1612_v17, %v843_v53  ;;  %v972_v56 = vadd.f32 %v1612_v17, %v971_v54 }
 0x17e   : > { %v845_v57 = vpop.f32.mrf.mxu0  ;;  %v973_v58 = vpop.f32.mrf.mxu1 }
 0x17f   : > { %v1014_v59 = vmax.f32 %v844_v55, 0.0  ;;  %v1046_v60 = vmax.f32 %v972_v56, 0.0 }
 0x180   : > { %v846_v61 = vpop.f32.mrf.mxu0  ;;  %v974_v62 = vpop.f32.mrf.mxu1 }
 0x181   : > { %1079 = vst.msk [vmem:[%s1621_s5 + $0xe0] sm:$0xff] %vm1050_vm0, %v1014_v59  ;;  %1111 = vst.msk [vmem:[%s1621_s5 + $0x1e0] sm:$0xff] %vm1050_vm0, %v1046_v60  ;;  %v847_v63 = vadd.f32 %v1612_v17, %v846_v61  ;;  %v975_v0 = vadd.f32 %v1612_v17, %v974_v62 }
 0x182   : > { %v848_v1 = vpop.f32.mrf.mxu0  ;;  %v976_v2 = vpop.f32.mrf.mxu1 }
 0x183   : > { %v1015_v3 = vmax.f32 %v847_v63, 0.0  ;;  %v1047_v4 = vmax.f32 %v975_v0, 0.0 }
 0x184   : > { %v851_v5 = vpop.f32.mrf.mxu0  ;;  %v979_v6 = vpop.f32.mrf.mxu1 }
 0x185   : > { %1080 = vst.msk [vmem:[%s1621_s5 + $0xe8] sm:$0xff] %vm1050_vm0, %v1015_v3  ;;  %1112 = vst.msk [vmem:[%s1621_s5 + $0x1e8] sm:$0xff] %vm1050_vm0, %v1047_v4  ;;  %v852_v7 = vadd.f32 %v1612_v17, %v851_v5  ;;  %v980_v8 = vadd.f32 %v1612_v17, %v979_v6 }
 0x186   : > { %v853_v9 = vpop.f32.mrf.mxu0  ;;  %v981_v10 = vpop.f32.mrf.mxu1 }
 0x187   : > { %v1016_v11 = vmax.f32 %v852_v7, 0.0  ;;  %v1048_v12 = vmax.f32 %v980_v8, 0.0 }
 0x188   : > { %v854_v13 = vpop.f32.mrf.mxu0  ;;  %v982_v14 = vpop.f32.mrf.mxu1 }
 0x189   : > { %1081 = vst.msk [vmem:[%s1621_s5 + $0xf0] sm:$0xff] %vm1050_vm0, %v1016_v11  ;;  %1113 = vst.msk [vmem:[%s1621_s5 + $0x1f0] sm:$0xff] %vm1050_vm0, %v1048_v12  ;;  %v855_v15 = vadd.f32 %v1612_v17, %v854_v13  ;;  %v983_v16 = vadd.f32 %v1612_v17, %v982_v14 }
 0x18a   : > { %v856_v18 = vpop.f32.mrf.mxu0  ;;  %v984_v19 = vpop.f32.mrf.mxu1 }
 0x18b   : > { %v1017_v20 = vmax.f32 %v855_v15, 0.0  ;;  %v1049_v21 = vmax.f32 %v983_v16, 0.0 }
 0x18d   : > { %1082 = vst.msk [vmem:[%s1621_s5 + $0xf8] sm:$0xff] %vm1050_vm0, %v1017_v20  ;;  %1114 = vst.msk [vmem:[%s1621_s5 + $0x1f8] sm:$0xff] %vm1050_vm0, %v1049_v21 }
 0x18e PF: > { %s13_s12 = sadd.s32 1, %s1424_s12  }
 0x18f   : > { %p10_p4 = scmp.ge.s32.totalorder %s13_s12, 6  }
 0x191   :  { %12 = sbr.rel (!%p10_p4) target bundleno = 1 (0x1), region = 62 }

// kernel: encoder_forward.11
= control target key start
LH: loop header
LB: loop body
LE: loop exit
PB: predicated region body
PF: predicated region fallthrough
CT: control target
= control target key end

     0   :  { %s1766_s12 = smov 0   ;;  %s2054_s0 = inlined_call_operand.vmem [shape: bf16[512,512], index: 0, kind: input, shape index: {}]   ;;  %s2055_s1 = inlined_call_operand.vmem [shape: bf16[512,64], index: 1, kind: input, shape index: {}]   ;;  %s2056_s2 = inlined_call_operand.vmem [shape: f32[1,64], index: 2, kind: input, shape index: {}]   ;;  %s2057_s3 = inlined_call_operand.vmem [shape: f32[512,64], index: 3, kind: output, shape index: {}]  }
   0x1 LB: > { %s1268_s13 = sadd.s32 4294967295, %s1744_s12   ;;  %p1272_p0 = scmp.ge.s32.totalorder %s1744_s12, 1  ;;  %s1744_s12 = sphi %s1766_s12, %s13_s12  }
   0x2   : > { %p139_p1 = scmp.lt.s32.totalorder %s1744_s12, 3 }
   0x4   : > { %p140_p2 = pnand %p1272_p0, %p139_p1 }
   0x5   : > { %s1273_s21 = sshll.u32 (!%p140_p2), %s1268_s13, 5 }
   0x6   : > { %143 = sbr.rel (%p140_p2) target bundleno = 373 (0x175), region = 32  ;;  %p165_p3 = scmp.lt.s32.totalorder (!%p140_p2), %s1273_s21, 63 }
   0xb   : > { %v1610_v0 = vld [vmem:[%s2055_s1 + $0x78] sm:$0xff]   ;;  %v1614_v4 = vld [vmem:[%s2055_s1 + $0x70] sm:$0xff]   ;;  %v1618_v8 = vld [vmem:[%s2055_s1 + $0x68] sm:$0xff]   ;;  %s2059_s21 = smov (!%p165_p3, %s1273_s21), 63  ;;  %vm1179_vm0 = vcmask 523264  }
   0xc   : > { %v1611_v1 = vld [vmem:[%s2055_s1 + $0xf8] sm:$0xff]   ;;  %1378 = vmatprep.subr.bf16.mxu0 %v1610_v0  ;;  %v1615_v5 = vld [vmem:[%s2055_s1 + $0xf0] sm:$0xff]   ;;  %v1619_v9 = vld [vmem:[%s2055_s1 + $0xe8] sm:$0xff]   ;;  %s1377_s18 = sshll.u32 %s2059_s21, 4  ;;  %s1277_s7 = sshll.u32 %s2059_s21, 3 }
   0xd   : > { %v1612_v2 = vld [vmem:[%s2055_s1 + $0x38] sm:$0xff]   ;;  %1490 = vmatprep.subr.bf16.mxu1 %v1611_v1  ;;  %v1616_v6 = vld [vmem:[%s2055_s1 + $0x30] sm:$0xff]   ;;  %v1620_v10 = vld [vmem:[%s2055_s1 + $0x28] sm:$0xff]   ;;  %s1872_s28 = scalar_lea.vmem %s2054_s0, %s1377_s18  ;;  %s1954_s10 = scalar_lea.vmem %s2057_s3, %s1277_s7 }
   0xe   : > { %v1613_v3 = vld [vmem:[%s2055_s1 + $0xb8] sm:$0xff]   ;;  %1379 = vmatpush3.bf16.msra.mxu0 %v1612_v2  ;;  %v1617_v7 = vld [vmem:[%s2055_s1 + $0xb0] sm:$0xff]   ;;  %v1621_v11 = vld [vmem:[%s2055_s1 + $0xa8] sm:$0xff]  }
   0xf   : > { %1491 = vmatpush3.bf16.msra.mxu1 %v1613_v3  ;;  %1380 = vmatprep.subr.bf16.mxu0 %v1614_v4  ;;  %v1622_v12 = vld [vmem:[%s2055_s1 + $0x60] sm:$0xff]   ;;  %v1626_v16 = vld [vmem:[%s2055_s1 + $0x58] sm:$0xff]   ;;  %v1630_v20 = vld [vmem:[%s2055_s1 + $0x50] sm:$0xff]  }
  0x10   : > { %1492 = vmatprep.subr.bf16.mxu1 %v1615_v5  ;;  %v1623_v13 = vld [vmem:[%s2055_s1 + $0xe0] sm:$0xff]   ;;  %v1627_v17 = vld [vmem:[%s2055_s1 + $0xd8] sm:$0xff]   ;;  %v1631_v21 = vld [vmem:[%s2055_s1 + $0xd0] sm:$0xff]  }
  0x11   : > { %v1624_v14 = vld [vmem:[%s2055_s1 + $0x20] sm:$0xff]   ;;  %v1628_v18 = vld [vmem:[%s2055_s1 + $0x18] sm:$0xff]   ;;  %v1632_v22 = vld [vmem:[%s2055_s1 + $0x10] sm:$0xff]  }
  0x12   : > { %1381 = vmatpush3.bf16.msra.mxu0 %v1616_v6  ;;  %v1625_v15 = vld [vmem:[%s2055_s1 + $0xa0] sm:$0xff]   ;;  %v1629_v19 = vld [vmem:[%s2055_s1 + $0x98] sm:$0xff]   ;;  %v1633_v23 = vld [vmem:[%s2055_s1 + $0x90] sm:$0xff]  }
  0x13   : > { %1493 = vmatpush3.bf16.msra.mxu1 %v1617_v7  ;;  %1382 = vmatprep.subr.bf16.mxu0 %v1618_v8  ;;  %v1634_v24 = vld [vmem:[%s2055_s1 + $0x48] sm:$0xff]   ;;  %v1638_v28 = vld [vmem:[%s2055_s1 + $0x40] sm:$0xff]  }
  0x14   : > { %1494 = vmatprep.subr.bf16.mxu1 %v1619_v9  ;;  %v1635_v25 = vld [vmem:[%s2055_s1 + $0xc8] sm:$0xff]   ;;  %v1639_v29 = vld [vmem:[%s2055_s1 + $0xc0] sm:$0xff]  }
  0x15   : > { %v1636_v26 = vld [vmem:[%s2055_s1 + $0x8] sm:$0xff]   ;;  %v1640_v30 = vld [vmem:[%s2055_s1] sm:$0xff]  }
  0x16   : > { %1383 = vmatpush3.bf16.msra.mxu0 %v1620_v10  ;;  %v1637_v27 = vld [vmem:[%s2055_s1 + $0x88] sm:$0xff]   ;;  %v1641_v31 = vld [vmem:[%s2055_s1 + $0x80] sm:$0xff]  }
  0x17   : > { %1495 = vmatpush3.bf16.msra.mxu1 %v1621_v11  ;;  %1384 = vmatprep.subr.bf16.mxu0 %v1622_v12  ;;  %v1642_v32 = vld [vmem:[%s1872_s28] ss:$16 sps:$4 sm:$0xff]   ;;  %v1644_v33 = vld [vmem:[%s1872_s28 + $0x4] ss:$16 sps:$4 sm:$0xff]   ;;  %v1645_v34 = vld [vmem:[%s1872_s28 + $0x8] ss:$16 sps:$4 sm:$0xff]  }
  0x18   : > { %1496 = vmatprep.subr.bf16.mxu1 %v1623_v13  ;;  %v1647_v35 = vld [vmem:[%s1872_s28 + $0xc] ss:$16 sps:$4 sm:$0xff]   ;;  %857 = vmatprep.mubr.bf16.mxu0 %v1644_v33  ;;  %v1648_v36 = vld [vmem:[%s1872_s28 + $0x24] ss:$16 sps:$4 sm:$0xff]   ;;  %v1652_v38 = vld [vmem:[%s1872_s28 + $0x20] ss:$16 sps:$4 sm:$0xff]  }
  0x19   : > { %1018 = vmatprep.mubr.bf16.mxu1 %v1647_v35  ;;  %v1650_v37 = vld [vmem:[%s1872_s28 + $0x2c] ss:$16 sps:$4 sm:$0xff]   ;;  %v1653_v39 = vld [vmem:[%s1872_s28 + $0x28] ss:$16 sps:$4 sm:$0xff]   ;;  %v1654_v40 = vld [vmem:[%s1872_s28 + $0x44] ss:$16 sps:$4 sm:$0xff]  }
  0x1a   : > { %1385 = vmatpush3.bf16.msra.mxu0 %v1624_v14  ;;  %v1656_v41 = vld [vmem:[%s1872_s28 + $0x4c] ss:$16 sps:$4 sm:$0xff]   ;;  %v1658_v42 = vld [vmem:[%s1872_s28 + $0x40] ss:$16 sps:$4 sm:$0xff]   ;;  %v1659_v43 = vld [vmem:[%s1872_s28 + $0x48] ss:$16 sps:$4 sm:$0xff]  }
  0x1b   : > { %1497 = vmatpush3.bf16.msra.mxu1 %v1625_v15  ;;  %1386 = vmatprep.subr.bf16.mxu0 %v1626_v16  ;;  %v1660_v44 = vld [vmem:[%s1872_s28 + $0x64] ss:$16 sps:$4 sm:$0xff]   ;;  %v1662_v45 = vld [vmem:[%s1872_s28 + $0x6c] ss:$16 sps:$4 sm:$0xff]   ;;  %v1664_v46 = vld [vmem:[%s1872_s28 + $0x60] ss:$16 sps:$4 sm:$0xff]  }
  0x1c   : > { %1498 = vmatprep.subr.bf16.mxu1 %v1627_v17  ;;  %v1665_v47 = vld [vmem:[%s1872_s28 + $0x68] ss:$16 sps:$4 sm:$0xff]   ;;  %v1666_v48 = vld [vmem:[%s1872_s28 + $0x84] ss:$16 sps:$4 sm:$0xff]   ;;  %v1668_v49 = vld [vmem:[%s1872_s28 + $0x8c] ss:$16 sps:$4 sm:$0xff]  }
  0x1d   : > { %v1670_v50 = vld [vmem:[%s1872_s28 + $0x80] ss:$16 sps:$4 sm:$0xff]   ;;  %v1671_v51 = vld [vmem:[%s1872_s28 + $0x88] ss:$16 sps:$4 sm:$0xff]   ;;  %v1672_v52 = vld [vmem:[%s1872_s28 + $0xa4] ss:$16 sps:$4 sm:$0xff]  }
  0x1e   : > { %1387 = vmatpush3.bf16.msra.mxu0 %v1628_v18  ;;  %v1674_v53 = vld [vmem:[%s1872_s28 + $0xac] ss:$16 sps:$4 sm:$0xff]   ;;  %v1676_v54 = vld [vmem:[%s1872_s28 + $0xa0] ss:$16 sps:$4 sm:$0xff]   ;;  %v1677_v55 = vld [vmem:[%s1872_s28 + $0xa8] ss:$16 sps:$4 sm:$0xff]  }
  0x1f   : > { %1499 = vmatpush3.bf16.msra.mxu1 %v1629_v19  ;;  %1388 = vmatprep.subr.bf16.mxu0 %v1630_v20  ;;  %v1678_v56 = vld [vmem:[%s1872_s28 + $0xc4] ss:$16 sps:$4 sm:$0xff]   ;;  %v1680_v57 = vld [vmem:[%s1872_s28 + $0xcc] ss:$16 sps:$4 sm:$0xff]   ;;  %v1682_v58 = vld [vmem:[%s1872_s28 + $0xc0] ss:$16 sps:$4 sm:$0xff]  }
  0x20   : > { %1500 = vmatprep.subr.bf16.mxu1 %v1631_v21  ;;  %v1683_v59 = vld [vmem:[%s1872_s28 + $0xc8] ss:$16 sps:$4 sm:$0xff]   ;;  %v1684_v60 = vld [vmem:[%s1872_s28 + $0xe4] ss:$16 sps:$4 sm:$0xff]   ;;  %v1686_v61 = vld [vmem:[%s1872_s28 + $0xec] ss:$16 sps:$4 sm:$0xff]  }
  0x21   : > { %v1688_v62 = vld [vmem:[%s1872_s28 + $0xe0] ss:$16 sps:$4 sm:$0xff]   ;;  %v1689_v63 = vld [vmem:[%s1872_s28 + $0xe8] ss:$16 sps:$4 sm:$0xff]   ;;  %v1690_v0 = vld [vmem:[%s1872_s28 + $0x104] ss:$16 sps:$4 sm:$0xff]  }
  0x22   : > { %1389 = vmatpush3.bf16.msra.mxu0 %v1632_v22  ;;  %v1692_v1 = vld [vmem:[%s1872_s28 + $0x10c] ss:$16 sps:$4 sm:$0xff]   ;;  %v1694_v2 = vld [vmem:[%s1872_s28 + $0x100] ss:$16 sps:$4 sm:$0xff]   ;;  %v1695_v3 = vld [vmem:[%s1872_s28 + $0x108] ss:$16 sps:$4 sm:$0xff]  }
  0x23   : > { %1501 = vmatpush3.bf16.msra.mxu1 %v1633_v23  ;;  %1390 = vmatprep.subr.bf16.mxu0 %v1634_v24  ;;  %v1696_v4 = vld [vmem:[%s1872_s28 + $0x124] ss:$16 sps:$4 sm:$0xff]   ;;  %v1698_v5 = vld [vmem:[%s1872_s28 + $0x12c] ss:$16 sps:$4 sm:$0xff]   ;;  %v1700_v6 = vld [vmem:[%s1872_s28 + $0x120] ss:$16 sps:$4 sm:$0xff]  }
  0x24   : > { %1502 = vmatprep.subr.bf16.mxu1 %v1635_v25  ;;  %v1701_v7 = vld [vmem:[%s1872_s28 + $0x128] ss:$16 sps:$4 sm:$0xff]   ;;  %v1702_v8 = vld [vmem:[%s1872_s28 + $0x144] ss:$16 sps:$4 sm:$0xff]   ;;  %v1704_v9 = vld [vmem:[%s1872_s28 + $0x14c] ss:$16 sps:$4 sm:$0xff]  }
  0x25   : > { %v1706_v10 = vld [vmem:[%s1872_s28 + $0x140] ss:$16 sps:$4 sm:$0xff]   ;;  %v1707_v11 = vld [vmem:[%s1872_s28 + $0x148] ss:$16 sps:$4 sm:$0xff]   ;;  %v1708_v12 = vld [vmem:[%s1872_s28 + $0x164] ss:$16 sps:$4 sm:$0xff]  }
  0x26   : > { %1391 = vmatpush3.bf16.msra.mxu0 %v1636_v26  ;;  %v1710_v13 = vld [vmem:[%s1872_s28 + $0x16c] ss:$16 sps:$4 sm:$0xff]   ;;  %v1712_v14 = vld [vmem:[%s1872_s28 + $0x160] ss:$16 sps:$4 sm:$0xff]   ;;  %v1713_v15 = vld [vmem:[%s1872_s28 + $0x168] ss:$16 sps:$4 sm:$0xff]  }
  0x27   : > { %1503 = vmatpush3.bf16.msra.mxu1 %v1637_v27  ;;  %1392 = vmatprep.subr.bf16.mxu0 %v1638_v28  ;;  %v1714_v16 = vld [vmem:[%s1872_s28 + $0x184] ss:$16 sps:$4 sm:$0xff]   ;;  %v1716_v17 = vld [vmem:[%s1872_s28 + $0x18c] ss:$16 sps:$4 sm:$0xff]   ;;  %v1718_v18 = vld [vmem:[%s1872_s28 + $0x180] ss:$16 sps:$4 sm:$0xff]  }
  0x28   : > { %1504 = vmatprep.subr.bf16.mxu1 %v1639_v29  ;;  %v1719_v19 = vld [vmem:[%s1872_s28 + $0x188] ss:$16 sps:$4 sm:$0xff]   ;;  %v1720_v20 = vld [vmem:[%s1872_s28 + $0x1a4] ss:$16 sps:$4 sm:$0xff]   ;;  %v1722_v21 = vld [vmem:[%s1872_s28 + $0x1ac] ss:$16 sps:$4 sm:$0xff]  }
  0x29   : > { %v1724_v22 = vld [vmem:[%s1872_s28 + $0x1a0] ss:$16 sps:$4 sm:$0xff]   ;;  %v1725_v23 = vld [vmem:[%s1872_s28 + $0x1a8] ss:$16 sps:$4 sm:$0xff]   ;;  %v1726_v24 = vld [vmem:[%s1872_s28 + $0x1c4] ss:$16 sps:$4 sm:$0xff]  }
  0x2a   : > { %1393 = vmatpush3.bf16.msra.mxu0 %v1640_v30  ;;  %v1728_v25 = vld [vmem:[%s1872_s28 + $0x1cc] ss:$16 sps:$4 sm:$0xff]   ;;  %v1730_v26 = vld [vmem:[%s1872_s28 + $0x1c0] ss:$16 sps:$4 sm:$0xff]   ;;  %v1731_v27 = vld [vmem:[%s1872_s28 + $0x1c8] ss:$16 sps:$4 sm:$0xff]  }
  0x2b   : > { %1505 = vmatpush3.bf16.msra.mxu1 %v1641_v31  ;;  %v1732_v28 = vld [vmem:[%s1872_s28 + $0x1e4] ss:$16 sps:$4 sm:$0xff]   ;;  %v1734_v29 = vld [vmem:[%s1872_s28 + $0x1ec] ss:$16 sps:$4 sm:$0xff]   ;;  %v1736_v30 = vld [vmem:[%s1872_s28 + $0x1e0] ss:$16 sps:$4 sm:$0xff]  }
  0x2c   : > { %v1737_v31 = vld [vmem:[%s1872_s28 + $0x1e8] ss:$16 sps:$4 sm:$0xff]  }
  0x2d   : > { %858 = vmatmul.mubr.bf16.vlgmr.msra.gmra.mxu0 %v1642_v32 }
  0x2e   : > { %1019 = vmatmul.mubr.bf16.vlgmr.msra.gmra.mxu1 %v1645_v34  ;;  %865 = vmatprep.mubr.bf16.mxu0 %v1648_v36  ;;  %v1947_v34 = vld [vmem:[%s2056_s2] ss:$0 sm:$0xff] }
  0x2f   : > { %1026 = vmatprep.mubr.bf16.mxu1 %v1650_v37 }
  0x35   : > { %866 = vmatmul.mubr.bf16.gmra.mxu0 %v1652_v38 }
  0x36   : > { %1027 = vmatmul.mubr.bf16.gmra.mxu1 %v1653_v39  ;;  %873 = vmatprep.mubr.bf16.mxu0 %v1654_v40 }
  0x37   : > { %1034 = vmatprep.mubr.bf16.mxu1 %v1656_v41 }
  0x3d   : > { %874 = vmatmul.mubr.bf16.gmra.mxu0 %v1658_v42 }
  0x3e   : > { %1035 = vmatmul.mubr.bf16.gmra.mxu1 %v1659_v43  ;;  %881 = vmatprep.mubr.bf16.mxu0 %v1660_v44 }
  0x3f   : > { %1042 = vmatprep.mubr.bf16.mxu1 %v1662_v45 }
  0x45   : > { %882 = vmatmul.mubr.bf16.gmra.mxu0 %v1664_v46 }
  0x46   : > { %1043 = vmatmul.mubr.bf16.gmra.mxu1 %v1665_v47  ;;  %889 = vmatprep.mubr.bf16.mxu0 %v1666_v48 }
  0x47   : > { %1050 = vmatprep.mubr.bf16.mxu1 %v1668_v49 }
  0x4d   : > { %890 = vmatmul.mubr.bf16.gmra.mxu0 %v1670_v50 }
  0x4e   : > { %1051 = vmatmul.mubr.bf16.gmra.mxu1 %v1671_v51  ;;  %897 = vmatprep.mubr.bf16.mxu0 %v1672_v52 }
  0x4f   : > { %1058 = vmatprep.mubr.bf16.mxu1 %v1674_v53 }
  0x55   : > { %898 = vmatmul.mubr.bf16.gmra.mxu0 %v1676_v54 }
  0x56   : > { %1059 = vmatmul.mubr.bf16.gmra.mxu1 %v1677_v55  ;;  %905 = vmatprep.mubr.bf16.mxu0 %v1678_v56 }
  0x57   : > { %1066 = vmatprep.mubr.bf16.mxu1 %v1680_v57 }
  0x5d   : > { %906 = vmatmul.mubr.bf16.gmra.mxu0 %v1682_v58 }
  0x5e   : > { %1067 = vmatmul.mubr.bf16.gmra.mxu1 %v1683_v59  ;;  %913 = vmatprep.mubr.bf16.mxu0 %v1684_v60 }
  0x5f   : > { %1074 = vmatprep.mubr.bf16.mxu1 %v1686_v61 }
  0x65   : > { %914 = vmatmul.mubr.bf16.gmra.mxu0 %v1688_v62 }
  0x66   : > { %1075 = vmatmul.mubr.bf16.gmra.mxu1 %v1689_v63  ;;  %921 = vmatprep.mubr.bf16.mxu0 %v1690_v0 }
  0x67   : > { %1082 = vmatprep.mubr.bf16.mxu1 %v1692_v1 }
  0x6d   : > { %922 = vmatmul.mubr.bf16.gmra.mxu0 %v1694_v2 }
  0x6e   : > { %1083 = vmatmul.mubr.bf16.gmra.mxu1 %v1695_v3  ;;  %929 = vmatprep.mubr.bf16.mxu0 %v1696_v4 }
  0x6f   : > { %1090 = vmatprep.mubr.bf16.mxu1 %v1698_v5 }
  0x75   : > { %930 = vmatmul.mubr.bf16.gmra.mxu0 %v1700_v6 }
  0x76   : > { %1091 = vmatmul.mubr.bf16.gmra.mxu1 %v1701_v7  ;;  %937 = vmatprep.mubr.bf16.mxu0 %v1702_v8 }
  0x77   : > { %1098 = vmatprep.mubr.bf16.mxu1 %v1704_v9 }
  0x7d   : > { %938 = vmatmul.mubr.bf16.gmra.mxu0 %v1706_v10 }
  0x7e   : > { %1099 = vmatmul.mubr.bf16.gmra.mxu1 %v1707_v11  ;;  %945 = vmatprep.mubr.bf16.mxu0 %v1708_v12 }
  0x7f   : > { %1106 = vmatprep.mubr.bf16.mxu1 %v1710_v13 }
  0x85   : > { %946 = vmatmul.mubr.bf16.gmra.mxu0 %v1712_v14 }
  0x86   : > { %1107 = vmatmul.mubr.bf16.gmra.mxu1 %v1713_v15  ;;  %953 = vmatprep.mubr.bf16.mxu0 %v1714_v16 }
  0x87   : > { %1114 = vmatprep.mubr.bf16.mxu1 %v1716_v17 }
  0x8d   : > { %954 = vmatmul.mubr.bf16.gmra.mxu0 %v1718_v18 }
  0x8e   : > { %1115 = vmatmul.mubr.bf16.gmra.mxu1 %v1719_v19  ;;  %961 = vmatprep.mubr.bf16.mxu0 %v1720_v20 }
  0x8f   : > { %1122 = vmatprep.mubr.bf16.mxu1 %v1722_v21 }
  0x95   : > { %962 = vmatmul.mubr.bf16.gmra.mxu0 %v1724_v22 }
  0x96   : > { %1123 = vmatmul.mubr.bf16.gmra.mxu1 %v1725_v23  ;;  %969 = vmatprep.mubr.bf16.mxu0 %v1726_v24 }
  0x97   : > { %1130 = vmatprep.mubr.bf16.mxu1 %v1728_v25 }
  0x9d   : > { %970 = vmatmul.mubr.bf16.gmra.mxu0 %v1730_v26 }
  0x9e   : > { %1131 = vmatmul.mubr.bf16.gmra.mxu1 %v1731_v27  ;;  %977 = vmatprep.mubr.bf16.mxu0 %v1732_v28 }
  0x9f   : > { %1138 = vmatprep.mubr.bf16.mxu1 %v1734_v29 }
  0xa5   : > { %978 = vmatmul.mubr.bf16.gmra.mxu0 %v1736_v30 }
  0xa6   : > { %1139 = vmatmul.mubr.bf16.gmra.mxu1 %v1737_v31 }
  0xed   : > { %v1394_v32 = vpop.f32.mrf.mxu0 }
  0xee   : > { %v1506_v33 = vpop.f32.mrf.mxu1 }
  0xef   : > { %v1395_v35 = vpop.f32.mrf.mxu0 }
  0xf0   : > { %v1396_v36 = vadd.f32 %v1395_v35, %v1394_v32  ;;  %v1507_v37 = vpop.f32.mrf.mxu1 }
  0xf1   : > { %v1397_v38 = vpop.f32.mrf.mxu0  ;;  %v1508_v40 = vadd.f32 %v1507_v37, %v1506_v33 }
  0xf2   : > { %v860_v39 = vadd.f32 %v1396_v36, %v1947_v34  ;;  %v1509_v41 = vpop.f32.mrf.mxu1 }
  0xf3   : > { %v1398_v42 = vpop.f32.mrf.mxu0 }
  0xf4   : > { %v1021_v43 = vadd.f32 %v1508_v40, %v860_v39  ;;  %v1399_v44 = vadd.f32 %v1398_v42, %v1397_v38  ;;  %v1510_v45 = vpop.f32.mrf.mxu1 }
  0xf5   : > { %v1400_v46 = vpop.f32.mrf.mxu0  ;;  %v1511_v49 = vadd.f32 %v1510_v45, %v1509_v41 }
  0xf6   : > { %v1147_v47 = vmax.f32 %v1021_v43, 0.0  ;;  %v863_v48 = vadd.f32 %v1399_v44, %v1947_v34  ;;  %v1512_v50 = vpop.f32.mrf.mxu1 }
  0xf7   : > { %v1401_v51 = vpop.f32.mrf.mxu0 }
  0xf8   : > { %1180 = vst.msk [vmem:[%s1954_s10] sm:$0xff] %vm1179_vm0, %v1147_v47  ;;  %v1024_v52 = vadd.f32 %v1511_v49, %v863_v48  ;;  %v1402_v53 = vadd.f32 %v1401_v51, %v1400_v46  ;;  %v1513_v54 = vpop.f32.mrf.mxu1 }
  0xf9   : > { %v1403_v55 = vpop.f32.mrf.mxu0  ;;  %v1514_v58 = vadd.f32 %v1513_v54, %v1512_v50 }
  0xfa   : > { %v1148_v56 = vmax.f32 %v1024_v52, 0.0  ;;  %v868_v57 = vadd.f32 %v1402_v53, %v1947_v34  ;;  %v1515_v59 = vpop.f32.mrf.mxu1 }
  0xfb   : > { %v1404_v60 = vpop.f32.mrf.mxu0 }
  0xfc   : > { %1181 = vst.msk [vmem:[%s1954_s10 + $0x8] sm:$0xff] %vm1179_vm0, %v1148_v56  ;;  %v1029_v61 = vadd.f32 %v1514_v58, %v868_v57  ;;  %v1405_v62 = vadd.f32 %v1404_v60, %v1403_v55  ;;  %v1516_v63 = vpop.f32.mrf.mxu1 }
  0xfd   : > { %v1406_v0 = vpop.f32.mrf.mxu0  ;;  %v1517_v3 = vadd.f32 %v1516_v63, %v1515_v59 }
  0xfe   : > { %v1149_v1 = vmax.f32 %v1029_v61, 0.0  ;;  %v871_v2 = vadd.f32 %v1405_v62, %v1947_v34  ;;  %v1518_v4 = vpop.f32.mrf.mxu1 }
  0xff   : > { %v1407_v5 = vpop.f32.mrf.mxu0 }
 0x100   : > { %1182 = vst.msk [vmem:[%s1954_s10 + $0x10] sm:$0xff] %vm1179_vm0, %v1149_v1  ;;  %v1032_v6 = vadd.f32 %v1517_v3, %v871_v2  ;;  %v1408_v7 = vadd.f32 %v1407_v5, %v1406_v0  ;;  %v1519_v8 = vpop.f32.mrf.mxu1 }
 0x101   : > { %v1409_v9 = vpop.f32.mrf.mxu0  ;;  %v1520_v12 = vadd.f32 %v1519_v8, %v1518_v4 }
 0x102   : > { %v1150_v10 = vmax.f32 %v1032_v6, 0.0  ;;  %v876_v11 = vadd.f32 %v1408_v7, %v1947_v34  ;;  %v1521_v13 = vpop.f32.mrf.mxu1 }
 0x103   : > { %v1410_v14 = vpop.f32.mrf.mxu0 }
 0x104   : > { %1183 = vst.msk [vmem:[%s1954_s10 + $0x18] sm:$0xff] %vm1179_vm0, %v1150_v10  ;;  %v1037_v15 = vadd.f32 %v1520_v12, %v876_v11  ;;  %v1411_v16 = vadd.f32 %v1410_v14, %v1409_v9  ;;  %v1522_v17 = vpop.f32.mrf.mxu1 }
 0x105   : > { %v1412_v18 = vpop.f32.mrf.mxu0  ;;  %v1523_v21 = vadd.f32 %v1522_v17, %v1521_v13 }
 0x106   : > { %v1151_v19 = vmax.f32 %v1037_v15, 0.0  ;;  %v879_v20 = vadd.f32 %v1411_v16, %v1947_v34  ;;  %v1524_v22 = vpop.f32.mrf.mxu1 }
 0x107   : > { %v1413_v23 = vpop.f32.mrf.mxu0 }
 0x108   : > { %1184 = vst.msk [vmem:[%s1954_s10 + $0x20] sm:$0xff] %vm1179_vm0, %v1151_v19  ;;  %v1040_v24 = vadd.f32 %v1523_v21, %v879_v20  ;;  %v1414_v25 = vadd.f32 %v1413_v23, %v1412_v18  ;;  %v1525_v26 = vpop.f32.mrf.mxu1 }
 0x109   : > { %v1415_v27 = vpop.f32.mrf.mxu0  ;;  %v1526_v30 = vadd.f32 %v1525_v26, %v1524_v22 }
 0x10a   : > { %v1152_v28 = vmax.f32 %v1040_v24, 0.0  ;;  %v884_v29 = vadd.f32 %v1414_v25, %v1947_v34  ;;  %v1527_v31 = vpop.f32.mrf.mxu1 }
 0x10b   : > { %v1416_v32 = vpop.f32.mrf.mxu0 }
 0x10c   : > { %1185 = vst.msk [vmem:[%s1954_s10 + $0x28] sm:$0xff] %vm1179_vm0, %v1152_v28  ;;  %v1045_v33 = vadd.f32 %v1526_v30, %v884_v29  ;;  %v1417_v35 = vadd.f32 %v1416_v32, %v1415_v27  ;;  %v1528_v36 = vpop.f32.mrf.mxu1 }
 0x10d   : > { %v1418_v37 = vpop.f32.mrf.mxu0  ;;  %v1529_v40 = vadd.f32 %v1528_v36, %v1527_v31 }
 0x10e   : > { %v1153_v38 = vmax.f32 %v1045_v33, 0.0  ;;  %v887_v39 = vadd.f32 %v1417_v35, %v1947_v34  ;;  %v1530_v41 = vpop.f32.mrf.mxu1 }
 0x10f   : > { %v1419_v42 = vpop.f32.mrf.mxu0 }
 0x110   : > { %1186 = vst.msk [vmem:[%s1954_s10 + $0x30] sm:$0xff] %vm1179_vm0, %v1153_v38  ;;  %v1048_v43 = vadd.f32 %v1529_v40, %v887_v39  ;;  %v1420_v44 = vadd.f32 %v1419_v42, %v1418_v37  ;;  %v1531_v45 = vpop.f32.mrf.mxu1 }
 0x111   : > { %v1421_v46 = vpop.f32.mrf.mxu0  ;;  %v1532_v49 = vadd.f32 %v1531_v45, %v1530_v41 }
 0x112   : > { %v1154_v47 = vmax.f32 %v1048_v43, 0.0  ;;  %v892_v48 = vadd.f32 %v1420_v44, %v1947_v34  ;;  %v1533_v50 = vpop.f32.mrf.mxu1 }
 0x113   : > { %v1422_v51 = vpop.f32.mrf.mxu0 }
 0x114   : > { %1187 = vst.msk [vmem:[%s1954_s10 + $0x38] sm:$0xff] %vm1179_vm0, %v1154_v47  ;;  %v1053_v52 = vadd.f32 %v1532_v49, %v892_v48  ;;  %v1423_v53 = vadd.f32 %v1422_v51, %v1421_v46  ;;  %v1534_v54 = vpop.f32.mrf.mxu1 }
 0x115   : > { %v1424_v55 = vpop.f32.mrf.mxu0  ;;  %v1535_v58 = vadd.f32 %v1534_v54, %v1533_v50 }
 0x116   : > { %v1155_v56 = vmax.f32 %v1053_v52, 0.0  ;;  %v895_v57 = vadd.f32 %v1423_v53, %v1947_v34  ;;  %v1536_v59 = vpop.f32.mrf.mxu1 }
 0x117   : > { %v1425_v60 = vpop.f32.mrf.mxu0 }
 0x118   : > { %1188 = vst.msk [vmem:[%s1954_s10 + $0x40] sm:$0xff] %vm1179_vm0, %v1155_v56  ;;  %v1056_v61 = vadd.f32 %v1535_v58, %v895_v57  ;;  %v1426_v62 = vadd.f32 %v1425_v60, %v1424_v55  ;;  %v1537_v63 = vpop.f32.mrf.mxu1 }
 0x119   : > { %v1427_v0 = vpop.f32.mrf.mxu0  ;;  %v1538_v3 = vadd.f32 %v1537_v63, %v1536_v59 }
 0x11a   : > { %v1156_v1 = vmax.f32 %v1056_v61, 0.0  ;;  %v900_v2 = vadd.f32 %v1426_v62, %v1947_v34  ;;  %v1539_v4 = vpop.f32.mrf.mxu1 }
 0x11b   : > { %v1428_v5 = vpop.f32.mrf.mxu0 }
 0x11c   : > { %1189 = vst.msk [vmem:[%s1954_s10 + $0x48] sm:$0xff] %vm1179_vm0, %v1156_v1  ;;  %v1061_v6 = vadd.f32 %v1538_v3, %v900_v2  ;;  %v1429_v7 = vadd.f32 %v1428_v5, %v1427_v0  ;;  %v1540_v8 = vpop.f32.mrf.mxu1 }
 0x11d   : > { %v1430_v9 = vpop.f32.mrf.mxu0  ;;  %v1541_v12 = vadd.f32 %v1540_v8, %v1539_v4 }
 0x11e   : > { %v1157_v10 = vmax.f32 %v1061_v6, 0.0  ;;  %v903_v11 = vadd.f32 %v1429_v7, %v1947_v34  ;;  %v1542_v13 = vpop.f32.mrf.mxu1 }
 0x11f   : > { %v1431_v14 = vpop.f32.mrf.mxu0 }
 0x120   : > { %1190 = vst.msk [vmem:[%s1954_s10 + $0x50] sm:$0xff] %vm1179_vm0, %v1157_v10  ;;  %v1064_v15 = vadd.f32 %v1541_v12, %v903_v11  ;;  %v1432_v16 = vadd.f32 %v1431_v14, %v1430_v9  ;;  %v1543_v17 = vpop.f32.mrf.mxu1 }
 0x121   : > { %v1433_v18 = vpop.f32.mrf.mxu0  ;;  %v1544_v21 = vadd.f32 %v1543_v17, %v1542_v13 }
 0x122   : > { %v1158_v19 = vmax.f32 %v1064_v15, 0.0  ;;  %v908_v20 = vadd.f32 %v1432_v16, %v1947_v34  ;;  %v1545_v22 = vpop.f32.mrf.mxu1 }
 0x123   : > { %v1434_v23 = vpop.f32.mrf.mxu0 }
 0x124   : > { %1191 = vst.msk [vmem:[%s1954_s10 + $0x58] sm:$0xff] %vm1179_vm0, %v1158_v19  ;;  %v1069_v24 = vadd.f32 %v1544_v21, %v908_v20  ;;  %v1435_v25 = vadd.f32 %v1434_v23, %v1433_v18  ;;  %v1546_v26 = vpop.f32.mrf.mxu1 }
 0x125   : > { %v1436_v27 = vpop.f32.mrf.mxu0  ;;  %v1547_v30 = vadd.f32 %v1546_v26, %v1545_v22 }
 0x126   : > { %v1159_v28 = vmax.f32 %v1069_v24, 0.0  ;;  %v911_v29 = vadd.f32 %v1435_v25, %v1947_v34  ;;  %v1548_v31 = vpop.f32.mrf.mxu1 }
 0x127   : > { %v1437_v32 = vpop.f32.mrf.mxu0 }
 0x128   : > { %1192 = vst.msk [vmem:[%s1954_s10 + $0x60] sm:$0xff] %vm1179_vm0, %v1159_v28  ;;  %v1072_v33 = vadd.f32 %v1547_v30, %v911_v29  ;;  %v1438_v35 = vadd.f32 %v1437_v32, %v1436_v27  ;;  %v1549_v36 = vpop.f32.mrf.mxu1 }
 0x129   : > { %v1439_v37 = vpop.f32.mrf.mxu0  ;;  %v1550_v40 = vadd.f32 %v1549_v36, %v1548_v31 }
 0x12a   : > { %v1160_v38 = vmax.f32 %v1072_v33, 0.0  ;;  %v916_v39 = vadd.f32 %v1438_v35, %v1947_v34  ;;  %v1551_v41 = vpop.f32.mrf.mxu1 }
 0x12b   : > { %v1440_v42 = vpop.f32.mrf.mxu0 }
 0x12c   : > { %1193 = vst.msk [vmem:[%s1954_s10 + $0x68] sm:$0xff] %vm1179_vm0, %v1160_v38  ;;  %v1077_v43 = vadd.f32 %v1550_v40, %v916_v39  ;;  %v1441_v44 = vadd.f32 %v1440_v42, %v1439_v37  ;;  %v1552_v45 = vpop.f32.mrf.mxu1 }
 0x12d   : > { %v1442_v46 = vpop.f32.mrf.mxu0  ;;  %v1553_v49 = vadd.f32 %v1552_v45, %v1551_v41 }
 0x12e   : > { %v1161_v47 = vmax.f32 %v1077_v43, 0.0  ;;  %v919_v48 = vadd.f32 %v1441_v44, %v1947_v34  ;;  %v1554_v50 = vpop.f32.mrf.mxu1 }
 0x12f   : > { %v1443_v51 = vpop.f32.mrf.mxu0 }
 0x130   : > { %1194 = vst.msk [vmem:[%s1954_s10 + $0x70] sm:$0xff] %vm1179_vm0, %v1161_v47  ;;  %v1080_v52 = vadd.f32 %v1553_v49, %v919_v48  ;;  %v1444_v53 = vadd.f32 %v1443_v51, %v1442_v46  ;;  %v1555_v54 = vpop.f32.mrf.mxu1 }
 0x131   : > { %v1445_v55 = vpop.f32.mrf.mxu0  ;;  %v1556_v58 = vadd.f32 %v1555_v54, %v1554_v50 }
 0x132   : > { %v1162_v56 = vmax.f32 %v1080_v52, 0.0  ;;  %v924_v57 = vadd.f32 %v1444_v53, %v1947_v34  ;;  %v1557_v59 = vpop.f32.mrf.mxu1 }
 0x133   : > { %v1446_v60 = vpop.f32.mrf.mxu0 }
 0x134   : > { %1195 = vst.msk [vmem:[%s1954_s10 + $0x78] sm:$0xff] %vm1179_vm0, %v1162_v56  ;;  %v1085_v61 = vadd.f32 %v1556_v58, %v924_v57  ;;  %v1447_v62 = vadd.f32 %v1446_v60, %v1445_v55  ;;  %v1558_v63 = vpop.f32.mrf.mxu1 }
 0x135   : > { %v1448_v0 = vpop.f32.mrf.mxu0  ;;  %v1559_v3 = vadd.f32 %v1558_v63, %v1557_v59 }
 0x136   : > { %v1163_v1 = vmax.f32 %v1085_v61, 0.0  ;;  %v927_v2 = vadd.f32 %v1447_v62, %v1947_v34  ;;  %v1560_v4 = vpop.f32.mrf.mxu1 }
 0x137   : > { %v1449_v5 = vpop.f32.mrf.mxu0 }
 0x138   : > { %1196 = vst.msk [vmem:[%s1954_s10 + $0x80] sm:$0xff] %vm1179_vm0, %v1163_v1  ;;  %v1088_v6 = vadd.f32 %v1559_v3, %v927_v2  ;;  %v1450_v7 = vadd.f32 %v1449_v5, %v1448_v0  ;;  %v1561_v8 = vpop.f32.mrf.mxu1 }
 0x139   : > { %v1451_v9 = vpop.f32.mrf.mxu0  ;;  %v1562_v12 = vadd.f32 %v1561_v8, %v1560_v4 }
 0x13a   : > { %v1164_v10 = vmax.f32 %v1088_v6, 0.0  ;;  %v932_v11 = vadd.f32 %v1450_v7, %v1947_v34  ;;  %v1563_v13 = vpop.f32.mrf.mxu1 }
 0x13b   : > { %v1452_v14 = vpop.f32.mrf.mxu0 }
 0x13c   : > { %1197 = vst.msk [vmem:[%s1954_s10 + $0x88] sm:$0xff] %vm1179_vm0, %v1164_v10  ;;  %v1093_v15 = vadd.f32 %v1562_v12, %v932_v11  ;;  %v1453_v16 = vadd.f32 %v1452_v14, %v1451_v9  ;;  %v1564_v17 = vpop.f32.mrf.mxu1 }
 0x13d   : > { %v1454_v18 = vpop.f32.mrf.mxu0  ;;  %v1565_v21 = vadd.f32 %v1564_v17, %v1563_v13 }
 0x13e   : > { %v1165_v19 = vmax.f32 %v1093_v15, 0.0  ;;  %v935_v20 = vadd.f32 %v1453_v16, %v1947_v34  ;;  %v1566_v22 = vpop.f32.mrf.mxu1 }
 0x13f   : > { %v1455_v23 = vpop.f32.mrf.mxu0 }
 0x140   : > { %1198 = vst.msk [vmem:[%s1954_s10 + $0x90] sm:$0xff] %vm1179_vm0, %v1165_v19  ;;  %v1096_v24 = vadd.f32 %v1565_v21, %v935_v20  ;;  %v1456_v25 = vadd.f32 %v1455_v23, %v1454_v18  ;;  %v1567_v26 = vpop.f32.mrf.mxu1 }
 0x141   : > { %v1457_v27 = vpop.f32.mrf.mxu0  ;;  %v1568_v30 = vadd.f32 %v1567_v26, %v1566_v22 }
 0x142   : > { %v1166_v28 = vmax.f32 %v1096_v24, 0.0  ;;  %v940_v29 = vadd.f32 %v1456_v25, %v1947_v34  ;;  %v1569_v31 = vpop.f32.mrf.mxu1 }
 0x143   : > { %v1458_v32 = vpop.f32.mrf.mxu0 }
 0x144   : > { %1199 = vst.msk [vmem:[%s1954_s10 + $0x98] sm:$0xff] %vm1179_vm0, %v1166_v28  ;;  %v1101_v33 = vadd.f32 %v1568_v30, %v940_v29  ;;  %v1459_v35 = vadd.f32 %v1458_v32, %v1457_v27  ;;  %v1570_v36 = vpop.f32.mrf.mxu1 }
 0x145   : > { %v1460_v37 = vpop.f32.mrf.mxu0  ;;  %v1571_v40 = vadd.f32 %v1570_v36, %v1569_v31 }
 0x146   : > { %v1167_v38 = vmax.f32 %v1101_v33, 0.0  ;;  %v943_v39 = vadd.f32 %v1459_v35, %v1947_v34  ;;  %v1572_v41 = vpop.f32.mrf.mxu1 }
 0x147   : > { %v1461_v42 = vpop.f32.mrf.mxu0 }
 0x148   : > { %1200 = vst.msk [vmem:[%s1954_s10 + $0xa0] sm:$0xff] %vm1179_vm0, %v1167_v38  ;;  %v1104_v43 = vadd.f32 %v1571_v40, %v943_v39  ;;  %v1462_v44 = vadd.f32 %v1461_v42, %v1460_v37  ;;  %v1573_v45 = vpop.f32.mrf.mxu1 }
 0x149   : > { %v1463_v46 = vpop.f32.mrf.mxu0  ;;  %v1574_v49 = vadd.f32 %v1573_v45, %v1572_v41 }
 0x14a   : > { %v1168_v47 = vmax.f32 %v1104_v43, 0.0  ;;  %v948_v48 = vadd.f32 %v1462_v44, %v1947_v34  ;;  %v1575_v50 = vpop.f32.mrf.mxu1 }
 0x14b   : > { %v1464_v51 = vpop.f32.mrf.mxu0 }
 0x14c   : > { %1201 = vst.msk [vmem:[%s1954_s10 + $0xa8] sm:$0xff] %vm1179_vm0, %v1168_v47  ;;  %v1109_v52 = vadd.f32 %v1574_v49, %v948_v48  ;;  %v1465_v53 = vadd.f32 %v1464_v51, %v1463_v46  ;;  %v1576_v54 = vpop.f32.mrf.mxu1 }
 0x14d   : > { %v1466_v55 = vpop.f32.mrf.mxu0  ;;  %v1577_v58 = vadd.f32 %v1576_v54, %v1575_v50 }
 0x14e   : > { %v1169_v56 = vmax.f32 %v1109_v52, 0.0  ;;  %v951_v57 = vadd.f32 %v1465_v53, %v1947_v34  ;;  %v1578_v59 = vpop.f32.mrf.mxu1 }
 0x14f   : > { %v1467_v60 = vpop.f32.mrf.mxu0 }
 0x150   : > { %1202 = vst.msk [vmem:[%s1954_s10 + $0xb0] sm:$0xff] %vm1179_vm0, %v1169_v56  ;;  %v1112_v61 = vadd.f32 %v1577_v58, %v951_v57  ;;  %v1468_v62 = vadd.f32 %v1467_v60, %v1466_v55  ;;  %v1579_v63 = vpop.f32.mrf.mxu1 }
 0x151   : > { %v1469_v0 = vpop.f32.mrf.mxu0  ;;  %v1580_v3 = vadd.f32 %v1579_v63, %v1578_v59 }
 0x152   : > { %v1170_v1 = vmax.f32 %v1112_v61, 0.0  ;;  %v956_v2 = vadd.f32 %v1468_v62, %v1947_v34  ;;  %v1581_v4 = vpop.f32.mrf.mxu1 }
 0x153   : > { %v1470_v5 = vpop.f32.mrf.mxu0 }
 0x154   : > { %1203 = vst.msk [vmem:[%s1954_s10 + $0xb8] sm:$0xff] %vm1179_vm0, %v1170_v1  ;;  %v1117_v6 = vadd.f32 %v1580_v3, %v956_v2  ;;  %v1471_v7 = vadd.f32 %v1470_v5, %v1469_v0  ;;  %v1582_v8 = vpop.f32.mrf.mxu1 }
 0x155   : > { %v1472_v9 = vpop.f32.mrf.mxu0  ;;  %v1583_v12 = vadd.f32 %v1582_v8, %v1581_v4 }
 0x156   : > { %v1171_v10 = vmax.f32 %v1117_v6, 0.0  ;;  %v959_v11 = vadd.f32 %v1471_v7, %v1947_v34  ;;  %v1584_v13 = vpop.f32.mrf.mxu1 }
 0x157   : > { %v1473_v14 = vpop.f32.mrf.mxu0 }
 0x158   : > { %1204 = vst.msk [vmem:[%s1954_s10 + $0xc0] sm:$0xff] %vm1179_vm0, %v1171_v10  ;;  %v1120_v15 = vadd.f32 %v1583_v12, %v959_v11  ;;  %v1474_v16 = vadd.f32 %v1473_v14, %v1472_v9  ;;  %v1585_v17 = vpop.f32.mrf.mxu1 }
 0x159   : > { %v1475_v18 = vpop.f32.mrf.mxu0  ;;  %v1586_v21 = vadd.f32 %v1585_v17, %v1584_v13 }
 0x15a   : > { %v1172_v19 = vmax.f32 %v1120_v15, 0.0  ;;  %v964_v20 = vadd.f32 %v1474_v16, %v1947_v34  ;;  %v1587_v22 = vpop.f32.mrf.mxu1 }
 0x15b   : > { %v1476_v23 = vpop.f32.mrf.mxu0 }
 0x15c   : > { %1205 = vst.msk [vmem:[%s1954_s10 + $0xc8] sm:$0xff] %vm1179_vm0, %v1172_v19  ;;  %v1125_v24 = vadd.f32 %v1586_v21, %v964_v20  ;;  %v1477_v25 = vadd.f32 %v1476_v23, %v1475_v18  ;;  %v1588_v26 = vpop.f32.mrf.mxu1 }
 0x15d   : > { %v1478_v27 = vpop.f32.mrf.mxu0  ;;  %v1589_v30 = vadd.f32 %v1588_v26, %v1587_v22 }
 0x15e   : > { %v1173_v28 = vmax.f32 %v1125_v24, 0.0  ;;  %v967_v29 = vadd.f32 %v1477_v25, %v1947_v34  ;;  %v1590_v31 = vpop.f32.mrf.mxu1 }
 0x15f   : > { %v1479_v32 = vpop.f32.mrf.mxu0 }
 0x160   : > { %1206 = vst.msk [vmem:[%s1954_s10 + $0xd0] sm:$0xff] %vm1179_vm0, %v1173_v28  ;;  %v1128_v33 = vadd.f32 %v1589_v30, %v967_v29  ;;  %v1480_v35 = vadd.f32 %v1479_v32, %v1478_v27  ;;  %v1591_v36 = vpop.f32.mrf.mxu1 }
 0x161   : > { %v1481_v37 = vpop.f32.mrf.mxu0  ;;  %v1592_v40 = vadd.f32 %v1591_v36, %v1590_v31 }
 0x162   : > { %v1174_v38 = vmax.f32 %v1128_v33, 0.0  ;;  %v972_v39 = vadd.f32 %v1480_v35, %v1947_v34  ;;  %v1593_v41 = vpop.f32.mrf.mxu1 }
 0x163   : > { %v1482_v42 = vpop.f32.mrf.mxu0 }
 0x164   : > { %1207 = vst.msk [vmem:[%s1954_s10 + $0xd8] sm:$0xff] %vm1179_vm0, %v1174_v38  ;;  %v1133_v43 = vadd.f32 %v1592_v40, %v972_v39  ;;  %v1483_v44 = vadd.f32 %v1482_v42, %v1481_v37  ;;  %v1594_v45 = vpop.f32.mrf.mxu1 }
 0x165   : > { %v1484_v46 = vpop.f32.mrf.mxu0  ;;  %v1595_v49 = vadd.f32 %v1594_v45, %v1593_v41 }
 0x166   : > { %v1175_v47 = vmax.f32 %v1133_v43, 0.0  ;;  %v975_v48 = vadd.f32 %v1483_v44, %v1947_v34  ;;  %v1596_v50 = vpop.f32.mrf.mxu1 }
 0x167   : > { %v1485_v51 = vpop.f32.mrf.mxu0 }
 0x168   : > { %1208 = vst.msk [vmem:[%s1954_s10 + $0xe0] sm:$0xff] %vm1179_vm0, %v1175_v47  ;;  %v1136_v52 = vadd.f32 %v1595_v49, %v975_v48  ;;  %v1486_v53 = vadd.f32 %v1485_v51, %v1484_v46  ;;  %v1597_v54 = vpop.f32.mrf.mxu1 }
 0x169   : > { %v1487_v55 = vpop.f32.mrf.mxu0  ;;  %v1598_v58 = vadd.f32 %v1597_v54, %v1596_v50 }
 0x16a   : > { %v1176_v56 = vmax.f32 %v1136_v52, 0.0  ;;  %v980_v57 = vadd.f32 %v1486_v53, %v1947_v34  ;;  %v1599_v59 = vpop.f32.mrf.mxu1 }
 0x16b   : > { %v1488_v60 = vpop.f32.mrf.mxu0 }
 0x16c   : > { %1209 = vst.msk [vmem:[%s1954_s10 + $0xe8] sm:$0xff] %vm1179_vm0, %v1176_v56  ;;  %v1141_v61 = vadd.f32 %v1598_v58, %v980_v57  ;;  %v1489_v62 = vadd.f32 %v1488_v60, %v1487_v55  ;;  %v1600_v63 = vpop.f32.mrf.mxu1 }
 0x16d   : > { %v1601_v2 = vadd.f32 %v1600_v63, %v1599_v59 }
 0x16e   : > { %v1177_v0 = vmax.f32 %v1141_v61, 0.0  ;;  %v983_v1 = vadd.f32 %v1489_v62, %v1947_v34 }
 0x170   : > { %1210 = vst.msk [vmem:[%s1954_s10 + $0xf0] sm:$0xff] %vm1179_vm0, %v1177_v0  ;;  %v1144_v3 = vadd.f32 %v1601_v2, %v983_v1 }
 0x172   : > { %v1178_v4 = vmax.f32 %v1144_v3, 0.0 }
 0x174   : > { %1211 = vst.msk [vmem:[%s1954_s10 + $0xf8] sm:$0xff] %vm1179_vm0, %v1178_v4 }
 0x175 PF: > { %s13_s12 = sadd.s32 1, %s1744_s12  }
 0x176   : > { %p10_p4 = scmp.ge.s32.totalorder %s13_s12, 4  }
 0x178   :  { %12 = sbr.rel (!%p10_p4) target bundleno = 1 (0x1), region = 62 }

// kernel: encoder_forward.12
= control target key start
LH: loop header
LB: loop body
LE: loop exit
PB: predicated region body
PF: predicated region fallthrough
CT: control target
= control target key end

     0   :  { %s1592_s12 = smov 0   ;;  %s1908_s0 = inlined_call_operand.vmem [shape: bf16[128,1024], index: 0, kind: input, shape index: {}]   ;;  %s1909_s1 = inlined_call_operand.vmem [shape: bf16[1024,64], index: 1, kind: input, shape index: {}]   ;;  %s1910_s2 = inlined_call_operand.vmem [shape: f32[1,64], index: 2, kind: input, shape index: {}]   ;;  %s1911_s3 = inlined_call_operand.vmem [shape: f32[128,64], index: 3, kind: output, shape index: {}]  }
   0x1 LB: > { %s1222_s13 = sadd.s32 4294967295, %s1570_s12   ;;  %p1226_p0 = scmp.ge.s32.totalorder %s1570_s12, 1  ;;  %s1570_s12 = sphi %s1592_s12, %s13_s12  }
   0x2   : > { %p139_p1 = scmp.lt.s32.totalorder %s1570_s12, 3 }
   0x4   : > { %p140_p2 = pnand %p1226_p0, %p139_p1 }
   0x5   : > { %s1227_s21 = sshll.u32 (!%p140_p2), %s1222_s13, 3 }
   0x6   : > { %143 = sbr.rel (%p140_p2) target bundleno = 309 (0x135), region = 32  ;;  %p165_p3 = scmp.lt.s32.totalorder (!%p140_p2), %s1227_s21, 15 }
   0xb   : > { %v1500_v0 = vld [vmem:[%s1909_s1 + $0x78] sm:$0xff]   ;;  %v1504_v4 = vld [vmem:[%s1909_s1 + $0x70] sm:$0xff]   ;;  %v1508_v8 = vld [vmem:[%s1909_s1 + $0x68] sm:$0xff]   ;;  %s1913_s21 = smov (!%p165_p3, %s1227_s21), 15  ;;  %vm1157_vm0 = vcmask 523264  }
   0xc   : > { %v1501_v1 = vld [vmem:[%s1909_s1 + $0xf8] sm:$0xff]   ;;  %1332 = vmatprep.subr.bf16.mxu0 %v1500_v0  ;;  %v1505_v5 = vld [vmem:[%s1909_s1 + $0xf0] sm:$0xff]   ;;  %v1509_v9 = vld [vmem:[%s1909_s1 + $0xe8] sm:$0xff]   ;;  %s1331_s18 = sshll.u32 %s1913_s21, 5  ;;  %s1231_s25 = sshll.u32 %s1913_s21, 3 }
   0xd   : > { %v1502_v2 = vld [vmem:[%s1909_s1 + $0x38] sm:$0xff]   ;;  %1372 = vmatprep.subr.bf16.mxu1 %v1501_v1  ;;  %v1506_v6 = vld [vmem:[%s1909_s1 + $0x30] sm:$0xff]   ;;  %v1510_v10 = vld [vmem:[%s1909_s1 + $0x28] sm:$0xff]   ;;  %s1698_s28 = scalar_lea.vmem %s1908_s0, %s1331_s18  ;;  %s1870_s29 = scalar_lea.vmem %s1911_s3, %s1231_s25 }
   0xe   : > { %v1503_v3 = vld [vmem:[%s1909_s1 + $0xb8] sm:$0xff]   ;;  %1333 = vmatpush3.bf16.msra.mxu0 %v1502_v2  ;;  %v1507_v7 = vld [vmem:[%s1909_s1 + $0xb0] sm:$0xff]   ;;  %v1511_v11 = vld [vmem:[%s1909_s1 + $0xa8] sm:$0xff]  }
   0xf   : > { %1373 = vmatpush3.bf16.msra.mxu1 %v1503_v3  ;;  %1334 = vmatprep.subr.bf16.mxu0 %v1504_v4  ;;  %v1512_v12 = vld [vmem:[%s1909_s1 + $0x60] sm:$0xff]   ;;  %v1516_v16 = vld [vmem:[%s1909_s1 + $0x58] sm:$0xff]   ;;  %v1520_v20 = vld [vmem:[%s1909_s1 + $0x50] sm:$0xff]  }
  0x10   : > { %1374 = vmatprep.subr.bf16.mxu1 %v1505_v5  ;;  %v1513_v13 = vld [vmem:[%s1909_s1 + $0xe0] sm:$0xff]   ;;  %v1517_v17 = vld [vmem:[%s1909_s1 + $0xd8] sm:$0xff]   ;;  %v1521_v21 = vld [vmem:[%s1909_s1 + $0xd0] sm:$0xff]  }
  0x11   : > { %v1514_v14 = vld [vmem:[%s1909_s1 + $0x20] sm:$0xff]   ;;  %v1518_v18 = vld [vmem:[%s1909_s1 + $0x18] sm:$0xff]   ;;  %v1522_v22 = vld [vmem:[%s1909_s1 + $0x10] sm:$0xff]  }
  0x12   : > { %1335 = vmatpush3.bf16.msra.mxu0 %v1506_v6  ;;  %v1515_v15 = vld [vmem:[%s1909_s1 + $0xa0] sm:$0xff]   ;;  %v1519_v19 = vld [vmem:[%s1909_s1 + $0x98] sm:$0xff]   ;;  %v1523_v23 = vld [vmem:[%s1909_s1 + $0x90] sm:$0xff]  }
  0x13   : > { %1375 = vmatpush3.bf16.msra.mxu1 %v1507_v7  ;;  %1336 = vmatprep.subr.bf16.mxu0 %v1508_v8  ;;  %v1524_v24 = vld [vmem:[%s1909_s1 + $0x48] sm:$0xff]   ;;  %v1528_v28 = vld [vmem:[%s1909_s1 + $0x40] sm:$0xff]   ;;  %v1532_v40 = vld [vmem:[%s1909_s1 + $0x178] sm:$0xff]  }
  0x14   : > { %1376 = vmatprep.subr.bf16.mxu1 %v1509_v9  ;;  %v1525_v25 = vld [vmem:[%s1909_s1 + $0xc8] sm:$0xff]   ;;  %v1529_v29 = vld [vmem:[%s1909_s1 + $0xc0] sm:$0xff]   ;;  %v1533_v41 = vld [vmem:[%s1909_s1 + $0x1f8] sm:$0xff]  }
  0x15   : > { %v1526_v26 = vld [vmem:[%s1909_s1 + $0x8] sm:$0xff]   ;;  %v1530_v30 = vld [vmem:[%s1909_s1] sm:$0xff]   ;;  %v1534_v42 = vld [vmem:[%s1909_s1 + $0x138] sm:$0xff]  }
  0x16   : > { %1337 = vmatpush3.bf16.msra.mxu0 %v1510_v10  ;;  %v1527_v27 = vld [vmem:[%s1909_s1 + $0x88] sm:$0xff]   ;;  %v1531_v31 = vld [vmem:[%s1909_s1 + $0x80] sm:$0xff]   ;;  %v1535_v43 = vld [vmem:[%s1909_s1 + $0x1b8] sm:$0xff]  }
  0x17   : > { %1377 = vmatpush3.bf16.msra.mxu1 %v1511_v11  ;;  %1338 = vmatprep.subr.bf16.mxu0 %v1512_v12  ;;  %v178_v32 = vld [vmem:[%s1698_s28] sm:$0xff]  ;;  %v179_v34 = vld [vmem:[%s1698_s28 + $0x8] sm:$0xff]  ;;  %v1536_v44 = vld [vmem:[%s1909_s1 + $0x170] sm:$0xff]  }
  0x18   : > { %1378 = vmatprep.subr.bf16.mxu1 %v1513_v13  ;;  %v182_v33 = vld [vmem:[%s1698_s28 + $0x20] sm:$0xff]  ;;  %v183_v37 = vld [vmem:[%s1698_s28 + $0x28] sm:$0xff]  ;;  %v1537_v45 = vld [vmem:[%s1909_s1 + $0x1f0] sm:$0xff]  }
  0x19   : > { %v1233_v35 = vcombine.low %v178_v32, %v182_v33  ;;  %v1234_v36 = vcombine.high %v178_v32, %v182_v33  ;;  %v1235_v38 = vcombine.low %v179_v34, %v183_v37  ;;  %v1236_v39 = vcombine.high %v179_v34, %v183_v37  ;;  %v1538_v46 = vld [vmem:[%s1909_s1 + $0x130] sm:$0xff]   ;;  %v186_v48 = vld [vmem:[%s1698_s28 + $0x40] sm:$0xff]  ;;  %v187_v51 = vld [vmem:[%s1698_s28 + $0x48] sm:$0xff] }
  0x1a   : > { %1339 = vmatpush3.bf16.msra.mxu0 %v1514_v14  ;;  %v1539_v47 = vld [vmem:[%s1909_s1 + $0x1b0] sm:$0xff]   ;;  %v190_v49 = vld [vmem:[%s1698_s28 + $0x60] sm:$0xff]  ;;  %v191_v52 = vld [vmem:[%s1698_s28 + $0x68] sm:$0xff] }
  0x1b   : > { %1379 = vmatpush3.bf16.msra.mxu1 %v1515_v15  ;;  %1340 = vmatprep.subr.bf16.mxu0 %v1516_v16  ;;  %v1242_v50 = vcombine.high %v186_v48, %v190_v49  ;;  %v1241_v53 = vcombine.low %v186_v48, %v190_v49  ;;  %v1244_v54 = vcombine.high %v187_v51, %v191_v52  ;;  %v1540_v56 = vld [vmem:[%s1909_s1 + $0x168] sm:$0xff]   ;;  %v1544_v60 = vld [vmem:[%s1909_s1 + $0x160] sm:$0xff]   ;;  %v1548_v8 = vld [vmem:[%s1909_s1 + $0x158] sm:$0xff]  }
  0x1c   : > { %1380 = vmatprep.subr.bf16.mxu1 %v1517_v17  ;;  %921 = vmatprep.mubr.bf16.mxu0 %v1234_v36  ;;  %v1243_v55 = vcombine.low %v187_v51, %v191_v52  ;;  %v1541_v57 = vld [vmem:[%s1909_s1 + $0x1e8] sm:$0xff]   ;;  %v1545_v61 = vld [vmem:[%s1909_s1 + $0x1e0] sm:$0xff]   ;;  %v1549_v9 = vld [vmem:[%s1909_s1 + $0x1d8] sm:$0xff]  }
  0x1d   : > { %986 = vmatprep.mubr.bf16.mxu1 %v1236_v39  ;;  %v1542_v58 = vld [vmem:[%s1909_s1 + $0x128] sm:$0xff]   ;;  %v1546_v62 = vld [vmem:[%s1909_s1 + $0x120] sm:$0xff]   ;;  %v1550_v10 = vld [vmem:[%s1909_s1 + $0x118] sm:$0xff]  }
  0x1e   : > { %1341 = vmatpush3.bf16.msra.mxu0 %v1518_v18  ;;  %v1543_v59 = vld [vmem:[%s1909_s1 + $0x1a8] sm:$0xff]   ;;  %v1547_v63 = vld [vmem:[%s1909_s1 + $0x1a0] sm:$0xff]   ;;  %v1551_v11 = vld [vmem:[%s1909_s1 + $0x198] sm:$0xff]  }
  0x1f   : > { %1381 = vmatpush3.bf16.msra.mxu1 %v1519_v19  ;;  %1342 = vmatprep.subr.bf16.mxu0 %v1520_v20  ;;  %v194_v0 = vld [vmem:[%s1698_s28 + $0x80] sm:$0xff]  ;;  %v195_v2 = vld [vmem:[%s1698_s28 + $0x88] sm:$0xff]  ;;  %v1552_v12 = vld [vmem:[%s1909_s1 + $0x150] sm:$0xff]  }
  0x20   : > { %1382 = vmatprep.subr.bf16.mxu1 %v1521_v21  ;;  %v198_v1 = vld [vmem:[%s1698_s28 + $0xa0] sm:$0xff]  ;;  %v199_v3 = vld [vmem:[%s1698_s28 + $0xa8] sm:$0xff]  ;;  %v1553_v13 = vld [vmem:[%s1909_s1 + $0x1d0] sm:$0xff]  }
  0x21   : > { %v1250_v4 = vcombine.high %v194_v0, %v198_v1  ;;  %v1252_v5 = vcombine.high %v195_v2, %v199_v3  ;;  %v1249_v6 = vcombine.low %v194_v0, %v198_v1  ;;  %v1251_v7 = vcombine.low %v195_v2, %v199_v3  ;;  %v1554_v14 = vld [vmem:[%s1909_s1 + $0x110] sm:$0xff]   ;;  %v202_v16 = vld [vmem:[%s1698_s28 + $0xc0] sm:$0xff]  ;;  %v203_v18 = vld [vmem:[%s1698_s28 + $0xc8] sm:$0xff] }
  0x22   : > { %1343 = vmatpush3.bf16.msra.mxu0 %v1522_v22  ;;  %v1555_v15 = vld [vmem:[%s1909_s1 + $0x190] sm:$0xff]   ;;  %v206_v17 = vld [vmem:[%s1698_s28 + $0xe0] sm:$0xff]  ;;  %v207_v20 = vld [vmem:[%s1698_s28 + $0xe8] sm:$0xff] }
  0x23   : > { %1383 = vmatpush3.bf16.msra.mxu1 %v1523_v23  ;;  %1344 = vmatprep.subr.bf16.mxu0 %v1524_v24  ;;  %v1258_v19 = vcombine.high %v202_v16, %v206_v17  ;;  %v1257_v21 = vcombine.low %v202_v16, %v206_v17  ;;  %v1260_v22 = vcombine.high %v203_v18, %v207_v20  ;;  %v1556_v24 = vld [vmem:[%s1909_s1 + $0x148] sm:$0xff]   ;;  %v180_v32 = vld [vmem:[%s1698_s28 + $0x10] sm:$0xff]  ;;  %v181_v36 = vld [vmem:[%s1698_s28 + $0x18] sm:$0xff] }
  0x24   : > { %1384 = vmatprep.subr.bf16.mxu1 %v1525_v25  ;;  %v1259_v23 = vcombine.low %v203_v18, %v207_v20  ;;  %v1557_v25 = vld [vmem:[%s1909_s1 + $0x1c8] sm:$0xff]   ;;  %v184_v33 = vld [vmem:[%s1698_s28 + $0x30] sm:$0xff]  ;;  %v185_v37 = vld [vmem:[%s1698_s28 + $0x38] sm:$0xff] }
  0x25   : > { %v1237_v34 = vcombine.low %v180_v32, %v184_v33  ;;  %v1239_v39 = vcombine.low %v181_v36, %v185_v37  ;;  %v197_v48 = vld [vmem:[%s1698_s28 + $0x98] sm:$0xff] }
  0x26   : > { %1345 = vmatpush3.bf16.msra.mxu0 %v1526_v26  ;;  %v1558_v26 = vld [vmem:[%s1909_s1 + $0x108] sm:$0xff]   ;;  %v201_v49 = vld [vmem:[%s1698_s28 + $0xb8] sm:$0xff] }
  0x27   : > { %1385 = vmatpush3.bf16.msra.mxu1 %v1527_v27  ;;  %1346 = vmatprep.subr.bf16.mxu0 %v1528_v28  ;;  %v1559_v27 = vld [vmem:[%s1909_s1 + $0x188] sm:$0xff]   ;;  %v1560_v28 = vld [vmem:[%s1909_s1 + $0x140] sm:$0xff]  }
  0x28   : > { %1386 = vmatprep.subr.bf16.mxu1 %v1529_v29  ;;  %v1561_v29 = vld [vmem:[%s1909_s1 + $0x1c0] sm:$0xff]  }
  0x2a   : > { %1347 = vmatpush3.bf16.msra.mxu0 %v1530_v30  ;;  %v1562_v30 = vld [vmem:[%s1909_s1 + $0x100] sm:$0xff]  }
  0x2b   : > { %1387 = vmatpush3.bf16.msra.mxu1 %v1531_v31  ;;  %1412 = vmatprep.subr.bf16.mxu0 %v1532_v40  ;;  %v1563_v31 = vld [vmem:[%s1909_s1 + $0x180] sm:$0xff]   ;;  %v1240_v40 = vcombine.high %v181_v36, %v185_v37 }
  0x2c   : > { %1452 = vmatprep.subr.bf16.mxu1 %v1533_v41  ;;  %v192_v41 = vld [vmem:[%s1698_s28 + $0x70] sm:$0xff] }
  0x2d   : > { %922 = vmatmul.mubr.bf16.vlgmr.msra.gmra.mxu0 %v1233_v35  ;;  %v1238_v35 = vcombine.high %v180_v32, %v184_v33 }
  0x2e   : > { %987 = vmatmul.mubr.bf16.vlgmr.msra.gmra.mxu1 %v1235_v38  ;;  %1413 = vmatpush3.bf16.msra.mxu0 %v1534_v42  ;;  %v188_v38 = vld [vmem:[%s1698_s28 + $0x50] sm:$0xff]  ;;  %v189_v42 = vld [vmem:[%s1698_s28 + $0x58] sm:$0xff] }
  0x2f   : > { %1453 = vmatpush3.bf16.msra.mxu1 %v1535_v43  ;;  %1414 = vmatprep.subr.bf16.mxu0 %v1536_v44  ;;  %v193_v43 = vld [vmem:[%s1698_s28 + $0x78] sm:$0xff]  ;;  %v1246_v44 = vcombine.high %v188_v38, %v192_v41 }
  0x30   : > { %1454 = vmatprep.subr.bf16.mxu1 %v1537_v45  ;;  %929 = vmatprep.mubr.bf16.mxu0 %v1242_v50  ;;  %v1248_v45 = vcombine.high %v189_v42, %v193_v43  ;;  %v1245_v50 = vcombine.low %v188_v38, %v192_v41  ;;  %v1247_v51 = vcombine.low %v189_v42, %v193_v43 }
  0x31   : > { %994 = vmatprep.mubr.bf16.mxu1 %v1244_v54  ;;  %v204_v54 = vld [vmem:[%s1698_s28 + $0xd0] sm:$0xff] }
  0x32   : > { %1415 = vmatpush3.bf16.msra.mxu0 %v1538_v46  ;;  %v196_v46 = vld [vmem:[%s1698_s28 + $0x90] sm:$0xff] }
  0x33   : > { %1455 = vmatpush3.bf16.msra.mxu1 %v1539_v47  ;;  %1416 = vmatprep.subr.bf16.mxu0 %v1540_v56  ;;  %v200_v47 = vld [vmem:[%s1698_s28 + $0xb0] sm:$0xff]  ;;  %v205_v56 = vld [vmem:[%s1698_s28 + $0xd8] sm:$0xff] }
  0x34   : > { %1456 = vmatprep.subr.bf16.mxu1 %v1541_v57  ;;  %v1254_v52 = vcombine.high %v196_v46, %v200_v47  ;;  %v209_v57 = vld [vmem:[%s1698_s28 + $0xf8] sm:$0xff] }
  0x35   : > { %930 = vmatmul.mubr.bf16.gmra.mxu0 %v1241_v53  ;;  %v1256_v53 = vcombine.high %v197_v48, %v201_v49 }
  0x36   : > { %995 = vmatmul.mubr.bf16.gmra.mxu1 %v1243_v55  ;;  %1417 = vmatpush3.bf16.msra.mxu0 %v1542_v58  ;;  %v208_v55 = vld [vmem:[%s1698_s28 + $0xf0] sm:$0xff]  ;;  %v1253_v58 = vcombine.low %v196_v46, %v200_v47 }
  0x37   : > { %1457 = vmatpush3.bf16.msra.mxu1 %v1543_v59  ;;  %1418 = vmatprep.subr.bf16.mxu0 %v1544_v60  ;;  %v1255_v59 = vcombine.low %v197_v48, %v201_v49  ;;  %v1262_v60 = vcombine.high %v204_v54, %v208_v55 }
  0x38   : > { %1458 = vmatprep.subr.bf16.mxu1 %v1545_v61  ;;  %937 = vmatprep.mubr.bf16.mxu0 %v1250_v4  ;;  %v1264_v61 = vcombine.high %v205_v56, %v209_v57 }
  0x39   : > { %1002 = vmatprep.mubr.bf16.mxu1 %v1252_v5 }
  0x3a   : > { %1419 = vmatpush3.bf16.msra.mxu0 %v1546_v62  ;;  %v1261_v62 = vcombine.low %v204_v54, %v208_v55 }
  0x3b   : > { %1459 = vmatpush3.bf16.msra.mxu1 %v1547_v63  ;;  %1420 = vmatprep.subr.bf16.mxu0 %v1548_v8  ;;  %v1263_v63 = vcombine.low %v205_v56, %v209_v57 }
  0x3c   : > { %1460 = vmatprep.subr.bf16.mxu1 %v1549_v9 }
  0x3d   : > { %938 = vmatmul.mubr.bf16.gmra.mxu0 %v1249_v6 }
  0x3e   : > { %1003 = vmatmul.mubr.bf16.gmra.mxu1 %v1251_v7  ;;  %1421 = vmatpush3.bf16.msra.mxu0 %v1550_v10 }
  0x3f   : > { %1461 = vmatpush3.bf16.msra.mxu1 %v1551_v11  ;;  %1422 = vmatprep.subr.bf16.mxu0 %v1552_v12 }
  0x40   : > { %1462 = vmatprep.subr.bf16.mxu1 %v1553_v13  ;;  %945 = vmatprep.mubr.bf16.mxu0 %v1258_v19 }
  0x41   : > { %1010 = vmatprep.mubr.bf16.mxu1 %v1260_v22 }
  0x42   : > { %1423 = vmatpush3.bf16.msra.mxu0 %v1554_v14 }
  0x43   : > { %1463 = vmatpush3.bf16.msra.mxu1 %v1555_v15  ;;  %1424 = vmatprep.subr.bf16.mxu0 %v1556_v24 }
  0x44   : > { %1464 = vmatprep.subr.bf16.mxu1 %v1557_v25 }
  0x45   : > { %946 = vmatmul.mubr.bf16.gmra.mxu0 %v1257_v21 }
  0x46   : > { %1011 = vmatmul.mubr.bf16.gmra.mxu1 %v1259_v23  ;;  %1425 = vmatpush3.bf16.msra.mxu0 %v1558_v26 }
  0x47   : > { %1465 = vmatpush3.bf16.msra.mxu1 %v1559_v27  ;;  %1426 = vmatprep.subr.bf16.mxu0 %v1560_v28 }
  0x48   : > { %1466 = vmatprep.subr.bf16.mxu1 %v1561_v29  ;;  %1051 = vmatprep.mubr.bf16.mxu0 %v1238_v35 }
  0x49   : > { %1116 = vmatprep.mubr.bf16.mxu1 %v1240_v40 }
  0x4a   : > { %1427 = vmatpush3.bf16.msra.mxu0 %v1562_v30  ;;  %v1855_v30 = vld [vmem:[%s1910_s2] ss:$0 sm:$0xff] }
  0x4b   : > { %1467 = vmatpush3.bf16.msra.mxu1 %v1563_v31 }
  0x4d   : > { %1052 = vmatmul.mubr.bf16.vlgmr.msra.gmra.mxu0 %v1237_v34 }
  0x4e   : > { %1117 = vmatmul.mubr.bf16.vlgmr.msra.gmra.mxu1 %v1239_v39  ;;  %1059 = vmatprep.mubr.bf16.mxu0 %v1246_v44 }
  0x4f   : > { %1124 = vmatprep.mubr.bf16.mxu1 %v1248_v45 }
  0x55   : > { %1060 = vmatmul.mubr.bf16.gmra.mxu0 %v1245_v50 }
  0x56   : > { %1125 = vmatmul.mubr.bf16.gmra.mxu1 %v1247_v51  ;;  %1067 = vmatprep.mubr.bf16.mxu0 %v1254_v52 }
  0x57   : > { %1132 = vmatprep.mubr.bf16.mxu1 %v1256_v53 }
  0x5d   : > { %1068 = vmatmul.mubr.bf16.gmra.mxu0 %v1253_v58 }
  0x5e   : > { %1133 = vmatmul.mubr.bf16.gmra.mxu1 %v1255_v59  ;;  %1075 = vmatprep.mubr.bf16.mxu0 %v1262_v60 }
  0x5f   : > { %1140 = vmatprep.mubr.bf16.mxu1 %v1264_v61 }
  0x65   : > { %1076 = vmatmul.mubr.bf16.gmra.mxu0 %v1261_v62 }
  0x66   : > { %1141 = vmatmul.mubr.bf16.gmra.mxu1 %v1263_v63 }
  0xed   : > { %v1348_v0 = vpop.f32.mrf.mxu0 }
  0xee   : > { %v1388_v1 = vpop.f32.mrf.mxu1 }
  0xef   : > { %v1349_v2 = vpop.f32.mrf.mxu0 }
  0xf0   : > { %v1389_v3 = vpop.f32.mrf.mxu1  ;;  %v1350_v28 = vadd.f32 %v1349_v2, %v1348_v0 }
  0xf1   : > { %v1351_v4 = vpop.f32.mrf.mxu0  ;;  %v1390_v37 = vadd.f32 %v1389_v3, %v1388_v1 }
  0xf2   : > { %v1391_v5 = vpop.f32.mrf.mxu1  ;;  %v924_v34 = vadd.f32 %v1350_v28, %v1855_v30 }
  0xf3   : > { %v1352_v6 = vpop.f32.mrf.mxu0 }
  0xf4   : > { %v1392_v7 = vpop.f32.mrf.mxu1  ;;  %v1353_v35 = vadd.f32 %v1352_v6, %v1351_v4  ;;  %v989_v41 = vadd.f32 %v1390_v37, %v924_v34 }
  0xf5   : > { %v1354_v8 = vpop.f32.mrf.mxu0  ;;  %v1393_v46 = vadd.f32 %v1392_v7, %v1391_v5 }
  0xf6   : > { %v1394_v9 = vpop.f32.mrf.mxu1  ;;  %v927_v42 = vadd.f32 %v1353_v35, %v1855_v30 }
  0xf7   : > { %v1355_v10 = vpop.f32.mrf.mxu0 }
  0xf8   : > { %v1395_v11 = vpop.f32.mrf.mxu1  ;;  %v1356_v39 = vadd.f32 %v1355_v10, %v1354_v8  ;;  %v992_v52 = vadd.f32 %v1393_v46, %v927_v42 }
  0xf9   : > { %v1357_v12 = vpop.f32.mrf.mxu0  ;;  %v1396_v57 = vadd.f32 %v1395_v11, %v1394_v9 }
  0xfa   : > { %v1397_v13 = vpop.f32.mrf.mxu1  ;;  %v932_v50 = vadd.f32 %v1356_v39, %v1855_v30 }
  0xfb   : > { %v1358_v14 = vpop.f32.mrf.mxu0 }
  0xfc   : > { %v1398_v15 = vpop.f32.mrf.mxu1  ;;  %v1359_v53 = vadd.f32 %v1358_v14, %v1357_v12  ;;  %v997_v63 = vadd.f32 %v1396_v57, %v932_v50 }
  0xfd   : > { %v1360_v16 = vpop.f32.mrf.mxu0  ;;  %v1399_v7 = vadd.f32 %v1398_v15, %v1397_v13 }
  0xfe   : > { %v1834_v17 = vpop.f32.mrf.mxu1  ;;  %v935_v1 = vadd.f32 %v1359_v53, %v1855_v30 }
  0xff   : > { %v1361_v18 = vpop.f32.mrf.mxu0 }
 0x100   : > { %v1836_v19 = vpop.f32.mrf.mxu1  ;;  %v1362_v2 = vadd.f32 %v1361_v18, %v1360_v16  ;;  %v1000_v28 = vadd.f32 %v1399_v7, %v935_v1 }
 0x101   : > { %v1363_v20 = vpop.f32.mrf.mxu0  ;;  %v1402_v37 = vadd.f32 %v1836_v19, %v1834_v17 }
 0x102   : > { %v1838_v21 = vpop.f32.mrf.mxu1  ;;  %v940_v34 = vadd.f32 %v1362_v2, %v1855_v30 }
 0x103   : > { %v1364_v22 = vpop.f32.mrf.mxu0 }
 0x104   : > { %v1840_v23 = vpop.f32.mrf.mxu1  ;;  %v1365_v12 = vadd.f32 %v1364_v22, %v1363_v20 }
 0x105   : > { %v1842_v24 = vpop.f32.mrf.mxu0  ;;  %v1405_v17 = vadd.f32 %v1840_v23, %v1838_v21 }
 0x106   : > { %v1844_v25 = vpop.f32.mrf.mxu1  ;;  %v943_v20 = vadd.f32 %v1365_v12, %v1855_v30 }
 0x107   : > { %v1846_v26 = vpop.f32.mrf.mxu0 }
 0x108   : > { %v1848_v27 = vpop.f32.mrf.mxu1 }
 0x109   : > { %v1850_v29 = vpop.f32.mrf.mxu0  ;;  %v1408_v21 = vadd.f32 %v1848_v27, %v1844_v25 }
 0x10a   : > { %v1857_v31 = vpop.f32.mrf.mxu1 }
 0x10b   : > { %v1859_v32 = vpop.f32.mrf.mxu0 }
 0x10c   : > { %v1861_v33 = vpop.f32.mrf.mxu1 }
 0x10d   : > { %v1428_v36 = vpop.f32.mrf.mxu0 }
 0x10e   : > { %v1468_v38 = vpop.f32.mrf.mxu1 }
 0x10f   : > { %v1429_v40 = vpop.f32.mrf.mxu0 }
 0x110   : > { %v1430_v43 = vadd.f32 %v1429_v40, %v1428_v36  ;;  %v1469_v44 = vpop.f32.mrf.mxu1  ;;  %v1005_v40 = vadd.f32 %v1402_v37, %v940_v34 }
 0x111   : > { %v1431_v45 = vpop.f32.mrf.mxu0  ;;  %v1470_v48 = vadd.f32 %v1469_v44, %v1468_v38 }
 0x112   : > { %v1054_v47 = vadd.f32 %v1430_v43, %v989_v41  ;;  %v1471_v49 = vpop.f32.mrf.mxu1  ;;  %v1368_v41 = vadd.f32 %v1846_v26, %v1842_v24  ;;  %v1371_v24 = vadd.f32 %v1859_v32, %v1850_v29 }
 0x113   : > { %v1432_v51 = vpop.f32.mrf.mxu0 }
 0x114   : > { %v1119_v54 = vadd.f32 %v1470_v48, %v1054_v47  ;;  %v1433_v55 = vadd.f32 %v1432_v51, %v1431_v45  ;;  %v1472_v56 = vpop.f32.mrf.mxu1  ;;  %v948_v51 = vadd.f32 %v1368_v41, %v1855_v30 }
 0x115   : > { %v1434_v58 = vpop.f32.mrf.mxu0  ;;  %v1473_v61 = vadd.f32 %v1472_v56, %v1471_v49  ;;  %v1008_v49 = vadd.f32 %v1405_v17, %v943_v20 }
 0x116   : > { %v1149_v59 = vmax.f32 %v1119_v54, 0.0  ;;  %v1057_v60 = vadd.f32 %v1433_v55, %v992_v52  ;;  %v1474_v62 = vpop.f32.mrf.mxu1 }
 0x117   : > { %v1435_v0 = vpop.f32.mrf.mxu0 }
 0x118   : > { %1158 = vst.msk [vmem:[%s1870_s29] sm:$0xff] %vm1157_vm0, %v1149_v59  ;;  %v1122_v3 = vadd.f32 %v1473_v61, %v1057_v60  ;;  %v1436_v4 = vadd.f32 %v1435_v0, %v1434_v58  ;;  %v1475_v5 = vpop.f32.mrf.mxu1  ;;  %v1013_v59 = vadd.f32 %v1408_v21, %v948_v51  ;;  %v951_v60 = vadd.f32 %v1371_v24, %v1855_v30 }
 0x119   : > { %v1437_v6 = vpop.f32.mrf.mxu0  ;;  %v1476_v10 = vadd.f32 %v1475_v5, %v1474_v62 }
 0x11a   : > { %v1150_v8 = vmax.f32 %v1122_v3, 0.0  ;;  %v1062_v9 = vadd.f32 %v1436_v4, %v997_v63  ;;  %v1477_v11 = vpop.f32.mrf.mxu1  ;;  %v1411_v63 = vadd.f32 %v1861_v33, %v1857_v31 }
 0x11b   : > { %v1438_v14 = vpop.f32.mrf.mxu0 }
 0x11c   : > { %1159 = vst.msk [vmem:[%s1870_s29 + $0x8] sm:$0xff] %vm1157_vm0, %v1150_v8  ;;  %v1127_v16 = vadd.f32 %v1476_v10, %v1062_v9  ;;  %v1439_v18 = vadd.f32 %v1438_v14, %v1437_v6  ;;  %v1478_v35 = vpop.f32.mrf.mxu1  ;;  %v1016_v3 = vadd.f32 %v1411_v63, %v951_v60 }
 0x11d   : > { %v1440_v36 = vpop.f32.mrf.mxu0  ;;  %v1479_v38 = vadd.f32 %v1478_v35, %v1477_v11 }
 0x11e   : > { %v1151_v13 = vmax.f32 %v1127_v16, 0.0  ;;  %v1065_v15 = vadd.f32 %v1439_v18, %v1000_v28  ;;  %v1480_v39 = vpop.f32.mrf.mxu1 }
 0x11f   : > { %v1441_v22 = vpop.f32.mrf.mxu0 }
 0x120   : > { %1160 = vst.msk [vmem:[%s1870_s29 + $0x10] sm:$0xff] %vm1157_vm0, %v1151_v13  ;;  %v1130_v42 = vadd.f32 %v1479_v38, %v1065_v15  ;;  %v1442_v43 = vadd.f32 %v1441_v22, %v1440_v36  ;;  %v1481_v44 = vpop.f32.mrf.mxu1 }
 0x121   : > { %v1443_v19 = vpop.f32.mrf.mxu0  ;;  %v1482_v47 = vadd.f32 %v1481_v44, %v1480_v39 }
 0x122   : > { %v1152_v45 = vmax.f32 %v1130_v42, 0.0  ;;  %v1070_v46 = vadd.f32 %v1442_v43, %v1005_v40  ;;  %v1483_v48 = vpop.f32.mrf.mxu1 }
 0x123   : > { %v1444_v50 = vpop.f32.mrf.mxu0 }
 0x124   : > { %1161 = vst.msk [vmem:[%s1870_s29 + $0x18] sm:$0xff] %vm1157_vm0, %v1152_v45  ;;  %v1135_v26 = vadd.f32 %v1482_v47, %v1070_v46  ;;  %v1445_v52 = vadd.f32 %v1444_v50, %v1443_v19  ;;  %v1484_v53 = vpop.f32.mrf.mxu1 }
 0x125   : > { %v1446_v54 = vpop.f32.mrf.mxu0  ;;  %v1485_v56 = vadd.f32 %v1484_v53, %v1483_v48 }
 0x126   : > { %v1153_v23 = vmax.f32 %v1135_v26, 0.0  ;;  %v1073_v55 = vadd.f32 %v1445_v52, %v1008_v49  ;;  %v1486_v57 = vpop.f32.mrf.mxu1 }
 0x127   : > { %v1447_v58 = vpop.f32.mrf.mxu0 }
 0x128   : > { %1162 = vst.msk [vmem:[%s1870_s29 + $0x20] sm:$0xff] %vm1157_vm0, %v1153_v23  ;;  %v1138_v29 = vadd.f32 %v1485_v56, %v1073_v55  ;;  %v1448_v32 = vadd.f32 %v1447_v58, %v1446_v54  ;;  %v1487_v61 = vpop.f32.mrf.mxu1 }
 0x129   : > { %v1449_v62 = vpop.f32.mrf.mxu0  ;;  %v1488_v0 = vadd.f32 %v1487_v61, %v1486_v57 }
 0x12a   : > { %v1154_v25 = vmax.f32 %v1138_v29, 0.0  ;;  %v1078_v27 = vadd.f32 %v1448_v32, %v1013_v59  ;;  %v1489_v1 = vpop.f32.mrf.mxu1 }
 0x12b   : > { %v1450_v2 = vpop.f32.mrf.mxu0 }
 0x12c   : > { %1163 = vst.msk [vmem:[%s1870_s29 + $0x28] sm:$0xff] %vm1157_vm0, %v1154_v25  ;;  %v1143_v30 = vadd.f32 %v1488_v0, %v1078_v27  ;;  %v1451_v4 = vadd.f32 %v1450_v2, %v1449_v62  ;;  %v1490_v5 = vpop.f32.mrf.mxu1 }
 0x12d   : > { %v1491_v8 = vadd.f32 %v1490_v5, %v1489_v1 }
 0x12e   : > { %v1155_v6 = vmax.f32 %v1143_v30, 0.0  ;;  %v1081_v7 = vadd.f32 %v1451_v4, %v1016_v3 }
 0x130   : > { %1164 = vst.msk [vmem:[%s1870_s29 + $0x30] sm:$0xff] %vm1157_vm0, %v1155_v6  ;;  %v1146_v9 = vadd.f32 %v1491_v8, %v1081_v7 }
 0x132   : > { %v1156_v10 = vmax.f32 %v1146_v9, 0.0 }
 0x134   : > { %1165 = vst.msk [vmem:[%s1870_s29 + $0x38] sm:$0xff] %vm1157_vm0, %v1156_v10 }
 0x135 PF: > { %s13_s12 = sadd.s32 1, %s1570_s12  }
 0x136   : > { %p10_p4 = scmp.ge.s32.totalorder %s13_s12, 4  }
 0x138   :  { %12 = sbr.rel (!%p10_p4) target bundleno = 1 (0x1), region = 62 }

// kernel: encoder_forward.13
= control target key start
LH: loop header
LB: loop body
LE: loop exit
PB: predicated region body
PF: predicated region fallthrough
CT: control target
= control target key end

     0   :  { %s1244_s12 = smov 0   ;;  %s1472_s0 = inlined_call_operand.vmem [shape: bf16[32,1024], index: 0, kind: input, shape index: {}]   ;;  %s1473_s1 = inlined_call_operand.vmem [shape: bf16[1024,64], index: 1, kind: input, shape index: {}]   ;;  %s1474_s2 = inlined_call_operand.vmem [shape: f32[1,64], index: 2, kind: input, shape index: {}]   ;;  %s1475_s3 = inlined_call_operand.vmem [shape: f32[32,64], index: 3, kind: output, shape index: {}]  }
   0x1 LB: > { %s970_s13 = sadd.s32 4294967295, %s1222_s12   ;;  %p974_p0 = scmp.ge.s32.totalorder %s1222_s12, 1  ;;  %s1222_s12 = sphi %s1244_s12, %s13_s12  }
   0x2   : > { %p139_p1 = scmp.lt.s32.totalorder %s1222_s12, 3 }
   0x4   : > { %p140_p2 = pnand %p974_p0, %p139_p1 }
   0x5   : > { %s975_s21 = sshll.u32 (!%p140_p2), %s970_s13, 1 }
   0x6   : > { %143 = sbr.rel (%p140_p2) target bundleno = 285 (0x11d), region = 32  ;;  %p165_p3 = scmp.lt.s32.totalorder (!%p140_p2), %s975_s21, 3 }
   0xb   : > { %v1152_v0 = vld [vmem:[%s1473_s1 + $0x78] sm:$0xff]   ;;  %v1156_v4 = vld [vmem:[%s1473_s1 + $0x70] sm:$0xff]   ;;  %v1160_v8 = vld [vmem:[%s1473_s1 + $0x68] sm:$0xff]   ;;  %s1477_s21 = smov (!%p165_p3, %s975_s21), 3  ;;  %vm911_vm0 = vcmask 523264  }
   0xc   : > { %v1153_v1 = vld [vmem:[%s1473_s1 + $0xf8] sm:$0xff]   ;;  %1056 = vmatprep.subr.bf16.mxu0 %v1152_v0  ;;  %v1157_v5 = vld [vmem:[%s1473_s1 + $0xf0] sm:$0xff]   ;;  %v1161_v9 = vld [vmem:[%s1473_s1 + $0xe8] sm:$0xff]   ;;  %s1055_s18 = sshll.u32 %s1477_s21, 5 }
   0xd   : > { %v1154_v2 = vld [vmem:[%s1473_s1 + $0x38] sm:$0xff]   ;;  %1078 = vmatprep.subr.bf16.mxu1 %v1153_v1  ;;  %v1158_v6 = vld [vmem:[%s1473_s1 + $0x30] sm:$0xff]   ;;  %v1162_v10 = vld [vmem:[%s1473_s1 + $0x28] sm:$0xff]   ;;  %s1350_s28 = scalar_lea.vmem %s1472_s0, %s1055_s18 }
   0xe   : > { %v1155_v3 = vld [vmem:[%s1473_s1 + $0xb8] sm:$0xff]   ;;  %1057 = vmatpush3.bf16.msra.mxu0 %v1154_v2  ;;  %v1159_v7 = vld [vmem:[%s1473_s1 + $0xb0] sm:$0xff]   ;;  %v1163_v11 = vld [vmem:[%s1473_s1 + $0xa8] sm:$0xff]  }
   0xf   : > { %1079 = vmatpush3.bf16.msra.mxu1 %v1155_v3  ;;  %1058 = vmatprep.subr.bf16.mxu0 %v1156_v4  ;;  %v1164_v12 = vld [vmem:[%s1473_s1 + $0x60] sm:$0xff]   ;;  %v1168_v16 = vld [vmem:[%s1473_s1 + $0x58] sm:$0xff]   ;;  %v1172_v20 = vld [vmem:[%s1473_s1 + $0x50] sm:$0xff]  }
  0x10   : > { %1080 = vmatprep.subr.bf16.mxu1 %v1157_v5  ;;  %v1165_v13 = vld [vmem:[%s1473_s1 + $0xe0] sm:$0xff]   ;;  %v1169_v17 = vld [vmem:[%s1473_s1 + $0xd8] sm:$0xff]   ;;  %v1173_v21 = vld [vmem:[%s1473_s1 + $0xd0] sm:$0xff]  }
  0x11   : > { %v1166_v14 = vld [vmem:[%s1473_s1 + $0x20] sm:$0xff]   ;;  %v1170_v18 = vld [vmem:[%s1473_s1 + $0x18] sm:$0xff]   ;;  %v1174_v22 = vld [vmem:[%s1473_s1 + $0x10] sm:$0xff]  }
  0x12   : > { %1059 = vmatpush3.bf16.msra.mxu0 %v1158_v6  ;;  %v1167_v15 = vld [vmem:[%s1473_s1 + $0xa0] sm:$0xff]   ;;  %v1171_v19 = vld [vmem:[%s1473_s1 + $0x98] sm:$0xff]   ;;  %v1175_v23 = vld [vmem:[%s1473_s1 + $0x90] sm:$0xff]  }
  0x13   : > { %1081 = vmatpush3.bf16.msra.mxu1 %v1159_v7  ;;  %1060 = vmatprep.subr.bf16.mxu0 %v1160_v8  ;;  %v1176_v24 = vld [vmem:[%s1473_s1 + $0x48] sm:$0xff]   ;;  %v1180_v28 = vld [vmem:[%s1473_s1 + $0x40] sm:$0xff]   ;;  %v1184_v40 = vld [vmem:[%s1473_s1 + $0x178] sm:$0xff]  }
  0x14   : > { %1082 = vmatprep.subr.bf16.mxu1 %v1161_v9  ;;  %v1177_v25 = vld [vmem:[%s1473_s1 + $0xc8] sm:$0xff]   ;;  %v1181_v29 = vld [vmem:[%s1473_s1 + $0xc0] sm:$0xff]   ;;  %v1185_v41 = vld [vmem:[%s1473_s1 + $0x1f8] sm:$0xff]  }
  0x15   : > { %v1178_v26 = vld [vmem:[%s1473_s1 + $0x8] sm:$0xff]   ;;  %v1182_v30 = vld [vmem:[%s1473_s1] sm:$0xff]   ;;  %v1186_v42 = vld [vmem:[%s1473_s1 + $0x138] sm:$0xff]  }
  0x16   : > { %1061 = vmatpush3.bf16.msra.mxu0 %v1162_v10  ;;  %v1179_v27 = vld [vmem:[%s1473_s1 + $0x88] sm:$0xff]   ;;  %v1183_v31 = vld [vmem:[%s1473_s1 + $0x80] sm:$0xff]   ;;  %v1187_v43 = vld [vmem:[%s1473_s1 + $0x1b8] sm:$0xff]  }
  0x17   : > { %1083 = vmatpush3.bf16.msra.mxu1 %v1163_v11  ;;  %1062 = vmatprep.subr.bf16.mxu0 %v1164_v12  ;;  %v178_v32 = vld [vmem:[%s1350_s28] sm:$0xff]  ;;  %v179_v34 = vld [vmem:[%s1350_s28 + $0x8] sm:$0xff]  ;;  %v1188_v44 = vld [vmem:[%s1473_s1 + $0x170] sm:$0xff]  }
  0x18   : > { %1084 = vmatprep.subr.bf16.mxu1 %v1165_v13  ;;  %v182_v33 = vld [vmem:[%s1350_s28 + $0x20] sm:$0xff]  ;;  %v183_v37 = vld [vmem:[%s1350_s28 + $0x28] sm:$0xff]  ;;  %v1189_v45 = vld [vmem:[%s1473_s1 + $0x1f0] sm:$0xff]  }
  0x19   : > { %v981_v35 = vcombine.low %v178_v32, %v182_v33  ;;  %v982_v36 = vcombine.high %v178_v32, %v182_v33  ;;  %v983_v38 = vcombine.low %v179_v34, %v183_v37  ;;  %v984_v39 = vcombine.high %v179_v34, %v183_v37  ;;  %v1190_v46 = vld [vmem:[%s1473_s1 + $0x130] sm:$0xff]   ;;  %v1192_v48 = vld [vmem:[%s1473_s1 + $0x168] sm:$0xff]   ;;  %v1196_v52 = vld [vmem:[%s1473_s1 + $0x160] sm:$0xff]  }
  0x1a   : > { %1063 = vmatpush3.bf16.msra.mxu0 %v1166_v14  ;;  %v1191_v47 = vld [vmem:[%s1473_s1 + $0x1b0] sm:$0xff]   ;;  %v1193_v49 = vld [vmem:[%s1473_s1 + $0x1e8] sm:$0xff]   ;;  %v1197_v53 = vld [vmem:[%s1473_s1 + $0x1e0] sm:$0xff]  }
  0x1b   : > { %1085 = vmatpush3.bf16.msra.mxu1 %v1167_v15  ;;  %1064 = vmatprep.subr.bf16.mxu0 %v1168_v16  ;;  %v1194_v50 = vld [vmem:[%s1473_s1 + $0x128] sm:$0xff]   ;;  %v1198_v54 = vld [vmem:[%s1473_s1 + $0x120] sm:$0xff]   ;;  %v1200_v56 = vld [vmem:[%s1473_s1 + $0x158] sm:$0xff]  }
  0x1c   : > { %1086 = vmatprep.subr.bf16.mxu1 %v1169_v17  ;;  %777 = vmatprep.mubr.bf16.mxu0 %v982_v36  ;;  %v1195_v51 = vld [vmem:[%s1473_s1 + $0x1a8] sm:$0xff]   ;;  %v1199_v55 = vld [vmem:[%s1473_s1 + $0x1a0] sm:$0xff]   ;;  %v1201_v57 = vld [vmem:[%s1473_s1 + $0x1d8] sm:$0xff]  }
  0x1d   : > { %818 = vmatprep.mubr.bf16.mxu1 %v984_v39  ;;  %v1202_v58 = vld [vmem:[%s1473_s1 + $0x118] sm:$0xff]   ;;  %v1204_v60 = vld [vmem:[%s1473_s1 + $0x150] sm:$0xff]   ;;  %v1208_v0 = vld [vmem:[%s1473_s1 + $0x148] sm:$0xff]  }
  0x1e   : > { %1065 = vmatpush3.bf16.msra.mxu0 %v1170_v18  ;;  %v1203_v59 = vld [vmem:[%s1473_s1 + $0x198] sm:$0xff]   ;;  %v1205_v61 = vld [vmem:[%s1473_s1 + $0x1d0] sm:$0xff]   ;;  %v1209_v1 = vld [vmem:[%s1473_s1 + $0x1c8] sm:$0xff]  }
  0x1f   : > { %1087 = vmatpush3.bf16.msra.mxu1 %v1171_v19  ;;  %1066 = vmatprep.subr.bf16.mxu0 %v1172_v20  ;;  %v1206_v62 = vld [vmem:[%s1473_s1 + $0x110] sm:$0xff]   ;;  %v1210_v2 = vld [vmem:[%s1473_s1 + $0x108] sm:$0xff]   ;;  %v1212_v4 = vld [vmem:[%s1473_s1 + $0x140] sm:$0xff]  }
  0x20   : > { %1088 = vmatprep.subr.bf16.mxu1 %v1173_v21  ;;  %v1207_v63 = vld [vmem:[%s1473_s1 + $0x190] sm:$0xff]   ;;  %v1211_v3 = vld [vmem:[%s1473_s1 + $0x188] sm:$0xff]   ;;  %v1213_v5 = vld [vmem:[%s1473_s1 + $0x1c0] sm:$0xff]  }
  0x21   : > { %v1214_v6 = vld [vmem:[%s1473_s1 + $0x100] sm:$0xff]   ;;  %v180_v8 = vld [vmem:[%s1350_s28 + $0x10] sm:$0xff]  ;;  %v181_v12 = vld [vmem:[%s1350_s28 + $0x18] sm:$0xff] }
  0x22   : > { %1067 = vmatpush3.bf16.msra.mxu0 %v1174_v22  ;;  %v1215_v7 = vld [vmem:[%s1473_s1 + $0x180] sm:$0xff]   ;;  %v184_v9 = vld [vmem:[%s1350_s28 + $0x30] sm:$0xff]  ;;  %v185_v13 = vld [vmem:[%s1350_s28 + $0x38] sm:$0xff]  ;;  %s979_s28 = sshll.u32 %s1477_s21, 3 }
  0x23   : > { %1089 = vmatpush3.bf16.msra.mxu1 %v1175_v23  ;;  %1068 = vmatprep.subr.bf16.mxu0 %v1176_v24  ;;  %v985_v10 = vcombine.low %v180_v8, %v184_v9  ;;  %v986_v11 = vcombine.high %v180_v8, %v184_v9  ;;  %v987_v14 = vcombine.low %v181_v12, %v185_v13  ;;  %v980_v23 = vld [vmem:[%s1474_s2] ss:$0 sm:$0xff]  ;;  %s175_s29 = scalar_lea.vmem %s1475_s3, %s979_s28 }
  0x24   : > { %1090 = vmatprep.subr.bf16.mxu1 %v1177_v25  ;;  %v988_v15 = vcombine.high %v181_v12, %v185_v13 }
  0x26   : > { %1069 = vmatpush3.bf16.msra.mxu0 %v1178_v26 }
  0x27   : > { %1091 = vmatpush3.bf16.msra.mxu1 %v1179_v27  ;;  %1070 = vmatprep.subr.bf16.mxu0 %v1180_v28 }
  0x28   : > { %1092 = vmatprep.subr.bf16.mxu1 %v1181_v29 }
  0x2a   : > { %1071 = vmatpush3.bf16.msra.mxu0 %v1182_v30 }
  0x2b   : > { %1093 = vmatpush3.bf16.msra.mxu1 %v1183_v31  ;;  %1100 = vmatprep.subr.bf16.mxu0 %v1184_v40 }
  0x2c   : > { %1122 = vmatprep.subr.bf16.mxu1 %v1185_v41 }
  0x2d   : > { %778 = vmatmul.mubr.bf16.vlgmr.msra.gmra.mxu0 %v981_v35 }
  0x2e   : > { %819 = vmatmul.mubr.bf16.vlgmr.msra.gmra.mxu1 %v983_v38  ;;  %1101 = vmatpush3.bf16.msra.mxu0 %v1186_v42 }
  0x2f   : > { %1123 = vmatpush3.bf16.msra.mxu1 %v1187_v43  ;;  %1102 = vmatprep.subr.bf16.mxu0 %v1188_v44 }
  0x30   : > { %1124 = vmatprep.subr.bf16.mxu1 %v1189_v45  ;;  %859 = vmatprep.mubr.bf16.mxu0 %v986_v11 }
  0x31   : > { %900 = vmatprep.mubr.bf16.mxu1 %v988_v15 }
  0x32   : > { %1103 = vmatpush3.bf16.msra.mxu0 %v1190_v46 }
  0x33   : > { %1125 = vmatpush3.bf16.msra.mxu1 %v1191_v47  ;;  %1104 = vmatprep.subr.bf16.mxu0 %v1192_v48 }
  0x34   : > { %1126 = vmatprep.subr.bf16.mxu1 %v1193_v49 }
  0x36   : > { %1105 = vmatpush3.bf16.msra.mxu0 %v1194_v50 }
  0x37   : > { %1127 = vmatpush3.bf16.msra.mxu1 %v1195_v51  ;;  %1106 = vmatprep.subr.bf16.mxu0 %v1196_v52 }
  0x38   : > { %1128 = vmatprep.subr.bf16.mxu1 %v1197_v53 }
  0x3a   : > { %1107 = vmatpush3.bf16.msra.mxu0 %v1198_v54 }
  0x3b   : > { %1129 = vmatpush3.bf16.msra.mxu1 %v1199_v55  ;;  %1108 = vmatprep.subr.bf16.mxu0 %v1200_v56 }
  0x3c   : > { %1130 = vmatprep.subr.bf16.mxu1 %v1201_v57 }
  0x3e   : > { %1109 = vmatpush3.bf16.msra.mxu0 %v1202_v58 }
  0x3f   : > { %1131 = vmatpush3.bf16.msra.mxu1 %v1203_v59  ;;  %1110 = vmatprep.subr.bf16.mxu0 %v1204_v60 }
  0x40   : > { %1132 = vmatprep.subr.bf16.mxu1 %v1205_v61 }
  0x42   : > { %1111 = vmatpush3.bf16.msra.mxu0 %v1206_v62 }
  0x43   : > { %1133 = vmatpush3.bf16.msra.mxu1 %v1207_v63  ;;  %1112 = vmatprep.subr.bf16.mxu0 %v1208_v0 }
  0x44   : > { %1134 = vmatprep.subr.bf16.mxu1 %v1209_v1 }
  0x46   : > { %1113 = vmatpush3.bf16.msra.mxu0 %v1210_v2 }
  0x47   : > { %1135 = vmatpush3.bf16.msra.mxu1 %v1211_v3  ;;  %1114 = vmatprep.subr.bf16.mxu0 %v1212_v4 }
  0x48   : > { %1136 = vmatprep.subr.bf16.mxu1 %v1213_v5 }
  0x4a   : > { %1115 = vmatpush3.bf16.msra.mxu0 %v1214_v6 }
  0x4b   : > { %1137 = vmatpush3.bf16.msra.mxu1 %v1215_v7 }
  0x4d   : > { %860 = vmatmul.mubr.bf16.vlgmr.msra.gmra.mxu0 %v985_v10 }
  0x4e   : > { %901 = vmatmul.mubr.bf16.vlgmr.msra.gmra.mxu1 %v987_v14 }
  0xed   : > { %v1072_v16 = vpop.f32.mrf.mxu0 }
  0xee   : > { %v1094_v17 = vpop.f32.mrf.mxu1 }
  0xef   : > { %v1073_v18 = vpop.f32.mrf.mxu0 }
  0xf0   : > { %v1095_v19 = vpop.f32.mrf.mxu1  ;;  %v1074_v21 = vadd.f32 %v1073_v18, %v1072_v16 }
  0xf1   : > { %v1075_v20 = vpop.f32.mrf.mxu0  ;;  %v1096_v26 = vadd.f32 %v1095_v19, %v1094_v17 }
  0xf2   : > { %v1097_v22 = vpop.f32.mrf.mxu1  ;;  %v780_v25 = vadd.f32 %v1074_v21, %v980_v23 }
  0xf3   : > { %v1076_v24 = vpop.f32.mrf.mxu0 }
  0xf4   : > { %v1077_v27 = vadd.f32 %v1076_v24, %v1075_v20  ;;  %v1098_v28 = vpop.f32.mrf.mxu1  ;;  %v821_v32 = vadd.f32 %v1096_v26, %v780_v25 }
  0xf5   : > { %v1099_v37 = vadd.f32 %v1098_v28, %v1097_v22 }
  0xf6   : > { %v783_v33 = vadd.f32 %v1077_v27, %v980_v23 }
  0xf8   : > { %v824_v42 = vadd.f32 %v1099_v37, %v783_v33 }
 0x10d   : > { %v1116_v29 = vpop.f32.mrf.mxu0 }
 0x10e   : > { %v1138_v30 = vpop.f32.mrf.mxu1 }
 0x10f   : > { %v1117_v31 = vpop.f32.mrf.mxu0 }
 0x110   : > { %v1118_v34 = vadd.f32 %v1117_v31, %v1116_v29  ;;  %v1139_v35 = vpop.f32.mrf.mxu1 }
 0x111   : > { %v1119_v36 = vpop.f32.mrf.mxu0  ;;  %v1140_v39 = vadd.f32 %v1139_v35, %v1138_v30 }
 0x112   : > { %v862_v38 = vadd.f32 %v1118_v34, %v821_v32  ;;  %v1141_v40 = vpop.f32.mrf.mxu1 }
 0x113   : > { %v1120_v41 = vpop.f32.mrf.mxu0 }
 0x114   : > { %v903_v43 = vadd.f32 %v1140_v39, %v862_v38  ;;  %v1121_v44 = vadd.f32 %v1120_v41, %v1119_v36  ;;  %v1142_v45 = vpop.f32.mrf.mxu1 }
 0x115   : > { %v1143_v48 = vadd.f32 %v1142_v45, %v1141_v40 }
 0x116   : > { %v909_v46 = vmax.f32 %v903_v43, 0.0  ;;  %v865_v47 = vadd.f32 %v1121_v44, %v824_v42 }
 0x118   : > { %912 = vst.msk [vmem:[%s175_s29] sm:$0xff] %vm911_vm0, %v909_v46  ;;  %v906_v49 = vadd.f32 %v1143_v48, %v865_v47 }
 0x11a   : > { %v910_v50 = vmax.f32 %v906_v49, 0.0 }
 0x11c   : > { %913 = vst.msk [vmem:[%s175_s29 + $0x8] sm:$0xff] %vm911_vm0, %v910_v50 }
 0x11d PF: > { %s13_s12 = sadd.s32 1, %s1222_s12  }
 0x11e   : > { %p10_p4 = scmp.ge.s32.totalorder %s13_s12, 4  }
 0x120   :  { %12 = sbr.rel (!%p10_p4) target bundleno = 1 (0x1), region = 62 }

// kernel: encoder_forward.14
= control target key start
LH: loop header
LB: loop body
LE: loop exit
PB: predicated region body
PF: predicated region fallthrough
CT: control target
= control target key end

     0   :  { %vm727_vm0 = vcmask 523264   ;;  %s1196_s1 = inlined_call_operand.vmem [shape: bf16[1024,64], index: 1, kind: input, shape index: {}]   ;;  %s1197_s0 = inlined_call_operand.vmem [shape: bf16[8,1024], index: 0, kind: input, shape index: {}]   ;;  %s1198_s2 = inlined_call_operand.vmem [shape: f32[1,64], index: 2, kind: input, shape index: {}]   ;;  %s1199_s3 = inlined_call_operand.vmem [shape: f32[8,64], index: 3, kind: output, shape index: {}]  }
   0x1   :  { %v894_v0 = vld [vmem:[%s1196_s1 + $0x78] sm:$0xff]   ;;  %v898_v4 = vld [vmem:[%s1196_s1 + $0x70] sm:$0xff]   ;;  %v902_v8 = vld [vmem:[%s1196_s1 + $0x68] sm:$0xff]  }
   0x2   :  { %v895_v1 = vld [vmem:[%s1196_s1 + $0xf8] sm:$0xff]   ;;  %806 = vmatprep.subr.bf16.mxu0 %v894_v0  ;;  %v899_v5 = vld [vmem:[%s1196_s1 + $0xf0] sm:$0xff]   ;;  %v903_v9 = vld [vmem:[%s1196_s1 + $0xe8] sm:$0xff]  }
   0x3   :  { %v896_v2 = vld [vmem:[%s1196_s1 + $0x38] sm:$0xff]   ;;  %828 = vmatprep.subr.bf16.mxu1 %v895_v1  ;;  %v900_v6 = vld [vmem:[%s1196_s1 + $0x30] sm:$0xff]   ;;  %v904_v10 = vld [vmem:[%s1196_s1 + $0x28] sm:$0xff]  }
   0x4   :  { %v897_v3 = vld [vmem:[%s1196_s1 + $0xb8] sm:$0xff]   ;;  %807 = vmatpush3.bf16.msra.mxu0 %v896_v2  ;;  %v901_v7 = vld [vmem:[%s1196_s1 + $0xb0] sm:$0xff]   ;;  %v905_v11 = vld [vmem:[%s1196_s1 + $0xa8] sm:$0xff]  }
   0x5   :  { %829 = vmatpush3.bf16.msra.mxu1 %v897_v3  ;;  %808 = vmatprep.subr.bf16.mxu0 %v898_v4  ;;  %v906_v12 = vld [vmem:[%s1196_s1 + $0x60] sm:$0xff]   ;;  %v910_v16 = vld [vmem:[%s1196_s1 + $0x58] sm:$0xff]   ;;  %v914_v20 = vld [vmem:[%s1196_s1 + $0x50] sm:$0xff]  }
   0x6   :  { %830 = vmatprep.subr.bf16.mxu1 %v899_v5  ;;  %v907_v13 = vld [vmem:[%s1196_s1 + $0xe0] sm:$0xff]   ;;  %v911_v17 = vld [vmem:[%s1196_s1 + $0xd8] sm:$0xff]   ;;  %v915_v21 = vld [vmem:[%s1196_s1 + $0xd0] sm:$0xff]  }
   0x7   :  { %v908_v14 = vld [vmem:[%s1196_s1 + $0x20] sm:$0xff]   ;;  %v912_v18 = vld [vmem:[%s1196_s1 + $0x18] sm:$0xff]   ;;  %v916_v22 = vld [vmem:[%s1196_s1 + $0x10] sm:$0xff]  }
   0x8   :  { %809 = vmatpush3.bf16.msra.mxu0 %v900_v6  ;;  %v909_v15 = vld [vmem:[%s1196_s1 + $0xa0] sm:$0xff]   ;;  %v913_v19 = vld [vmem:[%s1196_s1 + $0x98] sm:$0xff]   ;;  %v917_v23 = vld [vmem:[%s1196_s1 + $0x90] sm:$0xff]  }
   0x9   :  { %831 = vmatpush3.bf16.msra.mxu1 %v901_v7  ;;  %810 = vmatprep.subr.bf16.mxu0 %v902_v8  ;;  %v918_v24 = vld [vmem:[%s1196_s1 + $0x48] sm:$0xff]   ;;  %v922_v28 = vld [vmem:[%s1196_s1 + $0x40] sm:$0xff]   ;;  %v930_v38 = vld [vmem:[%s1196_s1 + $0x178] sm:$0xff]  }
   0xa   :  { %832 = vmatprep.subr.bf16.mxu1 %v903_v9  ;;  %v919_v25 = vld [vmem:[%s1196_s1 + $0xc8] sm:$0xff]   ;;  %v923_v29 = vld [vmem:[%s1196_s1 + $0xc0] sm:$0xff]   ;;  %v931_v39 = vld [vmem:[%s1196_s1 + $0x1f8] sm:$0xff]  }
   0xb   :  { %v920_v26 = vld [vmem:[%s1196_s1 + $0x8] sm:$0xff]   ;;  %v924_v30 = vld [vmem:[%s1196_s1] sm:$0xff]   ;;  %v932_v40 = vld [vmem:[%s1196_s1 + $0x138] sm:$0xff]  }
   0xc   :  { %811 = vmatpush3.bf16.msra.mxu0 %v904_v10  ;;  %v921_v27 = vld [vmem:[%s1196_s1 + $0x88] sm:$0xff]   ;;  %v925_v31 = vld [vmem:[%s1196_s1 + $0x80] sm:$0xff]   ;;  %v933_v41 = vld [vmem:[%s1196_s1 + $0x1b8] sm:$0xff]  }
   0xd   :  { %833 = vmatpush3.bf16.msra.mxu1 %v905_v11  ;;  %812 = vmatprep.subr.bf16.mxu0 %v906_v12  ;;  %v15_v32 = vld [vmem:[%s1197_s0] sm:$0xff]  ;;  %v16_v33 = vld [vmem:[%s1197_s0 + $0x8] sm:$0xff]  ;;  %v934_v42 = vld [vmem:[%s1196_s1 + $0x170] sm:$0xff]  }
   0xe   :  { %834 = vmatprep.subr.bf16.mxu1 %v907_v13  ;;  %v734_v34 = vcombine.low %v15_v32, %v15_v32  ;;  %v735_v35 = vcombine.high %v15_v32, %v15_v32  ;;  %v736_v36 = vcombine.low %v16_v33, %v16_v33  ;;  %v737_v37 = vcombine.high %v16_v33, %v16_v33  ;;  %v935_v43 = vld [vmem:[%s1196_s1 + $0x1f0] sm:$0xff]   ;;  %v938_v46 = vld [vmem:[%s1196_s1 + $0x168] sm:$0xff]   ;;  %v942_v50 = vld [vmem:[%s1196_s1 + $0x160] sm:$0xff]  }
   0xf   :  { %v936_v44 = vld [vmem:[%s1196_s1 + $0x130] sm:$0xff]   ;;  %v939_v47 = vld [vmem:[%s1196_s1 + $0x1e8] sm:$0xff]   ;;  %v943_v51 = vld [vmem:[%s1196_s1 + $0x1e0] sm:$0xff]  }
  0x10   :  { %813 = vmatpush3.bf16.msra.mxu0 %v908_v14  ;;  %598 = vmatprep.mubr.bf16.mxu0 %v735_v35  ;;  %v937_v45 = vld [vmem:[%s1196_s1 + $0x1b0] sm:$0xff]   ;;  %v940_v48 = vld [vmem:[%s1196_s1 + $0x128] sm:$0xff]   ;;  %v944_v52 = vld [vmem:[%s1196_s1 + $0x120] sm:$0xff]  }
  0x11   :  { %835 = vmatpush3.bf16.msra.mxu1 %v909_v15  ;;  %814 = vmatprep.subr.bf16.mxu0 %v910_v16  ;;  %v941_v49 = vld [vmem:[%s1196_s1 + $0x1a8] sm:$0xff]   ;;  %v945_v53 = vld [vmem:[%s1196_s1 + $0x1a0] sm:$0xff]   ;;  %v946_v54 = vld [vmem:[%s1196_s1 + $0x158] sm:$0xff]  }
  0x12   :  { %836 = vmatprep.subr.bf16.mxu1 %v911_v17  ;;  %638 = vmatprep.mubr.bf16.mxu1 %v737_v37  ;;  %v947_v55 = vld [vmem:[%s1196_s1 + $0x1d8] sm:$0xff]   ;;  %v950_v58 = vld [vmem:[%s1196_s1 + $0x150] sm:$0xff]   ;;  %v954_v62 = vld [vmem:[%s1196_s1 + $0x148] sm:$0xff]  }
  0x13   :  { %v948_v56 = vld [vmem:[%s1196_s1 + $0x118] sm:$0xff]   ;;  %v951_v59 = vld [vmem:[%s1196_s1 + $0x1d0] sm:$0xff]   ;;  %v955_v63 = vld [vmem:[%s1196_s1 + $0x1c8] sm:$0xff]  }
  0x14   :  { %815 = vmatpush3.bf16.msra.mxu0 %v912_v18  ;;  %v949_v57 = vld [vmem:[%s1196_s1 + $0x198] sm:$0xff]   ;;  %v952_v60 = vld [vmem:[%s1196_s1 + $0x110] sm:$0xff]   ;;  %v956_v0 = vld [vmem:[%s1196_s1 + $0x108] sm:$0xff]  }
  0x15   :  { %837 = vmatpush3.bf16.msra.mxu1 %v913_v19  ;;  %816 = vmatprep.subr.bf16.mxu0 %v914_v20  ;;  %v953_v61 = vld [vmem:[%s1196_s1 + $0x190] sm:$0xff]   ;;  %v957_v1 = vld [vmem:[%s1196_s1 + $0x188] sm:$0xff]   ;;  %v958_v2 = vld [vmem:[%s1196_s1 + $0x140] sm:$0xff]  }
  0x16   :  { %838 = vmatprep.subr.bf16.mxu1 %v915_v21  ;;  %v959_v3 = vld [vmem:[%s1196_s1 + $0x1c0] sm:$0xff]   ;;  %v17_v6 = vld [vmem:[%s1197_s0 + $0x10] sm:$0xff]  ;;  %v18_v9 = vld [vmem:[%s1197_s0 + $0x18] sm:$0xff] }
  0x17   :  { %v960_v4 = vld [vmem:[%s1196_s1 + $0x100] sm:$0xff]   ;;  %v738_v7 = vcombine.low %v17_v6, %v17_v6  ;;  %v739_v8 = vcombine.high %v17_v6, %v17_v6  ;;  %v740_v10 = vcombine.low %v18_v9, %v18_v9  ;;  %v741_v11 = vcombine.high %v18_v9, %v18_v9 }
  0x18   :  { %817 = vmatpush3.bf16.msra.mxu0 %v916_v22  ;;  %v961_v5 = vld [vmem:[%s1196_s1 + $0x180] sm:$0xff]  }
  0x19   :  { %839 = vmatpush3.bf16.msra.mxu1 %v917_v23  ;;  %818 = vmatprep.subr.bf16.mxu0 %v918_v24  ;;  %v733_v21 = vld [vmem:[%s1198_s2] ss:$0 sm:$0xff] }
  0x1a   :  { %840 = vmatprep.subr.bf16.mxu1 %v919_v25 }
  0x1c   :  { %819 = vmatpush3.bf16.msra.mxu0 %v920_v26 }
  0x1d   :  { %841 = vmatpush3.bf16.msra.mxu1 %v921_v27  ;;  %820 = vmatprep.subr.bf16.mxu0 %v922_v28 }
  0x1e   :  { %842 = vmatprep.subr.bf16.mxu1 %v923_v29 }
  0x20   :  { %821 = vmatpush3.bf16.msra.mxu0 %v924_v30 }
  0x21   :  { %843 = vmatpush3.bf16.msra.mxu1 %v925_v31  ;;  %850 = vmatprep.subr.bf16.mxu0 %v930_v38 }
  0x22   :  { %872 = vmatprep.subr.bf16.mxu1 %v931_v39 }
  0x23   :  { %599 = vmatmul.mubr.bf16.vlgmr.msra.gmra.mxu0 %v734_v34 }
  0x24   :  { %639 = vmatmul.mubr.bf16.vlgmr.msra.gmra.mxu1 %v736_v36  ;;  %851 = vmatpush3.bf16.msra.mxu0 %v932_v40 }
  0x25   :  { %873 = vmatpush3.bf16.msra.mxu1 %v933_v41  ;;  %852 = vmatprep.subr.bf16.mxu0 %v934_v42 }
  0x26   :  { %874 = vmatprep.subr.bf16.mxu1 %v935_v43  ;;  %678 = vmatprep.mubr.bf16.mxu0 %v739_v8 }
  0x27   :  { %718 = vmatprep.mubr.bf16.mxu1 %v741_v11 }
  0x28   :  { %853 = vmatpush3.bf16.msra.mxu0 %v936_v44 }
  0x29   :  { %875 = vmatpush3.bf16.msra.mxu1 %v937_v45  ;;  %854 = vmatprep.subr.bf16.mxu0 %v938_v46 }
  0x2a   :  { %876 = vmatprep.subr.bf16.mxu1 %v939_v47 }
  0x2c   :  { %855 = vmatpush3.bf16.msra.mxu0 %v940_v48 }
  0x2d   :  { %877 = vmatpush3.bf16.msra.mxu1 %v941_v49  ;;  %856 = vmatprep.subr.bf16.mxu0 %v942_v50 }
  0x2e   :  { %878 = vmatprep.subr.bf16.mxu1 %v943_v51 }
  0x30   :  { %857 = vmatpush3.bf16.msra.mxu0 %v944_v52 }
  0x31   :  { %879 = vmatpush3.bf16.msra.mxu1 %v945_v53  ;;  %858 = vmatprep.subr.bf16.mxu0 %v946_v54 }
  0x32   :  { %880 = vmatprep.subr.bf16.mxu1 %v947_v55 }
  0x34   :  { %859 = vmatpush3.bf16.msra.mxu0 %v948_v56 }
  0x35   :  { %881 = vmatpush3.bf16.msra.mxu1 %v949_v57  ;;  %860 = vmatprep.subr.bf16.mxu0 %v950_v58 }
  0x36   :  { %882 = vmatprep.subr.bf16.mxu1 %v951_v59 }
  0x38   :  { %861 = vmatpush3.bf16.msra.mxu0 %v952_v60 }
  0x39   :  { %883 = vmatpush3.bf16.msra.mxu1 %v953_v61  ;;  %862 = vmatprep.subr.bf16.mxu0 %v954_v62 }
  0x3a   :  { %884 = vmatprep.subr.bf16.mxu1 %v955_v63 }
  0x3c   :  { %863 = vmatpush3.bf16.msra.mxu0 %v956_v0 }
  0x3d   :  { %885 = vmatpush3.bf16.msra.mxu1 %v957_v1  ;;  %864 = vmatprep.subr.bf16.mxu0 %v958_v2 }
  0x3e   :  { %886 = vmatprep.subr.bf16.mxu1 %v959_v3 }
  0x40   :  { %865 = vmatpush3.bf16.msra.mxu0 %v960_v4 }
  0x41   :  { %887 = vmatpush3.bf16.msra.mxu1 %v961_v5 }
  0x43   :  { %679 = vmatmul.mubr.bf16.vlgmr.msra.gmra.mxu0 %v738_v7 }
  0x44   :  { %719 = vmatmul.mubr.bf16.vlgmr.msra.gmra.mxu1 %v740_v10 }
  0xe3   :  { %v822_v12 = vpop.f32.mrf.mxu0 }
  0xe4   :  { %v844_v13 = vpop.f32.mrf.mxu1 }
  0xe5   :  { %v823_v14 = vpop.f32.mrf.mxu0 }
  0xe6   :  { %v845_v15 = vpop.f32.mrf.mxu1  ;;  %v824_v20 = vadd.f32 %v823_v14, %v822_v12 }
  0xe7   :  { %v825_v16 = vpop.f32.mrf.mxu0  ;;  %v846_v23 = vadd.f32 %v845_v15, %v844_v13 }
  0xe8   :  { %v847_v17 = vpop.f32.mrf.mxu1  ;;  %v601_v22 = vadd.f32 %v824_v20, %v733_v21 }
  0xe9   :  { %v826_v18 = vpop.f32.mrf.mxu0 }
  0xea   :  { %v848_v19 = vpop.f32.mrf.mxu1  ;;  %v641_v28 = vadd.f32 %v846_v23, %v601_v22 }
 0x103   :  { %v866_v24 = vpop.f32.mrf.mxu0 }
 0x104   :  { %v888_v25 = vpop.f32.mrf.mxu1 }
 0x105   :  { %v867_v26 = vpop.f32.mrf.mxu0 }
 0x106   :  { %v889_v27 = vpop.f32.mrf.mxu1  ;;  %v868_v29 = vadd.f32 %v867_v26, %v866_v24 }
 0x107   :  { %v869_v30 = vpop.f32.mrf.mxu0  ;;  %v890_v33 = vadd.f32 %v889_v27, %v888_v25 }
 0x108   :  { %v891_v31 = vpop.f32.mrf.mxu1  ;;  %v681_v32 = vadd.f32 %v868_v29, %v641_v28 }
 0x109   :  { %v870_v34 = vpop.f32.mrf.mxu0 }
 0x10a   :  { %v892_v35 = vpop.f32.mrf.mxu1  ;;  %v721_v36 = vadd.f32 %v890_v33, %v681_v32 }
 0x10c   :  { %v726_v37 = vmax.f32 %v721_v36, 0.0 }
 0x10e   :  { %728 = vst.msk [vmem:[%s1199_s3] sm:$0xff] %vm727_vm0, %v726_v37 }

// kernel: reverse
= control target key start
LH: loop header
LB: loop body
LE: loop exit
PB: predicated region body
PF: predicated region fallthrough
CT: control target
= control target key end

     0   :  { %s14857_s0 = inlined_call_operand.vmem [shape: bf16[4,4,64,1024], index: 0, kind: input, shape index: {}]   ;;  %s14858_s1 = inlined_call_operand.vmem [shape: bf16[4,4,64,1024], index: 1, kind: output, shape index: {}]  }
   0x1   :  { %v11263_v0 = vld [vmem:[%s14857_s0 + $0xf00] sm:$0xff]  }
   0x2   :  { %v11264_v1 = vld [vmem:[%s14857_s0 + $0xb00] sm:$0xff]   ;;  %8834 = vst [vmem:[%s14858_s1] sm:$0xff] %v11263_v0 }
   0x3   :  { %v11265_v2 = vld [vmem:[%s14857_s0 + $0x700] sm:$0xff]   ;;  %8838 = vst [vmem:[%s14858_s1 + $0x400] sm:$0xff] %v11264_v1 }
   0x4   :  { %v11266_v3 = vld [vmem:[%s14857_s0 + $0x300] sm:$0xff]   ;;  %8842 = vst [vmem:[%s14858_s1 + $0x800] sm:$0xff] %v11265_v2 }
   0x5   :  { %v11267_v4 = vld [vmem:[%s14857_s0 + $0xe00] sm:$0xff]   ;;  %8846 = vst [vmem:[%s14858_s1 + $0xc00] sm:$0xff] %v11266_v3 }
   0x6   :  { %v11268_v5 = vld [vmem:[%s14857_s0 + $0xa00] sm:$0xff]   ;;  %8850 = vst [vmem:[%s14858_s1 + $0x100] sm:$0xff] %v11267_v4 }
   0x7   :  { %v11269_v6 = vld [vmem:[%s14857_s0 + $0x600] sm:$0xff]   ;;  %8854 = vst [vmem:[%s14858_s1 + $0x500] sm:$0xff] %v11268_v5 }
   0x8   :  { %v11270_v7 = vld [vmem:[%s14857_s0 + $0x200] sm:$0xff]   ;;  %8858 = vst [vmem:[%s14858_s1 + $0x900] sm:$0xff] %v11269_v6 }
   0x9   :  { %v11271_v8 = vld [vmem:[%s14857_s0 + $0xd00] sm:$0xff]   ;;  %8862 = vst [vmem:[%s14858_s1 + $0xd00] sm:$0xff] %v11270_v7 }
   0xa   :  { %v11272_v9 = vld [vmem:[%s14857_s0 + $0x900] sm:$0xff]   ;;  %8866 = vst [vmem:[%s14858_s1 + $0x200] sm:$0xff] %v11271_v8 }
   0xb   :  { %v11273_v10 = vld [vmem:[%s14857_s0 + $0x500] sm:$0xff]   ;;  %8870 = vst [vmem:[%s14858_s1 + $0x600] sm:$0xff] %v11272_v9 }
   0xc   :  { %v11274_v11 = vld [vmem:[%s14857_s0 + $0x100] sm:$0xff]   ;;  %8874 = vst [vmem:[%s14858_s1 + $0xa00] sm:$0xff] %v11273_v10 }
   0xd   :  { %v11275_v12 = vld [vmem:[%s14857_s0 + $0xc00] sm:$0xff]   ;;  %8878 = vst [vmem:[%s14858_s1 + $0xe00] sm:$0xff] %v11274_v11 }
   0xe   :  { %v11276_v13 = vld [vmem:[%s14857_s0 + $0x800] sm:$0xff]   ;;  %8882 = vst [vmem:[%s14858_s1 + $0x300] sm:$0xff] %v11275_v12 }
   0xf   :  { %v11277_v14 = vld [vmem:[%s14857_s0 + $0x400] sm:$0xff]   ;;  %8886 = vst [vmem:[%s14858_s1 + $0x700] sm:$0xff] %v11276_v13 }
  0x10   :  { %v11278_v15 = vld [vmem:[%s14857_s0] sm:$0xff]   ;;  %8890 = vst [vmem:[%s14858_s1 + $0xb00] sm:$0xff] %v11277_v14 }
  0x11   :  { %v11279_v16 = vld [vmem:[%s14857_s0 + $0xf20] sm:$0xff]   ;;  %8894 = vst [vmem:[%s14858_s1 + $0xf00] sm:$0xff] %v11278_v15 }
  0x12   :  { %v11280_v17 = vld [vmem:[%s14857_s0 + $0xb20] sm:$0xff]   ;;  %8898 = vst [vmem:[%s14858_s1 + $0x20] sm:$0xff] %v11279_v16 }
  0x13   :  { %v11281_v18 = vld [vmem:[%s14857_s0 + $0x720] sm:$0xff]   ;;  %8902 = vst [vmem:[%s14858_s1 + $0x420] sm:$0xff] %v11280_v17 }
  0x14   :  { %v11282_v19 = vld [vmem:[%s14857_s0 + $0x320] sm:$0xff]   ;;  %8906 = vst [vmem:[%s14858_s1 + $0x820] sm:$0xff] %v11281_v18 }
  0x15   :  { %v11283_v20 = vld [vmem:[%s14857_s0 + $0xe20] sm:$0xff]   ;;  %8910 = vst [vmem:[%s14858_s1 + $0xc20] sm:$0xff] %v11282_v19 }
  0x16   :  { %v11284_v21 = vld [vmem:[%s14857_s0 + $0xa20] sm:$0xff]   ;;  %8914 = vst [vmem:[%s14858_s1 + $0x120] sm:$0xff] %v11283_v20 }
  0x17   :  { %v11285_v22 = vld [vmem:[%s14857_s0 + $0x620] sm:$0xff]   ;;  %8918 = vst [vmem:[%s14858_s1 + $0x520] sm:$0xff] %v11284_v21 }
  0x18   :  { %v11286_v23 = vld [vmem:[%s14857_s0 + $0x220] sm:$0xff]   ;;  %8922 = vst [vmem:[%s14858_s1 + $0x920] sm:$0xff] %v11285_v22 }
  0x19   :  { %v11287_v24 = vld [vmem:[%s14857_s0 + $0xd20] sm:$0xff]   ;;  %8926 = vst [vmem:[%s14858_s1 + $0xd20] sm:$0xff] %v11286_v23 }
  0x1a   :  { %v11288_v25 = vld [vmem:[%s14857_s0 + $0x920] sm:$0xff]   ;;  %8930 = vst [vmem:[%s14858_s1 + $0x220] sm:$0xff] %v11287_v24 }
  0x1b   :  { %v11289_v26 = vld [vmem:[%s14857_s0 + $0x520] sm:$0xff]   ;;  %8934 = vst [vmem:[%s14858_s1 + $0x620] sm:$0xff] %v11288_v25 }
  0x1c   :  { %v11290_v27 = vld [vmem:[%s14857_s0 + $0x120] sm:$0xff]   ;;  %8938 = vst [vmem:[%s14858_s1 + $0xa20] sm:$0xff] %v11289_v26 }
  0x1d   :  { %v11291_v28 = vld [vmem:[%s14857_s0 + $0xc20] sm:$0xff]   ;;  %8942 = vst [vmem:[%s14858_s1 + $0xe20] sm:$0xff] %v11290_v27 }
  0x1e   :  { %v11292_v29 = vld [vmem:[%s14857_s0 + $0x820] sm:$0xff]   ;;  %8946 = vst [vmem:[%s14858_s1 + $0x320] sm:$0xff] %v11291_v28 }
  0x1f   :  { %v11293_v30 = vld [vmem:[%s14857_s0 + $0x420] sm:$0xff]   ;;  %8950 = vst [vmem:[%s14858_s1 + $0x720] sm:$0xff] %v11292_v29 }
  0x20   :  { %v11294_v31 = vld [vmem:[%s14857_s0 + $0x20] sm:$0xff]   ;;  %8954 = vst [vmem:[%s14858_s1 + $0xb20] sm:$0xff] %v11293_v30 }
  0x21   :  { %v11295_v32 = vld [vmem:[%s14857_s0 + $0xf40] sm:$0xff]   ;;  %8958 = vst [vmem:[%s14858_s1 + $0xf20] sm:$0xff] %v11294_v31 }
  0x22   :  { %v11296_v33 = vld [vmem:[%s14857_s0 + $0xb40] sm:$0xff]   ;;  %8962 = vst [vmem:[%s14858_s1 + $0x40] sm:$0xff] %v11295_v32 }
  0x23   :  { %v11297_v34 = vld [vmem:[%s14857_s0 + $0x740] sm:$0xff]   ;;  %8966 = vst [vmem:[%s14858_s1 + $0x440] sm:$0xff] %v11296_v33 }
  0x24   :  { %v11298_v35 = vld [vmem:[%s14857_s0 + $0x340] sm:$0xff]   ;;  %8970 = vst [vmem:[%s14858_s1 + $0x840] sm:$0xff] %v11297_v34 }
  0x25   :  { %v11299_v36 = vld [vmem:[%s14857_s0 + $0xe40] sm:$0xff]   ;;  %8974 = vst [vmem:[%s14858_s1 + $0xc40] sm:$0xff] %v11298_v35 }
  0x26   :  { %v11300_v37 = vld [vmem:[%s14857_s0 + $0xa40] sm:$0xff]   ;;  %8978 = vst [vmem:[%s14858_s1 + $0x140] sm:$0xff] %v11299_v36 }
  0x27   :  { %v11301_v38 = vld [vmem:[%s14857_s0 + $0x640] sm:$0xff]   ;;  %8982 = vst [vmem:[%s14858_s1 + $0x540] sm:$0xff] %v11300_v37 }
  0x28   :  { %v11302_v39 = vld [vmem:[%s14857_s0 + $0x240] sm:$0xff]   ;;  %8986 = vst [vmem:[%s14858_s1 + $0x940] sm:$0xff] %v11301_v38 }
  0x29   :  { %v11303_v40 = vld [vmem:[%s14857_s0 + $0xd40] sm:$0xff]   ;;  %8990 = vst [vmem:[%s14858_s1 + $0xd40] sm:$0xff] %v11302_v39 }
  0x2a   :  { %v11304_v41 = vld [vmem:[%s14857_s0 + $0x940] sm:$0xff]   ;;  %8994 = vst [vmem:[%s14858_s1 + $0x240] sm:$0xff] %v11303_v40 }
  0x2b   :  { %v11305_v42 = vld [vmem:[%s14857_s0 + $0x540] sm:$0xff]   ;;  %8998 = vst [vmem:[%s14858_s1 + $0x640] sm:$0xff] %v11304_v41 }
  0x2c   :  { %v11306_v43 = vld [vmem:[%s14857_s0 + $0x140] sm:$0xff]   ;;  %9002 = vst [vmem:[%s14858_s1 + $0xa40] sm:$0xff] %v11305_v42 }
  0x2d   :  { %v11307_v44 = vld [vmem:[%s14857_s0 + $0xc40] sm:$0xff]   ;;  %9006 = vst [vmem:[%s14858_s1 + $0xe40] sm:$0xff] %v11306_v43 }
  0x2e   :  { %v11308_v45 = vld [vmem:[%s14857_s0 + $0x840] sm:$0xff]   ;;  %9010 = vst [vmem:[%s14858_s1 + $0x340] sm:$0xff] %v11307_v44 }
  0x2f   :  { %v11309_v46 = vld [vmem:[%s14857_s0 + $0x440] sm:$0xff]   ;;  %9014 = vst [vmem:[%s14858_s1 + $0x740] sm:$0xff] %v11308_v45 }
  0x30   :  { %v11310_v47 = vld [vmem:[%s14857_s0 + $0x40] sm:$0xff]   ;;  %9018 = vst [vmem:[%s14858_s1 + $0xb40] sm:$0xff] %v11309_v46 }
  0x31   :  { %v11311_v48 = vld [vmem:[%s14857_s0 + $0xf60] sm:$0xff]   ;;  %9022 = vst [vmem:[%s14858_s1 + $0xf40] sm:$0xff] %v11310_v47 }
  0x32   :  { %v11312_v49 = vld [vmem:[%s14857_s0 + $0xb60] sm:$0xff]   ;;  %9026 = vst [vmem:[%s14858_s1 + $0x60] sm:$0xff] %v11311_v48 }
  0x33   :  { %v11313_v50 = vld [vmem:[%s14857_s0 + $0x760] sm:$0xff]   ;;  %9030 = vst [vmem:[%s14858_s1 + $0x460] sm:$0xff] %v11312_v49 }
  0x34   :  { %v11314_v51 = vld [vmem:[%s14857_s0 + $0x360] sm:$0xff]   ;;  %9034 = vst [vmem:[%s14858_s1 + $0x860] sm:$0xff] %v11313_v50 }
  0x35   :  { %v11315_v52 = vld [vmem:[%s14857_s0 + $0xe60] sm:$0xff]   ;;  %9038 = vst [vmem:[%s14858_s1 + $0xc60] sm:$0xff] %v11314_v51 }
  0x36   :  { %v11316_v53 = vld [vmem:[%s14857_s0 + $0xa60] sm:$0xff]   ;;  %9042 = vst [vmem:[%s14858_s1 + $0x160] sm:$0xff] %v11315_v52 }
  0x37   :  { %v11317_v54 = vld [vmem:[%s14857_s0 + $0x660] sm:$0xff]   ;;  %9046 = vst [vmem:[%s14858_s1 + $0x560] sm:$0xff] %v11316_v53 }
  0x38   :  { %v11318_v55 = vld [vmem:[%s14857_s0 + $0x260] sm:$0xff]   ;;  %9050 = vst [vmem:[%s14858_s1 + $0x960] sm:$0xff] %v11317_v54 }
  0x39   :  { %v11319_v56 = vld [vmem:[%s14857_s0 + $0xd60] sm:$0xff]   ;;  %9054 = vst [vmem:[%s14858_s1 + $0xd60] sm:$0xff] %v11318_v55 }
  0x3a   :  { %v11320_v57 = vld [vmem:[%s14857_s0 + $0x960] sm:$0xff]   ;;  %9058 = vst [vmem:[%s14858_s1 + $0x260] sm:$0xff] %v11319_v56 }
  0x3b   :  { %v11321_v58 = vld [vmem:[%s14857_s0 + $0x560] sm:$0xff]   ;;  %9062 = vst [vmem:[%s14858_s1 + $0x660] sm:$0xff] %v11320_v57 }
  0x3c   :  { %v11322_v59 = vld [vmem:[%s14857_s0 + $0x160] sm:$0xff]   ;;  %9066 = vst [vmem:[%s14858_s1 + $0xa60] sm:$0xff] %v11321_v58 }
  0x3d   :  { %v11323_v60 = vld [vmem:[%s14857_s0 + $0xc60] sm:$0xff]   ;;  %9070 = vst [vmem:[%s14858_s1 + $0xe60] sm:$0xff] %v11322_v59 }
  0x3e   :  { %v11324_v61 = vld [vmem:[%s14857_s0 + $0x860] sm:$0xff]   ;;  %9074 = vst [vmem:[%s14858_s1 + $0x360] sm:$0xff] %v11323_v60 }
  0x3f   :  { %v11325_v62 = vld [vmem:[%s14857_s0 + $0x460] sm:$0xff]   ;;  %9078 = vst [vmem:[%s14858_s1 + $0x760] sm:$0xff] %v11324_v61 }
  0x40   :  { %v11326_v63 = vld [vmem:[%s14857_s0 + $0x60] sm:$0xff]   ;;  %9082 = vst [vmem:[%s14858_s1 + $0xb60] sm:$0xff] %v11325_v62 }
  0x41   :  { %v11327_v0 = vld [vmem:[%s14857_s0 + $0xf80] sm:$0xff]   ;;  %9086 = vst [vmem:[%s14858_s1 + $0xf60] sm:$0xff] %v11326_v63 }
  0x42   :  { %v11328_v1 = vld [vmem:[%s14857_s0 + $0xb80] sm:$0xff]   ;;  %9090 = vst [vmem:[%s14858_s1 + $0x80] sm:$0xff] %v11327_v0  ;;  %v11391_v0 = vld [vmem:[%s14857_s0 + $0xf08] sm:$0xff]  }
  0x43   :  { %v11329_v2 = vld [vmem:[%s14857_s0 + $0x780] sm:$0xff]   ;;  %9094 = vst [vmem:[%s14858_s1 + $0x480] sm:$0xff] %v11328_v1  ;;  %v11392_v1 = vld [vmem:[%s14857_s0 + $0xb08] sm:$0xff]   ;;  %9474 = vst [vmem:[%s14858_s1 + $0x8] sm:$0xff] %v11391_v0 }
  0x44   :  { %v11330_v3 = vld [vmem:[%s14857_s0 + $0x380] sm:$0xff]   ;;  %9098 = vst [vmem:[%s14858_s1 + $0x880] sm:$0xff] %v11329_v2  ;;  %v11393_v2 = vld [vmem:[%s14857_s0 + $0x708] sm:$0xff]   ;;  %9478 = vst [vmem:[%s14858_s1 + $0x408] sm:$0xff] %v11392_v1 }
  0x45   :  { %v11331_v4 = vld [vmem:[%s14857_s0 + $0xe80] sm:$0xff]   ;;  %9102 = vst [vmem:[%s14858_s1 + $0xc80] sm:$0xff] %v11330_v3  ;;  %v11394_v3 = vld [vmem:[%s14857_s0 + $0x308] sm:$0xff]   ;;  %9482 = vst [vmem:[%s14858_s1 + $0x808] sm:$0xff] %v11393_v2 }
  0x46   :  { %v11332_v5 = vld [vmem:[%s14857_s0 + $0xa80] sm:$0xff]   ;;  %9106 = vst [vmem:[%s14858_s1 + $0x180] sm:$0xff] %v11331_v4  ;;  %v11395_v4 = vld [vmem:[%s14857_s0 + $0xe08] sm:$0xff]   ;;  %9486 = vst [vmem:[%s14858_s1 + $0xc08] sm:$0xff] %v11394_v3 }
  0x47   :  { %v11333_v6 = vld [vmem:[%s14857_s0 + $0x680] sm:$0xff]   ;;  %9110 = vst [vmem:[%s14858_s1 + $0x580] sm:$0xff] %v11332_v5  ;;  %v11396_v5 = vld [vmem:[%s14857_s0 + $0xa08] sm:$0xff]   ;;  %9490 = vst [vmem:[%s14858_s1 + $0x108] sm:$0xff] %v11395_v4 }
  0x48   :  { %v11334_v7 = vld [vmem:[%s14857_s0 + $0x280] sm:$0xff]   ;;  %9114 = vst [vmem:[%s14858_s1 + $0x980] sm:$0xff] %v11333_v6  ;;  %v11397_v6 = vld [vmem:[%s14857_s0 + $0x608] sm:$0xff]   ;;  %9494 = vst [vmem:[%s14858_s1 + $0x508] sm:$0xff] %v11396_v5 }
  0x49   :  { %v11335_v8 = vld [vmem:[%s14857_s0 + $0xd80] sm:$0xff]   ;;  %9118 = vst [vmem:[%s14858_s1 + $0xd80] sm:$0xff] %v11334_v7  ;;  %v11398_v7 = vld [vmem:[%s14857_s0 + $0x208] sm:$0xff]   ;;  %9498 = vst [vmem:[%s14858_s1 + $0x908] sm:$0xff] %v11397_v6 }
  0x4a   :  { %v11336_v9 = vld [vmem:[%s14857_s0 + $0x980] sm:$0xff]   ;;  %9122 = vst [vmem:[%s14858_s1 + $0x280] sm:$0xff] %v11335_v8  ;;  %v11399_v8 = vld [vmem:[%s14857_s0 + $0xd08] sm:$0xff]   ;;  %9502 = vst [vmem:[%s14858_s1 + $0xd08] sm:$0xff] %v11398_v7 }
  0x4b   :  { %v11337_v10 = vld [vmem:[%s14857_s0 + $0x580] sm:$0xff]   ;;  %9126 = vst [vmem:[%s14858_s1 + $0x680] sm:$0xff] %v11336_v9  ;;  %v11400_v9 = vld [vmem:[%s14857_s0 + $0x908] sm:$0xff]   ;;  %9506 = vst [vmem:[%s14858_s1 + $0x208] sm:$0xff] %v11399_v8 }
  0x4c   :  { %v11338_v11 = vld [vmem:[%s14857_s0 + $0x180] sm:$0xff]   ;;  %9130 = vst [vmem:[%s14858_s1 + $0xa80] sm:$0xff] %v11337_v10  ;;  %v11401_v10 = vld [vmem:[%s14857_s0 + $0x508] sm:$0xff]   ;;  %9510 = vst [vmem:[%s14858_s1 + $0x608] sm:$0xff] %v11400_v9 }
  0x4d   :  { %v11339_v12 = vld [vmem:[%s14857_s0 + $0xc80] sm:$0xff]   ;;  %9134 = vst [vmem:[%s14858_s1 + $0xe80] sm:$0xff] %v11338_v11  ;;  %v11402_v11 = vld [vmem:[%s14857_s0 + $0x108] sm:$0xff]   ;;  %9514 = vst [vmem:[%s14858_s1 + $0xa08] sm:$0xff] %v11401_v10 }
  0x4e   :  { %v11340_v13 = vld [vmem:[%s14857_s0 + $0x880] sm:$0xff]   ;;  %9138 = vst [vmem:[%s14858_s1 + $0x380] sm:$0xff] %v11339_v12  ;;  %v11403_v12 = vld [vmem:[%s14857_s0 + $0xc08] sm:$0xff]   ;;  %9518 = vst [vmem:[%s14858_s1 + $0xe08] sm:$0xff] %v11402_v11 }
  0x4f   :  { %v11341_v14 = vld [vmem:[%s14857_s0 + $0x480] sm:$0xff]   ;;  %9142 = vst [vmem:[%s14858_s1 + $0x780] sm:$0xff] %v11340_v13  ;;  %v11404_v13 = vld [vmem:[%s14857_s0 + $0x808] sm:$0xff]   ;;  %9522 = vst [vmem:[%s14858_s1 + $0x308] sm:$0xff] %v11403_v12 }
  0x50   :  { %v11342_v15 = vld [vmem:[%s14857_s0 + $0x80] sm:$0xff]   ;;  %9146 = vst [vmem:[%s14858_s1 + $0xb80] sm:$0xff] %v11341_v14  ;;  %v11405_v14 = vld [vmem:[%s14857_s0 + $0x408] sm:$0xff]   ;;  %9526 = vst [vmem:[%s14858_s1 + $0x708] sm:$0xff] %v11404_v13 }
  0x51   :  { %v11343_v16 = vld [vmem:[%s14857_s0 + $0xfa0] sm:$0xff]   ;;  %9150 = vst [vmem:[%s14858_s1 + $0xf80] sm:$0xff] %v11342_v15  ;;  %v11406_v15 = vld [vmem:[%s14857_s0 + $0x8] sm:$0xff]   ;;  %9530 = vst [vmem:[%s14858_s1 + $0xb08] sm:$0xff] %v11405_v14 }
  0x52   :  { %v11344_v17 = vld [vmem:[%s14857_s0 + $0xba0] sm:$0xff]   ;;  %9154 = vst [vmem:[%s14858_s1 + $0xa0] sm:$0xff] %v11343_v16  ;;  %v11407_v16 = vld [vmem:[%s14857_s0 + $0xf28] sm:$0xff]   ;;  %9534 = vst [vmem:[%s14858_s1 + $0xf08] sm:$0xff] %v11406_v15 }
  0x53   :  { %v11345_v18 = vld [vmem:[%s14857_s0 + $0x7a0] sm:$0xff]   ;;  %9158 = vst [vmem:[%s14858_s1 + $0x4a0] sm:$0xff] %v11344_v17  ;;  %v11408_v17 = vld [vmem:[%s14857_s0 + $0xb28] sm:$0xff]   ;;  %9538 = vst [vmem:[%s14858_s1 + $0x28] sm:$0xff] %v11407_v16 }
  0x54   :  { %v11346_v19 = vld [vmem:[%s14857_s0 + $0x3a0] sm:$0xff]   ;;  %9162 = vst [vmem:[%s14858_s1 + $0x8a0] sm:$0xff] %v11345_v18  ;;  %v11409_v18 = vld [vmem:[%s14857_s0 + $0x728] sm:$0xff]   ;;  %9542 = vst [vmem:[%s14858_s1 + $0x428] sm:$0xff] %v11408_v17 }
  0x55   :  { %v11347_v20 = vld [vmem:[%s14857_s0 + $0xea0] sm:$0xff]   ;;  %9166 = vst [vmem:[%s14858_s1 + $0xca0] sm:$0xff] %v11346_v19  ;;  %v11410_v19 = vld [vmem:[%s14857_s0 + $0x328] sm:$0xff]   ;;  %9546 = vst [vmem:[%s14858_s1 + $0x828] sm:$0xff] %v11409_v18 }
  0x56   :  { %v11348_v21 = vld [vmem:[%s14857_s0 + $0xaa0] sm:$0xff]   ;;  %9170 = vst [vmem:[%s14858_s1 + $0x1a0] sm:$0xff] %v11347_v20  ;;  %v11411_v20 = vld [vmem:[%s14857_s0 + $0xe28] sm:$0xff]   ;;  %9550 = vst [vmem:[%s14858_s1 + $0xc28] sm:$0xff] %v11410_v19 }
  0x57   :  { %v11349_v22 = vld [vmem:[%s14857_s0 + $0x6a0] sm:$0xff]   ;;  %9174 = vst [vmem:[%s14858_s1 + $0x5a0] sm:$0xff] %v11348_v21  ;;  %v11412_v21 = vld [vmem:[%s14857_s0 + $0xa28] sm:$0xff]   ;;  %9554 = vst [vmem:[%s14858_s1 + $0x128] sm:$0xff] %v11411_v20 }
  0x58   :  { %v11350_v23 = vld [vmem:[%s14857_s0 + $0x2a0] sm:$0xff]   ;;  %9178 = vst [vmem:[%s14858_s1 + $0x9a0] sm:$0xff] %v11349_v22  ;;  %v11413_v22 = vld [vmem:[%s14857_s0 + $0x628] sm:$0xff]   ;;  %9558 = vst [vmem:[%s14858_s1 + $0x528] sm:$0xff] %v11412_v21 }
  0x59   :  { %v11351_v24 = vld [vmem:[%s14857_s0 + $0xda0] sm:$0xff]   ;;  %9182 = vst [vmem:[%s14858_s1 + $0xda0] sm:$0xff] %v11350_v23  ;;  %v11414_v23 = vld [vmem:[%s14857_s0 + $0x228] sm:$0xff]   ;;  %9562 = vst [vmem:[%s14858_s1 + $0x928] sm:$0xff] %v11413_v22 }
  0x5a   :  { %v11352_v25 = vld [vmem:[%s14857_s0 + $0x9a0] sm:$0xff]   ;;  %9186 = vst [vmem:[%s14858_s1 + $0x2a0] sm:$0xff] %v11351_v24  ;;  %v11415_v24 = vld [vmem:[%s14857_s0 + $0xd28] sm:$0xff]   ;;  %9566 = vst [vmem:[%s14858_s1 + $0xd28] sm:$0xff] %v11414_v23 }
  0x5b   :  { %v11353_v26 = vld [vmem:[%s14857_s0 + $0x5a0] sm:$0xff]   ;;  %9190 = vst [vmem:[%s14858_s1 + $0x6a0] sm:$0xff] %v11352_v25  ;;  %v11416_v25 = vld [vmem:[%s14857_s0 + $0x928] sm:$0xff]   ;;  %9570 = vst [vmem:[%s14858_s1 + $0x228] sm:$0xff] %v11415_v24 }
  0x5c   :  { %v11354_v27 = vld [vmem:[%s14857_s0 + $0x1a0] sm:$0xff]   ;;  %9194 = vst [vmem:[%s14858_s1 + $0xaa0] sm:$0xff] %v11353_v26  ;;  %v11417_v26 = vld [vmem:[%s14857_s0 + $0x528] sm:$0xff]   ;;  %9574 = vst [vmem:[%s14858_s1 + $0x628] sm:$0xff] %v11416_v25 }
  0x5d   :  { %v11355_v28 = vld [vmem:[%s14857_s0 + $0xca0] sm:$0xff]   ;;  %9198 = vst [vmem:[%s14858_s1 + $0xea0] sm:$0xff] %v11354_v27  ;;  %v11418_v27 = vld [vmem:[%s14857_s0 + $0x128] sm:$0xff]   ;;  %9578 = vst [vmem:[%s14858_s1 + $0xa28] sm:$0xff] %v11417_v26 }
  0x5e   :  { %v11356_v29 = vld [vmem:[%s14857_s0 + $0x8a0] sm:$0xff]   ;;  %9202 = vst [vmem:[%s14858_s1 + $0x3a0] sm:$0xff] %v11355_v28  ;;  %v11419_v28 = vld [vmem:[%s14857_s0 + $0xc28] sm:$0xff]   ;;  %9582 = vst [vmem:[%s14858_s1 + $0xe28] sm:$0xff] %v11418_v27 }
  0x5f   :  { %v11357_v30 = vld [vmem:[%s14857_s0 + $0x4a0] sm:$0xff]   ;;  %9206 = vst [vmem:[%s14858_s1 + $0x7a0] sm:$0xff] %v11356_v29  ;;  %v11420_v29 = vld [vmem:[%s14857_s0 + $0x828] sm:$0xff]   ;;  %9586 = vst [vmem:[%s14858_s1 + $0x328] sm:$0xff] %v11419_v28 }
  0x60   :  { %v11358_v31 = vld [vmem:[%s14857_s0 + $0xa0] sm:$0xff]   ;;  %9210 = vst [vmem:[%s14858_s1 + $0xba0] sm:$0xff] %v11357_v30  ;;  %v11421_v30 = vld [vmem:[%s14857_s0 + $0x428] sm:$0xff]   ;;  %9590 = vst [vmem:[%s14858_s1 + $0x728] sm:$0xff] %v11420_v29 }
  0x61   :  { %v11359_v32 = vld [vmem:[%s14857_s0 + $0xfc0] sm:$0xff]   ;;  %9214 = vst [vmem:[%s14858_s1 + $0xfa0] sm:$0xff] %v11358_v31  ;;  %v11422_v31 = vld [vmem:[%s14857_s0 + $0x28] sm:$0xff]   ;;  %9594 = vst [vmem:[%s14858_s1 + $0xb28] sm:$0xff] %v11421_v30 }
  0x62   :  { %v11360_v33 = vld [vmem:[%s14857_s0 + $0xbc0] sm:$0xff]   ;;  %9218 = vst [vmem:[%s14858_s1 + $0xc0] sm:$0xff] %v11359_v32  ;;  %v11423_v32 = vld [vmem:[%s14857_s0 + $0xf48] sm:$0xff]   ;;  %9598 = vst [vmem:[%s14858_s1 + $0xf28] sm:$0xff] %v11422_v31 }
  0x63   :  { %v11361_v34 = vld [vmem:[%s14857_s0 + $0x7c0] sm:$0xff]   ;;  %9222 = vst [vmem:[%s14858_s1 + $0x4c0] sm:$0xff] %v11360_v33  ;;  %v11424_v33 = vld [vmem:[%s14857_s0 + $0xb48] sm:$0xff]   ;;  %9602 = vst [vmem:[%s14858_s1 + $0x48] sm:$0xff] %v11423_v32 }
  0x64   :  { %v11362_v35 = vld [vmem:[%s14857_s0 + $0x3c0] sm:$0xff]   ;;  %9226 = vst [vmem:[%s14858_s1 + $0x8c0] sm:$0xff] %v11361_v34  ;;  %v11425_v34 = vld [vmem:[%s14857_s0 + $0x748] sm:$0xff]   ;;  %9606 = vst [vmem:[%s14858_s1 + $0x448] sm:$0xff] %v11424_v33 }
  0x65   :  { %v11363_v36 = vld [vmem:[%s14857_s0 + $0xec0] sm:$0xff]   ;;  %9230 = vst [vmem:[%s14858_s1 + $0xcc0] sm:$0xff] %v11362_v35  ;;  %v11426_v35 = vld [vmem:[%s14857_s0 + $0x348] sm:$0xff]   ;;  %9610 = vst [vmem:[%s14858_s1 + $0x848] sm:$0xff] %v11425_v34 }
  0x66   :  { %v11364_v37 = vld [vmem:[%s14857_s0 + $0xac0] sm:$0xff]   ;;  %9234 = vst [vmem:[%s14858_s1 + $0x1c0] sm:$0xff] %v11363_v36  ;;  %v11427_v36 = vld [vmem:[%s14857_s0 + $0xe48] sm:$0xff]   ;;  %9614 = vst [vmem:[%s14858_s1 + $0xc48] sm:$0xff] %v11426_v35 }
  0x67   :  { %v11365_v38 = vld [vmem:[%s14857_s0 + $0x6c0] sm:$0xff]   ;;  %9238 = vst [vmem:[%s14858_s1 + $0x5c0] sm:$0xff] %v11364_v37  ;;  %v11428_v37 = vld [vmem:[%s14857_s0 + $0xa48] sm:$0xff]   ;;  %9618 = vst [vmem:[%s14858_s1 + $0x148] sm:$0xff] %v11427_v36 }
  0x68   :  { %v11366_v39 = vld [vmem:[%s14857_s0 + $0x2c0] sm:$0xff]   ;;  %9242 = vst [vmem:[%s14858_s1 + $0x9c0] sm:$0xff] %v11365_v38  ;;  %v11429_v38 = vld [vmem:[%s14857_s0 + $0x648] sm:$0xff]   ;;  %9622 = vst [vmem:[%s14858_s1 + $0x548] sm:$0xff] %v11428_v37 }
  0x69   :  { %v11367_v40 = vld [vmem:[%s14857_s0 + $0xdc0] sm:$0xff]   ;;  %9246 = vst [vmem:[%s14858_s1 + $0xdc0] sm:$0xff] %v11366_v39  ;;  %v11430_v39 = vld [vmem:[%s14857_s0 + $0x248] sm:$0xff]   ;;  %9626 = vst [vmem:[%s14858_s1 + $0x948] sm:$0xff] %v11429_v38 }
  0x6a   :  { %v11368_v41 = vld [vmem:[%s14857_s0 + $0x9c0] sm:$0xff]   ;;  %9250 = vst [vmem:[%s14858_s1 + $0x2c0] sm:$0xff] %v11367_v40  ;;  %v11431_v40 = vld [vmem:[%s14857_s0 + $0xd48] sm:$0xff]   ;;  %9630 = vst [vmem:[%s14858_s1 + $0xd48] sm:$0xff] %v11430_v39 }
  0x6b   :  { %v11369_v42 = vld [vmem:[%s14857_s0 + $0x5c0] sm:$0xff]   ;;  %9254 = vst [vmem:[%s14858_s1 + $0x6c0] sm:$0xff] %v11368_v41  ;;  %v11432_v41 = vld [vmem:[%s14857_s0 + $0x948] sm:$0xff]   ;;  %9634 = vst [vmem:[%s14858_s1 + $0x248] sm:$0xff] %v11431_v40 }
  0x6c   :  { %v11370_v43 = vld [vmem:[%s14857_s0 + $0x1c0] sm:$0xff]   ;;  %9258 = vst [vmem:[%s14858_s1 + $0xac0] sm:$0xff] %v11369_v42  ;;  %v11433_v42 = vld [vmem:[%s14857_s0 + $0x548] sm:$0xff]   ;;  %9638 = vst [vmem:[%s14858_s1 + $0x648] sm:$0xff] %v11432_v41 }
  0x6d   :  { %v11371_v44 = vld [vmem:[%s14857_s0 + $0xcc0] sm:$0xff]   ;;  %9262 = vst [vmem:[%s14858_s1 + $0xec0] sm:$0xff] %v11370_v43  ;;  %v11434_v43 = vld [vmem:[%s14857_s0 + $0x148] sm:$0xff]   ;;  %9642 = vst [vmem:[%s14858_s1 + $0xa48] sm:$0xff] %v11433_v42 }
  0x6e   :  { %v11372_v45 = vld [vmem:[%s14857_s0 + $0x8c0] sm:$0xff]   ;;  %9266 = vst [vmem:[%s14858_s1 + $0x3c0] sm:$0xff] %v11371_v44  ;;  %v11435_v44 = vld [vmem:[%s14857_s0 + $0xc48] sm:$0xff]   ;;  %9646 = vst [vmem:[%s14858_s1 + $0xe48] sm:$0xff] %v11434_v43 }
  0x6f   :  { %v11373_v46 = vld [vmem:[%s14857_s0 + $0x4c0] sm:$0xff]   ;;  %9270 = vst [vmem:[%s14858_s1 + $0x7c0] sm:$0xff] %v11372_v45  ;;  %v11436_v45 = vld [vmem:[%s14857_s0 + $0x848] sm:$0xff]   ;;  %9650 = vst [vmem:[%s14858_s1 + $0x348] sm:$0xff] %v11435_v44 }
  0x70   :  { %v11374_v47 = vld [vmem:[%s14857_s0 + $0xc0] sm:$0xff]   ;;  %9274 = vst [vmem:[%s14858_s1 + $0xbc0] sm:$0xff] %v11373_v46  ;;  %v11437_v46 = vld [vmem:[%s14857_s0 + $0x448] sm:$0xff]   ;;  %9654 = vst [vmem:[%s14858_s1 + $0x748] sm:$0xff] %v11436_v45 }
  0x71   :  { %v11375_v48 = vld [vmem:[%s14857_s0 + $0xfe0] sm:$0xff]   ;;  %9278 = vst [vmem:[%s14858_s1 + $0xfc0] sm:$0xff] %v11374_v47  ;;  %v11438_v47 = vld [vmem:[%s14857_s0 + $0x48] sm:$0xff]   ;;  %9658 = vst [vmem:[%s14858_s1 + $0xb48] sm:$0xff] %v11437_v46 }
  0x72   :  { %v11376_v49 = vld [vmem:[%s14857_s0 + $0xbe0] sm:$0xff]   ;;  %9282 = vst [vmem:[%s14858_s1 + $0xe0] sm:$0xff] %v11375_v48  ;;  %v11439_v48 = vld [vmem:[%s14857_s0 + $0xf68] sm:$0xff]   ;;  %9662 = vst [vmem:[%s14858_s1 + $0xf48] sm:$0xff] %v11438_v47 }
  0x73   :  { %v11377_v50 = vld [vmem:[%s14857_s0 + $0x7e0] sm:$0xff]   ;;  %9286 = vst [vmem:[%s14858_s1 + $0x4e0] sm:$0xff] %v11376_v49  ;;  %v11440_v49 = vld [vmem:[%s14857_s0 + $0xb68] sm:$0xff]   ;;  %9666 = vst [vmem:[%s14858_s1 + $0x68] sm:$0xff] %v11439_v48 }
  0x74   :  { %v11378_v51 = vld [vmem:[%s14857_s0 + $0x3e0] sm:$0xff]   ;;  %9290 = vst [vmem:[%s14858_s1 + $0x8e0] sm:$0xff] %v11377_v50  ;;  %v11441_v50 = vld [vmem:[%s14857_s0 + $0x768] sm:$0xff]   ;;  %9670 = vst [vmem:[%s14858_s1 + $0x468] sm:$0xff] %v11440_v49 }
  0x75   :  { %v11379_v52 = vld [vmem:[%s14857_s0 + $0xee0] sm:$0xff]   ;;  %9294 = vst [vmem:[%s14858_s1 + $0xce0] sm:$0xff] %v11378_v51  ;;  %v11442_v51 = vld [vmem:[%s14857_s0 + $0x368] sm:$0xff]   ;;  %9674 = vst [vmem:[%s14858_s1 + $0x868] sm:$0xff] %v11441_v50 }
  0x76   :  { %v11380_v53 = vld [vmem:[%s14857_s0 + $0xae0] sm:$0xff]   ;;  %9298 = vst [vmem:[%s14858_s1 + $0x1e0] sm:$0xff] %v11379_v52  ;;  %v11443_v52 = vld [vmem:[%s14857_s0 + $0xe68] sm:$0xff]   ;;  %9678 = vst [vmem:[%s14858_s1 + $0xc68] sm:$0xff] %v11442_v51 }
  0x77   :  { %v11381_v54 = vld [vmem:[%s14857_s0 + $0x6e0] sm:$0xff]   ;;  %9302 = vst [vmem:[%s14858_s1 + $0x5e0] sm:$0xff] %v11380_v53  ;;  %v11444_v53 = vld [vmem:[%s14857_s0 + $0xa68] sm:$0xff]   ;;  %9682 = vst [vmem:[%s14858_s1 + $0x168] sm:$0xff] %v11443_v52 }
  0x78   :  { %v11382_v55 = vld [vmem:[%s14857_s0 + $0x2e0] sm:$0xff]   ;;  %9306 = vst [vmem:[%s14858_s1 + $0x9e0] sm:$0xff] %v11381_v54  ;;  %v11445_v54 = vld [vmem:[%s14857_s0 + $0x668] sm:$0xff]   ;;  %9686 = vst [vmem:[%s14858_s1 + $0x568] sm:$0xff] %v11444_v53 }
  0x79   :  { %v11383_v56 = vld [vmem:[%s14857_s0 + $0xde0] sm:$0xff]   ;;  %9310 = vst [vmem:[%s14858_s1 + $0xde0] sm:$0xff] %v11382_v55  ;;  %v11446_v55 = vld [vmem:[%s14857_s0 + $0x268] sm:$0xff]   ;;  %9690 = vst [vmem:[%s14858_s1 + $0x968] sm:$0xff] %v11445_v54 }
  0x7a   :  { %v11384_v57 = vld [vmem:[%s14857_s0 + $0x9e0] sm:$0xff]   ;;  %9314 = vst [vmem:[%s14858_s1 + $0x2e0] sm:$0xff] %v11383_v56  ;;  %v11447_v56 = vld [vmem:[%s14857_s0 + $0xd68] sm:$0xff]   ;;  %9694 = vst [vmem:[%s14858_s1 + $0xd68] sm:$0xff] %v11446_v55 }
  0x7b   :  { %v11385_v58 = vld [vmem:[%s14857_s0 + $0x5e0] sm:$0xff]   ;;  %9318 = vst [vmem:[%s14858_s1 + $0x6e0] sm:$0xff] %v11384_v57  ;;  %v11448_v57 = vld [vmem:[%s14857_s0 + $0x968] sm:$0xff]   ;;  %9698 = vst [vmem:[%s14858_s1 + $0x268] sm:$0xff] %v11447_v56 }
  0x7c   :  { %v11386_v59 = vld [vmem:[%s14857_s0 + $0x1e0] sm:$0xff]   ;;  %9322 = vst [vmem:[%s14858_s1 + $0xae0] sm:$0xff] %v11385_v58  ;;  %v11449_v58 = vld [vmem:[%s14857_s0 + $0x568] sm:$0xff]   ;;  %9702 = vst [vmem:[%s14858_s1 + $0x668] sm:$0xff] %v11448_v57 }
  0x7d   :  { %v11387_v60 = vld [vmem:[%s14857_s0 + $0xce0] sm:$0xff]   ;;  %9326 = vst [vmem:[%s14858_s1 + $0xee0] sm:$0xff] %v11386_v59  ;;  %v11450_v59 = vld [vmem:[%s14857_s0 + $0x168] sm:$0xff]   ;;  %9706 = vst [vmem:[%s14858_s1 + $0xa68] sm:$0xff] %v11449_v58 }
  0x7e   :  { %v11388_v61 = vld [vmem:[%s14857_s0 + $0x8e0] sm:$0xff]   ;;  %9330 = vst [vmem:[%s14858_s1 + $0x3e0] sm:$0xff] %v11387_v60  ;;  %v11451_v60 = vld [vmem:[%s14857_s0 + $0xc68] sm:$0xff]   ;;  %9710 = vst [vmem:[%s14858_s1 + $0xe68] sm:$0xff] %v11450_v59 }
  0x7f   :  { %v11389_v62 = vld [vmem:[%s14857_s0 + $0x4e0] sm:$0xff]   ;;  %9334 = vst [vmem:[%s14858_s1 + $0x7e0] sm:$0xff] %v11388_v61  ;;  %v11452_v61 = vld [vmem:[%s14857_s0 + $0x868] sm:$0xff]   ;;  %9714 = vst [vmem:[%s14858_s1 + $0x368] sm:$0xff] %v11451_v60 }
  0x80   :  { %v11390_v63 = vld [vmem:[%s14857_s0 + $0xe0] sm:$0xff]   ;;  %9338 = vst [vmem:[%s14858_s1 + $0xbe0] sm:$0xff] %v11389_v62  ;;  %v11453_v62 = vld [vmem:[%s14857_s0 + $0x468] sm:$0xff]   ;;  %9718 = vst [vmem:[%s14858_s1 + $0x768] sm:$0xff] %v11452_v61 }
  0x81   :  { %9342 = vst [vmem:[%s14858_s1 + $0xfe0] sm:$0xff] %v11390_v63  ;;  %v11454_v63 = vld [vmem:[%s14857_s0 + $0x68] sm:$0xff]   ;;  %9722 = vst [vmem:[%s14858_s1 + $0xb68] sm:$0xff] %v11453_v62 }
  0x82   :  { %v11455_v0 = vld [vmem:[%s14857_s0 + $0xf88] sm:$0xff]   ;;  %9726 = vst [vmem:[%s14858_s1 + $0xf68] sm:$0xff] %v11454_v63 }
  0x83   :  { %v11456_v1 = vld [vmem:[%s14857_s0 + $0xb88] sm:$0xff]   ;;  %9730 = vst [vmem:[%s14858_s1 + $0x88] sm:$0xff] %v11455_v0  ;;  %v11519_v0 = vld [vmem:[%s14857_s0 + $0xf10] sm:$0xff]  }
  0x84   :  { %v11457_v2 = vld [vmem:[%s14857_s0 + $0x788] sm:$0xff]   ;;  %9734 = vst [vmem:[%s14858_s1 + $0x488] sm:$0xff] %v11456_v1  ;;  %v11520_v1 = vld [vmem:[%s14857_s0 + $0xb10] sm:$0xff]   ;;  %10114 = vst [vmem:[%s14858_s1 + $0x10] sm:$0xff] %v11519_v0 }
  0x85   :  { %v11458_v3 = vld [vmem:[%s14857_s0 + $0x388] sm:$0xff]   ;;  %9738 = vst [vmem:[%s14858_s1 + $0x888] sm:$0xff] %v11457_v2  ;;  %v11521_v2 = vld [vmem:[%s14857_s0 + $0x710] sm:$0xff]   ;;  %10118 = vst [vmem:[%s14858_s1 + $0x410] sm:$0xff] %v11520_v1 }
  0x86   :  { %v11459_v4 = vld [vmem:[%s14857_s0 + $0xe88] sm:$0xff]   ;;  %9742 = vst [vmem:[%s14858_s1 + $0xc88] sm:$0xff] %v11458_v3  ;;  %v11522_v3 = vld [vmem:[%s14857_s0 + $0x310] sm:$0xff]   ;;  %10122 = vst [vmem:[%s14858_s1 + $0x810] sm:$0xff] %v11521_v2 }
  0x87   :  { %v11460_v5 = vld [vmem:[%s14857_s0 + $0xa88] sm:$0xff]   ;;  %9746 = vst [vmem:[%s14858_s1 + $0x188] sm:$0xff] %v11459_v4  ;;  %v11523_v4 = vld [vmem:[%s14857_s0 + $0xe10] sm:$0xff]   ;;  %10126 = vst [vmem:[%s14858_s1 + $0xc10] sm:$0xff] %v11522_v3 }
  0x88   :  { %v11461_v6 = vld [vmem:[%s14857_s0 + $0x688] sm:$0xff]   ;;  %9750 = vst [vmem:[%s14858_s1 + $0x588] sm:$0xff] %v11460_v5  ;;  %v11524_v5 = vld [vmem:[%s14857_s0 + $0xa10] sm:$0xff]   ;;  %10130 = vst [vmem:[%s14858_s1 + $0x110] sm:$0xff] %v11523_v4 }
  0x89   :  { %v11462_v7 = vld [vmem:[%s14857_s0 + $0x288] sm:$0xff]   ;;  %9754 = vst [vmem:[%s14858_s1 + $0x988] sm:$0xff] %v11461_v6  ;;  %v11525_v6 = vld [vmem:[%s14857_s0 + $0x610] sm:$0xff]   ;;  %10134 = vst [vmem:[%s14858_s1 + $0x510] sm:$0xff] %v11524_v5 }
  0x8a   :  { %v11463_v8 = vld [vmem:[%s14857_s0 + $0xd88] sm:$0xff]   ;;  %9758 = vst [vmem:[%s14858_s1 + $0xd88] sm:$0xff] %v11462_v7  ;;  %v11526_v7 = vld [vmem:[%s14857_s0 + $0x210] sm:$0xff]   ;;  %10138 = vst [vmem:[%s14858_s1 + $0x910] sm:$0xff] %v11525_v6 }
  0x8b   :  { %v11464_v9 = vld [vmem:[%s14857_s0 + $0x988] sm:$0xff]   ;;  %9762 = vst [vmem:[%s14858_s1 + $0x288] sm:$0xff] %v11463_v8  ;;  %v11527_v8 = vld [vmem:[%s14857_s0 + $0xd10] sm:$0xff]   ;;  %10142 = vst [vmem:[%s14858_s1 + $0xd10] sm:$0xff] %v11526_v7 }
  0x8c   :  { %v11465_v10 = vld [vmem:[%s14857_s0 + $0x588] sm:$0xff]   ;;  %9766 = vst [vmem:[%s14858_s1 + $0x688] sm:$0xff] %v11464_v9  ;;  %v11528_v9 = vld [vmem:[%s14857_s0 + $0x910] sm:$0xff]   ;;  %10146 = vst [vmem:[%s14858_s1 + $0x210] sm:$0xff] %v11527_v8 }
  0x8d   :  { %v11466_v11 = vld [vmem:[%s14857_s0 + $0x188] sm:$0xff]   ;;  %9770 = vst [vmem:[%s14858_s1 + $0xa88] sm:$0xff] %v11465_v10  ;;  %v11529_v10 = vld [vmem:[%s14857_s0 + $0x510] sm:$0xff]   ;;  %10150 = vst [vmem:[%s14858_s1 + $0x610] sm:$0xff] %v11528_v9 }
  0x8e   :  { %v11467_v12 = vld [vmem:[%s14857_s0 + $0xc88] sm:$0xff]   ;;  %9774 = vst [vmem:[%s14858_s1 + $0xe88] sm:$0xff] %v11466_v11  ;;  %v11530_v11 = vld [vmem:[%s14857_s0 + $0x110] sm:$0xff]   ;;  %10154 = vst [vmem:[%s14858_s1 + $0xa10] sm:$0xff] %v11529_v10 }
  0x8f   :  { %v11468_v13 = vld [vmem:[%s14857_s0 + $0x888] sm:$0xff]   ;;  %9778 = vst [vmem:[%s14858_s1 + $0x388] sm:$0xff] %v11467_v12  ;;  %v11531_v12 = vld [vmem:[%s14857_s0 + $0xc10] sm:$0xff]   ;;  %10158 = vst [vmem:[%s14858_s1 + $0xe10] sm:$0xff] %v11530_v11 }
  0x90   :  { %v11469_v14 = vld [vmem:[%s14857_s0 + $0x488] sm:$0xff]   ;;  %9782 = vst [vmem:[%s14858_s1 + $0x788] sm:$0xff] %v11468_v13  ;;  %v11532_v13 = vld [vmem:[%s14857_s0 + $0x810] sm:$0xff]   ;;  %10162 = vst [vmem:[%s14858_s1 + $0x310] sm:$0xff] %v11531_v12 }
  0x91   :  { %v11470_v15 = vld [vmem:[%s14857_s0 + $0x88] sm:$0xff]   ;;  %9786 = vst [vmem:[%s14858_s1 + $0xb88] sm:$0xff] %v11469_v14  ;;  %v11533_v14 = vld [vmem:[%s14857_s0 + $0x410] sm:$0xff]   ;;  %10166 = vst [vmem:[%s14858_s1 + $0x710] sm:$0xff] %v11532_v13 }
  0x92   :  { %v11471_v16 = vld [vmem:[%s14857_s0 + $0xfa8] sm:$0xff]   ;;  %9790 = vst [vmem:[%s14858_s1 + $0xf88] sm:$0xff] %v11470_v15  ;;  %v11534_v15 = vld [vmem:[%s14857_s0 + $0x10] sm:$0xff]   ;;  %10170 = vst [vmem:[%s14858_s1 + $0xb10] sm:$0xff] %v11533_v14 }
  0x93   :  { %v11472_v17 = vld [vmem:[%s14857_s0 + $0xba8] sm:$0xff]   ;;  %9794 = vst [vmem:[%s14858_s1 + $0xa8] sm:$0xff] %v11471_v16  ;;  %v11535_v16 = vld [vmem:[%s14857_s0 + $0xf30] sm:$0xff]   ;;  %10174 = vst [vmem:[%s14858_s1 + $0xf10] sm:$0xff] %v11534_v15 }
  0x94   :  { %v11473_v18 = vld [vmem:[%s14857_s0 + $0x7a8] sm:$0xff]   ;;  %9798 = vst [vmem:[%s14858_s1 + $0x4a8] sm:$0xff] %v11472_v17  ;;  %v11536_v17 = vld [vmem:[%s14857_s0 + $0xb30] sm:$0xff]   ;;  %10178 = vst [vmem:[%s14858_s1 + $0x30] sm:$0xff] %v11535_v16 }
  0x95   :  { %v11474_v19 = vld [vmem:[%s14857_s0 + $0x3a8] sm:$0xff]   ;;  %9802 = vst [vmem:[%s14858_s1 + $0x8a8] sm:$0xff] %v11473_v18  ;;  %v11537_v18 = vld [vmem:[%s14857_s0 + $0x730] sm:$0xff]   ;;  %10182 = vst [vmem:[%s14858_s1 + $0x430] sm:$0xff] %v11536_v17 }
  0x96   :  { %v11475_v20 = vld [vmem:[%s14857_s0 + $0xea8] sm:$0xff]   ;;  %9806 = vst [vmem:[%s14858_s1 + $0xca8] sm:$0xff] %v11474_v19  ;;  %v11538_v19 = vld [vmem:[%s14857_s0 + $0x330] sm:$0xff]   ;;  %10186 = vst [vmem:[%s14858_s1 + $0x830] sm:$0xff] %v11537_v18 }
  0x97   :  { %v11476_v21 = vld [vmem:[%s14857_s0 + $0xaa8] sm:$0xff]   ;;  %9810 = vst [vmem:[%s14858_s1 + $0x1a8] sm:$0xff] %v11475_v20  ;;  %v11539_v20 = vld [vmem:[%s14857_s0 + $0xe30] sm:$0xff]   ;;  %10190 = vst [vmem:[%s14858_s1 + $0xc30] sm:$0xff] %v11538_v19 }
  0x98   :  { %v11477_v22 = vld [vmem:[%s14857_s0 + $0x6a8] sm:$0xff]   ;;  %9814 = vst [vmem:[%s14858_s1 + $0x5a8] sm:$0xff] %v11476_v21  ;;  %v11540_v21 = vld [vmem:[%s14857_s0 + $0xa30] sm:$0xff]   ;;  %10194 = vst [vmem:[%s14858_s1 + $0x130] sm:$0xff] %v11539_v20 }
  0x99   :  { %v11478_v23 = vld [vmem:[%s14857_s0 + $0x2a8] sm:$0xff]   ;;  %9818 = vst [vmem:[%s14858_s1 + $0x9a8] sm:$0xff] %v11477_v22  ;;  %v11541_v22 = vld [vmem:[%s14857_s0 + $0x630] sm:$0xff]   ;;  %10198 = vst [vmem:[%s14858_s1 + $0x530] sm:$0xff] %v11540_v21 }
  0x9a   :  { %v11479_v24 = vld [vmem:[%s14857_s0 + $0xda8] sm:$0xff]   ;;  %9822 = vst [vmem:[%s14858_s1 + $0xda8] sm:$0xff] %v11478_v23  ;;  %v11542_v23 = vld [vmem:[%s14857_s0 + $0x230] sm:$0xff]   ;;  %10202 = vst [vmem:[%s14858_s1 + $0x930] sm:$0xff] %v11541_v22 }
  0x9b   :  { %v11480_v25 = vld [vmem:[%s14857_s0 + $0x9a8] sm:$0xff]   ;;  %9826 = vst [vmem:[%s14858_s1 + $0x2a8] sm:$0xff] %v11479_v24  ;;  %v11543_v24 = vld [vmem:[%s14857_s0 + $0xd30] sm:$0xff]   ;;  %10206 = vst [vmem:[%s14858_s1 + $0xd30] sm:$0xff] %v11542_v23 }
  0x9c   :  { %v11481_v26 = vld [vmem:[%s14857_s0 + $0x5a8] sm:$0xff]   ;;  %9830 = vst [vmem:[%s14858_s1 + $0x6a8] sm:$0xff] %v11480_v25  ;;  %v11544_v25 = vld [vmem:[%s14857_s0 + $0x930] sm:$0xff]   ;;  %10210 = vst [vmem:[%s14858_s1 + $0x230] sm:$0xff] %v11543_v24 }
  0x9d   :  { %v11482_v27 = vld [vmem:[%s14857_s0 + $0x1a8] sm:$0xff]   ;;  %9834 = vst [vmem:[%s14858_s1 + $0xaa8] sm:$0xff] %v11481_v26  ;;  %v11545_v26 = vld [vmem:[%s14857_s0 + $0x530] sm:$0xff]   ;;  %10214 = vst [vmem:[%s14858_s1 + $0x630] sm:$0xff] %v11544_v25 }
  0x9e   :  { %v11483_v28 = vld [vmem:[%s14857_s0 + $0xca8] sm:$0xff]   ;;  %9838 = vst [vmem:[%s14858_s1 + $0xea8] sm:$0xff] %v11482_v27  ;;  %v11546_v27 = vld [vmem:[%s14857_s0 + $0x130] sm:$0xff]   ;;  %10218 = vst [vmem:[%s14858_s1 + $0xa30] sm:$0xff] %v11545_v26 }
  0x9f   :  { %v11484_v29 = vld [vmem:[%s14857_s0 + $0x8a8] sm:$0xff]   ;;  %9842 = vst [vmem:[%s14858_s1 + $0x3a8] sm:$0xff] %v11483_v28  ;;  %v11547_v28 = vld [vmem:[%s14857_s0 + $0xc30] sm:$0xff]   ;;  %10222 = vst [vmem:[%s14858_s1 + $0xe30] sm:$0xff] %v11546_v27 }
  0xa0   :  { %v11485_v30 = vld [vmem:[%s14857_s0 + $0x4a8] sm:$0xff]   ;;  %9846 = vst [vmem:[%s14858_s1 + $0x7a8] sm:$0xff] %v11484_v29  ;;  %v11548_v29 = vld [vmem:[%s14857_s0 + $0x830] sm:$0xff]   ;;  %10226 = vst [vmem:[%s14858_s1 + $0x330] sm:$0xff] %v11547_v28 }
  0xa1   :  { %v11486_v31 = vld [vmem:[%s14857_s0 + $0xa8] sm:$0xff]   ;;  %9850 = vst [vmem:[%s14858_s1 + $0xba8] sm:$0xff] %v11485_v30  ;;  %v11549_v30 = vld [vmem:[%s14857_s0 + $0x430] sm:$0xff]   ;;  %10230 = vst [vmem:[%s14858_s1 + $0x730] sm:$0xff] %v11548_v29 }
  0xa2   :  { %v11487_v32 = vld [vmem:[%s14857_s0 + $0xfc8] sm:$0xff]   ;;  %9854 = vst [vmem:[%s14858_s1 + $0xfa8] sm:$0xff] %v11486_v31  ;;  %v11550_v31 = vld [vmem:[%s14857_s0 + $0x30] sm:$0xff]   ;;  %10234 = vst [vmem:[%s14858_s1 + $0xb30] sm:$0xff] %v11549_v30 }
  0xa3   :  { %v11488_v33 = vld [vmem:[%s14857_s0 + $0xbc8] sm:$0xff]   ;;  %9858 = vst [vmem:[%s14858_s1 + $0xc8] sm:$0xff] %v11487_v32  ;;  %v11551_v32 = vld [vmem:[%s14857_s0 + $0xf50] sm:$0xff]   ;;  %10238 = vst [vmem:[%s14858_s1 + $0xf30] sm:$0xff] %v11550_v31 }
  0xa4   :  { %v11489_v34 = vld [vmem:[%s14857_s0 + $0x7c8] sm:$0xff]   ;;  %9862 = vst [vmem:[%s14858_s1 + $0x4c8] sm:$0xff] %v11488_v33  ;;  %v11552_v33 = vld [vmem:[%s14857_s0 + $0xb50] sm:$0xff]   ;;  %10242 = vst [vmem:[%s14858_s1 + $0x50] sm:$0xff] %v11551_v32 }
  0xa5   :  { %v11490_v35 = vld [vmem:[%s14857_s0 + $0x3c8] sm:$0xff]   ;;  %9866 = vst [vmem:[%s14858_s1 + $0x8c8] sm:$0xff] %v11489_v34  ;;  %v11553_v34 = vld [vmem:[%s14857_s0 + $0x750] sm:$0xff]   ;;  %10246 = vst [vmem:[%s14858_s1 + $0x450] sm:$0xff] %v11552_v33 }
  0xa6   :  { %v11491_v36 = vld [vmem:[%s14857_s0 + $0xec8] sm:$0xff]   ;;  %9870 = vst [vmem:[%s14858_s1 + $0xcc8] sm:$0xff] %v11490_v35  ;;  %v11554_v35 = vld [vmem:[%s14857_s0 + $0x350] sm:$0xff]   ;;  %10250 = vst [vmem:[%s14858_s1 + $0x850] sm:$0xff] %v11553_v34 }
  0xa7   :  { %v11492_v37 = vld [vmem:[%s14857_s0 + $0xac8] sm:$0xff]   ;;  %9874 = vst [vmem:[%s14858_s1 + $0x1c8] sm:$0xff] %v11491_v36  ;;  %v11555_v36 = vld [vmem:[%s14857_s0 + $0xe50] sm:$0xff]   ;;  %10254 = vst [vmem:[%s14858_s1 + $0xc50] sm:$0xff] %v11554_v35 }
  0xa8   :  { %v11493_v38 = vld [vmem:[%s14857_s0 + $0x6c8] sm:$0xff]   ;;  %9878 = vst [vmem:[%s14858_s1 + $0x5c8] sm:$0xff] %v11492_v37  ;;  %v11556_v37 = vld [vmem:[%s14857_s0 + $0xa50] sm:$0xff]   ;;  %10258 = vst [vmem:[%s14858_s1 + $0x150] sm:$0xff] %v11555_v36 }
  0xa9   :  { %v11494_v39 = vld [vmem:[%s14857_s0 + $0x2c8] sm:$0xff]   ;;  %9882 = vst [vmem:[%s14858_s1 + $0x9c8] sm:$0xff] %v11493_v38  ;;  %v11557_v38 = vld [vmem:[%s14857_s0 + $0x650] sm:$0xff]   ;;  %10262 = vst [vmem:[%s14858_s1 + $0x550] sm:$0xff] %v11556_v37 }
  0xaa   :  { %v11495_v40 = vld [vmem:[%s14857_s0 + $0xdc8] sm:$0xff]   ;;  %9886 = vst [vmem:[%s14858_s1 + $0xdc8] sm:$0xff] %v11494_v39  ;;  %v11558_v39 = vld [vmem:[%s14857_s0 + $0x250] sm:$0xff]   ;;  %10266 = vst [vmem:[%s14858_s1 + $0x950] sm:$0xff] %v11557_v38 }
  0xab   :  { %v11496_v41 = vld [vmem:[%s14857_s0 + $0x9c8] sm:$0xff]   ;;  %9890 = vst [vmem:[%s14858_s1 + $0x2c8] sm:$0xff] %v11495_v40  ;;  %v11559_v40 = vld [vmem:[%s14857_s0 + $0xd50] sm:$0xff]   ;;  %10270 = vst [vmem:[%s14858_s1 + $0xd50] sm:$0xff] %v11558_v39 }
  0xac   :  { %v11497_v42 = vld [vmem:[%s14857_s0 + $0x5c8] sm:$0xff]   ;;  %9894 = vst [vmem:[%s14858_s1 + $0x6c8] sm:$0xff] %v11496_v41  ;;  %v11560_v41 = vld [vmem:[%s14857_s0 + $0x950] sm:$0xff]   ;;  %10274 = vst [vmem:[%s14858_s1 + $0x250] sm:$0xff] %v11559_v40 }
  0xad   :  { %v11498_v43 = vld [vmem:[%s14857_s0 + $0x1c8] sm:$0xff]   ;;  %9898 = vst [vmem:[%s14858_s1 + $0xac8] sm:$0xff] %v11497_v42  ;;  %v11561_v42 = vld [vmem:[%s14857_s0 + $0x550] sm:$0xff]   ;;  %10278 = vst [vmem:[%s14858_s1 + $0x650] sm:$0xff] %v11560_v41 }
  0xae   :  { %v11499_v44 = vld [vmem:[%s14857_s0 + $0xcc8] sm:$0xff]   ;;  %9902 = vst [vmem:[%s14858_s1 + $0xec8] sm:$0xff] %v11498_v43  ;;  %v11562_v43 = vld [vmem:[%s14857_s0 + $0x150] sm:$0xff]   ;;  %10282 = vst [vmem:[%s14858_s1 + $0xa50] sm:$0xff] %v11561_v42 }
  0xaf   :  { %v11500_v45 = vld [vmem:[%s14857_s0 + $0x8c8] sm:$0xff]   ;;  %9906 = vst [vmem:[%s14858_s1 + $0x3c8] sm:$0xff] %v11499_v44  ;;  %v11563_v44 = vld [vmem:[%s14857_s0 + $0xc50] sm:$0xff]   ;;  %10286 = vst [vmem:[%s14858_s1 + $0xe50] sm:$0xff] %v11562_v43 }
  0xb0   :  { %v11501_v46 = vld [vmem:[%s14857_s0 + $0x4c8] sm:$0xff]   ;;  %9910 = vst [vmem:[%s14858_s1 + $0x7c8] sm:$0xff] %v11500_v45  ;;  %v11564_v45 = vld [vmem:[%s14857_s0 + $0x850] sm:$0xff]   ;;  %10290 = vst [vmem:[%s14858_s1 + $0x350] sm:$0xff] %v11563_v44 }
  0xb1   :  { %v11502_v47 = vld [vmem:[%s14857_s0 + $0xc8] sm:$0xff]   ;;  %9914 = vst [vmem:[%s14858_s1 + $0xbc8] sm:$0xff] %v11501_v46  ;;  %v11565_v46 = vld [vmem:[%s14857_s0 + $0x450] sm:$0xff]   ;;  %10294 = vst [vmem:[%s14858_s1 + $0x750] sm:$0xff] %v11564_v45 }
  0xb2   :  { %v11503_v48 = vld [vmem:[%s14857_s0 + $0xfe8] sm:$0xff]   ;;  %9918 = vst [vmem:[%s14858_s1 + $0xfc8] sm:$0xff] %v11502_v47  ;;  %v11566_v47 = vld [vmem:[%s14857_s0 + $0x50] sm:$0xff]   ;;  %10298 = vst [vmem:[%s14858_s1 + $0xb50] sm:$0xff] %v11565_v46 }
  0xb3   :  { %v11504_v49 = vld [vmem:[%s14857_s0 + $0xbe8] sm:$0xff]   ;;  %9922 = vst [vmem:[%s14858_s1 + $0xe8] sm:$0xff] %v11503_v48  ;;  %v11567_v48 = vld [vmem:[%s14857_s0 + $0xf70] sm:$0xff]   ;;  %10302 = vst [vmem:[%s14858_s1 + $0xf50] sm:$0xff] %v11566_v47 }
  0xb4   :  { %v11505_v50 = vld [vmem:[%s14857_s0 + $0x7e8] sm:$0xff]   ;;  %9926 = vst [vmem:[%s14858_s1 + $0x4e8] sm:$0xff] %v11504_v49  ;;  %v11568_v49 = vld [vmem:[%s14857_s0 + $0xb70] sm:$0xff]   ;;  %10306 = vst [vmem:[%s14858_s1 + $0x70] sm:$0xff] %v11567_v48 }
  0xb5   :  { %v11506_v51 = vld [vmem:[%s14857_s0 + $0x3e8] sm:$0xff]   ;;  %9930 = vst [vmem:[%s14858_s1 + $0x8e8] sm:$0xff] %v11505_v50  ;;  %v11569_v50 = vld [vmem:[%s14857_s0 + $0x770] sm:$0xff]   ;;  %10310 = vst [vmem:[%s14858_s1 + $0x470] sm:$0xff] %v11568_v49 }
  0xb6   :  { %v11507_v52 = vld [vmem:[%s14857_s0 + $0xee8] sm:$0xff]   ;;  %9934 = vst [vmem:[%s14858_s1 + $0xce8] sm:$0xff] %v11506_v51  ;;  %v11570_v51 = vld [vmem:[%s14857_s0 + $0x370] sm:$0xff]   ;;  %10314 = vst [vmem:[%s14858_s1 + $0x870] sm:$0xff] %v11569_v50 }
  0xb7   :  { %v11508_v53 = vld [vmem:[%s14857_s0 + $0xae8] sm:$0xff]   ;;  %9938 = vst [vmem:[%s14858_s1 + $0x1e8] sm:$0xff] %v11507_v52  ;;  %v11571_v52 = vld [vmem:[%s14857_s0 + $0xe70] sm:$0xff]   ;;  %10318 = vst [vmem:[%s14858_s1 + $0xc70] sm:$0xff] %v11570_v51 }
  0xb8   :  { %v11509_v54 = vld [vmem:[%s14857_s0 + $0x6e8] sm:$0xff]   ;;  %9942 = vst [vmem:[%s14858_s1 + $0x5e8] sm:$0xff] %v11508_v53  ;;  %v11572_v53 = vld [vmem:[%s14857_s0 + $0xa70] sm:$0xff]   ;;  %10322 = vst [vmem:[%s14858_s1 + $0x170] sm:$0xff] %v11571_v52 }
  0xb9   :  { %v11510_v55 = vld [vmem:[%s14857_s0 + $0x2e8] sm:$0xff]   ;;  %9946 = vst [vmem:[%s14858_s1 + $0x9e8] sm:$0xff] %v11509_v54  ;;  %v11573_v54 = vld [vmem:[%s14857_s0 + $0x670] sm:$0xff]   ;;  %10326 = vst [vmem:[%s14858_s1 + $0x570] sm:$0xff] %v11572_v53 }
  0xba   :  { %v11511_v56 = vld [vmem:[%s14857_s0 + $0xde8] sm:$0xff]   ;;  %9950 = vst [vmem:[%s14858_s1 + $0xde8] sm:$0xff] %v11510_v55  ;;  %v11574_v55 = vld [vmem:[%s14857_s0 + $0x270] sm:$0xff]   ;;  %10330 = vst [vmem:[%s14858_s1 + $0x970] sm:$0xff] %v11573_v54 }
  0xbb   :  { %v11512_v57 = vld [vmem:[%s14857_s0 + $0x9e8] sm:$0xff]   ;;  %9954 = vst [vmem:[%s14858_s1 + $0x2e8] sm:$0xff] %v11511_v56  ;;  %v11575_v56 = vld [vmem:[%s14857_s0 + $0xd70] sm:$0xff]   ;;  %10334 = vst [vmem:[%s14858_s1 + $0xd70] sm:$0xff] %v11574_v55 }
  0xbc   :  { %v11513_v58 = vld [vmem:[%s14857_s0 + $0x5e8] sm:$0xff]   ;;  %9958 = vst [vmem:[%s14858_s1 + $0x6e8] sm:$0xff] %v11512_v57  ;;  %v11576_v57 = vld [vmem:[%s14857_s0 + $0x970] sm:$0xff]   ;;  %10338 = vst [vmem:[%s14858_s1 + $0x270] sm:$0xff] %v11575_v56 }
  0xbd   :  { %v11514_v59 = vld [vmem:[%s14857_s0 + $0x1e8] sm:$0xff]   ;;  %9962 = vst [vmem:[%s14858_s1 + $0xae8] sm:$0xff] %v11513_v58  ;;  %v11577_v58 = vld [vmem:[%s14857_s0 + $0x570] sm:$0xff]   ;;  %10342 = vst [vmem:[%s14858_s1 + $0x670] sm:$0xff] %v11576_v57 }
  0xbe   :  { %v11515_v60 = vld [vmem:[%s14857_s0 + $0xce8] sm:$0xff]   ;;  %9966 = vst [vmem:[%s14858_s1 + $0xee8] sm:$0xff] %v11514_v59  ;;  %v11578_v59 = vld [vmem:[%s14857_s0 + $0x170] sm:$0xff]   ;;  %10346 = vst [vmem:[%s14858_s1 + $0xa70] sm:$0xff] %v11577_v58 }
  0xbf   :  { %v11516_v61 = vld [vmem:[%s14857_s0 + $0x8e8] sm:$0xff]   ;;  %9970 = vst [vmem:[%s14858_s1 + $0x3e8] sm:$0xff] %v11515_v60  ;;  %v11579_v60 = vld [vmem:[%s14857_s0 + $0xc70] sm:$0xff]   ;;  %10350 = vst [vmem:[%s14858_s1 + $0xe70] sm:$0xff] %v11578_v59 }
  0xc0   :  { %v11517_v62 = vld [vmem:[%s14857_s0 + $0x4e8] sm:$0xff]   ;;  %9974 = vst [vmem:[%s14858_s1 + $0x7e8] sm:$0xff] %v11516_v61  ;;  %v11580_v61 = vld [vmem:[%s14857_s0 + $0x870] sm:$0xff]   ;;  %10354 = vst [vmem:[%s14858_s1 + $0x370] sm:$0xff] %v11579_v60 }
  0xc1   :  { %v11518_v63 = vld [vmem:[%s14857_s0 + $0xe8] sm:$0xff]   ;;  %9978 = vst [vmem:[%s14858_s1 + $0xbe8] sm:$0xff] %v11517_v62  ;;  %v11581_v62 = vld [vmem:[%s14857_s0 + $0x470] sm:$0xff]   ;;  %10358 = vst [vmem:[%s14858_s1 + $0x770] sm:$0xff] %v11580_v61 }
  0xc2   :  { %9982 = vst [vmem:[%s14858_s1 + $0xfe8] sm:$0xff] %v11518_v63  ;;  %v11582_v63 = vld [vmem:[%s14857_s0 + $0x70] sm:$0xff]   ;;  %10362 = vst [vmem:[%s14858_s1 + $0xb70] sm:$0xff] %v11581_v62 }
  0xc3   :  { %v11583_v0 = vld [vmem:[%s14857_s0 + $0xf90] sm:$0xff]   ;;  %10366 = vst [vmem:[%s14858_s1 + $0xf70] sm:$0xff] %v11582_v63 }
  0xc4   :  { %v11584_v1 = vld [vmem:[%s14857_s0 + $0xb90] sm:$0xff]   ;;  %10370 = vst [vmem:[%s14858_s1 + $0x90] sm:$0xff] %v11583_v0  ;;  %v11647_v0 = vld [vmem:[%s14857_s0 + $0xf18] sm:$0xff]  }
  0xc5   :  { %v11585_v2 = vld [vmem:[%s14857_s0 + $0x790] sm:$0xff]   ;;  %10374 = vst [vmem:[%s14858_s1 + $0x490] sm:$0xff] %v11584_v1  ;;  %v11648_v1 = vld [vmem:[%s14857_s0 + $0xb18] sm:$0xff]   ;;  %10754 = vst [vmem:[%s14858_s1 + $0x18] sm:$0xff] %v11647_v0 }
  0xc6   :  { %v11586_v3 = vld [vmem:[%s14857_s0 + $0x390] sm:$0xff]   ;;  %10378 = vst [vmem:[%s14858_s1 + $0x890] sm:$0xff] %v11585_v2  ;;  %v11649_v2 = vld [vmem:[%s14857_s0 + $0x718] sm:$0xff]   ;;  %10758 = vst [vmem:[%s14858_s1 + $0x418] sm:$0xff] %v11648_v1 }
  0xc7   :  { %v11587_v4 = vld [vmem:[%s14857_s0 + $0xe90] sm:$0xff]   ;;  %10382 = vst [vmem:[%s14858_s1 + $0xc90] sm:$0xff] %v11586_v3  ;;  %v11650_v3 = vld [vmem:[%s14857_s0 + $0x318] sm:$0xff]   ;;  %10762 = vst [vmem:[%s14858_s1 + $0x818] sm:$0xff] %v11649_v2 }
  0xc8   :  { %v11588_v5 = vld [vmem:[%s14857_s0 + $0xa90] sm:$0xff]   ;;  %10386 = vst [vmem:[%s14858_s1 + $0x190] sm:$0xff] %v11587_v4  ;;  %v11651_v4 = vld [vmem:[%s14857_s0 + $0xe18] sm:$0xff]   ;;  %10766 = vst [vmem:[%s14858_s1 + $0xc18] sm:$0xff] %v11650_v3 }
  0xc9   :  { %v11589_v6 = vld [vmem:[%s14857_s0 + $0x690] sm:$0xff]   ;;  %10390 = vst [vmem:[%s14858_s1 + $0x590] sm:$0xff] %v11588_v5  ;;  %v11652_v5 = vld [vmem:[%s14857_s0 + $0xa18] sm:$0xff]   ;;  %10770 = vst [vmem:[%s14858_s1 + $0x118] sm:$0xff] %v11651_v4 }
  0xca   :  { %v11590_v7 = vld [vmem:[%s14857_s0 + $0x290] sm:$0xff]   ;;  %10394 = vst [vmem:[%s14858_s1 + $0x990] sm:$0xff] %v11589_v6  ;;  %v11653_v6 = vld [vmem:[%s14857_s0 + $0x618] sm:$0xff]   ;;  %10774 = vst [vmem:[%s14858_s1 + $0x518] sm:$0xff] %v11652_v5 }
  0xcb   :  { %v11591_v8 = vld [vmem:[%s14857_s0 + $0xd90] sm:$0xff]   ;;  %10398 = vst [vmem:[%s14858_s1 + $0xd90] sm:$0xff] %v11590_v7  ;;  %v11654_v7 = vld [vmem:[%s14857_s0 + $0x218] sm:$0xff]   ;;  %10778 = vst [vmem:[%s14858_s1 + $0x918] sm:$0xff] %v11653_v6 }
  0xcc   :  { %v11592_v9 = vld [vmem:[%s14857_s0 + $0x990] sm:$0xff]   ;;  %10402 = vst [vmem:[%s14858_s1 + $0x290] sm:$0xff] %v11591_v8  ;;  %v11655_v8 = vld [vmem:[%s14857_s0 + $0xd18] sm:$0xff]   ;;  %10782 = vst [vmem:[%s14858_s1 + $0xd18] sm:$0xff] %v11654_v7 }
  0xcd   :  { %v11593_v10 = vld [vmem:[%s14857_s0 + $0x590] sm:$0xff]   ;;  %10406 = vst [vmem:[%s14858_s1 + $0x690] sm:$0xff] %v11592_v9  ;;  %v11656_v9 = vld [vmem:[%s14857_s0 + $0x918] sm:$0xff]   ;;  %10786 = vst [vmem:[%s14858_s1 + $0x218] sm:$0xff] %v11655_v8 }
  0xce   :  { %v11594_v11 = vld [vmem:[%s14857_s0 + $0x190] sm:$0xff]   ;;  %10410 = vst [vmem:[%s14858_s1 + $0xa90] sm:$0xff] %v11593_v10  ;;  %v11657_v10 = vld [vmem:[%s14857_s0 + $0x518] sm:$0xff]   ;;  %10790 = vst [vmem:[%s14858_s1 + $0x618] sm:$0xff] %v11656_v9 }
  0xcf   :  { %v11595_v12 = vld [vmem:[%s14857_s0 + $0xc90] sm:$0xff]   ;;  %10414 = vst [vmem:[%s14858_s1 + $0xe90] sm:$0xff] %v11594_v11  ;;  %v11658_v11 = vld [vmem:[%s14857_s0 + $0x118] sm:$0xff]   ;;  %10794 = vst [vmem:[%s14858_s1 + $0xa18] sm:$0xff] %v11657_v10 }
  0xd0   :  { %v11596_v13 = vld [vmem:[%s14857_s0 + $0x890] sm:$0xff]   ;;  %10418 = vst [vmem:[%s14858_s1 + $0x390] sm:$0xff] %v11595_v12  ;;  %v11659_v12 = vld [vmem:[%s14857_s0 + $0xc18] sm:$0xff]   ;;  %10798 = vst [vmem:[%s14858_s1 + $0xe18] sm:$0xff] %v11658_v11 }
  0xd1   :  { %v11597_v14 = vld [vmem:[%s14857_s0 + $0x490] sm:$0xff]   ;;  %10422 = vst [vmem:[%s14858_s1 + $0x790] sm:$0xff] %v11596_v13  ;;  %v11660_v13 = vld [vmem:[%s14857_s0 + $0x818] sm:$0xff]   ;;  %10802 = vst [vmem:[%s14858_s1 + $0x318] sm:$0xff] %v11659_v12 }
  0xd2   :  { %v11598_v15 = vld [vmem:[%s14857_s0 + $0x90] sm:$0xff]   ;;  %10426 = vst [vmem:[%s14858_s1 + $0xb90] sm:$0xff] %v11597_v14  ;;  %v11661_v14 = vld [vmem:[%s14857_s0 + $0x418] sm:$0xff]   ;;  %10806 = vst [vmem:[%s14858_s1 + $0x718] sm:$0xff] %v11660_v13 }
  0xd3   :  { %v11599_v16 = vld [vmem:[%s14857_s0 + $0xfb0] sm:$0xff]   ;;  %10430 = vst [vmem:[%s14858_s1 + $0xf90] sm:$0xff] %v11598_v15  ;;  %v11662_v15 = vld [vmem:[%s14857_s0 + $0x18] sm:$0xff]   ;;  %10810 = vst [vmem:[%s14858_s1 + $0xb18] sm:$0xff] %v11661_v14 }
  0xd4   :  { %v11600_v17 = vld [vmem:[%s14857_s0 + $0xbb0] sm:$0xff]   ;;  %10434 = vst [vmem:[%s14858_s1 + $0xb0] sm:$0xff] %v11599_v16  ;;  %v11663_v16 = vld [vmem:[%s14857_s0 + $0xf38] sm:$0xff]   ;;  %10814 = vst [vmem:[%s14858_s1 + $0xf18] sm:$0xff] %v11662_v15 }
  0xd5   :  { %v11601_v18 = vld [vmem:[%s14857_s0 + $0x7b0] sm:$0xff]   ;;  %10438 = vst [vmem:[%s14858_s1 + $0x4b0] sm:$0xff] %v11600_v17  ;;  %v11664_v17 = vld [vmem:[%s14857_s0 + $0xb38] sm:$0xff]   ;;  %10818 = vst [vmem:[%s14858_s1 + $0x38] sm:$0xff] %v11663_v16 }
  0xd6   :  { %v11602_v19 = vld [vmem:[%s14857_s0 + $0x3b0] sm:$0xff]   ;;  %10442 = vst [vmem:[%s14858_s1 + $0x8b0] sm:$0xff] %v11601_v18  ;;  %v11665_v18 = vld [vmem:[%s14857_s0 + $0x738] sm:$0xff]   ;;  %10822 = vst [vmem:[%s14858_s1 + $0x438] sm:$0xff] %v11664_v17 }
  0xd7   :  { %v11603_v20 = vld [vmem:[%s14857_s0 + $0xeb0] sm:$0xff]   ;;  %10446 = vst [vmem:[%s14858_s1 + $0xcb0] sm:$0xff] %v11602_v19  ;;  %v11666_v19 = vld [vmem:[%s14857_s0 + $0x338] sm:$0xff]   ;;  %10826 = vst [vmem:[%s14858_s1 + $0x838] sm:$0xff] %v11665_v18 }
  0xd8   :  { %v11604_v21 = vld [vmem:[%s14857_s0 + $0xab0] sm:$0xff]   ;;  %10450 = vst [vmem:[%s14858_s1 + $0x1b0] sm:$0xff] %v11603_v20  ;;  %v11667_v20 = vld [vmem:[%s14857_s0 + $0xe38] sm:$0xff]   ;;  %10830 = vst [vmem:[%s14858_s1 + $0xc38] sm:$0xff] %v11666_v19 }
  0xd9   :  { %v11605_v22 = vld [vmem:[%s14857_s0 + $0x6b0] sm:$0xff]   ;;  %10454 = vst [vmem:[%s14858_s1 + $0x5b0] sm:$0xff] %v11604_v21  ;;  %v11668_v21 = vld [vmem:[%s14857_s0 + $0xa38] sm:$0xff]   ;;  %10834 = vst [vmem:[%s14858_s1 + $0x138] sm:$0xff] %v11667_v20 }
  0xda   :  { %v11606_v23 = vld [vmem:[%s14857_s0 + $0x2b0] sm:$0xff]   ;;  %10458 = vst [vmem:[%s14858_s1 + $0x9b0] sm:$0xff] %v11605_v22  ;;  %v11669_v22 = vld [vmem:[%s14857_s0 + $0x638] sm:$0xff]   ;;  %10838 = vst [vmem:[%s14858_s1 + $0x538] sm:$0xff] %v11668_v21 }
  0xdb   :  { %v11607_v24 = vld [vmem:[%s14857_s0 + $0xdb0] sm:$0xff]   ;;  %10462 = vst [vmem:[%s14858_s1 + $0xdb0] sm:$0xff] %v11606_v23  ;;  %v11670_v23 = vld [vmem:[%s14857_s0 + $0x238] sm:$0xff]   ;;  %10842 = vst [vmem:[%s14858_s1 + $0x938] sm:$0xff] %v11669_v22 }
  0xdc   :  { %v11608_v25 = vld [vmem:[%s14857_s0 + $0x9b0] sm:$0xff]   ;;  %10466 = vst [vmem:[%s14858_s1 + $0x2b0] sm:$0xff] %v11607_v24  ;;  %v11671_v24 = vld [vmem:[%s14857_s0 + $0xd38] sm:$0xff]   ;;  %10846 = vst [vmem:[%s14858_s1 + $0xd38] sm:$0xff] %v11670_v23 }
  0xdd   :  { %v11609_v26 = vld [vmem:[%s14857_s0 + $0x5b0] sm:$0xff]   ;;  %10470 = vst [vmem:[%s14858_s1 + $0x6b0] sm:$0xff] %v11608_v25  ;;  %v11672_v25 = vld [vmem:[%s14857_s0 + $0x938] sm:$0xff]   ;;  %10850 = vst [vmem:[%s14858_s1 + $0x238] sm:$0xff] %v11671_v24 }
  0xde   :  { %v11610_v27 = vld [vmem:[%s14857_s0 + $0x1b0] sm:$0xff]   ;;  %10474 = vst [vmem:[%s14858_s1 + $0xab0] sm:$0xff] %v11609_v26  ;;  %v11673_v26 = vld [vmem:[%s14857_s0 + $0x538] sm:$0xff]   ;;  %10854 = vst [vmem:[%s14858_s1 + $0x638] sm:$0xff] %v11672_v25 }
  0xdf   :  { %v11611_v28 = vld [vmem:[%s14857_s0 + $0xcb0] sm:$0xff]   ;;  %10478 = vst [vmem:[%s14858_s1 + $0xeb0] sm:$0xff] %v11610_v27  ;;  %v11674_v27 = vld [vmem:[%s14857_s0 + $0x138] sm:$0xff]   ;;  %10858 = vst [vmem:[%s14858_s1 + $0xa38] sm:$0xff] %v11673_v26 }
  0xe0   :  { %v11612_v29 = vld [vmem:[%s14857_s0 + $0x8b0] sm:$0xff]   ;;  %10482 = vst [vmem:[%s14858_s1 + $0x3b0] sm:$0xff] %v11611_v28  ;;  %v11675_v28 = vld [vmem:[%s14857_s0 + $0xc38] sm:$0xff]   ;;  %10862 = vst [vmem:[%s14858_s1 + $0xe38] sm:$0xff] %v11674_v27 }
  0xe1   :  { %v11613_v30 = vld [vmem:[%s14857_s0 + $0x4b0] sm:$0xff]   ;;  %10486 = vst [vmem:[%s14858_s1 + $0x7b0] sm:$0xff] %v11612_v29  ;;  %v11676_v29 = vld [vmem:[%s14857_s0 + $0x838] sm:$0xff]   ;;  %10866 = vst [vmem:[%s14858_s1 + $0x338] sm:$0xff] %v11675_v28 }
  0xe2   :  { %v11614_v31 = vld [vmem:[%s14857_s0 + $0xb0] sm:$0xff]   ;;  %10490 = vst [vmem:[%s14858_s1 + $0xbb0] sm:$0xff] %v11613_v30  ;;  %v11677_v30 = vld [vmem:[%s14857_s0 + $0x438] sm:$0xff]   ;;  %10870 = vst [vmem:[%s14858_s1 + $0x738] sm:$0xff] %v11676_v29 }
  0xe3   :  { %v11615_v32 = vld [vmem:[%s14857_s0 + $0xfd0] sm:$0xff]   ;;  %10494 = vst [vmem:[%s14858_s1 + $0xfb0] sm:$0xff] %v11614_v31  ;;  %v11678_v31 = vld [vmem:[%s14857_s0 + $0x38] sm:$0xff]   ;;  %10874 = vst [vmem:[%s14858_s1 + $0xb38] sm:$0xff] %v11677_v30 }
  0xe4   :  { %v11616_v33 = vld [vmem:[%s14857_s0 + $0xbd0] sm:$0xff]   ;;  %10498 = vst [vmem:[%s14858_s1 + $0xd0] sm:$0xff] %v11615_v32  ;;  %v11679_v32 = vld [vmem:[%s14857_s0 + $0xf58] sm:$0xff]   ;;  %10878 = vst [vmem:[%s14858_s1 + $0xf38] sm:$0xff] %v11678_v31 }
  0xe5   :  { %v11617_v34 = vld [vmem:[%s14857_s0 + $0x7d0] sm:$0xff]   ;;  %10502 = vst [vmem:[%s14858_s1 + $0x4d0] sm:$0xff] %v11616_v33  ;;  %v11680_v33 = vld [vmem:[%s14857_s0 + $0xb58] sm:$0xff]   ;;  %10882 = vst [vmem:[%s14858_s1 + $0x58] sm:$0xff] %v11679_v32 }
  0xe6   :  { %v11618_v35 = vld [vmem:[%s14857_s0 + $0x3d0] sm:$0xff]   ;;  %10506 = vst [vmem:[%s14858_s1 + $0x8d0] sm:$0xff] %v11617_v34  ;;  %v11681_v34 = vld [vmem:[%s14857_s0 + $0x758] sm:$0xff]   ;;  %10886 = vst [vmem:[%s14858_s1 + $0x458] sm:$0xff] %v11680_v33 }
  0xe7   :  { %v11619_v36 = vld [vmem:[%s14857_s0 + $0xed0] sm:$0xff]   ;;  %10510 = vst [vmem:[%s14858_s1 + $0xcd0] sm:$0xff] %v11618_v35  ;;  %v11682_v35 = vld [vmem:[%s14857_s0 + $0x358] sm:$0xff]   ;;  %10890 = vst [vmem:[%s14858_s1 + $0x858] sm:$0xff] %v11681_v34 }
  0xe8   :  { %v11620_v37 = vld [vmem:[%s14857_s0 + $0xad0] sm:$0xff]   ;;  %10514 = vst [vmem:[%s14858_s1 + $0x1d0] sm:$0xff] %v11619_v36  ;;  %v11683_v36 = vld [vmem:[%s14857_s0 + $0xe58] sm:$0xff]   ;;  %10894 = vst [vmem:[%s14858_s1 + $0xc58] sm:$0xff] %v11682_v35 }
  0xe9   :  { %v11621_v38 = vld [vmem:[%s14857_s0 + $0x6d0] sm:$0xff]   ;;  %10518 = vst [vmem:[%s14858_s1 + $0x5d0] sm:$0xff] %v11620_v37  ;;  %v11684_v37 = vld [vmem:[%s14857_s0 + $0xa58] sm:$0xff]   ;;  %10898 = vst [vmem:[%s14858_s1 + $0x158] sm:$0xff] %v11683_v36 }
  0xea   :  { %v11622_v39 = vld [vmem:[%s14857_s0 + $0x2d0] sm:$0xff]   ;;  %10522 = vst [vmem:[%s14858_s1 + $0x9d0] sm:$0xff] %v11621_v38  ;;  %v11685_v38 = vld [vmem:[%s14857_s0 + $0x658] sm:$0xff]   ;;  %10902 = vst [vmem:[%s14858_s1 + $0x558] sm:$0xff] %v11684_v37 }
  0xeb   :  { %v11623_v40 = vld [vmem:[%s14857_s0 + $0xdd0] sm:$0xff]   ;;  %10526 = vst [vmem:[%s14858_s1 + $0xdd0] sm:$0xff] %v11622_v39  ;;  %v11686_v39 = vld [vmem:[%s14857_s0 + $0x258] sm:$0xff]   ;;  %10906 = vst [vmem:[%s14858_s1 + $0x958] sm:$0xff] %v11685_v38 }
  0xec   :  { %v11624_v41 = vld [vmem:[%s14857_s0 + $0x9d0] sm:$0xff]   ;;  %10530 = vst [vmem:[%s14858_s1 + $0x2d0] sm:$0xff] %v11623_v40  ;;  %v11687_v40 = vld [vmem:[%s14857_s0 + $0xd58] sm:$0xff]   ;;  %10910 = vst [vmem:[%s14858_s1 + $0xd58] sm:$0xff] %v11686_v39 }
  0xed   :  { %v11625_v42 = vld [vmem:[%s14857_s0 + $0x5d0] sm:$0xff]   ;;  %10534 = vst [vmem:[%s14858_s1 + $0x6d0] sm:$0xff] %v11624_v41  ;;  %v11688_v41 = vld [vmem:[%s14857_s0 + $0x958] sm:$0xff]   ;;  %10914 = vst [vmem:[%s14858_s1 + $0x258] sm:$0xff] %v11687_v40 }
  0xee   :  { %v11626_v43 = vld [vmem:[%s14857_s0 + $0x1d0] sm:$0xff]   ;;  %10538 = vst [vmem:[%s14858_s1 + $0xad0] sm:$0xff] %v11625_v42  ;;  %v11689_v42 = vld [vmem:[%s14857_s0 + $0x558] sm:$0xff]   ;;  %10918 = vst [vmem:[%s14858_s1 + $0x658] sm:$0xff] %v11688_v41 }
  0xef   :  { %v11627_v44 = vld [vmem:[%s14857_s0 + $0xcd0] sm:$0xff]   ;;  %10542 = vst [vmem:[%s14858_s1 + $0xed0] sm:$0xff] %v11626_v43  ;;  %v11690_v43 = vld [vmem:[%s14857_s0 + $0x158] sm:$0xff]   ;;  %10922 = vst [vmem:[%s14858_s1 + $0xa58] sm:$0xff] %v11689_v42 }
  0xf0   :  { %v11628_v45 = vld [vmem:[%s14857_s0 + $0x8d0] sm:$0xff]   ;;  %10546 = vst [vmem:[%s14858_s1 + $0x3d0] sm:$0xff] %v11627_v44  ;;  %v11691_v44 = vld [vmem:[%s14857_s0 + $0xc58] sm:$0xff]   ;;  %10926 = vst [vmem:[%s14858_s1 + $0xe58] sm:$0xff] %v11690_v43 }
  0xf1   :  { %v11629_v46 = vld [vmem:[%s14857_s0 + $0x4d0] sm:$0xff]   ;;  %10550 = vst [vmem:[%s14858_s1 + $0x7d0] sm:$0xff] %v11628_v45  ;;  %v11692_v45 = vld [vmem:[%s14857_s0 + $0x858] sm:$0xff]   ;;  %10930 = vst [vmem:[%s14858_s1 + $0x358] sm:$0xff] %v11691_v44 }
  0xf2   :  { %v11630_v47 = vld [vmem:[%s14857_s0 + $0xd0] sm:$0xff]   ;;  %10554 = vst [vmem:[%s14858_s1 + $0xbd0] sm:$0xff] %v11629_v46  ;;  %v11693_v46 = vld [vmem:[%s14857_s0 + $0x458] sm:$0xff]   ;;  %10934 = vst [vmem:[%s14858_s1 + $0x758] sm:$0xff] %v11692_v45 }
  0xf3   :  { %v11631_v48 = vld [vmem:[%s14857_s0 + $0xff0] sm:$0xff]   ;;  %10558 = vst [vmem:[%s14858_s1 + $0xfd0] sm:$0xff] %v11630_v47  ;;  %v11694_v47 = vld [vmem:[%s14857_s0 + $0x58] sm:$0xff]   ;;  %10938 = vst [vmem:[%s14858_s1 + $0xb58] sm:$0xff] %v11693_v46 }
  0xf4   :  { %v11632_v49 = vld [vmem:[%s14857_s0 + $0xbf0] sm:$0xff]   ;;  %10562 = vst [vmem:[%s14858_s1 + $0xf0] sm:$0xff] %v11631_v48  ;;  %v11695_v48 = vld [vmem:[%s14857_s0 + $0xf78] sm:$0xff]   ;;  %10942 = vst [vmem:[%s14858_s1 + $0xf58] sm:$0xff] %v11694_v47 }
  0xf5   :  { %v11633_v50 = vld [vmem:[%s14857_s0 + $0x7f0] sm:$0xff]   ;;  %10566 = vst [vmem:[%s14858_s1 + $0x4f0] sm:$0xff] %v11632_v49  ;;  %v11696_v49 = vld [vmem:[%s14857_s0 + $0xb78] sm:$0xff]   ;;  %10946 = vst [vmem:[%s14858_s1 + $0x78] sm:$0xff] %v11695_v48 }
  0xf6   :  { %v11634_v51 = vld [vmem:[%s14857_s0 + $0x3f0] sm:$0xff]   ;;  %10570 = vst [vmem:[%s14858_s1 + $0x8f0] sm:$0xff] %v11633_v50  ;;  %v11697_v50 = vld [vmem:[%s14857_s0 + $0x778] sm:$0xff]   ;;  %10950 = vst [vmem:[%s14858_s1 + $0x478] sm:$0xff] %v11696_v49 }
  0xf7   :  { %v11635_v52 = vld [vmem:[%s14857_s0 + $0xef0] sm:$0xff]   ;;  %10574 = vst [vmem:[%s14858_s1 + $0xcf0] sm:$0xff] %v11634_v51  ;;  %v11698_v51 = vld [vmem:[%s14857_s0 + $0x378] sm:$0xff]   ;;  %10954 = vst [vmem:[%s14858_s1 + $0x878] sm:$0xff] %v11697_v50 }
  0xf8   :  { %v11636_v53 = vld [vmem:[%s14857_s0 + $0xaf0] sm:$0xff]   ;;  %10578 = vst [vmem:[%s14858_s1 + $0x1f0] sm:$0xff] %v11635_v52  ;;  %v11699_v52 = vld [vmem:[%s14857_s0 + $0xe78] sm:$0xff]   ;;  %10958 = vst [vmem:[%s14858_s1 + $0xc78] sm:$0xff] %v11698_v51 }
  0xf9   :  { %v11637_v54 = vld [vmem:[%s14857_s0 + $0x6f0] sm:$0xff]   ;;  %10582 = vst [vmem:[%s14858_s1 + $0x5f0] sm:$0xff] %v11636_v53  ;;  %v11700_v53 = vld [vmem:[%s14857_s0 + $0xa78] sm:$0xff]   ;;  %10962 = vst [vmem:[%s14858_s1 + $0x178] sm:$0xff] %v11699_v52 }
  0xfa   :  { %v11638_v55 = vld [vmem:[%s14857_s0 + $0x2f0] sm:$0xff]   ;;  %10586 = vst [vmem:[%s14858_s1 + $0x9f0] sm:$0xff] %v11637_v54  ;;  %v11701_v54 = vld [vmem:[%s14857_s0 + $0x678] sm:$0xff]   ;;  %10966 = vst [vmem:[%s14858_s1 + $0x578] sm:$0xff] %v11700_v53 }
  0xfb   :  { %v11639_v56 = vld [vmem:[%s14857_s0 + $0xdf0] sm:$0xff]   ;;  %10590 = vst [vmem:[%s14858_s1 + $0xdf0] sm:$0xff] %v11638_v55  ;;  %v11702_v55 = vld [vmem:[%s14857_s0 + $0x278] sm:$0xff]   ;;  %10970 = vst [vmem:[%s14858_s1 + $0x978] sm:$0xff] %v11701_v54 }
  0xfc   :  { %v11640_v57 = vld [vmem:[%s14857_s0 + $0x9f0] sm:$0xff]   ;;  %10594 = vst [vmem:[%s14858_s1 + $0x2f0] sm:$0xff] %v11639_v56  ;;  %v11703_v56 = vld [vmem:[%s14857_s0 + $0xd78] sm:$0xff]   ;;  %10974 = vst [vmem:[%s14858_s1 + $0xd78] sm:$0xff] %v11702_v55 }
  0xfd   :  { %v11641_v58 = vld [vmem:[%s14857_s0 + $0x5f0] sm:$0xff]   ;;  %10598 = vst [vmem:[%s14858_s1 + $0x6f0] sm:$0xff] %v11640_v57  ;;  %v11704_v57 = vld [vmem:[%s14857_s0 + $0x978] sm:$0xff]   ;;  %10978 = vst [vmem:[%s14858_s1 + $0x278] sm:$0xff] %v11703_v56 }
  0xfe   :  { %v11642_v59 = vld [vmem:[%s14857_s0 + $0x1f0] sm:$0xff]   ;;  %10602 = vst [vmem:[%s14858_s1 + $0xaf0] sm:$0xff] %v11641_v58  ;;  %v11705_v58 = vld [vmem:[%s14857_s0 + $0x578] sm:$0xff]   ;;  %10982 = vst [vmem:[%s14858_s1 + $0x678] sm:$0xff] %v11704_v57 }
  0xff   :  { %v11643_v60 = vld [vmem:[%s14857_s0 + $0xcf0] sm:$0xff]   ;;  %10606 = vst [vmem:[%s14858_s1 + $0xef0] sm:$0xff] %v11642_v59  ;;  %v11706_v59 = vld [vmem:[%s14857_s0 + $0x178] sm:$0xff]   ;;  %10986 = vst [vmem:[%s14858_s1 + $0xa78] sm:$0xff] %v11705_v58 }
 0x100   :  { %v11644_v61 = vld [vmem:[%s14857_s0 + $0x8f0] sm:$0xff]   ;;  %10610 = vst [vmem:[%s14858_s1 + $0x3f0] sm:$0xff] %v11643_v60  ;;  %v11707_v60 = vld [vmem:[%s14857_s0 + $0xc78] sm:$0xff]   ;;  %10990 = vst [vmem:[%s14858_s1 + $0xe78] sm:$0xff] %v11706_v59 }
 0x101   :  { %v11645_v62 = vld [vmem:[%s14857_s0 + $0x4f0] sm:$0xff]   ;;  %10614 = vst [vmem:[%s14858_s1 + $0x7f0] sm:$0xff] %v11644_v61  ;;  %v11708_v61 = vld [vmem:[%s14857_s0 + $0x878] sm:$0xff]   ;;  %10994 = vst [vmem:[%s14858_s1 + $0x378] sm:$0xff] %v11707_v60 }
 0x102   :  { %v11646_v63 = vld [vmem:[%s14857_s0 + $0xf0] sm:$0xff]   ;;  %10618 = vst [vmem:[%s14858_s1 + $0xbf0] sm:$0xff] %v11645_v62  ;;  %v11709_v62 = vld [vmem:[%s14857_s0 + $0x478] sm:$0xff]   ;;  %10998 = vst [vmem:[%s14858_s1 + $0x778] sm:$0xff] %v11708_v61 }
 0x103   :  { %10622 = vst [vmem:[%s14858_s1 + $0xff0] sm:$0xff] %v11646_v63  ;;  %v11710_v63 = vld [vmem:[%s14857_s0 + $0x78] sm:$0xff]   ;;  %11002 = vst [vmem:[%s14858_s1 + $0xb78] sm:$0xff] %v11709_v62 }
 0x104   :  { %v11711_v0 = vld [vmem:[%s14857_s0 + $0xf98] sm:$0xff]   ;;  %11006 = vst [vmem:[%s14858_s1 + $0xf78] sm:$0xff] %v11710_v63 }
 0x105   :  { %v11712_v1 = vld [vmem:[%s14857_s0 + $0xb98] sm:$0xff]   ;;  %11010 = vst [vmem:[%s14858_s1 + $0x98] sm:$0xff] %v11711_v0 }
 0x106   :  { %v11713_v2 = vld [vmem:[%s14857_s0 + $0x798] sm:$0xff]   ;;  %11014 = vst [vmem:[%s14858_s1 + $0x498] sm:$0xff] %v11712_v1 }
 0x107   :  { %v11714_v3 = vld [vmem:[%s14857_s0 + $0x398] sm:$0xff]   ;;  %11018 = vst [vmem:[%s14858_s1 + $0x898] sm:$0xff] %v11713_v2 }
 0x108   :  { %v11715_v4 = vld [vmem:[%s14857_s0 + $0xe98] sm:$0xff]   ;;  %11022 = vst [vmem:[%s14858_s1 + $0xc98] sm:$0xff] %v11714_v3 }
 0x109   :  { %v11716_v5 = vld [vmem:[%s14857_s0 + $0xa98] sm:$0xff]   ;;  %11026 = vst [vmem:[%s14858_s1 + $0x198] sm:$0xff] %v11715_v4 }
 0x10a   :  { %v11717_v6 = vld [vmem:[%s14857_s0 + $0x698] sm:$0xff]   ;;  %11030 = vst [vmem:[%s14858_s1 + $0x598] sm:$0xff] %v11716_v5 }
 0x10b   :  { %v11718_v7 = vld [vmem:[%s14857_s0 + $0x298] sm:$0xff]   ;;  %11034 = vst [vmem:[%s14858_s1 + $0x998] sm:$0xff] %v11717_v6 }
 0x10c   :  { %v11719_v8 = vld [vmem:[%s14857_s0 + $0xd98] sm:$0xff]   ;;  %11038 = vst [vmem:[%s14858_s1 + $0xd98] sm:$0xff] %v11718_v7 }
 0x10d   :  { %v11720_v9 = vld [vmem:[%s14857_s0 + $0x998] sm:$0xff]   ;;  %11042 = vst [vmem:[%s14858_s1 + $0x298] sm:$0xff] %v11719_v8 }
 0x10e   :  { %v11721_v10 = vld [vmem:[%s14857_s0 + $0x598] sm:$0xff]   ;;  %11046 = vst [vmem:[%s14858_s1 + $0x698] sm:$0xff] %v11720_v9 }
 0x10f   :  { %v11722_v11 = vld [vmem:[%s14857_s0 + $0x198] sm:$0xff]   ;;  %11050 = vst [vmem:[%s14858_s1 + $0xa98] sm:$0xff] %v11721_v10 }
 0x110   :  { %v11723_v12 = vld [vmem:[%s14857_s0 + $0xc98] sm:$0xff]   ;;  %11054 = vst [vmem:[%s14858_s1 + $0xe98] sm:$0xff] %v11722_v11 }
 0x111   :  { %v11724_v13 = vld [vmem:[%s14857_s0 + $0x898] sm:$0xff]   ;;  %11058 = vst [vmem:[%s14858_s1 + $0x398] sm:$0xff] %v11723_v12 }
 0x112   :  { %v11725_v14 = vld [vmem:[%s14857_s0 + $0x498] sm:$0xff]   ;;  %11062 = vst [vmem:[%s14858_s1 + $0x798] sm:$0xff] %v11724_v13 }
 0x113   :  { %v11726_v15 = vld [vmem:[%s14857_s0 + $0x98] sm:$0xff]   ;;  %11066 = vst [vmem:[%s14858_s1 + $0xb98] sm:$0xff] %v11725_v14 }
 0x114   :  { %v11727_v16 = vld [vmem:[%s14857_s0 + $0xfb8] sm:$0xff]   ;;  %11070 = vst [vmem:[%s14858_s1 + $0xf98] sm:$0xff] %v11726_v15 }
 0x115   :  { %v11728_v17 = vld [vmem:[%s14857_s0 + $0xbb8] sm:$0xff]   ;;  %11074 = vst [vmem:[%s14858_s1 + $0xb8] sm:$0xff] %v11727_v16 }
 0x116   :  { %v11729_v18 = vld [vmem:[%s14857_s0 + $0x7b8] sm:$0xff]   ;;  %11078 = vst [vmem:[%s14858_s1 + $0x4b8] sm:$0xff] %v11728_v17 }
 0x117   :  { %v11730_v19 = vld [vmem:[%s14857_s0 + $0x3b8] sm:$0xff]   ;;  %11082 = vst [vmem:[%s14858_s1 + $0x8b8] sm:$0xff] %v11729_v18 }
 0x118   :  { %v11731_v20 = vld [vmem:[%s14857_s0 + $0xeb8] sm:$0xff]   ;;  %11086 = vst [vmem:[%s14858_s1 + $0xcb8] sm:$0xff] %v11730_v19 }
 0x119   :  { %v11732_v21 = vld [vmem:[%s14857_s0 + $0xab8] sm:$0xff]   ;;  %11090 = vst [vmem:[%s14858_s1 + $0x1b8] sm:$0xff] %v11731_v20 }
 0x11a   :  { %v11733_v22 = vld [vmem:[%s14857_s0 + $0x6b8] sm:$0xff]   ;;  %11094 = vst [vmem:[%s14858_s1 + $0x5b8] sm:$0xff] %v11732_v21 }
 0x11b   :  { %v11734_v23 = vld [vmem:[%s14857_s0 + $0x2b8] sm:$0xff]   ;;  %11098 = vst [vmem:[%s14858_s1 + $0x9b8] sm:$0xff] %v11733_v22 }
 0x11c   :  { %v11735_v24 = vld [vmem:[%s14857_s0 + $0xdb8] sm:$0xff]   ;;  %11102 = vst [vmem:[%s14858_s1 + $0xdb8] sm:$0xff] %v11734_v23 }
 0x11d   :  { %v11736_v25 = vld [vmem:[%s14857_s0 + $0x9b8] sm:$0xff]   ;;  %11106 = vst [vmem:[%s14858_s1 + $0x2b8] sm:$0xff] %v11735_v24 }
 0x11e   :  { %v11737_v26 = vld [vmem:[%s14857_s0 + $0x5b8] sm:$0xff]   ;;  %11110 = vst [vmem:[%s14858_s1 + $0x6b8] sm:$0xff] %v11736_v25 }
 0x11f   :  { %v11738_v27 = vld [vmem:[%s14857_s0 + $0x1b8] sm:$0xff]   ;;  %11114 = vst [vmem:[%s14858_s1 + $0xab8] sm:$0xff] %v11737_v26 }
 0x120   :  { %v11739_v28 = vld [vmem:[%s14857_s0 + $0xcb8] sm:$0xff]   ;;  %11118 = vst [vmem:[%s14858_s1 + $0xeb8] sm:$0xff] %v11738_v27 }
 0x121   :  { %v11740_v29 = vld [vmem:[%s14857_s0 + $0x8b8] sm:$0xff]   ;;  %11122 = vst [vmem:[%s14858_s1 + $0x3b8] sm:$0xff] %v11739_v28 }
 0x122   :  { %v11741_v30 = vld [vmem:[%s14857_s0 + $0x4b8] sm:$0xff]   ;;  %11126 = vst [vmem:[%s14858_s1 + $0x7b8] sm:$0xff] %v11740_v29 }
 0x123   :  { %v11742_v31 = vld [vmem:[%s14857_s0 + $0xb8] sm:$0xff]   ;;  %11130 = vst [vmem:[%s14858_s1 + $0xbb8] sm:$0xff] %v11741_v30 }
 0x124   :  { %v11743_v32 = vld [vmem:[%s14857_s0 + $0xfd8] sm:$0xff]   ;;  %11134 = vst [vmem:[%s14858_s1 + $0xfb8] sm:$0xff] %v11742_v31 }
 0x125   :  { %v11744_v33 = vld [vmem:[%s14857_s0 + $0xbd8] sm:$0xff]   ;;  %11138 = vst [vmem:[%s14858_s1 + $0xd8] sm:$0xff] %v11743_v32 }
 0x126   :  { %v11745_v34 = vld [vmem:[%s14857_s0 + $0x7d8] sm:$0xff]   ;;  %11142 = vst [vmem:[%s14858_s1 + $0x4d8] sm:$0xff] %v11744_v33 }
 0x127   :  { %v11746_v35 = vld [vmem:[%s14857_s0 + $0x3d8] sm:$0xff]   ;;  %11146 = vst [vmem:[%s14858_s1 + $0x8d8] sm:$0xff] %v11745_v34 }
 0x128   :  { %v11747_v36 = vld [vmem:[%s14857_s0 + $0xed8] sm:$0xff]   ;;  %11150 = vst [vmem:[%s14858_s1 + $0xcd8] sm:$0xff] %v11746_v35 }
 0x129   :  { %v11748_v37 = vld [vmem:[%s14857_s0 + $0xad8] sm:$0xff]   ;;  %11154 = vst [vmem:[%s14858_s1 + $0x1d8] sm:$0xff] %v11747_v36 }
 0x12a   :  { %v11749_v38 = vld [vmem:[%s14857_s0 + $0x6d8] sm:$0xff]   ;;  %11158 = vst [vmem:[%s14858_s1 + $0x5d8] sm:$0xff] %v11748_v37 }
 0x12b   :  { %v11750_v39 = vld [vmem:[%s14857_s0 + $0x2d8] sm:$0xff]   ;;  %11162 = vst [vmem:[%s14858_s1 + $0x9d8] sm:$0xff] %v11749_v38 }
 0x12c   :  { %v11751_v40 = vld [vmem:[%s14857_s0 + $0xdd8] sm:$0xff]   ;;  %11166 = vst [vmem:[%s14858_s1 + $0xdd8] sm:$0xff] %v11750_v39 }
 0x12d   :  { %v11752_v41 = vld [vmem:[%s14857_s0 + $0x9d8] sm:$0xff]   ;;  %11170 = vst [vmem:[%s14858_s1 + $0x2d8] sm:$0xff] %v11751_v40 }
 0x12e   :  { %v11753_v42 = vld [vmem:[%s14857_s0 + $0x5d8] sm:$0xff]   ;;  %11174 = vst [vmem:[%s14858_s1 + $0x6d8] sm:$0xff] %v11752_v41 }
 0x12f   :  { %v11754_v43 = vld [vmem:[%s14857_s0 + $0x1d8] sm:$0xff]   ;;  %11178 = vst [vmem:[%s14858_s1 + $0xad8] sm:$0xff] %v11753_v42 }
 0x130   :  { %v11755_v44 = vld [vmem:[%s14857_s0 + $0xcd8] sm:$0xff]   ;;  %11182 = vst [vmem:[%s14858_s1 + $0xed8] sm:$0xff] %v11754_v43 }
 0x131   :  { %v11756_v45 = vld [vmem:[%s14857_s0 + $0x8d8] sm:$0xff]   ;;  %11186 = vst [vmem:[%s14858_s1 + $0x3d8] sm:$0xff] %v11755_v44 }
 0x132   :  { %v11757_v46 = vld [vmem:[%s14857_s0 + $0x4d8] sm:$0xff]   ;;  %11190 = vst [vmem:[%s14858_s1 + $0x7d8] sm:$0xff] %v11756_v45 }
 0x133   :  { %v11758_v47 = vld [vmem:[%s14857_s0 + $0xd8] sm:$0xff]   ;;  %11194 = vst [vmem:[%s14858_s1 + $0xbd8] sm:$0xff] %v11757_v46 }
 0x134   :  { %v11759_v48 = vld [vmem:[%s14857_s0 + $0xff8] sm:$0xff]   ;;  %11198 = vst [vmem:[%s14858_s1 + $0xfd8] sm:$0xff] %v11758_v47 }
 0x135   :  { %v11760_v49 = vld [vmem:[%s14857_s0 + $0xbf8] sm:$0xff]   ;;  %11202 = vst [vmem:[%s14858_s1 + $0xf8] sm:$0xff] %v11759_v48 }
 0x136   :  { %v11761_v50 = vld [vmem:[%s14857_s0 + $0x7f8] sm:$0xff]   ;;  %11206 = vst [vmem:[%s14858_s1 + $0x4f8] sm:$0xff] %v11760_v49 }
 0x137   :  { %v11762_v51 = vld [vmem:[%s14857_s0 + $0x3f8] sm:$0xff]   ;;  %11210 = vst [vmem:[%s14858_s1 + $0x8f8] sm:$0xff] %v11761_v50 }
 0x138   :  { %v11763_v52 = vld [vmem:[%s14857_s0 + $0xef8] sm:$0xff]   ;;  %11214 = vst [vmem:[%s14858_s1 + $0xcf8] sm:$0xff] %v11762_v51 }
 0x139   :  { %v11764_v53 = vld [vmem:[%s14857_s0 + $0xaf8] sm:$0xff]   ;;  %11218 = vst [vmem:[%s14858_s1 + $0x1f8] sm:$0xff] %v11763_v52 }
 0x13a   :  { %v11765_v54 = vld [vmem:[%s14857_s0 + $0x6f8] sm:$0xff]   ;;  %11222 = vst [vmem:[%s14858_s1 + $0x5f8] sm:$0xff] %v11764_v53 }
 0x13b   :  { %v11766_v55 = vld [vmem:[%s14857_s0 + $0x2f8] sm:$0xff]   ;;  %11226 = vst [vmem:[%s14858_s1 + $0x9f8] sm:$0xff] %v11765_v54 }
 0x13c   :  { %v11767_v56 = vld [vmem:[%s14857_s0 + $0xdf8] sm:$0xff]   ;;  %11230 = vst [vmem:[%s14858_s1 + $0xdf8] sm:$0xff] %v11766_v55 }
 0x13d   :  { %v11768_v57 = vld [vmem:[%s14857_s0 + $0x9f8] sm:$0xff]   ;;  %11234 = vst [vmem:[%s14858_s1 + $0x2f8] sm:$0xff] %v11767_v56 }
 0x13e   :  { %v11769_v58 = vld [vmem:[%s14857_s0 + $0x5f8] sm:$0xff]   ;;  %11238 = vst [vmem:[%s14858_s1 + $0x6f8] sm:$0xff] %v11768_v57 }
 0x13f   :  { %v11770_v59 = vld [vmem:[%s14857_s0 + $0x1f8] sm:$0xff]   ;;  %11242 = vst [vmem:[%s14858_s1 + $0xaf8] sm:$0xff] %v11769_v58 }
 0x140   :  { %v11771_v60 = vld [vmem:[%s14857_s0 + $0xcf8] sm:$0xff]   ;;  %11246 = vst [vmem:[%s14858_s1 + $0xef8] sm:$0xff] %v11770_v59 }
 0x141   :  { %v11772_v61 = vld [vmem:[%s14857_s0 + $0x8f8] sm:$0xff]   ;;  %11250 = vst [vmem:[%s14858_s1 + $0x3f8] sm:$0xff] %v11771_v60 }
 0x142   :  { %v11773_v62 = vld [vmem:[%s14857_s0 + $0x4f8] sm:$0xff]   ;;  %11254 = vst [vmem:[%s14858_s1 + $0x7f8] sm:$0xff] %v11772_v61 }
 0x143   :  { %v11774_v63 = vld [vmem:[%s14857_s0 + $0xf8] sm:$0xff]   ;;  %11258 = vst [vmem:[%s14858_s1 + $0xbf8] sm:$0xff] %v11773_v62 }
 0x144   :  { %11262 = vst [vmem:[%s14858_s1 + $0xff8] sm:$0xff] %v11774_v63 }

// kernel: encoder_forward.15
= control target key start
LH: loop header
LB: loop body
LE: loop exit
PB: predicated region body
PF: predicated region fallthrough
CT: control target
= control target key end

     0   :  { %vm727_vm0 = vcmask 64512   ;;  %s1198_s1 = inlined_call_operand.vmem [shape: bf16[1024,8], index: 1, kind: input, shape index: {}]   ;;  %s1199_s0 = inlined_call_operand.vmem [shape: bf16[8,1024], index: 0, kind: input, shape index: {}]   ;;  %s1200_s2 = inlined_call_operand.vmem [shape: f32[1,8], index: 2, kind: input, shape index: {}]   ;;  %s1201_s3 = inlined_call_operand.vmem [shape: f32[8,8], index: 3, kind: output, shape index: {}]  }
   0x1   :  { %v894_v0 = vld [vmem:[%s1198_s1 + $0x78] sm:$0xff]   ;;  %v898_v4 = vld [vmem:[%s1198_s1 + $0x70] sm:$0xff]   ;;  %v902_v8 = vld [vmem:[%s1198_s1 + $0x68] sm:$0xff]  }
   0x2   :  { %v895_v1 = vld [vmem:[%s1198_s1 + $0xf8] sm:$0xff]   ;;  %806 = vmatprep.subr.bf16.mxu0 %v894_v0  ;;  %v899_v5 = vld [vmem:[%s1198_s1 + $0xf0] sm:$0xff]   ;;  %v903_v9 = vld [vmem:[%s1198_s1 + $0xe8] sm:$0xff]  }
   0x3   :  { %v896_v2 = vld [vmem:[%s1198_s1 + $0x38] sm:$0xff]   ;;  %828 = vmatprep.subr.bf16.mxu1 %v895_v1  ;;  %v900_v6 = vld [vmem:[%s1198_s1 + $0x30] sm:$0xff]   ;;  %v904_v10 = vld [vmem:[%s1198_s1 + $0x28] sm:$0xff]  }
   0x4   :  { %v897_v3 = vld [vmem:[%s1198_s1 + $0xb8] sm:$0xff]   ;;  %807 = vmatpush3.bf16.msra.mxu0 %v896_v2  ;;  %v901_v7 = vld [vmem:[%s1198_s1 + $0xb0] sm:$0xff]   ;;  %v905_v11 = vld [vmem:[%s1198_s1 + $0xa8] sm:$0xff]  }
   0x5   :  { %829 = vmatpush3.bf16.msra.mxu1 %v897_v3  ;;  %808 = vmatprep.subr.bf16.mxu0 %v898_v4  ;;  %v906_v12 = vld [vmem:[%s1198_s1 + $0x60] sm:$0xff]   ;;  %v910_v16 = vld [vmem:[%s1198_s1 + $0x58] sm:$0xff]   ;;  %v914_v20 = vld [vmem:[%s1198_s1 + $0x50] sm:$0xff]  }
   0x6   :  { %830 = vmatprep.subr.bf16.mxu1 %v899_v5  ;;  %v907_v13 = vld [vmem:[%s1198_s1 + $0xe0] sm:$0xff]   ;;  %v911_v17 = vld [vmem:[%s1198_s1 + $0xd8] sm:$0xff]   ;;  %v915_v21 = vld [vmem:[%s1198_s1 + $0xd0] sm:$0xff]  }
   0x7   :  { %v908_v14 = vld [vmem:[%s1198_s1 + $0x20] sm:$0xff]   ;;  %v912_v18 = vld [vmem:[%s1198_s1 + $0x18] sm:$0xff]   ;;  %v916_v22 = vld [vmem:[%s1198_s1 + $0x10] sm:$0xff]  }
   0x8   :  { %809 = vmatpush3.bf16.msra.mxu0 %v900_v6  ;;  %v909_v15 = vld [vmem:[%s1198_s1 + $0xa0] sm:$0xff]   ;;  %v913_v19 = vld [vmem:[%s1198_s1 + $0x98] sm:$0xff]   ;;  %v917_v23 = vld [vmem:[%s1198_s1 + $0x90] sm:$0xff]  }
   0x9   :  { %831 = vmatpush3.bf16.msra.mxu1 %v901_v7  ;;  %810 = vmatprep.subr.bf16.mxu0 %v902_v8  ;;  %v918_v24 = vld [vmem:[%s1198_s1 + $0x48] sm:$0xff]   ;;  %v922_v28 = vld [vmem:[%s1198_s1 + $0x40] sm:$0xff]   ;;  %v930_v38 = vld [vmem:[%s1198_s1 + $0x178] sm:$0xff]  }
   0xa   :  { %832 = vmatprep.subr.bf16.mxu1 %v903_v9  ;;  %v919_v25 = vld [vmem:[%s1198_s1 + $0xc8] sm:$0xff]   ;;  %v923_v29 = vld [vmem:[%s1198_s1 + $0xc0] sm:$0xff]   ;;  %v931_v39 = vld [vmem:[%s1198_s1 + $0x1f8] sm:$0xff]  }
   0xb   :  { %v920_v26 = vld [vmem:[%s1198_s1 + $0x8] sm:$0xff]   ;;  %v924_v30 = vld [vmem:[%s1198_s1] sm:$0xff]   ;;  %v932_v40 = vld [vmem:[%s1198_s1 + $0x138] sm:$0xff]  }
   0xc   :  { %811 = vmatpush3.bf16.msra.mxu0 %v904_v10  ;;  %v921_v27 = vld [vmem:[%s1198_s1 + $0x88] sm:$0xff]   ;;  %v925_v31 = vld [vmem:[%s1198_s1 + $0x80] sm:$0xff]   ;;  %v933_v41 = vld [vmem:[%s1198_s1 + $0x1b8] sm:$0xff]  }
   0xd   :  { %833 = vmatpush3.bf16.msra.mxu1 %v905_v11  ;;  %812 = vmatprep.subr.bf16.mxu0 %v906_v12  ;;  %v15_v32 = vld [vmem:[%s1199_s0] sm:$0xff]  ;;  %v16_v33 = vld [vmem:[%s1199_s0 + $0x8] sm:$0xff]  ;;  %v934_v42 = vld [vmem:[%s1198_s1 + $0x170] sm:$0xff]  }
   0xe   :  { %834 = vmatprep.subr.bf16.mxu1 %v907_v13  ;;  %v734_v34 = vcombine.low %v15_v32, %v15_v32  ;;  %v735_v35 = vcombine.high %v15_v32, %v15_v32  ;;  %v736_v36 = vcombine.low %v16_v33, %v16_v33  ;;  %v737_v37 = vcombine.high %v16_v33, %v16_v33  ;;  %v935_v43 = vld [vmem:[%s1198_s1 + $0x1f0] sm:$0xff]   ;;  %v938_v46 = vld [vmem:[%s1198_s1 + $0x168] sm:$0xff]   ;;  %v942_v50 = vld [vmem:[%s1198_s1 + $0x160] sm:$0xff]  }
   0xf   :  { %v936_v44 = vld [vmem:[%s1198_s1 + $0x130] sm:$0xff]   ;;  %v939_v47 = vld [vmem:[%s1198_s1 + $0x1e8] sm:$0xff]   ;;  %v943_v51 = vld [vmem:[%s1198_s1 + $0x1e0] sm:$0xff]  }
  0x10   :  { %813 = vmatpush3.bf16.msra.mxu0 %v908_v14  ;;  %598 = vmatprep.mubr.bf16.mxu0 %v735_v35  ;;  %v937_v45 = vld [vmem:[%s1198_s1 + $0x1b0] sm:$0xff]   ;;  %v940_v48 = vld [vmem:[%s1198_s1 + $0x128] sm:$0xff]   ;;  %v944_v52 = vld [vmem:[%s1198_s1 + $0x120] sm:$0xff]  }
  0x11   :  { %835 = vmatpush3.bf16.msra.mxu1 %v909_v15  ;;  %814 = vmatprep.subr.bf16.mxu0 %v910_v16  ;;  %v941_v49 = vld [vmem:[%s1198_s1 + $0x1a8] sm:$0xff]   ;;  %v945_v53 = vld [vmem:[%s1198_s1 + $0x1a0] sm:$0xff]   ;;  %v946_v54 = vld [vmem:[%s1198_s1 + $0x158] sm:$0xff]  }
  0x12   :  { %836 = vmatprep.subr.bf16.mxu1 %v911_v17  ;;  %638 = vmatprep.mubr.bf16.mxu1 %v737_v37  ;;  %v947_v55 = vld [vmem:[%s1198_s1 + $0x1d8] sm:$0xff]   ;;  %v950_v58 = vld [vmem:[%s1198_s1 + $0x150] sm:$0xff]   ;;  %v954_v62 = vld [vmem:[%s1198_s1 + $0x148] sm:$0xff]  }
  0x13   :  { %v948_v56 = vld [vmem:[%s1198_s1 + $0x118] sm:$0xff]   ;;  %v951_v59 = vld [vmem:[%s1198_s1 + $0x1d0] sm:$0xff]   ;;  %v955_v63 = vld [vmem:[%s1198_s1 + $0x1c8] sm:$0xff]  }
  0x14   :  { %815 = vmatpush3.bf16.msra.mxu0 %v912_v18  ;;  %v949_v57 = vld [vmem:[%s1198_s1 + $0x198] sm:$0xff]   ;;  %v952_v60 = vld [vmem:[%s1198_s1 + $0x110] sm:$0xff]   ;;  %v956_v0 = vld [vmem:[%s1198_s1 + $0x108] sm:$0xff]  }
  0x15   :  { %837 = vmatpush3.bf16.msra.mxu1 %v913_v19  ;;  %816 = vmatprep.subr.bf16.mxu0 %v914_v20  ;;  %v953_v61 = vld [vmem:[%s1198_s1 + $0x190] sm:$0xff]   ;;  %v957_v1 = vld [vmem:[%s1198_s1 + $0x188] sm:$0xff]   ;;  %v958_v2 = vld [vmem:[%s1198_s1 + $0x140] sm:$0xff]  }
  0x16   :  { %838 = vmatprep.subr.bf16.mxu1 %v915_v21  ;;  %v959_v3 = vld [vmem:[%s1198_s1 + $0x1c0] sm:$0xff]   ;;  %v17_v6 = vld [vmem:[%s1199_s0 + $0x10] sm:$0xff]  ;;  %v18_v9 = vld [vmem:[%s1199_s0 + $0x18] sm:$0xff] }
  0x17   :  { %v960_v4 = vld [vmem:[%s1198_s1 + $0x100] sm:$0xff]   ;;  %v738_v7 = vcombine.low %v17_v6, %v17_v6  ;;  %v739_v8 = vcombine.high %v17_v6, %v17_v6  ;;  %v740_v10 = vcombine.low %v18_v9, %v18_v9  ;;  %v741_v11 = vcombine.high %v18_v9, %v18_v9 }
  0x18   :  { %817 = vmatpush3.bf16.msra.mxu0 %v916_v22  ;;  %v961_v5 = vld [vmem:[%s1198_s1 + $0x180] sm:$0xff]  }
  0x19   :  { %839 = vmatpush3.bf16.msra.mxu1 %v917_v23  ;;  %818 = vmatprep.subr.bf16.mxu0 %v918_v24  ;;  %v733_v21 = vld [vmem:[%s1200_s2] ss:$0 sm:$0xff] }
  0x1a   :  { %840 = vmatprep.subr.bf16.mxu1 %v919_v25 }
  0x1c   :  { %819 = vmatpush3.bf16.msra.mxu0 %v920_v26 }
  0x1d   :  { %841 = vmatpush3.bf16.msra.mxu1 %v921_v27  ;;  %820 = vmatprep.subr.bf16.mxu0 %v922_v28 }
  0x1e   :  { %842 = vmatprep.subr.bf16.mxu1 %v923_v29 }
  0x20   :  { %821 = vmatpush3.bf16.msra.mxu0 %v924_v30 }
  0x21   :  { %843 = vmatpush3.bf16.msra.mxu1 %v925_v31  ;;  %850 = vmatprep.subr.bf16.mxu0 %v930_v38 }
  0x22   :  { %872 = vmatprep.subr.bf16.mxu1 %v931_v39 }
  0x23   :  { %599 = vmatmul.mubr.bf16.vlgmr.msra.gmra.mxu0 %v734_v34 }
  0x24   :  { %639 = vmatmul.mubr.bf16.vlgmr.msra.gmra.mxu1 %v736_v36  ;;  %851 = vmatpush3.bf16.msra.mxu0 %v932_v40 }
  0x25   :  { %873 = vmatpush3.bf16.msra.mxu1 %v933_v41  ;;  %852 = vmatprep.subr.bf16.mxu0 %v934_v42 }
  0x26   :  { %874 = vmatprep.subr.bf16.mxu1 %v935_v43  ;;  %678 = vmatprep.mubr.bf16.mxu0 %v739_v8 }
  0x27   :  { %718 = vmatprep.mubr.bf16.mxu1 %v741_v11 }
  0x28   :  { %853 = vmatpush3.bf16.msra.mxu0 %v936_v44 }
  0x29   :  { %875 = vmatpush3.bf16.msra.mxu1 %v937_v45  ;;  %854 = vmatprep.subr.bf16.mxu0 %v938_v46 }
  0x2a   :  { %876 = vmatprep.subr.bf16.mxu1 %v939_v47 }
  0x2c   :  { %855 = vmatpush3.bf16.msra.mxu0 %v940_v48 }
  0x2d   :  { %877 = vmatpush3.bf16.msra.mxu1 %v941_v49  ;;  %856 = vmatprep.subr.bf16.mxu0 %v942_v50 }
  0x2e   :  { %878 = vmatprep.subr.bf16.mxu1 %v943_v51 }
  0x30   :  { %857 = vmatpush3.bf16.msra.mxu0 %v944_v52 }
  0x31   :  { %879 = vmatpush3.bf16.msra.mxu1 %v945_v53  ;;  %858 = vmatprep.subr.bf16.mxu0 %v946_v54 }
  0x32   :  { %880 = vmatprep.subr.bf16.mxu1 %v947_v55 }
  0x34   :  { %859 = vmatpush3.bf16.msra.mxu0 %v948_v56 }
  0x35   :  { %881 = vmatpush3.bf16.msra.mxu1 %v949_v57  ;;  %860 = vmatprep.subr.bf16.mxu0 %v950_v58 }
  0x36   :  { %882 = vmatprep.subr.bf16.mxu1 %v951_v59 }
  0x38   :  { %861 = vmatpush3.bf16.msra.mxu0 %v952_v60 }
  0x39   :  { %883 = vmatpush3.bf16.msra.mxu1 %v953_v61  ;;  %862 = vmatprep.subr.bf16.mxu0 %v954_v62 }
  0x3a   :  { %884 = vmatprep.subr.bf16.mxu1 %v955_v63 }
  0x3c   :  { %863 = vmatpush3.bf16.msra.mxu0 %v956_v0 }
  0x3d   :  { %885 = vmatpush3.bf16.msra.mxu1 %v957_v1  ;;  %864 = vmatprep.subr.bf16.mxu0 %v958_v2 }
  0x3e   :  { %886 = vmatprep.subr.bf16.mxu1 %v959_v3 }
  0x40   :  { %865 = vmatpush3.bf16.msra.mxu0 %v960_v4 }
  0x41   :  { %887 = vmatpush3.bf16.msra.mxu1 %v961_v5 }
  0x43   :  { %679 = vmatmul.mubr.bf16.vlgmr.msra.gmra.mxu0 %v738_v7 }
  0x44   :  { %719 = vmatmul.mubr.bf16.vlgmr.msra.gmra.mxu1 %v740_v10 }
  0xe3   :  { %v822_v12 = vpop.f32.mrf.mxu0 }
  0xe4   :  { %v844_v13 = vpop.f32.mrf.mxu1 }
  0xe5   :  { %v823_v14 = vpop.f32.mrf.mxu0 }
  0xe6   :  { %v845_v15 = vpop.f32.mrf.mxu1  ;;  %v824_v20 = vadd.f32 %v823_v14, %v822_v12 }
  0xe7   :  { %v825_v16 = vpop.f32.mrf.mxu0  ;;  %v846_v23 = vadd.f32 %v845_v15, %v844_v13 }
  0xe8   :  { %v847_v17 = vpop.f32.mrf.mxu1  ;;  %v601_v22 = vadd.f32 %v824_v20, %v733_v21 }
  0xe9   :  { %v826_v18 = vpop.f32.mrf.mxu0 }
  0xea   :  { %v848_v19 = vpop.f32.mrf.mxu1  ;;  %v641_v28 = vadd.f32 %v846_v23, %v601_v22 }
 0x103   :  { %v866_v24 = vpop.f32.mrf.mxu0 }
 0x104   :  { %v888_v25 = vpop.f32.mrf.mxu1 }
 0x105   :  { %v867_v26 = vpop.f32.mrf.mxu0 }
 0x106   :  { %v889_v27 = vpop.f32.mrf.mxu1  ;;  %v868_v29 = vadd.f32 %v867_v26, %v866_v24 }
 0x107   :  { %v869_v30 = vpop.f32.mrf.mxu0  ;;  %v890_v33 = vadd.f32 %v889_v27, %v888_v25 }
 0x108   :  { %v891_v31 = vpop.f32.mrf.mxu1  ;;  %v681_v32 = vadd.f32 %v868_v29, %v641_v28 }
 0x109   :  { %v870_v34 = vpop.f32.mrf.mxu0 }
 0x10a   :  { %v892_v35 = vpop.f32.mrf.mxu1  ;;  %v721_v36 = vadd.f32 %v890_v33, %v681_v32 }
 0x10c   :  { %966 = vtanh.f32 %v721_v36 }
 0x119   :  { %v967_v37 = vpop.eup %966 }
 0x11a   :  { %728 = vst.msk [vmem:[%s1201_s3] sm:$0xff] %vm727_vm0, %v967_v37 }

</bundles_post_ra>
